<compile_context>
chip_gen: v7x
topology: tpu7x:2x2x1
jax: 0.10.0
libtpu: 0.0.40
codegen_flags: <defaults>
</compile_context>

<pallas_src>
import numpy as np
import jax
import jax.numpy as jnp
from jax import lax
from jax.experimental import pallas as pl
from jax.experimental.pallas import tpu as pltpu


# ----------------------------- Pallas kernels -------------------------------

def _elu(v):
    # ELU(alpha=1): x if x>0 else exp(x)-1.
    # TODO(synk): expm1 would be marginally more accurate near 0-, but exp is the
    # safely-lowered Mosaic op; the difference (~1e-7) is far below tolerance.
    return jnp.where(v > 0.0, v, jnp.exp(jnp.minimum(v, 0.0)) - 1.0)


def _linear_kernel(x_ref, w_ref, b_ref, o_ref):
    o_ref[...] = (jnp.dot(x_ref[...], w_ref[...],
                          preferred_element_type=jnp.float32)
                  + b_ref[...])


def _matmul_kernel(x_ref, w_ref, o_ref):
    # ConvT1 tap-packed matmul (no bias here: bias is added once per output
    # pixel, after the overlap-add, fused into the next kernel's prologue).
    o_ref[...] = jnp.dot(x_ref[...], w_ref[...],
                         preferred_element_type=jnp.float32)


def _elu_matmul_kernel(x_ref, b_ref, w_ref, o_ref):
    # ConvT2: fused elu(x + b_prev) prologue, then tap-packed matmul.
    x = _elu(x_ref[...] + b_ref[...])
    o_ref[...] = jnp.dot(x, w_ref[...], preferred_element_type=jnp.float32)


def _tail_kernel(x_ref, b2_ref, w3_ref, b3_ref, w4_ref, b4_ref, o_ref):
    # Fused ConvT3 + ConvT4 (both k==s==2 -> pixel shuffles, no overlap):
    #   x_act = elu(x + b2)                         (layer-2 epilogue)
    #   y3    = elu(x_act @ W3r + b3r)              (layer 3, taps packed in lanes)
    #   o     = y3 @ blockdiag(W4r) + b4r           (layer 4)
    x = _elu(x_ref[...] + b2_ref[...])
    y3 = _elu(jnp.dot(x, w3_ref[...], preferred_element_type=jnp.float32)
              + b3_ref[...])
    o_ref[...] = (jnp.dot(y3, w4_ref[...], preferred_element_type=jnp.float32)
                  + b4_ref[...])


# ------------------------------ tiling helpers -------------------------------

def _round_up(x, m):
    return (x + m - 1) // m * m


def _row_tiling(m, max_tile=1024, min_blocks=2):
    """Row tile (multiple of 8) and padded row count giving >=min_blocks blocks
    when possible (v7x megacore) while keeping tiles <= max_tile."""
    nb = max(min_blocks, -(-m // max_tile))
    tm = max(8, _round_up(-(-m // nb), 8))
    m_pad = _round_up(m, tm)
    return tm, m_pad


def _col_tiling(n, max_tile):
    """Column tile (multiple of 128 when split) for wide weight/output blocks."""
    if n <= max_tile:
        return n, n, 1
    nb = -(-n // max_tile)
    tn = max(128, _round_up(-(-n // nb), 128))
    n_pad = _round_up(n, tn)
    return tn, n_pad, n_pad // tn


def _tiled_matmul_call(kernel, x2d, extras, n_out_cols, *,
                       max_row_tile=1024, max_col_tile=512):
    """Row/column-tiled pallas_call for the tap-packed matmul kernels.

    x2d:    (M, Cin) activation rows; tiled along rows (zero-padded to a
            multiple of the row tile; garbage rows are finite and sliced off).
    extras: sequence of (arr2d, col_tiled).  col_tiled arrays have n_out_cols
            columns and are tiled along columns together with the output
            (zero-padded if needed); the rest are small whole-array-resident
            operands (biases, the tiny layer-3 weight).
    Grid is (col_block, row_block) with rows fastest, so each weight column
    block is DMA'd once total and pipelined against the previous block's
    compute; only the small activation tile is re-fetched per column block.
    """
    m, cin = x2d.shape
    tm, m_pad = _row_tiling(m, max_row_tile)
    if m_pad != m:
        x2d = jnp.pad(x2d, ((0, m_pad - m), (0, 0)))
    nb_r = m_pad // tm

    tn, n_pad, nb_c = _col_tiling(n_out_cols, max_col_tile)

    ops = [x2d]
    in_specs = [pl.BlockSpec((tm, cin), lambda jc, ir: (ir, 0))]
    for arr, col_tiled in extras:
        assert arr.ndim == 2
        if col_tiled:
            assert arr.shape[1] == n_out_cols
            if n_pad != n_out_cols:
                arr = jnp.pad(arr, ((0, 0), (0, n_pad - n_out_cols)))
            in_specs.append(pl.BlockSpec((arr.shape[0], tn),
                                         lambda jc, ir: (0, jc)))
        else:
            in_specs.append(pl.BlockSpec(arr.shape, lambda jc, ir: (0, 0)))
        ops.append(arr)

    out = pl.pallas_call(
        kernel,
        out_shape=jax.ShapeDtypeStruct((m_pad, n_pad), jnp.float32),
        grid=(nb_c, nb_r),
        in_specs=in_specs,
        out_specs=pl.BlockSpec((tm, tn), lambda jc, ir: (ir, jc)),
        compiler_params=pltpu.CompilerParams(
            dimension_semantics=("parallel", "parallel")),
    )(*ops)
    return out[:m, :n_out_cols]


# ------------------------- col2im (overlap-add) glue --------------------------

def _col2im_overlap1(patches, bsz, h, w, k, s):
    """Scatter-add of tap-packed ConvTranspose patches for k == s + 1.

    patches: (bsz*h*w, k*k*c), columns ordered (kh, kw, c).
    Returns (bsz, (h-1)*s+k, (w-1)*s+k, c), WITHOUT bias (added downstream).
    """
    assert k == s + 1
    c = patches.shape[-1] // (k * k)
    ho, wo = (h - 1) * s + k, (w - 1) * s + k
    z = jnp.float32(0)

    p = patches.reshape(bsz, h, w, k, k, c)
    p = jnp.transpose(p, (0, 1, 3, 2, 4, 5))                 # (b, h, kh, w, kw, c)

    # rows: first s taps are a pixel shuffle, last tap overlaps the next block.
    body = p[:, :, :s].reshape(bsz, h * s, w, k, c)
    tail = p[:, :, s]                                        # (b, h, w, kw, c)
    rows = (lax.pad(body, z, ((0, 0, 0), (0, k - s, 0), (0, 0, 0), (0, 0, 0), (0, 0, 0)))
            + lax.pad(tail, z, ((0, 0, 0), (s, 0, s - 1), (0, 0, 0), (0, 0, 0), (0, 0, 0))))

    # cols: same decomposition along the width taps.
    body2 = rows[:, :, :, :s].reshape(bsz, ho, w * s, c)
    tail2 = rows[:, :, :, s]                                 # (b, ho, w, c)
    out = (lax.pad(body2, z, ((0, 0, 0), (0, 0, 0), (0, k - s, 0), (0, 0, 0)))
           + lax.pad(tail2, z, ((0, 0, 0), (0, 0, 0), (s, 0, s - 1), (0, 0, 0))))
    return out                                               # (b, ho, wo, c)


# --------------------------------- forward -----------------------------------

def conv_decoder_forward(params, x):
    """ConvDecoder forward.  x: (..., in_dim) -> (..., out_channels, 120, 160)."""
    bd = x.shape[:-1]                                        # flatten_batch
    xf = x.reshape(-1, x.shape[-1]).astype(jnp.float32)
    bsz, in_dim = xf.shape

    c1 = params["w1"].shape[0]          # 747
    c2 = params["w1"].shape[1]          # 64
    c3 = params["w2"].shape[1]          # 32
    c4 = params["w3"].shape[1]          # 16
    co = params["w4"].shape[1]          # out_channels
    H0, W0 = 3, 4                       # nn.Unflatten(-1, (747, 3, 4))
    H1, W1 = (H0 - 1) * 3 + 4, (W0 - 1) * 3 + 4    # 10, 13  (k=4, s=3)
    H2, W2 = (H1 - 1) * 3 + 4, (W1 - 1) * 3 + 4    # 31, 40  (k=4, s=3)
    HF, WF = H2 * 4, W2 * 4                        # 124, 160 (two k=2,s=2 shuffles)

    # ---- weight re-layout (small-tensor JAX glue, no activation traffic) ----
    # Permute Linear columns so Unflatten -> NHWC is a free reshape of h0.
    lin_w = jnp.transpose(params["lin_w"].reshape(in_dim, c1, H0, W0),
                          (0, 2, 3, 1)).reshape(in_dim, c1 * H0 * W0)
    lin_b = jnp.transpose(params["lin_b"].reshape(c1, H0, W0),
                          (1, 2, 0)).reshape(1, c1 * H0 * W0)
    # Tap-packed ConvTranspose weights: (Cin, Cout, Kh, Kw) -> (Cin, Kh*Kw*Cout).
    w1r = jnp.transpose(params["w1"], (0, 2, 3, 1)).reshape(c1, 16 * c2)
    w2r = jnp.transpose(params["w2"], (0, 2, 3, 1)).reshape(c2, 16 * c3)
    w3r = jnp.transpose(params["w3"], (0, 2, 3, 1)).reshape(c3, 4 * c4)
    w4r = jnp.transpose(params["w4"], (0, 2, 3, 1)).reshape(c4, 4 * co)
    # Block-diagonal layer-4 weight so layers 3+4 fuse into one kernel with a
    # single matmul (avoids in-kernel lane slicing / relayout).
    w4blk = jnp.kron(jnp.eye(4, dtype=jnp.float32), w4r)     # (4*c4, 16*co)
    b1 = params["b1"].reshape(1, c2)
    b2 = params["b2"].reshape(1, c3)
    b3r = jnp.tile(params["b3"], 4).reshape(1, 4 * c4)
    b4r = jnp.tile(params["b4"], 16).reshape(1, 16 * co)

    # ---- Linear (+ free Unflatten to NHWC), column-tiled over 8964 outputs ---
    h0 = _tiled_matmul_call(_linear_kernel, xf,
                            [(lin_w, True), (lin_b, True)], c1 * H0 * W0,
                            max_col_tile=1152)               # (B, 8964)
    x1 = h0.reshape(bsz * H0 * W0, c1)                       # NHWC rows

    # ---- ConvT1 747->64, k=4, s=3: tap-packed matmul + 1-pixel overlap-add ---
    p1 = _tiled_matmul_call(_matmul_kernel, x1, [(w1r, True)], 16 * c2)
    y1 = _col2im_overlap1(p1, bsz, H0, W0, 4, 3)             # (B,10,13,64) pre-bias

    # ---- ConvT2 64->32, k=4, s=3 with fused elu(x + b1) prologue -------------
    p2 = _tiled_matmul_call(_elu_matmul_kernel,
                            y1.reshape(bsz * H1 * W1, c2),
                            [(b1, False), (w2r, True)], 16 * c3)
    y2 = _col2im_overlap1(p2, bsz, H1, W1, 4, 3)             # (B,31,40,32) pre-bias

    # ---- ConvT3 + ConvT4 (k=2,s=2 pixel shuffles) fused in one kernel --------
    p34 = _tiled_matmul_call(_tail_kernel, y2.reshape(bsz * H2 * W2, c3),
                             [(b2, False), (w3r, False), (b3r, False),
                              (w4blk, True), (b4r, True)], 16 * co)

    # Depth-to-space x2, crop padding=(2,0), NCHW (pure layout glue).
    y = p34.reshape(bsz, H2, W2, 2, 2, 2, 2, co)             # (b,i,j,kh3,kw3,kh4,kw4,c)
    y = jnp.transpose(y, (0, 1, 3, 5, 2, 4, 6, 7)).reshape(bsz, HF, WF, co)
    y = y[:, 2:HF - 2, :, :]                                 # ConvT4 padding=(2, 0)
    y = jnp.transpose(y, (0, 3, 1, 2))                       # back to NCHW
    return y.reshape(bd + y.shape[1:])                       # unflatten_batch


# -------------------------- deterministic init -------------------------------

def init_params(key, in_dim, out_channels=3):
    def uni(k, shape, fan_in):
        bnd = 1.0 / np.sqrt(fan_in)
        return jax.random.uniform(k, shape, jnp.float32, -bnd, bnd)

    ks = jax.random.split(key, 10)
    return {
        "lin_w": uni(ks[0], (in_dim, 8964), in_dim),        # Linear(in_dim, 8964)
        "lin_b": uni(ks[1], (8964,), in_dim),
        "w1": uni(ks[2], (747, 64, 4, 4), 747),             # ConvT(747,64,k=4,s=3)
        "b1": uni(ks[3], (64,), 747 * 16),
        "w2": uni(ks[4], (64, 32, 4, 4), 64),                # ConvT(64,32,k=4,s=3)
        "b2": uni(ks[5], (32,), 64 * 16),
        "w3": uni(ks[6], (32, 16, 2, 2), 32),                # ConvT(32,16,k=2,s=2)
        "b3": uni(ks[7], (16,), 32 * 4),
        "w4": uni(ks[8], (16, out_channels, 2, 2), 16),      # ConvT(16,3,k=2,s=2,p=(2,0))
        "b4": uni(ks[9], (out_channels,), 16 * 4),
    }


# ----------------------------- numpy reference -------------------------------

def _ref_elu(x):
    return np.where(x > 0, x, np.expm1(np.minimum(x, 0.0)))


def _ref_conv_transpose2d(x, w, b, stride, padding):
    # x: (B, Cin, H, W), w: (Cin, Cout, Kh, Kw)  -- direct scatter formulation.
    bsz, cin, h, wd = x.shape
    _, cout, kh_sz, kw_sz = w.shape
    s = stride
    ho = (h - 1) * s + kh_sz
    wo = (wd - 1) * s + kw_sz
    y = np.zeros((bsz, cout, ho, wo), np.float32)
    for kh in range(kh_sz):
        for kw in range(kw_sz):
            c = np.einsum("bihw,io->bohw", x, w[:, :, kh, kw])
            y[:, :, kh:kh + (h - 1) * s + 1:s,
                    kw:kw + (wd - 1) * s + 1:s] += c
    y += b[None, :, None, None]
    ph, pw = padding
    return y[:, :, ph:ho - ph, pw:wo - pw]


def ref_forward(params, x):
    p = {k: np.asarray(v, np.float32) for k, v in params.items()}
    h = np.asarray(x, np.float32) @ p["lin_w"] + p["lin_b"]
    h = h.reshape(-1, 747, 3, 4)
    h = _ref_elu(_ref_conv_transpose2d(h, p["w1"], p["b1"], 3, (0, 0)))
    h = _ref_elu(_ref_conv_transpose2d(h, p["w2"], p["b2"], 3, (0, 0)))
    h = _ref_elu(_ref_conv_transpose2d(h, p["w3"], p["b3"], 2, (0, 0)))
    h = _ref_conv_transpose2d(h, p["w4"], p["b4"], 2, (2, 0))
    return h


# --------------------------------- main ---------------------------------------

if __name__ == "__main__":
    key = jax.random.PRNGKey(0)
    kp, kx = jax.random.split(key)
    in_dim = 32

    params = init_params(kp, in_dim)
    x = jax.random.normal(kx, (2, in_dim), jnp.float32)

    fwd = jax.jit(conv_decoder_forward)
    y = jax.block_until_ready(fwd(params, x))

    assert y.shape == (2, 3, 120, 160), y.shape
    assert y.dtype == jnp.float32

    # Tolerance accounts for single-pass bf16 MXU matmuls (default precision)
    # vs. the full-f32 NumPy reference; structural bugs produce errors >> 1e-2.
    y_ref = ref_forward(params, x)
    np.testing.assert_allclose(np.asarray(y), y_ref, rtol=2e-2, atol=1e-2)

    print("KERNEL_OK")
</pallas_src>

<mosaic_0001>
module attributes {stable_mosaic.version = 11 : i64} {
  func.func @_linear_kernel(%arg0: i32, %arg1: i32, %arg2: memref<8x32xf32, #tpu.memory_space<vmem>>, %arg3: memref<32x1152xf32, #tpu.memory_space<vmem>>, %arg4: memref<1x1152xf32, #tpu.memory_space<vmem>>, %arg5: memref<8x1152xf32, #tpu.memory_space<vmem>>) attributes {dimension_semantics = [#tpu.dimension_semantics<parallel>, #tpu.dimension_semantics<parallel>], iteration_bounds = array<i64: 8, 1>, scalar_prefetch = 0 : i64, scratch_operands = 0 : i64, tpu.core_type = #tpu.core_type<tc>, window_params = [{transform_indices = @transform_0, window_bounds = array<i64: 8, 32>}, {transform_indices = @transform_1, window_bounds = array<i64: 32, 1152>}, {transform_indices = @transform_2, window_bounds = array<i64: 1, 1152>}, {transform_indices = @transform_3, window_bounds = array<i64: 8, 1152>}]} {
    %c0 = arith.constant 0 : index
    %c0_0 = arith.constant 0 : index
    %0 = vector.load %arg2[%c0, %c0_0] : memref<8x32xf32, #tpu.memory_space<vmem>>, vector<8x32xf32>
    %c0_1 = arith.constant 0 : index
    %c0_2 = arith.constant 0 : index
    %1 = vector.load %arg3[%c0_1, %c0_2] : memref<32x1152xf32, #tpu.memory_space<vmem>>, vector<32x1152xf32>
    %cst = arith.constant dense<0.000000e+00> : vector<8x1152xf32>
    %2 = tpu.matmul %0, %1, %cst {dimension_numbers = #tpu.dot_dimension_numbers<[1], [0], [0], [1], [0, 0, 1, 1], [], []>} : vector<8x32xf32>, vector<32x1152xf32>, vector<8x1152xf32> -> vector<8x1152xf32>
    %c0_3 = arith.constant 0 : index
    %c0_4 = arith.constant 0 : index
    %3 = vector.load %arg4[%c0_3, %c0_4] : memref<1x1152xf32, #tpu.memory_space<vmem>>, vector<1x1152xf32>
    %4 = vector.broadcast %3 : vector<1x1152xf32> to vector<8x1152xf32>
    %5 = arith.addf %2, %4 : vector<8x1152xf32>
    %c0_5 = arith.constant 0 : index
    %c0_6 = arith.constant 0 : index
    %6 = vector.load %arg5[%c0_5, %c0_6] : memref<8x1152xf32, #tpu.memory_space<vmem>>, vector<8x1152xf32>
    tpu.vector_store %arg5[%c0_5, %c0_6], %5 {strides = array<i32>} : memref<8x1152xf32, #tpu.memory_space<vmem>>, vector<8x1152xf32>,
    return
  }
  func.func @transform_0(%arg0: i32, %arg1: i32) -> (i32, i32) {
    %c0_i32 = arith.constant 0 : i32
    %c0_i32_0 = arith.constant 0 : i32
    return %arg1, %c0_i32 : i32, i32
  }
  func.func @transform_1(%arg0: i32, %arg1: i32) -> (i32, i32) {
    %c0_i32 = arith.constant 0 : i32
    %c0_i32_0 = arith.constant 0 : i32
    return %c0_i32, %arg0 : i32, i32
  }
  func.func @transform_2(%arg0: i32, %arg1: i32) -> (i32, i32) {
    %c0_i32 = arith.constant 0 : i32
    %c0_i32_0 = arith.constant 0 : i32
    return %c0_i32, %arg0 : i32, i32
  }
  func.func @transform_3(%arg0: i32, %arg1: i32) -> (i32, i32) {
    %c0_i32 = arith.constant 0 : i32
    return %arg1, %arg0 : i32, i32
  }
}

module attributes {stable_mosaic.version = 11 : i64} {
  func.func @_matmul_kernel(%arg0: i32, %arg1: i32, %arg2: memref<16x747xf32, #tpu.memory_space<vmem>>, %arg3: memref<747x512xf32, #tpu.memory_space<vmem>>, %arg4: memref<16x512xf32, #tpu.memory_space<vmem>>) attributes {dimension_semantics = [#tpu.dimension_semantics<parallel>, #tpu.dimension_semantics<parallel>], iteration_bounds = array<i64: 2, 2>, scalar_prefetch = 0 : i64, scratch_operands = 0 : i64, tpu.core_type = #tpu.core_type<tc>, window_params = [{transform_indices = @transform_0, window_bounds = array<i64: 16, 747>}, {transform_indices = @transform_1, window_bounds = array<i64: 747, 512>}, {transform_indices = @transform_2, window_bounds = array<i64: 16, 512>}]} {
    %c0 = arith.constant 0 : index
    %c0_0 = arith.constant 0 : index
    %0 = vector.load %arg2[%c0, %c0_0] : memref<16x747xf32, #tpu.memory_space<vmem>>, vector<16x747xf32>
    %c0_1 = arith.constant 0 : index
    %c0_2 = arith.constant 0 : index
    %1 = vector.load %arg3[%c0_1, %c0_2] : memref<747x512xf32, #tpu.memory_space<vmem>>, vector<747x512xf32>
    %cst = arith.constant dense<0.000000e+00> : vector<16x512xf32>
    %2 = tpu.matmul %0, %1, %cst {dimension_numbers = #tpu.dot_dimension_numbers<[1], [0], [0], [1], [0, 0, 1, 1], [], []>} : vector<16x747xf32>, vector<747x512xf32>, vector<16x512xf32> -> vector<16x512xf32>
    %c0_3 = arith.constant 0 : index
    %c0_4 = arith.constant 0 : index
    %3 = vector.load %arg4[%c0_3, %c0_4] : memref<16x512xf32, #tpu.memory_space<vmem>>, vector<16x512xf32>
    tpu.vector_store %arg4[%c0_3, %c0_4], %2 {strides = array<i32>} : memref<16x512xf32, #tpu.memory_space<vmem>>, vector<16x512xf32>,
    return
  }
  func.func @transform_0(%arg0: i32, %arg1: i32) -> (i32, i32) {
    %c0_i32 = arith.constant 0 : i32
    %c0_i32_0 = arith.constant 0 : i32
    return %arg1, %c0_i32 : i32, i32
  }
  func.func @transform_1(%arg0: i32, %arg1: i32) -> (i32, i32) {
    %c0_i32 = arith.constant 0 : i32
    %c0_i32_0 = arith.constant 0 : i32
    return %c0_i32, %arg0 : i32, i32
  }
  func.func @transform_2(%arg0: i32, %arg1: i32) -> (i32, i32) {
    %c0_i32 = arith.constant 0 : i32
    return %arg1, %arg0 : i32, i32
  }
}

module attributes {stable_mosaic.version = 11 : i64} {
  func.func @_elu_matmul_kernel(%arg0: i32, %arg1: i32, %arg2: memref<136x64xf32, #tpu.memory_space<vmem>>, %arg3: memref<1x64xf32, #tpu.memory_space<vmem>>, %arg4: memref<64x512xf32, #tpu.memory_space<vmem>>, %arg5: memref<136x512xf32, #tpu.memory_space<vmem>>) attributes {dimension_semantics = [#tpu.dimension_semantics<parallel>, #tpu.dimension_semantics<parallel>], iteration_bounds = array<i64: 1, 2>, scalar_prefetch = 0 : i64, scratch_operands = 0 : i64, tpu.core_type = #tpu.core_type<tc>, window_params = [{transform_indices = @transform_0, window_bounds = array<i64: 136, 64>}, {pipeline_mode = #tpu.pipeline_mode<synchronous>, transform_indices = @transform_1, window_bounds = array<i64: 1, 64>}, {transform_indices = @transform_2, window_bounds = array<i64: 64, 512>}, {transform_indices = @transform_3, window_bounds = array<i64: 136, 512>}]} {
    %c0 = arith.constant 0 : index
    %c0_0 = arith.constant 0 : index
    %0 = vector.load %arg2[%c0, %c0_0] : memref<136x64xf32, #tpu.memory_space<vmem>>, vector<136x64xf32>
    %c0_1 = arith.constant 0 : index
    %c0_2 = arith.constant 0 : index
    %1 = vector.load %arg3[%c0_1, %c0_2] : memref<1x64xf32, #tpu.memory_space<vmem>>, vector<1x64xf32>
    %2 = vector.broadcast %1 : vector<1x64xf32> to vector<136x64xf32>
    %3 = arith.addf %0, %2 : vector<136x64xf32>
    %cst = arith.constant 0.000000e+00 : f32
    %4 = vector.broadcast %cst : f32 to vector<136x64xf32>
    %5 = arith.cmpf ogt, %3, %4 : vector<136x64xf32>
    %cst_3 = arith.constant 0.000000e+00 : f32
    %6 = vector.broadcast %cst_3 : f32 to vector<136x64xf32>
    %7 = arith.minimumf %3, %6 : vector<136x64xf32>
    %8 = math.exp %7 : vector<136x64xf32>
    %cst_4 = arith.constant 1.000000e+00 : f32
    %9 = vector.broadcast %cst_4 : f32 to vector<136x64xf32>
    %10 = arith.subf %8, %9 : vector<136x64xf32>
    %11 = arith.select %5, %3, %10 : vector<136x64xi1>, vector<136x64xf32>
    %c0_5 = arith.constant 0 : index
    %c0_6 = arith.constant 0 : index
    %12 = vector.load %arg4[%c0_5, %c0_6] : memref<64x512xf32, #tpu.memory_space<vmem>>, vector<64x512xf32>
    %cst_7 = arith.constant dense<0.000000e+00> : vector<136x512xf32>
    %13 = tpu.matmul %11, %12, %cst_7 {dimension_numbers = #tpu.dot_dimension_numbers<[1], [0], [0], [1], [0, 0, 1, 1], [], []>} : vector<136x64xf32>, vector<64x512xf32>, vector<136x512xf32> -> vector<136x512xf32>
    %c0_8 = arith.constant 0 : index
    %c0_9 = arith.constant 0 : index
    %14 = vector.load %arg5[%c0_8, %c0_9] : memref<136x512xf32, #tpu.memory_space<vmem>>, vector<136x512xf32>
    tpu.vector_store %arg5[%c0_8, %c0_9], %13 {strides = array<i32>} : memref<136x512xf32, #tpu.memory_space<vmem>>, vector<136x512xf32>,
    return
  }
  func.func @transform_0(%arg0: i32, %arg1: i32) -> (i32, i32) {
    %c0_i32 = arith.constant 0 : i32
    %c0_i32_0 = arith.constant 0 : i32
    return %arg1, %c0_i32 : i32, i32
  }
  func.func @transform_1(%arg0: i32, %arg1: i32) -> (i32, i32) {
    %c0_i32 = arith.constant 0 : i32
    %c0_i32_0 = arith.constant 0 : i32
    %c0_i32_1 = arith.constant 0 : i32
    return %c0_i32, %c0_i32_0 : i32, i32
  }
  func.func @transform_2(%arg0: i32, %arg1: i32) -> (i32, i32) {
    %c0_i32 = arith.constant 0 : i32
    %c0_i32_0 = arith.constant 0 : i32
    return %c0_i32, %arg0 : i32, i32
  }
  func.func @transform_3(%arg0: i32, %arg1: i32) -> (i32, i32) {
    %c0_i32 = arith.constant 0 : i32
    return %arg1, %arg0 : i32, i32
  }
}

module attributes {stable_mosaic.version = 11 : i64} {
  func.func @_tail_kernel(%arg0: i32, %arg1: i32, %arg2: memref<832x32xf32, #tpu.memory_space<vmem>>, %arg3: memref<1x32xf32, #tpu.memory_space<vmem>>, %arg4: memref<32x64xf32, #tpu.memory_space<vmem>>, %arg5: memref<1x64xf32, #tpu.memory_space<vmem>>, %arg6: memref<64x48xf32, #tpu.memory_space<vmem>>, %arg7: memref<1x48xf32, #tpu.memory_space<vmem>>, %arg8: memref<832x48xf32, #tpu.memory_space<vmem>>) attributes {dimension_semantics = [#tpu.dimension_semantics<parallel>, #tpu.dimension_semantics<parallel>], iteration_bounds = array<i64: 1, 3>, scalar_prefetch = 0 : i64, scratch_operands = 0 : i64, tpu.core_type = #tpu.core_type<tc>, window_params = [{transform_indices = @transform_0, window_bounds = array<i64: 832, 32>}, {pipeline_mode = #tpu.pipeline_mode<synchronous>, transform_indices = @transform_1, window_bounds = array<i64: 1, 32>}, {pipeline_mode = #tpu.pipeline_mode<synchronous>, transform_indices = @transform_2, window_bounds = array<i64: 32, 64>}, {pipeline_mode = #tpu.pipeline_mode<synchronous>, transform_indices = @transform_3, window_bounds = array<i64: 1, 64>}, {transform_indices = @transform_4, window_bounds = array<i64: 64, 48>}, {transform_indices = @transform_5, window_bounds = array<i64: 1, 48>}, {transform_indices = @transform_6, window_bounds = array<i64: 832, 48>}]} {
    %c0 = arith.constant 0 : index
    %c0_0 = arith.constant 0 : index
    %0 = vector.load %arg2[%c0, %c0_0] : memref<832x32xf32, #tpu.memory_space<vmem>>, vector<832x32xf32>
    %c0_1 = arith.constant 0 : index
    %c0_2 = arith.constant 0 : index
    %1 = vector.load %arg3[%c0_1, %c0_2] : memref<1x32xf32, #tpu.memory_space<vmem>>, vector<1x32xf32>
    %2 = vector.broadcast %1 : vector<1x32xf32> to vector<832x32xf32>
    %3 = arith.addf %0, %2 : vector<832x32xf32>
    %cst = arith.constant 0.000000e+00 : f32
    %4 = vector.broadcast %cst : f32 to vector<832x32xf32>
    %5 = arith.cmpf ogt, %3, %4 : vector<832x32xf32>
    %cst_3 = arith.constant 0.000000e+00 : f32
    %6 = vector.broadcast %cst_3 : f32 to vector<832x32xf32>
    %7 = arith.minimumf %3, %6 : vector<832x32xf32>
    %8 = math.exp %7 : vector<832x32xf32>
    %cst_4 = arith.constant 1.000000e+00 : f32
    %9 = vector.broadcast %cst_4 : f32 to vector<832x32xf32>
    %10 = arith.subf %8, %9 : vector<832x32xf32>
    %11 = arith.select %5, %3, %10 : vector<832x32xi1>, vector<832x32xf32>
    %c0_5 = arith.constant 0 : index
    %c0_6 = arith.constant 0 : index
    %12 = vector.load %arg4[%c0_5, %c0_6] : memref<32x64xf32, #tpu.memory_space<vmem>>, vector<32x64xf32>
    %cst_7 = arith.constant dense<0.000000e+00> : vector<832x64xf32>
    %13 = tpu.matmul %11, %12, %cst_7 {dimension_numbers = #tpu.dot_dimension_numbers<[1], [0], [0], [1], [0, 0, 1, 1], [], []>} : vector<832x32xf32>, vector<32x64xf32>, vector<832x64xf32> -> vector<832x64xf32>
    %c0_8 = arith.constant 0 : index
    %c0_9 = arith.constant 0 : index
    %14 = vector.load %arg5[%c0_8, %c0_9] : memref<1x64xf32, #tpu.memory_space<vmem>>, vector<1x64xf32>
    %15 = vector.broadcast %14 : vector<1x64xf32> to vector<832x64xf32>
    %16 = arith.addf %13, %15 : vector<832x64xf32>
    %cst_10 = arith.constant 0.000000e+00 : f32
    %17 = vector.broadcast %cst_10 : f32 to vector<832x64xf32>
    %18 = arith.cmpf ogt, %16, %17 : vector<832x64xf32>
    %cst_11 = arith.constant 0.000000e+00 : f32
    %19 = vector.broadcast %cst_11 : f32 to vector<832x64xf32>
    %20 = arith.minimumf %16, %19 : vector<832x64xf32>
    %21 = math.exp %20 : vector<832x64xf32>
    %cst_12 = arith.constant 1.000000e+00 : f32
    %22 = vector.broadcast %cst_12 : f32 to vector<832x64xf32>
    %23 = arith.subf %21, %22 : vector<832x64xf32>
    %24 = arith.select %18, %16, %23 : vector<832x64xi1>, vector<832x64xf32>
    %c0_13 = arith.constant 0 : index
    %c0_14 = arith.constant 0 : index
    %25 = vector.load %arg6[%c0_13, %c0_14] : memref<64x48xf32, #tpu.memory_space<vmem>>, vector<64x48xf32>
    %cst_15 = arith.constant dense<0.000000e+00> : vector<832x48xf32>
    %26 = tpu.matmul %24, %25, %cst_15 {dimension_numbers = #tpu.dot_dimension_numbers<[1], [0], [0], [1], [0, 0, 1, 1], [], []>} : vector<832x64xf32>, vector<64x48xf32>, vector<832x48xf32> -> vector<832x48xf32>
    %c0_16 = arith.constant 0 : index
    %c0_17 = arith.constant 0 : index
    %27 = vector.load %arg7[%c0_16, %c0_17] : memref<1x48xf32, #tpu.memory_space<vmem>>, vector<1x48xf32>
    %28 = vector.broadcast %27 : vector<1x48xf32> to vector<832x48xf32>
    %29 = arith.addf %26, %28 : vector<832x48xf32>
    %c0_18 = arith.constant 0 : index
    %c0_19 = arith.constant 0 : index
    %30 = vector.load %arg8[%c0_18, %c0_19] : memref<832x48xf32, #tpu.memory_space<vmem>>, vector<832x48xf32>
    tpu.vector_store %arg8[%c0_18, %c0_19], %29 {strides = array<i32>} : memref<832x48xf32, #tpu.memory_space<vmem>>, vector<832x48xf32>,
    return
  }
  func.func @transform_0(%arg0: i32, %arg1: i32) -> (i32, i32) {
    %c0_i32 = arith.constant 0 : i32
    %c0_i32_0 = arith.constant 0 : i32
    return %arg1, %c0_i32 : i32, i32
  }
  func.func @transform_1(%arg0: i32, %arg1: i32) -> (i32, i32) {
    %c0_i32 = arith.constant 0 : i32
    %c0_i32_0 = arith.constant 0 : i32
    %c0_i32_1 = arith.constant 0 : i32
    return %c0_i32, %c0_i32_0 : i32, i32
  }
  func.func @transform_2(%arg0: i32, %arg1: i32) -> (i32, i32) {
    %c0_i32 = arith.constant 0 : i32
    %c0_i32_0 = arith.constant 0 : i32
    %c0_i32_1 = arith.constant 0 : i32
    return %c0_i32, %c0_i32_0 : i32, i32
  }
  func.func @transform_3(%arg0: i32, %arg1: i32) -> (i32, i32) {
    %c0_i32 = arith.constant 0 : i32
    %c0_i32_0 = arith.constant 0 : i32
    %c0_i32_1 = arith.constant 0 : i32
    return %c0_i32, %c0_i32_0 : i32, i32
  }
  func.func @transform_4(%arg0: i32, %arg1: i32) -> (i32, i32) {
    %c0_i32 = arith.constant 0 : i32
    %c0_i32_0 = arith.constant 0 : i32
    return %c0_i32, %arg0 : i32, i32
  }
  func.func @transform_5(%arg0: i32, %arg1: i32) -> (i32, i32) {
    %c0_i32 = arith.constant 0 : i32
    %c0_i32_0 = arith.constant 0 : i32
    return %c0_i32, %arg0 : i32, i32
  }
  func.func @transform_6(%arg0: i32, %arg1: i32) -> (i32, i32) {
    %c0_i32 = arith.constant 0 : i32
    return %arg1, %arg0 : i32, i32
  }
}

</mosaic_0001>

<bundles_post_ra>
// kernel: tile.14
= control target key start
LH: loop header
LB: loop body
LE: loop exit
PB: predicated region body
PF: predicated region fallthrough
CT: control target
= control target key end

     0   :  { %vm7_vm0 = vcmask 130048   ;;  %s37_s8 = smov 16   ;;  %s38_s9 = smov 32   ;;  %vm13_vm1 = vcmask 523648   ;;  %vm19_vm2 = vcmask 392448   ;;  %vm25_vm3 = vcmask 261248   ;;  %s55_s0 = inlined_call_operand.vmem [shape: f32[4,16], index: 0, kind: input, shape index: {}]   ;;  %s56_s1 = inlined_call_operand.vmem [shape: f32[1,64], index: 1, kind: output, shape index: {}]  }
   0x1   :  { %v4_v0 = vld [vmem:[%s55_s0] sm:$0xf]  ;;  %s36_s0 = smov 48  }
   0x2   :  { %5 = vst [vmem:[#allocation1] sm:$0xf] %v4_v0 }
   0x9   :  { %v10_v1 = vld [vmem:[#allocation1 + $0x3] sm:$0x1]   ;;  %v22_v2 = vld [vmem:[#allocation1 + $0x1] sm:$0x1]   ;;  %v6_v3 = vld [vmem:[#allocation1] sm:$0x1]  }
   0xa   :  { %11 = vrot.lane.b32.xlu0 %v10_v1, %s36_s0  ;;  %23 = vrot.lane.b32.xlu1 %v22_v2, %s37_s8  ;;  %v16_v4 = vld [vmem:[#allocation1 + $0x2] sm:$0x1]   ;;  %8 = vst.msk [vmem:[#allocation0] sm:$0x1] %vm7_vm0, %v6_v3  }
   0xe   :  { %17 = vrot.lane.b32.xlu0 %v16_v4, %s38_s9 }
  0x7c   :  { %v12_v5 = vpop.permute.xlu0 %11   ;;  %v24_v6 = vpop.permute.xlu1 %23  }
  0x7d   :  { %14 = vst.msk [vmem:[#allocation0] sm:$0x1] %vm13_vm1, %v12_v5  }
  0x80   :  { %v18_v7 = vpop.permute.xlu0 %17  }
  0x81   :  { %20 = vst.msk [vmem:[#allocation0] sm:$0x1] %vm19_vm2, %v18_v7  }
  0x82   :  { %26 = vst.msk [vmem:[#allocation0] sm:$0x1] %vm25_vm3, %v24_v6  }
  0x89   :  { %v30_v8 = vld [vmem:[#allocation0] sm:$0x1] }
  0x8a   :  { %32 = vst [vmem:[%s56_s1] sm:$0x1] %v30_v8 }

// kernel: tile.13
= control target key start
LH: loop header
LB: loop body
LE: loop exit
PB: predicated region body
PF: predicated region fallthrough
CT: control target
= control target key end

     0   :  { %2 = vsyncpa [#allocation1], 0  ;;  %s44_s6 = smov [#allocation0]   ;;  %s70_s0 = inlined_call_operand.hbm [shape: f32[16], index: 0, kind: input, shape index: {}]   ;;  %s71_s1 = inlined_call_operand.vmem [shape: f32[4,16], index: 1, kind: output, shape index: {}]  }
   0x1   :  { %s9_s7 = sshll.u32 %s44_s6, 4  ;;  %s20_s10 = scalar_lea.hbm %s70_s0, 16  ;;  %s10_s7 = int_to_ptr.vmem [resolvable:$true] %s9_s7 }
   0x2   :  { %p21_p0 = scmp.ne.s32.totalorder %s70_s0, %s20_s10  ;;  %p24_p1 = scmp.lt.u32.totalorder %s20_s10, %s70_s0 }
   0x4   :  { %p26_p2 = pnand %p24_p1, %p21_p0 }
   0x6   :  { %29 = shalt.err (!%p26_p2)
}
   0x7   :  { %s30_s15 = scalar_lea.vmem %s10_s7, 16  ;;  %s34_s16 = scalar_lea.vmem %s10_s7, 32 }
   0x8   :  { %p31_p3 = scmp.ne.s32.totalorder %s10_s7, %s30_s15  ;;  %p35_p4 = scmp.lt.s32.totalorder %s10_s7, %s10_s7 }
   0x9   :  { %p36_p5 = scmp.lt.s32.totalorder %s34_s16, %s30_s15 }
   0xb   :  { %p37_p6 = por %p36_p5, %p35_p4 }
   0xd   :  { %p38_p7 = pnand %p37_p6, %p31_p3 }
   0xf   :  { %41 = shalt.err (!%p38_p7)
}
  0x10   :  { %12 = dma.hbm_to_vmem [thread:$0]  %s70_s0, 16, %s10_s7, [#allocation1]  }
  0x11   :  { %42 = dma.done.wait [#allocation1], 16  }
  0x12   :  { %43 = vsyncadd [#allocation1], 4294967280  ;;  %v16_v0 = vld [vmem:[#allocation0] ss:$0 sm:$0xff] }
  0x13   :  { %17 = vst [vmem:[%s71_s1] sm:$0xf] %v16_v0 }
  0x14   :  { %18 = vsyncpa [#allocation1], 1 }

// kernel: tile.18
= control target key start
LH: loop header
LB: loop body
LE: loop exit
PB: predicated region body
PF: predicated region fallthrough
CT: control target
= control target key end

     0   :  { %2 = vsyncpa [#allocation1], 0  ;;  %s47_s6 = smov [#allocation0]   ;;  %s76_s0 = inlined_call_operand.hbm [shape: f32[3], index: 0, kind: input, shape index: {}]   ;;  %s77_s1 = inlined_call_operand.vmem [shape: f32[16,3], index: 1, kind: output, shape index: {}]  }
   0x1   :  { %s9_s7 = sshll.u32 %s47_s6, 4  ;;  %s23_s10 = scalar_lea.hbm %s76_s0, 16  ;;  %s10_s7 = int_to_ptr.vmem [resolvable:$true] %s9_s7 }
   0x2   :  { %p24_p0 = scmp.ne.s32.totalorder %s76_s0, %s23_s10  ;;  %p27_p1 = scmp.lt.u32.totalorder %s23_s10, %s76_s0 }
   0x4   :  { %p29_p2 = pnand %p27_p1, %p24_p0 }
   0x6   :  { %32 = shalt.err (!%p29_p2)
}
   0x7   :  { %s33_s15 = scalar_lea.vmem %s10_s7, 16  ;;  %s37_s16 = scalar_lea.vmem %s10_s7, 32 }
   0x8   :  { %p34_p3 = scmp.ne.s32.totalorder %s10_s7, %s33_s15  ;;  %p38_p4 = scmp.lt.s32.totalorder %s10_s7, %s10_s7 }
   0x9   :  { %p39_p5 = scmp.lt.s32.totalorder %s37_s16, %s33_s15 }
   0xb   :  { %p40_p6 = por %p39_p5, %p38_p4 }
   0xd   :  { %p41_p7 = pnand %p40_p6, %p34_p3 }
   0xf   :  { %44 = shalt.err (!%p41_p7)
}
  0x10   :  { %12 = dma.hbm_to_vmem [thread:$0]  %s76_s0, 16, %s10_s7, [#allocation1]  }
  0x11   :  { %45 = dma.done.wait [#allocation1], 16  }
  0x12   :  { %46 = vsyncadd [#allocation1], 4294967280  ;;  %v16_v0 = vld [vmem:[#allocation0] ss:$0 sm:$0xff] }
  0x13   :  { %17 = vst [vmem:[%s77_s1] sm:$0xff] %v16_v0  ;;  %21 = vst [vmem:[%s77_s1 + $0x8] sm:$0xff] %v16_v0 }
  0x14   :  { %20 = vsyncpa [#allocation1], 1 }

// kernel: tile.19
= control target key start
LH: loop header
LB: loop body
LE: loop exit
PB: predicated region body
PF: predicated region fallthrough
CT: control target
= control target key end

     0   :  { %s131_s10 = smov 45   ;;  %s132_s11 = smov 39   ;;  %vm3_vm0 = vcmask 23552   ;;  %vm9_vm1 = vcmask 392552   ;;  %vm15_vm2 = vcmask 367952   ;;  %vm21_vm3 = vcmask 343352   ;;  %s207_s0 = inlined_call_operand.vmem [shape: f32[16,3], index: 0, kind: input, shape index: {}]   ;;  %s208_s1 = inlined_call_operand.vmem [shape: f32[1,48], index: 1, kind: output, shape index: {}]  }
   0x1   :  { %v101_v0 = vld [vmem:[%s207_s0 + $0xf] sm:$0x1]   ;;  %v103_v1 = vld [vmem:[%s207_s0 + $0xd] sm:$0x1]   ;;  %v102_v2 = vld [vmem:[%s207_s0 + $0xe] sm:$0x1]  }
   0x2   :  { %7 = vrot.lane.b32.xlu0 %v101_v0, %s131_s10  ;;  %19 = vrot.lane.b32.xlu1 %v103_v1, %s132_s11  ;;  %v104_v3 = vld [vmem:[%s207_s0 + $0xc] sm:$0x1]   ;;  %s133_s16 = smov 42   ;;  %s134_s17 = smov 36   ;;  %v105_v4 = vld [vmem:[%s207_s0 + $0xb] sm:$0x1]  }
   0x3   :  { %v106_v5 = vld [vmem:[%s207_s0 + $0xa] sm:$0x1]   ;;  %v2_v6 = vld [vmem:[%s207_s0] sm:$0x1]   ;;  %s135_s24 = smov 33   ;;  %s136_s25 = smov 30  }
   0x4   :  { %4 = vst.msk [vmem:[#allocation0] sm:$0x1] %vm3_vm0, %v2_v6   ;;  %v107_v7 = vld [vmem:[%s207_s0 + $0x9] sm:$0x1]   ;;  %v108_v8 = vld [vmem:[%s207_s0 + $0x8] sm:$0x1]  }
   0x5   :  { %s137_s30 = smov 27   ;;  %s138_s2 = smov 24   ;;  %v109_v9 = vld [vmem:[%s207_s0 + $0x7] sm:$0x1]   ;;  %v110_v10 = vld [vmem:[%s207_s0 + $0x6] sm:$0x1]  }
   0x6   :  { %13 = vrot.lane.b32.xlu0 %v102_v2, %s133_s16  ;;  %25 = vrot.lane.b32.xlu1 %v104_v3, %s134_s17  ;;  %s139_s7 = smov 21   ;;  %s140_s8 = smov 18   ;;  %v111_v11 = vld [vmem:[%s207_s0 + $0x5] sm:$0x1]   ;;  %v112_v12 = vld [vmem:[%s207_s0 + $0x4] sm:$0x1]  }
   0x7   :  { %s141_s13 = smov 15   ;;  %s142_s14 = smov 12   ;;  %v113_v13 = vld [vmem:[%s207_s0 + $0x3] sm:$0x1]   ;;  %v114_v14 = vld [vmem:[%s207_s0 + $0x2] sm:$0x1]  }
   0x8   :  { %s143_s19 = smov 9   ;;  %s144_s20 = smov 6   ;;  %v115_v15 = vld [vmem:[%s207_s0 + $0x1] sm:$0x1]   ;;  %vm27_vm4 = vcmask 318752   ;;  %vm33_vm5 = vcmask 294152  }
   0x9   :  { %s145_s0 = smov 3   ;;  %vm39_vm6 = vcmask 269552   ;;  %vm45_vm7 = vcmask 244952   ;;  %vm51_vm8 = vcmask 220352   ;;  %vm57_vm9 = vcmask 195752  }
   0xa   :  { %31 = vrot.lane.b32.xlu0 %v105_v4, %s135_s24  ;;  %37 = vrot.lane.b32.xlu1 %v106_v5, %s136_s25  ;;  %vm63_vm10 = vcmask 171152   ;;  %vm69_vm11 = vcmask 146552   ;;  %vm75_vm12 = vcmask 121952   ;;  %vm81_vm13 = vcmask 97352  }
   0xb   :  { %vm87_vm14 = vcmask 72752   ;;  %vm93_vm15 = vcmask 48152  }
   0xe   :  { %43 = vrot.lane.b32.xlu0 %v107_v7, %s137_s30  ;;  %49 = vrot.lane.b32.xlu1 %v108_v8, %s138_s2 }
  0x12   :  { %55 = vrot.lane.b32.xlu0 %v109_v9, %s139_s7  ;;  %61 = vrot.lane.b32.xlu1 %v110_v10, %s140_s8 }
  0x16   :  { %67 = vrot.lane.b32.xlu0 %v111_v11, %s141_s13  ;;  %73 = vrot.lane.b32.xlu1 %v112_v12, %s142_s14 }
  0x1a   :  { %79 = vrot.lane.b32.xlu0 %v113_v13, %s143_s19  ;;  %85 = vrot.lane.b32.xlu1 %v114_v14, %s144_s20 }
  0x1e   :  { %91 = vrot.lane.b32.xlu0 %v115_v15, %s145_s0 }
  0x74   :  { %v8_v16 = vpop.permute.xlu0 %7   ;;  %v20_v17 = vpop.permute.xlu1 %19  }
  0x75   :  { %10 = vst.msk [vmem:[#allocation0] sm:$0x1] %vm9_vm1, %v8_v16  }
  0x78   :  { %v14_v18 = vpop.permute.xlu0 %13   ;;  %v26_v19 = vpop.permute.xlu1 %25  }
  0x79   :  { %16 = vst.msk [vmem:[#allocation0] sm:$0x1] %vm15_vm2, %v14_v18  }
  0x7a   :  { %22 = vst.msk [vmem:[#allocation0] sm:$0x1] %vm21_vm3, %v20_v17  }
  0x7b   :  { %28 = vst.msk [vmem:[#allocation0] sm:$0x1] %vm27_vm4, %v26_v19  }
  0x7c   :  { %v32_v20 = vpop.permute.xlu0 %31   ;;  %v38_v21 = vpop.permute.xlu1 %37  }
  0x7d   :  { %34 = vst.msk [vmem:[#allocation0] sm:$0x1] %vm33_vm5, %v32_v20  }
  0x7e   :  { %40 = vst.msk [vmem:[#allocation0] sm:$0x1] %vm39_vm6, %v38_v21  }
  0x80   :  { %v44_v22 = vpop.permute.xlu0 %43   ;;  %v50_v23 = vpop.permute.xlu1 %49  }
  0x81   :  { %46 = vst.msk [vmem:[#allocation0] sm:$0x1] %vm45_vm7, %v44_v22  }
  0x82   :  { %52 = vst.msk [vmem:[#allocation0] sm:$0x1] %vm51_vm8, %v50_v23  }
  0x84   :  { %v56_v24 = vpop.permute.xlu0 %55   ;;  %v62_v25 = vpop.permute.xlu1 %61  }
  0x85   :  { %58 = vst.msk [vmem:[#allocation0] sm:$0x1] %vm57_vm9, %v56_v24  }
  0x86   :  { %64 = vst.msk [vmem:[#allocation0] sm:$0x1] %vm63_vm10, %v62_v25  }
  0x88   :  { %v68_v26 = vpop.permute.xlu0 %67   ;;  %v74_v27 = vpop.permute.xlu1 %73  }
  0x89   :  { %70 = vst.msk [vmem:[#allocation0] sm:$0x1] %vm69_vm11, %v68_v26  }
  0x8a   :  { %76 = vst.msk [vmem:[#allocation0] sm:$0x1] %vm75_vm12, %v74_v27  }
  0x8c   :  { %v80_v28 = vpop.permute.xlu0 %79   ;;  %v86_v29 = vpop.permute.xlu1 %85  }
  0x8d   :  { %82 = vst.msk [vmem:[#allocation0] sm:$0x1] %vm81_vm13, %v80_v28  }
  0x8e   :  { %88 = vst.msk [vmem:[#allocation0] sm:$0x1] %vm87_vm14, %v86_v29  }
  0x90   :  { %v92_v30 = vpop.permute.xlu0 %91  }
  0x91   :  { %94 = vst.msk [vmem:[#allocation0] sm:$0x1] %vm93_vm15, %v92_v30  }
  0x98   :  { %v98_v31 = vld [vmem:[#allocation0] sm:$0x1] }
  0x99   :  { %100 = vst [vmem:[%s208_s1] sm:$0x1] %v98_v31 }

// kernel: mul.4
= control target key start
LH: loop header
LB: loop body
LE: loop exit
PB: predicated region body
PF: predicated region fallthrough
CT: control target
= control target key end

     0   :  { %vm21_vm0 = vcmask 130048   ;;  %s80_s0 = inlined_call_operand.vmem [shape: f32[16,2,2,3], index: 0, kind: input, shape index: {}]   ;;  %s81_s1 = inlined_call_operand.vmem [shape: f32[16,12], index: 1, kind: output, shape index: {}]  }
   0x1   :  { %v40_v0 = vld [vmem:[%s80_s0 + $0xc] sm:$0xf]  ;;  %v41_v1 = vld [vmem:[%s80_s0 + $0x8] sm:$0xf]  ;;  %v42_v2 = vld [vmem:[%s80_s0 + $0x4] sm:$0xf] }
   0x2   :  { %8 = vst [vmem:[#allocation0 + $0x18] sm:$0xf] %v40_v0  ;;  %13 = vst [vmem:[#allocation0 + $0x10] sm:$0xf] %v41_v1  ;;  %v18_v3 = vld [vmem:[%s80_s0] sm:$0xf] }
   0x3   :  { %17 = vst [vmem:[#allocation0 + $0x8] sm:$0xf] %v42_v2  ;;  %19 = vst [vmem:[#allocation0] sm:$0xf] %v18_v3 }
   0x9   :  { %v29_v5 = vld [vmem:[#allocation0 + $0x10] sm:$0x7]   ;;  %v34_v6 = vld [vmem:[#allocation0 + $0x18] sm:$0x7]  }
   0xa   :  { %v24_v4 = vld [vmem:[#allocation0 + $0x8] sm:$0x7]   ;;  %v20_v7 = vld [vmem:[#allocation0] sm:$0x7]   ;;  %44 = vst.msk [vmem:[%s81_s1 + $0x6] sm:$0x7] %vm21_vm0, %v29_v5  }
   0xb   :  { %43 = vst.msk [vmem:[%s81_s1 + $0x3] sm:$0x7] %vm21_vm0, %v24_v4   ;;  %45 = vst.msk [vmem:[%s81_s1 + $0x9] sm:$0x7] %vm21_vm0, %v34_v6  }
   0xc   :  { %22 = vst.msk [vmem:[%s81_s1] sm:$0x7] %vm21_vm0, %v20_v7  }

// kernel: conv_decoder_forward.4
= control target key start
LH: loop header
LB: loop body
LE: loop exit
PB: predicated region body
PF: predicated region fallthrough
CT: control target
= control target key end

     0   :  { %s1064_s12 = smov 0   ;;  %s1066_s13 = smov 0   ;;  %s1274_s0 = inlined_call_operand.vmem [shape: f32[8,32], index: 0, kind: input, shape index: {}]   ;;  %s1275_s1 = inlined_call_operand.vmem [shape: f32[32,9216], index: 1, kind: input, shape index: {}]   ;;  %s1276_s2 = inlined_call_operand.vmem [shape: f32[1,9216], index: 2, kind: input, shape index: {}]   ;;  %s1277_s3 = inlined_call_operand.vmem [shape: f32[8,9216], index: 3, kind: output, shape index: {}]  }
   0x1   :  { %s1068_s14 = smov 0   ;;  %s1070_s15 = smov 0  }
   0x2   :  { %s1072_s16 = smov 0  }
   0x3 LB: > { %s25_s17 = sadd.s32 1, %s1035_s15  ;;  %p65_p1 = scmp.ne.s32.totalorder %s1027_s13, %s1023_s12  ;;  %s1039_s16 = sphi %s1072_s16, %s13_s16   ;;  %s1035_s15 = sphi %s1070_s15, %s1281_s15   ;;  %s1031_s14 = sphi %s1068_s14, %s1280_s14   ;;  %s1027_s13 = sphi %s1066_s13, %s1279_s13   ;;  %s1023_s12 = sphi %s1064_s12, %s1278_s12  }
   0x4   : > { %p27_p0 = scmp.ge.s32.totalorder %s25_s17, 8  ;;  %p66_p2 = scmp.eq.s32.totalorder %s1039_s16, 0 }
   0x5   : > { %s58_s19 = sadd.s32 1, %s1027_s13  ;;  %p889_p5 = scmp.ge.s32.totalorder %s1039_s16, 8 }
   0x6   : > { %s1283_s17 = smov (%p27_p0, %s25_s17), 0  ;;  %p67_p3 = por %p66_p2, %p65_p1 }
   0x7   : > { %s55_s18 = ssub.s32 %s1035_s15, %s1283_s17  ;;  %152 = sbr.rel (%p889_p5) target bundleno = 37 (0x25), region = 20 }
   0x8   : > { %p56_p4 = scmp.eq.s32.totalorder %s55_s18, 0 }
   0xa   : > { %s1099_s20 = scalar_select %p56_p4, %s1027_s13, %s58_s19  }
   0xe   : > { %155 = sbr.rel (!%p67_p3) target bundleno = 37 (0x25), region = 24  ;;  %s157_s21 = sand.u32 (%p67_p3), 1, %s1027_s13  }
   0xf   : > { %s901_s22 = smul.u32 (%p67_p3), 72, %s1035_s15 }
  0x10   : > { %s956_s23 = smul.u32 (%p67_p3), 288, %s157_s21 }
  0x11   : > { %s1107_s26 = scalar_lea.vmem (%p67_p3), %s1275_s1, %s901_s22 }
  0x12   : > { %v175_v0 = vld [vmem:[%s1107_s26] sm:$0xff] (%p67_p3)  ;;  %v177_v1 = vld [vmem:[%s1107_s26 + $0x8] sm:$0xff] (%p67_p3)  ;;  %v179_v2 = vld [vmem:[%s1107_s26 + $0x10] sm:$0xff] (%p67_p3)  ;;  %s1112_s27 = scalar_lea.vmem (%p67_p3), [#allocation2], %s956_s23 }
  0x13   : > { %176 = vst [vmem:[%s1112_s27] sm:$0xff] (%p67_p3), %v175_v0  ;;  %178 = vst [vmem:[%s1112_s27 + $0x8] sm:$0xff] (%p67_p3), %v177_v1  ;;  %v181_v3 = vld [vmem:[%s1107_s26 + $0x18] sm:$0xff] (%p67_p3)  ;;  %v183_v4 = vld [vmem:[%s1107_s26 + $0x20] sm:$0xff] (%p67_p3) }
  0x14   : > { %180 = vst [vmem:[%s1112_s27 + $0x10] sm:$0xff] (%p67_p3), %v179_v2  ;;  %v185_v5 = vld [vmem:[%s1107_s26 + $0x28] sm:$0xff] (%p67_p3)  ;;  %182 = vst [vmem:[%s1112_s27 + $0x18] sm:$0xff] (%p67_p3), %v181_v3  ;;  %v187_v6 = vld [vmem:[%s1107_s26 + $0x30] sm:$0xff] (%p67_p3) }
  0x15   : > { %184 = vst [vmem:[%s1112_s27 + $0x20] sm:$0xff] %v183_v4  ;;  %186 = vst [vmem:[%s1112_s27 + $0x28] sm:$0xff] %v185_v5  ;;  %v189_v7 = vld [vmem:[%s1107_s26 + $0x38] sm:$0xff]  ;;  %v191_v8 = vld [vmem:[%s1107_s26 + $0x40] sm:$0xff] }
  0x16   : > { %188 = vst [vmem:[%s1112_s27 + $0x30] sm:$0xff] %v187_v6  ;;  %190 = vst [vmem:[%s1112_s27 + $0x38] sm:$0xff] %v189_v7  ;;  %v193_v9 = vld [vmem:[%s1107_s26 + $0x240] sm:$0xff]  ;;  %v195_v10 = vld [vmem:[%s1107_s26 + $0x248] sm:$0xff] }
  0x17   : > { %192 = vst [vmem:[%s1112_s27 + $0x40] sm:$0xff] %v191_v8  ;;  %v197_v11 = vld [vmem:[%s1107_s26 + $0x250] sm:$0xff]  ;;  %194 = vst [vmem:[%s1112_s27 + $0x48] sm:$0xff] %v193_v9  ;;  %v199_v12 = vld [vmem:[%s1107_s26 + $0x258] sm:$0xff] }
  0x18   : > { %196 = vst [vmem:[%s1112_s27 + $0x50] sm:$0xff] %v195_v10  ;;  %198 = vst [vmem:[%s1112_s27 + $0x58] sm:$0xff] %v197_v11  ;;  %v201_v13 = vld [vmem:[%s1107_s26 + $0x260] sm:$0xff]  ;;  %v203_v14 = vld [vmem:[%s1107_s26 + $0x268] sm:$0xff] }
  0x19   : > { %200 = vst [vmem:[%s1112_s27 + $0x60] sm:$0xff] %v199_v12  ;;  %202 = vst [vmem:[%s1112_s27 + $0x68] sm:$0xff] %v201_v13  ;;  %v205_v15 = vld [vmem:[%s1107_s26 + $0x270] sm:$0xff]  ;;  %v207_v16 = vld [vmem:[%s1107_s26 + $0x278] sm:$0xff] }
  0x1a   : > { %204 = vst [vmem:[%s1112_s27 + $0x70] sm:$0xff] %v203_v14  ;;  %v209_v17 = vld [vmem:[%s1107_s26 + $0x280] sm:$0xff]  ;;  %206 = vst [vmem:[%s1112_s27 + $0x78] sm:$0xff] %v205_v15  ;;  %v213_v19 = vld [vmem:[%s1107_s26 + $0x488] sm:$0xff] }
  0x1b   : > { %208 = vst [vmem:[%s1112_s27 + $0x80] sm:$0xff] %v207_v16  ;;  %210 = vst [vmem:[%s1112_s27 + $0x88] sm:$0xff] %v209_v17  ;;  %v211_v18 = vld [vmem:[%s1107_s26 + $0x480] sm:$0xff]  ;;  %v215_v20 = vld [vmem:[%s1107_s26 + $0x490] sm:$0xff] }
  0x1c   : > { %212 = vst [vmem:[%s1112_s27 + $0x90] sm:$0xff] %v211_v18  ;;  %214 = vst [vmem:[%s1112_s27 + $0x98] sm:$0xff] %v213_v19  ;;  %v217_v21 = vld [vmem:[%s1107_s26 + $0x498] sm:$0xff]  ;;  %v219_v22 = vld [vmem:[%s1107_s26 + $0x4a0] sm:$0xff] }
  0x1d   : > { %216 = vst [vmem:[%s1112_s27 + $0xa0] sm:$0xff] %v215_v20  ;;  %v221_v23 = vld [vmem:[%s1107_s26 + $0x4a8] sm:$0xff]  ;;  %218 = vst [vmem:[%s1112_s27 + $0xa8] sm:$0xff] %v217_v21  ;;  %v223_v24 = vld [vmem:[%s1107_s26 + $0x4b0] sm:$0xff] }
  0x1e   : > { %220 = vst [vmem:[%s1112_s27 + $0xb0] sm:$0xff] %v219_v22  ;;  %222 = vst [vmem:[%s1112_s27 + $0xb8] sm:$0xff] %v221_v23  ;;  %v225_v25 = vld [vmem:[%s1107_s26 + $0x4b8] sm:$0xff]  ;;  %v227_v26 = vld [vmem:[%s1107_s26 + $0x4c0] sm:$0xff] }
  0x1f   : > { %224 = vst [vmem:[%s1112_s27 + $0xc0] sm:$0xff] %v223_v24  ;;  %226 = vst [vmem:[%s1112_s27 + $0xc8] sm:$0xff] %v225_v25  ;;  %v229_v27 = vld [vmem:[%s1107_s26 + $0x6c0] sm:$0xff]  ;;  %v231_v28 = vld [vmem:[%s1107_s26 + $0x6c8] sm:$0xff] }
  0x20   : > { %228 = vst [vmem:[%s1112_s27 + $0xd0] sm:$0xff] %v227_v26  ;;  %v233_v29 = vld [vmem:[%s1107_s26 + $0x6d0] sm:$0xff]  ;;  %230 = vst [vmem:[%s1112_s27 + $0xd8] sm:$0xff] %v229_v27  ;;  %v235_v30 = vld [vmem:[%s1107_s26 + $0x6d8] sm:$0xff] }
  0x21   : > { %232 = vst [vmem:[%s1112_s27 + $0xe0] sm:$0xff] %v231_v28  ;;  %234 = vst [vmem:[%s1112_s27 + $0xe8] sm:$0xff] %v233_v29  ;;  %v237_v31 = vld [vmem:[%s1107_s26 + $0x6e0] sm:$0xff]  ;;  %v239_v32 = vld [vmem:[%s1107_s26 + $0x6e8] sm:$0xff] }
  0x22   : > { %236 = vst [vmem:[%s1112_s27 + $0xf0] sm:$0xff] %v235_v30  ;;  %238 = vst [vmem:[%s1112_s27 + $0xf8] sm:$0xff] %v237_v31  ;;  %v241_v33 = vld [vmem:[%s1107_s26 + $0x6f0] sm:$0xff]  ;;  %v243_v34 = vld [vmem:[%s1107_s26 + $0x6f8] sm:$0xff] }
  0x23   : > { %240 = vst [vmem:[%s1112_s27 + $0x100] sm:$0xff] %v239_v32  ;;  %v245_v35 = vld [vmem:[%s1107_s26 + $0x700] sm:$0xff]  ;;  %242 = vst [vmem:[%s1112_s27 + $0x108] sm:$0xff] %v241_v33 }
  0x24   : > { %244 = vst [vmem:[%s1112_s27 + $0x110] sm:$0xff] %v243_v34  ;;  %246 = vst [vmem:[%s1112_s27 + $0x118] sm:$0xff] %v245_v35 }
  0x25 PF: > { %p891_p6 = scmp.ge.s32.totalorder %s1039_s16, 1  ;;  %p259_p7 = scmp.lt.s32.totalorder %s1039_s16, 9 }
  0x27   : > { %p260_p8 = pnand %p891_p6, %p259_p7 }
  0x28   : > { %s266_s28 = sand.u32 (!%p260_p8), 1, %s1023_s12   ;;  %v1041_v36 = vmov (!%p260_p8), 0.0   ;;  %v321_v2 = vld [vmem:[%s1274_s0] sm:$0xff] (!%p260_p8)  ;;  %vm407_vm0 = vcmask (!%p260_p8), 261120   ;;  %v1042_v25 = vmov (!%p260_p8), 0.0|0.0   ;;  %vm1043_vm1 = vmmov (!%p260_p8), 0  }
  0x29   : > { %263 = sbr.rel (%p260_p8) target bundleno = 287 (0x11f), region = 51  ;;  %475 = vmatprep.mubr.f32.mxu0 (!%p260_p8), %v1041_v36  ;;  %546 = vmatprep.mubr.f32.mxu1 (!%p260_p8), %v1041_v36  ;;  %v362_v29 = vlaneseq (!%p260_p8) }
  0x2a   : > { %s957_s29 = smul.u32 (!%p260_p8), 288, %s266_s28 }
  0x2b   : > { %s306_s6 = smul.u32 (!%p260_p8), 9, %s1031_s14  ;;  %v363_v30 = vshrl.u32 (!%p260_p8), %v362_v29, 7 }
  0x2c   : > { %s1188_s30 = scalar_lea.vmem (!%p260_p8), [#allocation2], %s957_s29 }
  0x2d   : > { %v323_v37 = vld [vmem:[%s1188_s30 + $0x8] sm:$0xff] (!%p260_p8)  ;;  %v332_v38 = vld [vmem:[%s1188_s30 + $0x50] sm:$0xff] (!%p260_p8)  ;;  %v322_v39 = vld [vmem:[%s1188_s30] sm:$0xff] (!%p260_p8)  ;;  %p307_p9 = scmp.lt.s32.totalorder (!%p260_p8), %s306_s6, 71  ;;  %v364_v31 = vsub.s32 (!%p260_p8), 0, %v363_v30  ;;  %v368_v33 = vsub.s32 (!%p260_p8), 1, %v363_v30 }
  0x2e   : > { %v918_v40 = vpack.c.bf16 (!%p260_p8), %v332_v38, %v323_v37  ;;  %v331_v41 = vld [vmem:[%s1188_s30 + $0x48] sm:$0xff] (!%p260_p8)  ;;  %v341_v42 = vld [vmem:[%s1188_s30 + $0x98] sm:$0xff] (!%p260_p8)  ;;  %v350_v43 = vld [vmem:[%s1188_s30 + $0xe0] sm:$0xff] (!%p260_p8)  ;;  %v372_v34 = vsub.s32 (!%p260_p8), 2, %v363_v30 }
  0x2f   : > { %v920_v44 = vpack.c.bf16 (!%p260_p8), %v331_v41, %v322_v39  ;;  %v922_v45 = vpack.c.bf16 (!%p260_p8), %v350_v43, %v341_v42  ;;  %v340_v46 = vld [vmem:[%s1188_s30 + $0x90] sm:$0xff] (!%p260_p8)  ;;  %v349_v47 = vld [vmem:[%s1188_s30 + $0xd8] sm:$0xff] (!%p260_p8)  ;;  %v334_v49 = vld [vmem:[%s1188_s30 + $0x60] sm:$0xff] (!%p260_p8)  ;;  %v380_v43 = vsub.s32 (!%p260_p8), 4, %v363_v30 }
  0x30   : > { %v325_v48 = vld [vmem:[%s1188_s30 + $0x18] sm:$0xff]  ;;  %919 = vmatprep.subr.bf16.mxu0 %v918_v40  ;;  %v324_v50 = vld [vmem:[%s1188_s30 + $0x10] sm:$0xff]  ;;  %v924_v52 = vpack.c.bf16 %v349_v47, %v340_v46  ;;  %v327_v55 = vld [vmem:[%s1188_s30 + $0x28] sm:$0xff]  ;;  %s1285_s6 = smov (!%p307_p9, %s306_s6), 71 }
  0x31   : > { %v333_v51 = vld [vmem:[%s1188_s30 + $0x58] sm:$0xff]  ;;  %921 = vmatpush1.bf16.msra.mxu0 %v920_v44  ;;  %v926_v53 = vpack.c.bf16 %v334_v49, %v325_v48  ;;  %v336_v56 = vld [vmem:[%s1188_s30 + $0x70] sm:$0xff]  ;;  %v326_v57 = vld [vmem:[%s1188_s30 + $0x20] sm:$0xff]  ;;  %s1241_s9 = scalar_lea.vmem %s1276_s2, %s1285_s6  ;;  %s892_s10 = sshll.u32 %s1285_s6, 3  ;;  %v388_v49 = vsub.s32 6, %v363_v30 }
  0x32   : > { %v928_v54 = vpack.c.bf16 %v333_v51, %v324_v50  ;;  %923 = vmatprep.subr.bf16.mxu0 %v922_v45  ;;  %v934_v58 = vpack.c.bf16 %v336_v56, %v327_v55  ;;  %v335_v59 = vld [vmem:[%s1188_s30 + $0x68] sm:$0xff]  ;;  %v352_v61 = vld [vmem:[%s1188_s30 + $0xf0] sm:$0xff]  ;;  %v342_v63 = vld [vmem:[%s1188_s30 + $0xa0] sm:$0xff]  ;;  %s1247_s14 = scalar_lea.vmem %s1277_s3, %s892_s10  ;;  %v384_v45 = vsub.s32 5, %v363_v30 }
  0x33   : > { %v343_v60 = vld [vmem:[%s1188_s30 + $0xa8] sm:$0xff]  ;;  %927 = vmatprep.subr.bf16.mxu1 %v926_v53  ;;  %v345_v1 = vld [vmem:[%s1188_s30 + $0xb8] sm:$0xff]  ;;  %v354_v4 = vld [vmem:[%s1188_s30 + $0x100] sm:$0xff]  ;;  %v936_v5 = vpack.c.bf16 %v335_v59, %v326_v57 }
  0x34   : > { %v930_v62 = vpack.c.bf16 %v352_v61, %v343_v60  ;;  %v351_v0 = vld [vmem:[%s1188_s30 + $0xe8] sm:$0xff]  ;;  %929 = vmatpush1.bf16.msra.mxu1 %v928_v54  ;;  %v329_v6 = vld [vmem:[%s1188_s30 + $0x38] sm:$0xff]  ;;  %v338_v7 = vld [vmem:[%s1188_s30 + $0x80] sm:$0xff]  ;;  %v938_v9 = vpack.c.bf16 %v354_v4, %v345_v1 }
  0x35   : > { %v932_v3 = vpack.c.bf16 %v351_v0, %v342_v63  ;;  %925 = vmatpush1.bf16.msra.mxu0 %v924_v52  ;;  %v328_v8 = vld [vmem:[%s1188_s30 + $0x30] sm:$0xff]  ;;  %v353_v11 = vld [vmem:[%s1188_s30 + $0xf8] sm:$0xff]  ;;  %v942_v12 = vpack.c.bf16 %v338_v7, %v329_v6  ;;  %v347_v14 = vld [vmem:[%s1188_s30 + $0xc8] sm:$0xff]  ;;  %v392_v52 = vsub.s32 7, %v363_v30 }
  0x36   : > { %931 = vmatprep.subr.bf16.mxu1 %v930_v62  ;;  %935 = vmatprep.subr.bf16.mxu0 %v934_v58  ;;  %v344_v10 = vld [vmem:[%s1188_s30 + $0xb0] sm:$0xff]  ;;  %v337_v13 = vld [vmem:[%s1188_s30 + $0x78] sm:$0xff]  ;;  %v346_v19 = vld [vmem:[%s1188_s30 + $0xc0] sm:$0xff] }
  0x37   : > { %v356_v15 = vld [vmem:[%s1188_s30 + $0x110] sm:$0xff]  ;;  %v944_v16 = vpack.c.bf16 %v337_v13, %v328_v8  ;;  %v940_v17 = vpack.c.bf16 %v353_v11, %v344_v10  ;;  %v355_v20 = vld [vmem:[%s1188_s30 + $0x108] sm:$0xff]  ;;  %v330_v21 = vld [vmem:[%s1188_s30 + $0x40] sm:$0xff] }
  0x38   : > { %894 = vmatmul.mubr.msk.f32.vlgmr.msra.gmra.mrb[0].mxu0 %vm407_vm0, %v321_v2  ;;  %933 = vmatpush1.bf16.msra.mxu1 %v932_v3  ;;  %v946_v18 = vpack.c.bf16 %v356_v15, %v347_v14  ;;  %v339_v22 = vld [vmem:[%s1188_s30 + $0x88] sm:$0xff]  ;;  %v948_v23 = vpack.c.bf16 %v355_v20, %v346_v19  ;;  %v348_v26 = vld [vmem:[%s1188_s30 + $0xd0] sm:$0xff]  ;;  %v357_v27 = vld [vmem:[%s1188_s30 + $0x118] sm:$0xff] }
  0x39   : > { %937 = vmatpush1.bf16.msra.mxu0 %v936_v5  ;;  %943 = vmatprep.subr.bf16.mxu1 %v942_v12  ;;  %v951_v24 = vpack.c.bf16 %v339_v22, %v330_v21  ;;  %v954_v28 = vpack.c.bf16 %v357_v27, %v348_v26  ;;  %v358_v32 = vld [vmem:[%s1241_s9] sm:$0xff]  ;;  %v893_v0 = vld [vmem:[%s1241_s9 + $0x8] ss:$0 sm:$0xff] }
  0x3a   : > { %939 = vmatprep.subr.bf16.mxu0 %v938_v9  ;;  %617 = vmatprep.mubr.f32.mxu0 %v1041_v36  ;;  %v365_v35 = vrot.slane %v358_v32, %v364_v31  ;;  %v369_v37 = vrot.slane %v358_v32, %v368_v33  ;;  %v373_v39 = vrot.slane %v358_v32, %v372_v34 }
  0x3b   : > { %895 = vmatmul.mubr.msk.f32.vlgmr.msra.gmra.mrb[0].mxu1 %vm407_vm0, %v321_v2  ;;  %v381_v51 = vrot.slane %v358_v32, %v380_v43  ;;  %v385_v53 = vrot.slane %v358_v32, %v384_v45  ;;  %v389_v55 = vrot.slane %v358_v32, %v388_v49  ;;  %v393_v58 = vrot.slane %v358_v32, %v392_v52 }
  0x3c   : > { %945 = vmatpush1.bf16.msra.mxu1 %v944_v16  ;;  %688 = vmatprep.mubr.f32.mxu1 %v1041_v36 }
  0x3d   : > { %941 = vmatpush1.bf16.msra.mxu0 %v940_v17  ;;  %947 = vmatprep.subr.bf16.mxu1 %v946_v18 }
  0x3e   : > { %950 = vmatprep.subr.bf16.mxu0 %v1042_v25 }
  0x40   : > { %896 = vmatmul.mubr.msk.f32.vlgmr.msra.gmra.mrb[2].mxu0 %vm407_vm0, %v321_v2  ;;  %949 = vmatpush1.bf16.msra.mxu1 %v948_v23 }
  0x41   : > { %952 = vmatpush3.bf16.msra.mxu0 %v951_v24  ;;  %915 = vmatprep.mubr.msk.f32.mxu0 %vm1043_vm1, %v1041_v36  ;;  %v376_v36 = vsub.s32 3, %v363_v30 }
  0x42   : > { %953 = vmatprep.subr.bf16.mxu0 %v1042_v25 }
  0x43   : > { %897 = vmatmul.mubr.msk.f32.vlgmr.msra.gmra.mrb[2].mxu1 %vm407_vm0, %v321_v2  ;;  %v377_v42 = vrot.slane %v358_v32, %v376_v36 }
  0x45   : > { %955 = vmatpush3.bf16.msra.mxu0 %v954_v28 }
  0x48   : > { %916 = vmatmul.mubr.msk.f32.vlgmr.msra.gmra.mrb[4].mxu0 %vm407_vm0, %v321_v2 }
 0x10b   : > { %v477_v38 = vpop.f32.mrb[0].mxu0 }
 0x10c   : > { %v478_v40 = vadd.f32 %v477_v38, %v365_v35  ;;  %v479_v41 = vpop.f32.mrb[1].mxu0 }
 0x10d   : > { %v480_v44 = vadd.f32 %v479_v41, %v369_v37 }
 0x10e   : > { %765 = vst [vmem:[%s1247_s14] sm:$0xff] %v478_v40  ;;  %v548_v46 = vpop.f32.mrb[0].mxu1 }
 0x10f   : > { %766 = vst [vmem:[%s1247_s14 + $0x8] sm:$0xff] %v480_v44  ;;  %v549_v47 = vadd.f32 %v548_v46, %v373_v39  ;;  %v550_v48 = vpop.f32.mrb[1].mxu1 }
 0x110   : > { %v551_v50 = vadd.f32 %v550_v48, %v377_v42 }
 0x111   : > { %767 = vst [vmem:[%s1247_s14 + $0x10] sm:$0xff] %v549_v47 }
 0x112   : > { %768 = vst [vmem:[%s1247_s14 + $0x18] sm:$0xff] %v551_v50 }
 0x113   : > { %v619_v54 = vpop.f32.mrb[2].mxu0 }
 0x114   : > { %v620_v56 = vadd.f32 %v619_v54, %v381_v51  ;;  %v621_v57 = vpop.f32.mrb[3].mxu0 }
 0x115   : > { %v622_v59 = vadd.f32 %v621_v57, %v385_v53 }
 0x116   : > { %769 = vst [vmem:[%s1247_s14 + $0x20] sm:$0xff] %v620_v56  ;;  %v690_v60 = vpop.f32.mrb[2].mxu1 }
 0x117   : > { %770 = vst [vmem:[%s1247_s14 + $0x28] sm:$0xff] %v622_v59  ;;  %v691_v61 = vadd.f32 %v690_v60, %v389_v55  ;;  %v692_v62 = vpop.f32.mrb[3].mxu1 }
 0x118   : > { %v693_v63 = vadd.f32 %v692_v62, %v393_v58 }
 0x119   : > { %771 = vst [vmem:[%s1247_s14 + $0x30] sm:$0xff] %v691_v61 }
 0x11a   : > { %772 = vst [vmem:[%s1247_s14 + $0x38] sm:$0xff] %v693_v63 }
 0x11b   : > { %v761_v1 = vpop.f32.mrb[4].mxu0 }
 0x11c   : > { %v762_v2 = vadd.f32 %v893_v0, %v761_v1  ;;  %v917_v3 = vpop.f32.mrb[5].mxu0 }
 0x11e   : > { %773 = vst [vmem:[%s1247_s14 + $0x40] sm:$0xff] %v762_v2 }
 0x11f PF: > { %s13_s16 = sadd.s32 1, %s1039_s16   ;;  %s1278_s12 = smov %s1027_s13 }
 0x120   : > { %p10_p10 = scmp.ge.s32.totalorder %s13_s16, 10   ;;  %s1279_s13 = smov %s1099_s20 }
 0x121   : > { %s1280_s14 = smov %s1035_s15  ;;  %s1281_s15 = smov %s1283_s17 }
 0x122   :  { %12 = sbr.rel (!%p10_p10) target bundleno = 3 (0x3), region = 96 }

// kernel: conv_decoder_forward.5
= control target key start
LH: loop header
LB: loop body
LE: loop exit
PB: predicated region body
PF: predicated region fallthrough
CT: control target
= control target key end

     0   :  { %s2542_s9 = smov 0   ;;  %s2544_s10 = smov 0   ;;  %s3835_s0 = inlined_call_operand.vmem [shape: f32[32,747], index: 0, kind: input, shape index: {}]   ;;  %s3836_s1 = inlined_call_operand.vmem [shape: f32[747,1024], index: 1, kind: input, shape index: {}]   ;;  %s3837_s2 = inlined_call_operand.vmem [shape: f32[32,1024], index: 2, kind: output, shape index: {}]  }
   0x1   :  { %s2546_s11 = smov 0   ;;  %s2548_s12 = smov 0  }
   0x2   :  { %s2550_s13 = smov 0   ;;  %s2552_s14 = smov 0  }
   0x3   :  { %s2554_s15 = smov 0   ;;  %s2556_s16 = smov 0  }
   0x4   :  { %s2558_s17 = smov 0  }
   0x5 LB: > { %s21_s18 = sadd.s32 1, %s2516_s15  ;;  %s24_s19 = sadd.s32 1, %s2520_s16  ;;  %s2524_s17 = sphi %s2558_s17, %s12_s17   ;;  %s2520_s16 = sphi %s2556_s16, %s3848_s16   ;;  %s2516_s15 = sphi %s2554_s15, %s3847_s15   ;;  %s2512_s14 = sphi %s2552_s14, %s3846_s14   ;;  %s2508_s13 = sphi %s2550_s13, %s3845_s13   ;;  %s2504_s12 = sphi %s2548_s12, %s3844_s12   ;;  %s2500_s11 = sphi %s2546_s11, %s3843_s11   ;;  %s2496_s10 = sphi %s2544_s10, %s3842_s10   ;;  %s2492_s9 = sphi %s2542_s9, %s3841_s9  }
   0x6   : > { %p22_p0 = scmp.ge.s32.totalorder %s21_s18, 2  ;;  %p64_p1 = scmp.ne.s32.totalorder %s2504_s12, %s2500_s11 }
   0x7   : > { %s1955_s20 = sadd.s32 4294967295, %s2524_s17   ;;  %p65_p2 = scmp.eq.s32.totalorder %s2524_s17, 0 }
   0x8   : > { %s3850_s18 = smov (%p22_p0, %s21_s18), 0  ;;  %s3852_s19 = smov (!%p22_p0, %s24_s19), %s2520_s16 }
   0x9   : > { %p26_p3 = scmp.ge.s32.totalorder %s3852_s19, 2  ;;  %s80_s21 = ssub.s32 %s2516_s15, %s3850_s18 }
   0xa   : > { %p2598_p4 = por %p65_p2, %p64_p1  ;;  %p95_p5 = scmp.ne.s32.totalorder %s2496_s10, %s2492_s9 }
   0xb   : > { %s3854_s19 = smov (%p26_p3, %s3852_s19), 0  ;;  %s57_s23 = sadd.s32 1, %s2504_s12 }
   0xc   : > { %p96_p6 = scmp.eq.s32.totalorder %s1955_s20, 3  ;;  %s54_s24 = ssub.s32 %s2520_s16, %s3854_s19 }
   0xd   : > { %s85_s25 = sadd.s32 1, %s2496_s10  ;;  %p55_p7 = scmp.eq.s32.totalorder %s54_s24, 0 }
   0xe   : > { %s82_s26 = sor.u32 %s80_s21, %s54_s24  ;;  %p2610_p9 = por %p96_p6, %p95_p5 }
   0xf   : > { %p83_p8 = scmp.eq.s32.totalorder %s82_s26, 0  ;;  %p1958_p10 = scmp.ge.s32.totalorder %s2524_s17, 4 }
  0x10   : > { %s2615_s28 = scalar_select %p55_p7, %s2504_s12, %s57_s23  }
  0x11   : > { %s2618_s29 = scalar_select %p83_p8, %s2496_s10, %s85_s25  }
  0x12   : > { %118 = sbr.rel (%p1958_p10) target bundleno = 218 (0xda), region = 16 }
  0x19   : > { %131 = sbr.rel (!%p2598_p4) target bundleno = 218 (0xda), region = 24  ;;  %s133_s30 = sand.u32 (%p2598_p4), 1, %s2504_s12  }
  0x1a   : > { %s1980_s3 = sshll.u32 (%p2598_p4), %s2520_s16, 5  ;;  %s2378_s4 = smul.u32 (%p2598_p4), 3008, %s133_s30 }
  0x1b   : > { %s2628_s7 = scalar_lea.vmem (%p2598_p4), %s3836_s1, %s1980_s3 }
  0x1c   : > { %v151_v0 = vld [vmem:[%s2628_s7] sm:$0xff] (%p2598_p4)  ;;  %v153_v1 = vld [vmem:[%s2628_s7 + $0x8] sm:$0xff] (%p2598_p4)  ;;  %v155_v2 = vld [vmem:[%s2628_s7 + $0x10] sm:$0xff] (%p2598_p4)  ;;  %s2636_s8 = scalar_lea.vmem (%p2598_p4), [#allocation2], %s2378_s4 }
  0x1d   : > { %v157_v3 = vld [vmem:[%s2628_s7 + $0x18] sm:$0xff] (%p2598_p4)  ;;  %v159_v4 = vld [vmem:[%s2628_s7 + $0x40] sm:$0xff] (%p2598_p4)  ;;  %v161_v5 = vld [vmem:[%s2628_s7 + $0x48] sm:$0xff] (%p2598_p4)  ;;  %152 = vst [vmem:[%s2636_s8] sm:$0xff] (%p2598_p4), %v151_v0 }
  0x1e   : > { %154 = vst [vmem:[%s2636_s8 + $0x8] sm:$0xff] (%p2598_p4), %v153_v1  ;;  %156 = vst [vmem:[%s2636_s8 + $0x10] sm:$0xff] (%p2598_p4), %v155_v2  ;;  %v163_v6 = vld [vmem:[%s2628_s7 + $0x50] sm:$0xff] (%p2598_p4)  ;;  %v165_v7 = vld [vmem:[%s2628_s7 + $0x58] sm:$0xff] (%p2598_p4) }
  0x1f   : > { %158 = vst [vmem:[%s2636_s8 + $0x18] sm:$0xff] (%p2598_p4), %v157_v3  ;;  %160 = vst [vmem:[%s2636_s8 + $0x20] sm:$0xff] (%p2598_p4), %v159_v4  ;;  %v167_v8 = vld [vmem:[%s2628_s7 + $0x80] sm:$0xff] (%p2598_p4)  ;;  %v169_v9 = vld [vmem:[%s2628_s7 + $0x88] sm:$0xff] (%p2598_p4) }
  0x20   : > { %162 = vst [vmem:[%s2636_s8 + $0x28] sm:$0xff] %v161_v5  ;;  %164 = vst [vmem:[%s2636_s8 + $0x30] sm:$0xff] %v163_v6  ;;  %v171_v10 = vld [vmem:[%s2628_s7 + $0x90] sm:$0xff]  ;;  %v173_v11 = vld [vmem:[%s2628_s7 + $0x98] sm:$0xff] }
  0x21   : > { %166 = vst [vmem:[%s2636_s8 + $0x38] sm:$0xff] %v165_v7  ;;  %168 = vst [vmem:[%s2636_s8 + $0x40] sm:$0xff] %v167_v8  ;;  %v175_v12 = vld [vmem:[%s2628_s7 + $0xc0] sm:$0xff]  ;;  %v177_v13 = vld [vmem:[%s2628_s7 + $0xc8] sm:$0xff] }
  0x22   : > { %170 = vst [vmem:[%s2636_s8 + $0x48] sm:$0xff] %v169_v9  ;;  %172 = vst [vmem:[%s2636_s8 + $0x50] sm:$0xff] %v171_v10  ;;  %v179_v14 = vld [vmem:[%s2628_s7 + $0xd0] sm:$0xff]  ;;  %v181_v15 = vld [vmem:[%s2628_s7 + $0xd8] sm:$0xff] }
  0x23   : > { %174 = vst [vmem:[%s2636_s8 + $0x58] sm:$0xff] %v173_v11  ;;  %176 = vst [vmem:[%s2636_s8 + $0x60] sm:$0xff] %v175_v12  ;;  %v183_v16 = vld [vmem:[%s2628_s7 + $0x100] sm:$0xff]  ;;  %v185_v17 = vld [vmem:[%s2628_s7 + $0x108] sm:$0xff] }
  0x24   : > { %178 = vst [vmem:[%s2636_s8 + $0x68] sm:$0xff] %v177_v13  ;;  %180 = vst [vmem:[%s2636_s8 + $0x70] sm:$0xff] %v179_v14  ;;  %v187_v18 = vld [vmem:[%s2628_s7 + $0x110] sm:$0xff]  ;;  %v189_v19 = vld [vmem:[%s2628_s7 + $0x118] sm:$0xff] }
  0x25   : > { %182 = vst [vmem:[%s2636_s8 + $0x78] sm:$0xff] %v181_v15  ;;  %184 = vst [vmem:[%s2636_s8 + $0x80] sm:$0xff] %v183_v16  ;;  %v191_v20 = vld [vmem:[%s2628_s7 + $0x140] sm:$0xff]  ;;  %v193_v21 = vld [vmem:[%s2628_s7 + $0x148] sm:$0xff] }
  0x26   : > { %186 = vst [vmem:[%s2636_s8 + $0x88] sm:$0xff] %v185_v17  ;;  %188 = vst [vmem:[%s2636_s8 + $0x90] sm:$0xff] %v187_v18  ;;  %v195_v22 = vld [vmem:[%s2628_s7 + $0x150] sm:$0xff]  ;;  %v197_v23 = vld [vmem:[%s2628_s7 + $0x158] sm:$0xff] }
  0x27   : > { %190 = vst [vmem:[%s2636_s8 + $0x98] sm:$0xff] %v189_v19  ;;  %192 = vst [vmem:[%s2636_s8 + $0xa0] sm:$0xff] %v191_v20  ;;  %v199_v24 = vld [vmem:[%s2628_s7 + $0x180] sm:$0xff]  ;;  %v201_v25 = vld [vmem:[%s2628_s7 + $0x188] sm:$0xff] }
  0x28   : > { %194 = vst [vmem:[%s2636_s8 + $0xa8] sm:$0xff] %v193_v21  ;;  %196 = vst [vmem:[%s2636_s8 + $0xb0] sm:$0xff] %v195_v22  ;;  %v203_v26 = vld [vmem:[%s2628_s7 + $0x190] sm:$0xff]  ;;  %v205_v27 = vld [vmem:[%s2628_s7 + $0x198] sm:$0xff] }
  0x29   : > { %198 = vst [vmem:[%s2636_s8 + $0xb8] sm:$0xff] %v197_v23  ;;  %200 = vst [vmem:[%s2636_s8 + $0xc0] sm:$0xff] %v199_v24  ;;  %v207_v28 = vld [vmem:[%s2628_s7 + $0x1c0] sm:$0xff]  ;;  %v209_v29 = vld [vmem:[%s2628_s7 + $0x1c8] sm:$0xff] }
  0x2a   : > { %202 = vst [vmem:[%s2636_s8 + $0xc8] sm:$0xff] %v201_v25  ;;  %204 = vst [vmem:[%s2636_s8 + $0xd0] sm:$0xff] %v203_v26  ;;  %v211_v30 = vld [vmem:[%s2628_s7 + $0x1d0] sm:$0xff]  ;;  %v213_v31 = vld [vmem:[%s2628_s7 + $0x1d8] sm:$0xff] }
  0x2b   : > { %206 = vst [vmem:[%s2636_s8 + $0xd8] sm:$0xff] %v205_v27  ;;  %208 = vst [vmem:[%s2636_s8 + $0xe0] sm:$0xff] %v207_v28  ;;  %v215_v32 = vld [vmem:[%s2628_s7 + $0x200] sm:$0xff]  ;;  %v217_v33 = vld [vmem:[%s2628_s7 + $0x208] sm:$0xff] }
  0x2c   : > { %210 = vst [vmem:[%s2636_s8 + $0xe8] sm:$0xff] %v209_v29  ;;  %212 = vst [vmem:[%s2636_s8 + $0xf0] sm:$0xff] %v211_v30  ;;  %v219_v34 = vld [vmem:[%s2628_s7 + $0x210] sm:$0xff]  ;;  %v221_v35 = vld [vmem:[%s2628_s7 + $0x218] sm:$0xff] }
  0x2d   : > { %214 = vst [vmem:[%s2636_s8 + $0xf8] sm:$0xff] %v213_v31  ;;  %216 = vst [vmem:[%s2636_s8 + $0x100] sm:$0xff] %v215_v32  ;;  %v223_v36 = vld [vmem:[%s2628_s7 + $0x240] sm:$0xff]  ;;  %v225_v37 = vld [vmem:[%s2628_s7 + $0x248] sm:$0xff] }
  0x2e   : > { %218 = vst [vmem:[%s2636_s8 + $0x108] sm:$0xff] %v217_v33  ;;  %220 = vst [vmem:[%s2636_s8 + $0x110] sm:$0xff] %v219_v34  ;;  %v227_v38 = vld [vmem:[%s2628_s7 + $0x250] sm:$0xff]  ;;  %v229_v39 = vld [vmem:[%s2628_s7 + $0x258] sm:$0xff] }
  0x2f   : > { %222 = vst [vmem:[%s2636_s8 + $0x118] sm:$0xff] %v221_v35  ;;  %224 = vst [vmem:[%s2636_s8 + $0x120] sm:$0xff] %v223_v36  ;;  %v231_v40 = vld [vmem:[%s2628_s7 + $0x280] sm:$0xff]  ;;  %v233_v41 = vld [vmem:[%s2628_s7 + $0x288] sm:$0xff] }
  0x30   : > { %226 = vst [vmem:[%s2636_s8 + $0x128] sm:$0xff] %v225_v37  ;;  %228 = vst [vmem:[%s2636_s8 + $0x130] sm:$0xff] %v227_v38  ;;  %v235_v42 = vld [vmem:[%s2628_s7 + $0x290] sm:$0xff]  ;;  %v237_v43 = vld [vmem:[%s2628_s7 + $0x298] sm:$0xff] }
  0x31   : > { %230 = vst [vmem:[%s2636_s8 + $0x138] sm:$0xff] %v229_v39  ;;  %232 = vst [vmem:[%s2636_s8 + $0x140] sm:$0xff] %v231_v40  ;;  %v239_v44 = vld [vmem:[%s2628_s7 + $0x2c0] sm:$0xff]  ;;  %v241_v45 = vld [vmem:[%s2628_s7 + $0x2c8] sm:$0xff] }
  0x32   : > { %234 = vst [vmem:[%s2636_s8 + $0x148] sm:$0xff] %v233_v41  ;;  %236 = vst [vmem:[%s2636_s8 + $0x150] sm:$0xff] %v235_v42  ;;  %v243_v46 = vld [vmem:[%s2628_s7 + $0x2d0] sm:$0xff]  ;;  %v245_v47 = vld [vmem:[%s2628_s7 + $0x2d8] sm:$0xff] }
  0x33   : > { %238 = vst [vmem:[%s2636_s8 + $0x158] sm:$0xff] %v237_v43  ;;  %240 = vst [vmem:[%s2636_s8 + $0x160] sm:$0xff] %v239_v44  ;;  %v247_v48 = vld [vmem:[%s2628_s7 + $0x300] sm:$0xff]  ;;  %v249_v49 = vld [vmem:[%s2628_s7 + $0x308] sm:$0xff] }
  0x34   : > { %242 = vst [vmem:[%s2636_s8 + $0x168] sm:$0xff] %v241_v45  ;;  %244 = vst [vmem:[%s2636_s8 + $0x170] sm:$0xff] %v243_v46  ;;  %v251_v50 = vld [vmem:[%s2628_s7 + $0x310] sm:$0xff]  ;;  %v253_v51 = vld [vmem:[%s2628_s7 + $0x318] sm:$0xff] }
  0x35   : > { %246 = vst [vmem:[%s2636_s8 + $0x178] sm:$0xff] %v245_v47  ;;  %248 = vst [vmem:[%s2636_s8 + $0x180] sm:$0xff] %v247_v48  ;;  %v255_v52 = vld [vmem:[%s2628_s7 + $0x340] sm:$0xff]  ;;  %v257_v53 = vld [vmem:[%s2628_s7 + $0x348] sm:$0xff] }
  0x36   : > { %250 = vst [vmem:[%s2636_s8 + $0x188] sm:$0xff] %v249_v49  ;;  %252 = vst [vmem:[%s2636_s8 + $0x190] sm:$0xff] %v251_v50  ;;  %v259_v54 = vld [vmem:[%s2628_s7 + $0x350] sm:$0xff]  ;;  %v261_v55 = vld [vmem:[%s2628_s7 + $0x358] sm:$0xff] }
  0x37   : > { %254 = vst [vmem:[%s2636_s8 + $0x198] sm:$0xff] %v253_v51  ;;  %256 = vst [vmem:[%s2636_s8 + $0x1a0] sm:$0xff] %v255_v52  ;;  %v263_v56 = vld [vmem:[%s2628_s7 + $0x380] sm:$0xff]  ;;  %v265_v57 = vld [vmem:[%s2628_s7 + $0x388] sm:$0xff] }
  0x38   : > { %258 = vst [vmem:[%s2636_s8 + $0x1a8] sm:$0xff] %v257_v53  ;;  %260 = vst [vmem:[%s2636_s8 + $0x1b0] sm:$0xff] %v259_v54  ;;  %v267_v58 = vld [vmem:[%s2628_s7 + $0x390] sm:$0xff]  ;;  %v269_v59 = vld [vmem:[%s2628_s7 + $0x398] sm:$0xff] }
  0x39   : > { %262 = vst [vmem:[%s2636_s8 + $0x1b8] sm:$0xff] %v261_v55  ;;  %264 = vst [vmem:[%s2636_s8 + $0x1c0] sm:$0xff] %v263_v56  ;;  %v271_v60 = vld [vmem:[%s2628_s7 + $0x3c0] sm:$0xff]  ;;  %v273_v61 = vld [vmem:[%s2628_s7 + $0x3c8] sm:$0xff] }
  0x3a   : > { %266 = vst [vmem:[%s2636_s8 + $0x1c8] sm:$0xff] %v265_v57  ;;  %268 = vst [vmem:[%s2636_s8 + $0x1d0] sm:$0xff] %v267_v58  ;;  %v275_v62 = vld [vmem:[%s2628_s7 + $0x3d0] sm:$0xff]  ;;  %v277_v63 = vld [vmem:[%s2628_s7 + $0x3d8] sm:$0xff] }
  0x3b   : > { %270 = vst [vmem:[%s2636_s8 + $0x1d8] sm:$0xff] %v269_v59  ;;  %272 = vst [vmem:[%s2636_s8 + $0x1e0] sm:$0xff] %v271_v60  ;;  %v279_v0 = vld [vmem:[%s2628_s7 + $0x400] sm:$0xff]  ;;  %v281_v1 = vld [vmem:[%s2628_s7 + $0x408] sm:$0xff] }
  0x3c   : > { %274 = vst [vmem:[%s2636_s8 + $0x1e8] sm:$0xff] %v273_v61  ;;  %276 = vst [vmem:[%s2636_s8 + $0x1f0] sm:$0xff] %v275_v62  ;;  %v283_v2 = vld [vmem:[%s2628_s7 + $0x410] sm:$0xff]  ;;  %v285_v3 = vld [vmem:[%s2628_s7 + $0x418] sm:$0xff] }
  0x3d   : > { %278 = vst [vmem:[%s2636_s8 + $0x1f8] sm:$0xff] %v277_v63  ;;  %280 = vst [vmem:[%s2636_s8 + $0x200] sm:$0xff] %v279_v0  ;;  %v287_v4 = vld [vmem:[%s2628_s7 + $0x440] sm:$0xff]  ;;  %v289_v5 = vld [vmem:[%s2628_s7 + $0x448] sm:$0xff] }
  0x3e   : > { %282 = vst [vmem:[%s2636_s8 + $0x208] sm:$0xff] %v281_v1  ;;  %284 = vst [vmem:[%s2636_s8 + $0x210] sm:$0xff] %v283_v2  ;;  %v291_v6 = vld [vmem:[%s2628_s7 + $0x450] sm:$0xff]  ;;  %v293_v7 = vld [vmem:[%s2628_s7 + $0x458] sm:$0xff] }
  0x3f   : > { %286 = vst [vmem:[%s2636_s8 + $0x218] sm:$0xff] %v285_v3  ;;  %288 = vst [vmem:[%s2636_s8 + $0x220] sm:$0xff] %v287_v4  ;;  %v295_v8 = vld [vmem:[%s2628_s7 + $0x480] sm:$0xff]  ;;  %v297_v9 = vld [vmem:[%s2628_s7 + $0x488] sm:$0xff] }
  0x40   : > { %290 = vst [vmem:[%s2636_s8 + $0x228] sm:$0xff] %v289_v5  ;;  %292 = vst [vmem:[%s2636_s8 + $0x230] sm:$0xff] %v291_v6  ;;  %v299_v10 = vld [vmem:[%s2628_s7 + $0x490] sm:$0xff]  ;;  %v301_v11 = vld [vmem:[%s2628_s7 + $0x498] sm:$0xff] }
  0x41   : > { %294 = vst [vmem:[%s2636_s8 + $0x238] sm:$0xff] %v293_v7  ;;  %296 = vst [vmem:[%s2636_s8 + $0x240] sm:$0xff] %v295_v8  ;;  %v303_v12 = vld [vmem:[%s2628_s7 + $0x4c0] sm:$0xff]  ;;  %v305_v13 = vld [vmem:[%s2628_s7 + $0x4c8] sm:$0xff] }
  0x42   : > { %298 = vst [vmem:[%s2636_s8 + $0x248] sm:$0xff] %v297_v9  ;;  %300 = vst [vmem:[%s2636_s8 + $0x250] sm:$0xff] %v299_v10  ;;  %v307_v14 = vld [vmem:[%s2628_s7 + $0x4d0] sm:$0xff]  ;;  %v309_v15 = vld [vmem:[%s2628_s7 + $0x4d8] sm:$0xff] }
  0x43   : > { %302 = vst [vmem:[%s2636_s8 + $0x258] sm:$0xff] %v301_v11  ;;  %304 = vst [vmem:[%s2636_s8 + $0x260] sm:$0xff] %v303_v12  ;;  %v311_v16 = vld [vmem:[%s2628_s7 + $0x500] sm:$0xff]  ;;  %v313_v17 = vld [vmem:[%s2628_s7 + $0x508] sm:$0xff] }
  0x44   : > { %306 = vst [vmem:[%s2636_s8 + $0x268] sm:$0xff] %v305_v13  ;;  %308 = vst [vmem:[%s2636_s8 + $0x270] sm:$0xff] %v307_v14  ;;  %v315_v18 = vld [vmem:[%s2628_s7 + $0x510] sm:$0xff]  ;;  %v317_v19 = vld [vmem:[%s2628_s7 + $0x518] sm:$0xff] }
  0x45   : > { %310 = vst [vmem:[%s2636_s8 + $0x278] sm:$0xff] %v309_v15  ;;  %312 = vst [vmem:[%s2636_s8 + $0x280] sm:$0xff] %v311_v16  ;;  %v319_v20 = vld [vmem:[%s2628_s7 + $0x540] sm:$0xff]  ;;  %v321_v21 = vld [vmem:[%s2628_s7 + $0x548] sm:$0xff] }
  0x46   : > { %314 = vst [vmem:[%s2636_s8 + $0x288] sm:$0xff] %v313_v17  ;;  %316 = vst [vmem:[%s2636_s8 + $0x290] sm:$0xff] %v315_v18  ;;  %v323_v22 = vld [vmem:[%s2628_s7 + $0x550] sm:$0xff]  ;;  %v325_v23 = vld [vmem:[%s2628_s7 + $0x558] sm:$0xff] }
  0x47   : > { %318 = vst [vmem:[%s2636_s8 + $0x298] sm:$0xff] %v317_v19  ;;  %320 = vst [vmem:[%s2636_s8 + $0x2a0] sm:$0xff] %v319_v20  ;;  %v327_v24 = vld [vmem:[%s2628_s7 + $0x580] sm:$0xff]  ;;  %v329_v25 = vld [vmem:[%s2628_s7 + $0x588] sm:$0xff] }
  0x48   : > { %322 = vst [vmem:[%s2636_s8 + $0x2a8] sm:$0xff] %v321_v21  ;;  %324 = vst [vmem:[%s2636_s8 + $0x2b0] sm:$0xff] %v323_v22  ;;  %v331_v26 = vld [vmem:[%s2628_s7 + $0x590] sm:$0xff]  ;;  %v333_v27 = vld [vmem:[%s2628_s7 + $0x598] sm:$0xff] }
  0x49   : > { %326 = vst [vmem:[%s2636_s8 + $0x2b8] sm:$0xff] %v325_v23  ;;  %328 = vst [vmem:[%s2636_s8 + $0x2c0] sm:$0xff] %v327_v24  ;;  %v335_v28 = vld [vmem:[%s2628_s7 + $0x5c0] sm:$0xff]  ;;  %v337_v29 = vld [vmem:[%s2628_s7 + $0x5c8] sm:$0xff] }
  0x4a   : > { %330 = vst [vmem:[%s2636_s8 + $0x2c8] sm:$0xff] %v329_v25  ;;  %332 = vst [vmem:[%s2636_s8 + $0x2d0] sm:$0xff] %v331_v26  ;;  %v339_v30 = vld [vmem:[%s2628_s7 + $0x5d0] sm:$0xff]  ;;  %v341_v31 = vld [vmem:[%s2628_s7 + $0x5d8] sm:$0xff] }
  0x4b   : > { %334 = vst [vmem:[%s2636_s8 + $0x2d8] sm:$0xff] %v333_v27  ;;  %336 = vst [vmem:[%s2636_s8 + $0x2e0] sm:$0xff] %v335_v28  ;;  %v343_v32 = vld [vmem:[%s2628_s7 + $0x600] sm:$0xff]  ;;  %v345_v33 = vld [vmem:[%s2628_s7 + $0x608] sm:$0xff] }
  0x4c   : > { %338 = vst [vmem:[%s2636_s8 + $0x2e8] sm:$0xff] %v337_v29  ;;  %340 = vst [vmem:[%s2636_s8 + $0x2f0] sm:$0xff] %v339_v30  ;;  %v347_v34 = vld [vmem:[%s2628_s7 + $0x610] sm:$0xff]  ;;  %v349_v35 = vld [vmem:[%s2628_s7 + $0x618] sm:$0xff] }
  0x4d   : > { %342 = vst [vmem:[%s2636_s8 + $0x2f8] sm:$0xff] %v341_v31  ;;  %344 = vst [vmem:[%s2636_s8 + $0x300] sm:$0xff] %v343_v32  ;;  %v351_v36 = vld [vmem:[%s2628_s7 + $0x640] sm:$0xff]  ;;  %v353_v37 = vld [vmem:[%s2628_s7 + $0x648] sm:$0xff] }
  0x4e   : > { %346 = vst [vmem:[%s2636_s8 + $0x308] sm:$0xff] %v345_v33  ;;  %348 = vst [vmem:[%s2636_s8 + $0x310] sm:$0xff] %v347_v34  ;;  %v355_v38 = vld [vmem:[%s2628_s7 + $0x650] sm:$0xff]  ;;  %v357_v39 = vld [vmem:[%s2628_s7 + $0x658] sm:$0xff] }
  0x4f   : > { %350 = vst [vmem:[%s2636_s8 + $0x318] sm:$0xff] %v349_v35  ;;  %352 = vst [vmem:[%s2636_s8 + $0x320] sm:$0xff] %v351_v36  ;;  %v359_v40 = vld [vmem:[%s2628_s7 + $0x680] sm:$0xff]  ;;  %v361_v41 = vld [vmem:[%s2628_s7 + $0x688] sm:$0xff] }
  0x50   : > { %354 = vst [vmem:[%s2636_s8 + $0x328] sm:$0xff] %v353_v37  ;;  %356 = vst [vmem:[%s2636_s8 + $0x330] sm:$0xff] %v355_v38  ;;  %v363_v42 = vld [vmem:[%s2628_s7 + $0x690] sm:$0xff]  ;;  %v365_v43 = vld [vmem:[%s2628_s7 + $0x698] sm:$0xff] }
  0x51   : > { %358 = vst [vmem:[%s2636_s8 + $0x338] sm:$0xff] %v357_v39  ;;  %360 = vst [vmem:[%s2636_s8 + $0x340] sm:$0xff] %v359_v40  ;;  %v367_v44 = vld [vmem:[%s2628_s7 + $0x6c0] sm:$0xff]  ;;  %v369_v45 = vld [vmem:[%s2628_s7 + $0x6c8] sm:$0xff] }
  0x52   : > { %362 = vst [vmem:[%s2636_s8 + $0x348] sm:$0xff] %v361_v41  ;;  %364 = vst [vmem:[%s2636_s8 + $0x350] sm:$0xff] %v363_v42  ;;  %v371_v46 = vld [vmem:[%s2628_s7 + $0x6d0] sm:$0xff]  ;;  %v373_v47 = vld [vmem:[%s2628_s7 + $0x6d8] sm:$0xff] }
  0x53   : > { %366 = vst [vmem:[%s2636_s8 + $0x358] sm:$0xff] %v365_v43  ;;  %368 = vst [vmem:[%s2636_s8 + $0x360] sm:$0xff] %v367_v44  ;;  %v375_v48 = vld [vmem:[%s2628_s7 + $0x700] sm:$0xff]  ;;  %v377_v49 = vld [vmem:[%s2628_s7 + $0x708] sm:$0xff] }
  0x54   : > { %370 = vst [vmem:[%s2636_s8 + $0x368] sm:$0xff] %v369_v45  ;;  %372 = vst [vmem:[%s2636_s8 + $0x370] sm:$0xff] %v371_v46  ;;  %v379_v50 = vld [vmem:[%s2628_s7 + $0x710] sm:$0xff]  ;;  %v381_v51 = vld [vmem:[%s2628_s7 + $0x718] sm:$0xff] }
  0x55   : > { %374 = vst [vmem:[%s2636_s8 + $0x378] sm:$0xff] %v373_v47  ;;  %376 = vst [vmem:[%s2636_s8 + $0x380] sm:$0xff] %v375_v48  ;;  %v383_v52 = vld [vmem:[%s2628_s7 + $0x740] sm:$0xff]  ;;  %v385_v53 = vld [vmem:[%s2628_s7 + $0x748] sm:$0xff] }
  0x56   : > { %378 = vst [vmem:[%s2636_s8 + $0x388] sm:$0xff] %v377_v49  ;;  %380 = vst [vmem:[%s2636_s8 + $0x390] sm:$0xff] %v379_v50  ;;  %v387_v54 = vld [vmem:[%s2628_s7 + $0x750] sm:$0xff]  ;;  %v389_v55 = vld [vmem:[%s2628_s7 + $0x758] sm:$0xff] }
  0x57   : > { %382 = vst [vmem:[%s2636_s8 + $0x398] sm:$0xff] %v381_v51  ;;  %384 = vst [vmem:[%s2636_s8 + $0x3a0] sm:$0xff] %v383_v52  ;;  %v391_v56 = vld [vmem:[%s2628_s7 + $0x780] sm:$0xff]  ;;  %v393_v57 = vld [vmem:[%s2628_s7 + $0x788] sm:$0xff] }
  0x58   : > { %386 = vst [vmem:[%s2636_s8 + $0x3a8] sm:$0xff] %v385_v53  ;;  %388 = vst [vmem:[%s2636_s8 + $0x3b0] sm:$0xff] %v387_v54  ;;  %v395_v58 = vld [vmem:[%s2628_s7 + $0x790] sm:$0xff]  ;;  %v397_v59 = vld [vmem:[%s2628_s7 + $0x798] sm:$0xff] }
  0x59   : > { %390 = vst [vmem:[%s2636_s8 + $0x3b8] sm:$0xff] %v389_v55  ;;  %392 = vst [vmem:[%s2636_s8 + $0x3c0] sm:$0xff] %v391_v56  ;;  %v399_v60 = vld [vmem:[%s2628_s7 + $0x7c0] sm:$0xff]  ;;  %v401_v61 = vld [vmem:[%s2628_s7 + $0x7c8] sm:$0xff] }
  0x5a   : > { %394 = vst [vmem:[%s2636_s8 + $0x3c8] sm:$0xff] %v393_v57  ;;  %396 = vst [vmem:[%s2636_s8 + $0x3d0] sm:$0xff] %v395_v58  ;;  %v403_v62 = vld [vmem:[%s2628_s7 + $0x7d0] sm:$0xff]  ;;  %v405_v63 = vld [vmem:[%s2628_s7 + $0x7d8] sm:$0xff] }
  0x5b   : > { %398 = vst [vmem:[%s2636_s8 + $0x3d8] sm:$0xff] %v397_v59  ;;  %400 = vst [vmem:[%s2636_s8 + $0x3e0] sm:$0xff] %v399_v60  ;;  %v407_v0 = vld [vmem:[%s2628_s7 + $0x800] sm:$0xff]  ;;  %v409_v1 = vld [vmem:[%s2628_s7 + $0x808] sm:$0xff] }
  0x5c   : > { %402 = vst [vmem:[%s2636_s8 + $0x3e8] sm:$0xff] %v401_v61  ;;  %404 = vst [vmem:[%s2636_s8 + $0x3f0] sm:$0xff] %v403_v62  ;;  %v411_v2 = vld [vmem:[%s2628_s7 + $0x810] sm:$0xff]  ;;  %v413_v3 = vld [vmem:[%s2628_s7 + $0x818] sm:$0xff] }
  0x5d   : > { %406 = vst [vmem:[%s2636_s8 + $0x3f8] sm:$0xff] %v405_v63  ;;  %408 = vst [vmem:[%s2636_s8 + $0x400] sm:$0xff] %v407_v0  ;;  %v415_v4 = vld [vmem:[%s2628_s7 + $0x840] sm:$0xff]  ;;  %v417_v5 = vld [vmem:[%s2628_s7 + $0x848] sm:$0xff] }
  0x5e   : > { %410 = vst [vmem:[%s2636_s8 + $0x408] sm:$0xff] %v409_v1  ;;  %412 = vst [vmem:[%s2636_s8 + $0x410] sm:$0xff] %v411_v2  ;;  %v419_v6 = vld [vmem:[%s2628_s7 + $0x850] sm:$0xff]  ;;  %v421_v7 = vld [vmem:[%s2628_s7 + $0x858] sm:$0xff] }
  0x5f   : > { %414 = vst [vmem:[%s2636_s8 + $0x418] sm:$0xff] %v413_v3  ;;  %416 = vst [vmem:[%s2636_s8 + $0x420] sm:$0xff] %v415_v4  ;;  %v423_v8 = vld [vmem:[%s2628_s7 + $0x880] sm:$0xff]  ;;  %v425_v9 = vld [vmem:[%s2628_s7 + $0x888] sm:$0xff] }
  0x60   : > { %418 = vst [vmem:[%s2636_s8 + $0x428] sm:$0xff] %v417_v5  ;;  %420 = vst [vmem:[%s2636_s8 + $0x430] sm:$0xff] %v419_v6  ;;  %v427_v10 = vld [vmem:[%s2628_s7 + $0x890] sm:$0xff]  ;;  %v429_v11 = vld [vmem:[%s2628_s7 + $0x898] sm:$0xff] }
  0x61   : > { %422 = vst [vmem:[%s2636_s8 + $0x438] sm:$0xff] %v421_v7  ;;  %424 = vst [vmem:[%s2636_s8 + $0x440] sm:$0xff] %v423_v8  ;;  %v431_v12 = vld [vmem:[%s2628_s7 + $0x8c0] sm:$0xff]  ;;  %v433_v13 = vld [vmem:[%s2628_s7 + $0x8c8] sm:$0xff] }
  0x62   : > { %426 = vst [vmem:[%s2636_s8 + $0x448] sm:$0xff] %v425_v9  ;;  %428 = vst [vmem:[%s2636_s8 + $0x450] sm:$0xff] %v427_v10  ;;  %v435_v14 = vld [vmem:[%s2628_s7 + $0x8d0] sm:$0xff]  ;;  %v437_v15 = vld [vmem:[%s2628_s7 + $0x8d8] sm:$0xff] }
  0x63   : > { %430 = vst [vmem:[%s2636_s8 + $0x458] sm:$0xff] %v429_v11  ;;  %432 = vst [vmem:[%s2636_s8 + $0x460] sm:$0xff] %v431_v12  ;;  %v439_v16 = vld [vmem:[%s2628_s7 + $0x900] sm:$0xff]  ;;  %v441_v17 = vld [vmem:[%s2628_s7 + $0x908] sm:$0xff] }
  0x64   : > { %434 = vst [vmem:[%s2636_s8 + $0x468] sm:$0xff] %v433_v13  ;;  %436 = vst [vmem:[%s2636_s8 + $0x470] sm:$0xff] %v435_v14  ;;  %v443_v18 = vld [vmem:[%s2628_s7 + $0x910] sm:$0xff]  ;;  %v445_v19 = vld [vmem:[%s2628_s7 + $0x918] sm:$0xff] }
  0x65   : > { %438 = vst [vmem:[%s2636_s8 + $0x478] sm:$0xff] %v437_v15  ;;  %440 = vst [vmem:[%s2636_s8 + $0x480] sm:$0xff] %v439_v16  ;;  %v447_v20 = vld [vmem:[%s2628_s7 + $0x940] sm:$0xff]  ;;  %v449_v21 = vld [vmem:[%s2628_s7 + $0x948] sm:$0xff] }
  0x66   : > { %442 = vst [vmem:[%s2636_s8 + $0x488] sm:$0xff] %v441_v17  ;;  %444 = vst [vmem:[%s2636_s8 + $0x490] sm:$0xff] %v443_v18  ;;  %v451_v22 = vld [vmem:[%s2628_s7 + $0x950] sm:$0xff]  ;;  %v453_v23 = vld [vmem:[%s2628_s7 + $0x958] sm:$0xff] }
  0x67   : > { %446 = vst [vmem:[%s2636_s8 + $0x498] sm:$0xff] %v445_v19  ;;  %448 = vst [vmem:[%s2636_s8 + $0x4a0] sm:$0xff] %v447_v20  ;;  %v455_v24 = vld [vmem:[%s2628_s7 + $0x980] sm:$0xff]  ;;  %v457_v25 = vld [vmem:[%s2628_s7 + $0x988] sm:$0xff] }
  0x68   : > { %450 = vst [vmem:[%s2636_s8 + $0x4a8] sm:$0xff] %v449_v21  ;;  %452 = vst [vmem:[%s2636_s8 + $0x4b0] sm:$0xff] %v451_v22  ;;  %v459_v26 = vld [vmem:[%s2628_s7 + $0x990] sm:$0xff]  ;;  %v461_v27 = vld [vmem:[%s2628_s7 + $0x998] sm:$0xff] }
  0x69   : > { %454 = vst [vmem:[%s2636_s8 + $0x4b8] sm:$0xff] %v453_v23  ;;  %456 = vst [vmem:[%s2636_s8 + $0x4c0] sm:$0xff] %v455_v24  ;;  %v463_v28 = vld [vmem:[%s2628_s7 + $0x9c0] sm:$0xff]  ;;  %v465_v29 = vld [vmem:[%s2628_s7 + $0x9c8] sm:$0xff] }
  0x6a   : > { %458 = vst [vmem:[%s2636_s8 + $0x4c8] sm:$0xff] %v457_v25  ;;  %460 = vst [vmem:[%s2636_s8 + $0x4d0] sm:$0xff] %v459_v26  ;;  %v467_v30 = vld [vmem:[%s2628_s7 + $0x9d0] sm:$0xff]  ;;  %v469_v31 = vld [vmem:[%s2628_s7 + $0x9d8] sm:$0xff] }
  0x6b   : > { %462 = vst [vmem:[%s2636_s8 + $0x4d8] sm:$0xff] %v461_v27  ;;  %464 = vst [vmem:[%s2636_s8 + $0x4e0] sm:$0xff] %v463_v28  ;;  %v471_v32 = vld [vmem:[%s2628_s7 + $0xa00] sm:$0xff]  ;;  %v473_v33 = vld [vmem:[%s2628_s7 + $0xa08] sm:$0xff] }
  0x6c   : > { %466 = vst [vmem:[%s2636_s8 + $0x4e8] sm:$0xff] %v465_v29  ;;  %468 = vst [vmem:[%s2636_s8 + $0x4f0] sm:$0xff] %v467_v30  ;;  %v475_v34 = vld [vmem:[%s2628_s7 + $0xa10] sm:$0xff]  ;;  %v477_v35 = vld [vmem:[%s2628_s7 + $0xa18] sm:$0xff] }
  0x6d   : > { %470 = vst [vmem:[%s2636_s8 + $0x4f8] sm:$0xff] %v469_v31  ;;  %472 = vst [vmem:[%s2636_s8 + $0x500] sm:$0xff] %v471_v32  ;;  %v479_v36 = vld [vmem:[%s2628_s7 + $0xa40] sm:$0xff]  ;;  %v481_v37 = vld [vmem:[%s2628_s7 + $0xa48] sm:$0xff] }
  0x6e   : > { %474 = vst [vmem:[%s2636_s8 + $0x508] sm:$0xff] %v473_v33  ;;  %476 = vst [vmem:[%s2636_s8 + $0x510] sm:$0xff] %v475_v34  ;;  %v483_v38 = vld [vmem:[%s2628_s7 + $0xa50] sm:$0xff]  ;;  %v485_v39 = vld [vmem:[%s2628_s7 + $0xa58] sm:$0xff] }
  0x6f   : > { %478 = vst [vmem:[%s2636_s8 + $0x518] sm:$0xff] %v477_v35  ;;  %480 = vst [vmem:[%s2636_s8 + $0x520] sm:$0xff] %v479_v36  ;;  %v487_v40 = vld [vmem:[%s2628_s7 + $0xa80] sm:$0xff]  ;;  %v489_v41 = vld [vmem:[%s2628_s7 + $0xa88] sm:$0xff] }
  0x70   : > { %482 = vst [vmem:[%s2636_s8 + $0x528] sm:$0xff] %v481_v37  ;;  %484 = vst [vmem:[%s2636_s8 + $0x530] sm:$0xff] %v483_v38  ;;  %v491_v42 = vld [vmem:[%s2628_s7 + $0xa90] sm:$0xff]  ;;  %v493_v43 = vld [vmem:[%s2628_s7 + $0xa98] sm:$0xff] }
  0x71   : > { %486 = vst [vmem:[%s2636_s8 + $0x538] sm:$0xff] %v485_v39  ;;  %488 = vst [vmem:[%s2636_s8 + $0x540] sm:$0xff] %v487_v40  ;;  %v495_v44 = vld [vmem:[%s2628_s7 + $0xac0] sm:$0xff]  ;;  %v497_v45 = vld [vmem:[%s2628_s7 + $0xac8] sm:$0xff] }
  0x72   : > { %490 = vst [vmem:[%s2636_s8 + $0x548] sm:$0xff] %v489_v41  ;;  %492 = vst [vmem:[%s2636_s8 + $0x550] sm:$0xff] %v491_v42  ;;  %v499_v46 = vld [vmem:[%s2628_s7 + $0xad0] sm:$0xff]  ;;  %v501_v47 = vld [vmem:[%s2628_s7 + $0xad8] sm:$0xff] }
  0x73   : > { %494 = vst [vmem:[%s2636_s8 + $0x558] sm:$0xff] %v493_v43  ;;  %496 = vst [vmem:[%s2636_s8 + $0x560] sm:$0xff] %v495_v44  ;;  %v503_v48 = vld [vmem:[%s2628_s7 + $0xb00] sm:$0xff]  ;;  %v505_v49 = vld [vmem:[%s2628_s7 + $0xb08] sm:$0xff] }
  0x74   : > { %498 = vst [vmem:[%s2636_s8 + $0x568] sm:$0xff] %v497_v45  ;;  %500 = vst [vmem:[%s2636_s8 + $0x570] sm:$0xff] %v499_v46  ;;  %v507_v50 = vld [vmem:[%s2628_s7 + $0xb10] sm:$0xff]  ;;  %v509_v51 = vld [vmem:[%s2628_s7 + $0xb18] sm:$0xff] }
  0x75   : > { %502 = vst [vmem:[%s2636_s8 + $0x578] sm:$0xff] %v501_v47  ;;  %504 = vst [vmem:[%s2636_s8 + $0x580] sm:$0xff] %v503_v48  ;;  %v511_v52 = vld [vmem:[%s2628_s7 + $0xb40] sm:$0xff]  ;;  %v513_v53 = vld [vmem:[%s2628_s7 + $0xb48] sm:$0xff] }
  0x76   : > { %506 = vst [vmem:[%s2636_s8 + $0x588] sm:$0xff] %v505_v49  ;;  %508 = vst [vmem:[%s2636_s8 + $0x590] sm:$0xff] %v507_v50  ;;  %v515_v54 = vld [vmem:[%s2628_s7 + $0xb50] sm:$0xff]  ;;  %v517_v55 = vld [vmem:[%s2628_s7 + $0xb58] sm:$0xff] }
  0x77   : > { %510 = vst [vmem:[%s2636_s8 + $0x598] sm:$0xff] %v509_v51  ;;  %512 = vst [vmem:[%s2636_s8 + $0x5a0] sm:$0xff] %v511_v52  ;;  %v519_v56 = vld [vmem:[%s2628_s7 + $0xb80] sm:$0xff]  ;;  %v521_v57 = vld [vmem:[%s2628_s7 + $0xb88] sm:$0xff] }
  0x78   : > { %514 = vst [vmem:[%s2636_s8 + $0x5a8] sm:$0xff] %v513_v53  ;;  %516 = vst [vmem:[%s2636_s8 + $0x5b0] sm:$0xff] %v515_v54  ;;  %v523_v58 = vld [vmem:[%s2628_s7 + $0xb90] sm:$0xff]  ;;  %v525_v59 = vld [vmem:[%s2628_s7 + $0xb98] sm:$0xff] }
  0x79   : > { %518 = vst [vmem:[%s2636_s8 + $0x5b8] sm:$0xff] %v517_v55  ;;  %520 = vst [vmem:[%s2636_s8 + $0x5c0] sm:$0xff] %v519_v56  ;;  %v527_v60 = vld [vmem:[%s2628_s7 + $0xbc0] sm:$0xff]  ;;  %v529_v61 = vld [vmem:[%s2628_s7 + $0xbc8] sm:$0xff] }
  0x7a   : > { %522 = vst [vmem:[%s2636_s8 + $0x5c8] sm:$0xff] %v521_v57  ;;  %524 = vst [vmem:[%s2636_s8 + $0x5d0] sm:$0xff] %v523_v58  ;;  %v531_v62 = vld [vmem:[%s2628_s7 + $0xbd0] sm:$0xff]  ;;  %v533_v63 = vld [vmem:[%s2628_s7 + $0xbd8] sm:$0xff] }
  0x7b   : > { %526 = vst [vmem:[%s2636_s8 + $0x5d8] sm:$0xff] %v525_v59  ;;  %528 = vst [vmem:[%s2636_s8 + $0x5e0] sm:$0xff] %v527_v60  ;;  %v535_v0 = vld [vmem:[%s2628_s7 + $0xc00] sm:$0xff]  ;;  %v537_v1 = vld [vmem:[%s2628_s7 + $0xc08] sm:$0xff] }
  0x7c   : > { %530 = vst [vmem:[%s2636_s8 + $0x5e8] sm:$0xff] %v529_v61  ;;  %532 = vst [vmem:[%s2636_s8 + $0x5f0] sm:$0xff] %v531_v62  ;;  %v539_v2 = vld [vmem:[%s2628_s7 + $0xc10] sm:$0xff]  ;;  %v541_v3 = vld [vmem:[%s2628_s7 + $0xc18] sm:$0xff] }
  0x7d   : > { %534 = vst [vmem:[%s2636_s8 + $0x5f8] sm:$0xff] %v533_v63  ;;  %536 = vst [vmem:[%s2636_s8 + $0x600] sm:$0xff] %v535_v0  ;;  %v543_v4 = vld [vmem:[%s2628_s7 + $0xc40] sm:$0xff]  ;;  %v545_v5 = vld [vmem:[%s2628_s7 + $0xc48] sm:$0xff] }
  0x7e   : > { %538 = vst [vmem:[%s2636_s8 + $0x608] sm:$0xff] %v537_v1  ;;  %540 = vst [vmem:[%s2636_s8 + $0x610] sm:$0xff] %v539_v2  ;;  %v547_v6 = vld [vmem:[%s2628_s7 + $0xc50] sm:$0xff]  ;;  %v549_v7 = vld [vmem:[%s2628_s7 + $0xc58] sm:$0xff] }
  0x7f   : > { %542 = vst [vmem:[%s2636_s8 + $0x618] sm:$0xff] %v541_v3  ;;  %544 = vst [vmem:[%s2636_s8 + $0x620] sm:$0xff] %v543_v4  ;;  %v551_v8 = vld [vmem:[%s2628_s7 + $0xc80] sm:$0xff]  ;;  %v553_v9 = vld [vmem:[%s2628_s7 + $0xc88] sm:$0xff] }
  0x80   : > { %546 = vst [vmem:[%s2636_s8 + $0x628] sm:$0xff] %v545_v5  ;;  %548 = vst [vmem:[%s2636_s8 + $0x630] sm:$0xff] %v547_v6  ;;  %v555_v10 = vld [vmem:[%s2628_s7 + $0xc90] sm:$0xff]  ;;  %v557_v11 = vld [vmem:[%s2628_s7 + $0xc98] sm:$0xff] }
  0x81   : > { %550 = vst [vmem:[%s2636_s8 + $0x638] sm:$0xff] %v549_v7  ;;  %552 = vst [vmem:[%s2636_s8 + $0x640] sm:$0xff] %v551_v8  ;;  %v559_v12 = vld [vmem:[%s2628_s7 + $0xcc0] sm:$0xff]  ;;  %v561_v13 = vld [vmem:[%s2628_s7 + $0xcc8] sm:$0xff] }
  0x82   : > { %554 = vst [vmem:[%s2636_s8 + $0x648] sm:$0xff] %v553_v9  ;;  %556 = vst [vmem:[%s2636_s8 + $0x650] sm:$0xff] %v555_v10  ;;  %v563_v14 = vld [vmem:[%s2628_s7 + $0xcd0] sm:$0xff]  ;;  %v565_v15 = vld [vmem:[%s2628_s7 + $0xcd8] sm:$0xff] }
  0x83   : > { %558 = vst [vmem:[%s2636_s8 + $0x658] sm:$0xff] %v557_v11  ;;  %560 = vst [vmem:[%s2636_s8 + $0x660] sm:$0xff] %v559_v12  ;;  %v567_v16 = vld [vmem:[%s2628_s7 + $0xd00] sm:$0xff]  ;;  %v569_v17 = vld [vmem:[%s2628_s7 + $0xd08] sm:$0xff] }
  0x84   : > { %562 = vst [vmem:[%s2636_s8 + $0x668] sm:$0xff] %v561_v13  ;;  %564 = vst [vmem:[%s2636_s8 + $0x670] sm:$0xff] %v563_v14  ;;  %v571_v18 = vld [vmem:[%s2628_s7 + $0xd10] sm:$0xff]  ;;  %v573_v19 = vld [vmem:[%s2628_s7 + $0xd18] sm:$0xff] }
  0x85   : > { %566 = vst [vmem:[%s2636_s8 + $0x678] sm:$0xff] %v565_v15  ;;  %568 = vst [vmem:[%s2636_s8 + $0x680] sm:$0xff] %v567_v16  ;;  %v575_v20 = vld [vmem:[%s2628_s7 + $0xd40] sm:$0xff]  ;;  %v577_v21 = vld [vmem:[%s2628_s7 + $0xd48] sm:$0xff] }
  0x86   : > { %570 = vst [vmem:[%s2636_s8 + $0x688] sm:$0xff] %v569_v17  ;;  %572 = vst [vmem:[%s2636_s8 + $0x690] sm:$0xff] %v571_v18  ;;  %v579_v22 = vld [vmem:[%s2628_s7 + $0xd50] sm:$0xff]  ;;  %v581_v23 = vld [vmem:[%s2628_s7 + $0xd58] sm:$0xff] }
  0x87   : > { %574 = vst [vmem:[%s2636_s8 + $0x698] sm:$0xff] %v573_v19  ;;  %576 = vst [vmem:[%s2636_s8 + $0x6a0] sm:$0xff] %v575_v20  ;;  %v583_v24 = vld [vmem:[%s2628_s7 + $0xd80] sm:$0xff]  ;;  %v585_v25 = vld [vmem:[%s2628_s7 + $0xd88] sm:$0xff] }
  0x88   : > { %578 = vst [vmem:[%s2636_s8 + $0x6a8] sm:$0xff] %v577_v21  ;;  %580 = vst [vmem:[%s2636_s8 + $0x6b0] sm:$0xff] %v579_v22  ;;  %v587_v26 = vld [vmem:[%s2628_s7 + $0xd90] sm:$0xff]  ;;  %v589_v27 = vld [vmem:[%s2628_s7 + $0xd98] sm:$0xff] }
  0x89   : > { %582 = vst [vmem:[%s2636_s8 + $0x6b8] sm:$0xff] %v581_v23  ;;  %584 = vst [vmem:[%s2636_s8 + $0x6c0] sm:$0xff] %v583_v24  ;;  %v591_v28 = vld [vmem:[%s2628_s7 + $0xdc0] sm:$0xff]  ;;  %v593_v29 = vld [vmem:[%s2628_s7 + $0xdc8] sm:$0xff] }
  0x8a   : > { %586 = vst [vmem:[%s2636_s8 + $0x6c8] sm:$0xff] %v585_v25  ;;  %588 = vst [vmem:[%s2636_s8 + $0x6d0] sm:$0xff] %v587_v26  ;;  %v595_v30 = vld [vmem:[%s2628_s7 + $0xdd0] sm:$0xff]  ;;  %v597_v31 = vld [vmem:[%s2628_s7 + $0xdd8] sm:$0xff] }
  0x8b   : > { %590 = vst [vmem:[%s2636_s8 + $0x6d8] sm:$0xff] %v589_v27  ;;  %592 = vst [vmem:[%s2636_s8 + $0x6e0] sm:$0xff] %v591_v28  ;;  %v599_v32 = vld [vmem:[%s2628_s7 + $0xe00] sm:$0xff]  ;;  %v601_v33 = vld [vmem:[%s2628_s7 + $0xe08] sm:$0xff] }
  0x8c   : > { %594 = vst [vmem:[%s2636_s8 + $0x6e8] sm:$0xff] %v593_v29  ;;  %596 = vst [vmem:[%s2636_s8 + $0x6f0] sm:$0xff] %v595_v30  ;;  %v603_v34 = vld [vmem:[%s2628_s7 + $0xe10] sm:$0xff]  ;;  %v605_v35 = vld [vmem:[%s2628_s7 + $0xe18] sm:$0xff] }
  0x8d   : > { %598 = vst [vmem:[%s2636_s8 + $0x6f8] sm:$0xff] %v597_v31  ;;  %600 = vst [vmem:[%s2636_s8 + $0x700] sm:$0xff] %v599_v32  ;;  %v607_v36 = vld [vmem:[%s2628_s7 + $0xe40] sm:$0xff]  ;;  %v609_v37 = vld [vmem:[%s2628_s7 + $0xe48] sm:$0xff] }
  0x8e   : > { %602 = vst [vmem:[%s2636_s8 + $0x708] sm:$0xff] %v601_v33  ;;  %604 = vst [vmem:[%s2636_s8 + $0x710] sm:$0xff] %v603_v34  ;;  %v611_v38 = vld [vmem:[%s2628_s7 + $0xe50] sm:$0xff]  ;;  %v613_v39 = vld [vmem:[%s2628_s7 + $0xe58] sm:$0xff] }
  0x8f   : > { %606 = vst [vmem:[%s2636_s8 + $0x718] sm:$0xff] %v605_v35  ;;  %608 = vst [vmem:[%s2636_s8 + $0x720] sm:$0xff] %v607_v36  ;;  %v615_v40 = vld [vmem:[%s2628_s7 + $0xe80] sm:$0xff]  ;;  %v617_v41 = vld [vmem:[%s2628_s7 + $0xe88] sm:$0xff] }
  0x90   : > { %610 = vst [vmem:[%s2636_s8 + $0x728] sm:$0xff] %v609_v37  ;;  %612 = vst [vmem:[%s2636_s8 + $0x730] sm:$0xff] %v611_v38  ;;  %v619_v42 = vld [vmem:[%s2628_s7 + $0xe90] sm:$0xff]  ;;  %v621_v43 = vld [vmem:[%s2628_s7 + $0xe98] sm:$0xff] }
  0x91   : > { %614 = vst [vmem:[%s2636_s8 + $0x738] sm:$0xff] %v613_v39  ;;  %616 = vst [vmem:[%s2636_s8 + $0x740] sm:$0xff] %v615_v40  ;;  %v623_v44 = vld [vmem:[%s2628_s7 + $0xec0] sm:$0xff]  ;;  %v625_v45 = vld [vmem:[%s2628_s7 + $0xec8] sm:$0xff] }
  0x92   : > { %618 = vst [vmem:[%s2636_s8 + $0x748] sm:$0xff] %v617_v41  ;;  %620 = vst [vmem:[%s2636_s8 + $0x750] sm:$0xff] %v619_v42  ;;  %v627_v46 = vld [vmem:[%s2628_s7 + $0xed0] sm:$0xff]  ;;  %v629_v47 = vld [vmem:[%s2628_s7 + $0xed8] sm:$0xff] }
  0x93   : > { %622 = vst [vmem:[%s2636_s8 + $0x758] sm:$0xff] %v621_v43  ;;  %624 = vst [vmem:[%s2636_s8 + $0x760] sm:$0xff] %v623_v44  ;;  %v631_v48 = vld [vmem:[%s2628_s7 + $0xf00] sm:$0xff]  ;;  %v633_v49 = vld [vmem:[%s2628_s7 + $0xf08] sm:$0xff] }
  0x94   : > { %626 = vst [vmem:[%s2636_s8 + $0x768] sm:$0xff] %v625_v45  ;;  %628 = vst [vmem:[%s2636_s8 + $0x770] sm:$0xff] %v627_v46  ;;  %v635_v50 = vld [vmem:[%s2628_s7 + $0xf10] sm:$0xff]  ;;  %v637_v51 = vld [vmem:[%s2628_s7 + $0xf18] sm:$0xff] }
  0x95   : > { %630 = vst [vmem:[%s2636_s8 + $0x778] sm:$0xff] %v629_v47  ;;  %632 = vst [vmem:[%s2636_s8 + $0x780] sm:$0xff] %v631_v48  ;;  %v639_v52 = vld [vmem:[%s2628_s7 + $0xf40] sm:$0xff]  ;;  %v641_v53 = vld [vmem:[%s2628_s7 + $0xf48] sm:$0xff] }
  0x96   : > { %634 = vst [vmem:[%s2636_s8 + $0x788] sm:$0xff] %v633_v49  ;;  %636 = vst [vmem:[%s2636_s8 + $0x790] sm:$0xff] %v635_v50  ;;  %v643_v54 = vld [vmem:[%s2628_s7 + $0xf50] sm:$0xff]  ;;  %v645_v55 = vld [vmem:[%s2628_s7 + $0xf58] sm:$0xff] }
  0x97   : > { %638 = vst [vmem:[%s2636_s8 + $0x798] sm:$0xff] %v637_v51  ;;  %640 = vst [vmem:[%s2636_s8 + $0x7a0] sm:$0xff] %v639_v52  ;;  %v647_v56 = vld [vmem:[%s2628_s7 + $0xf80] sm:$0xff]  ;;  %v649_v57 = vld [vmem:[%s2628_s7 + $0xf88] sm:$0xff] }
  0x98   : > { %642 = vst [vmem:[%s2636_s8 + $0x7a8] sm:$0xff] %v641_v53  ;;  %644 = vst [vmem:[%s2636_s8 + $0x7b0] sm:$0xff] %v643_v54  ;;  %v651_v58 = vld [vmem:[%s2628_s7 + $0xf90] sm:$0xff]  ;;  %v653_v59 = vld [vmem:[%s2628_s7 + $0xf98] sm:$0xff] }
  0x99   : > { %646 = vst [vmem:[%s2636_s8 + $0x7b8] sm:$0xff] %v645_v55  ;;  %648 = vst [vmem:[%s2636_s8 + $0x7c0] sm:$0xff] %v647_v56  ;;  %v655_v60 = vld [vmem:[%s2628_s7 + $0xfc0] sm:$0xff]  ;;  %v657_v61 = vld [vmem:[%s2628_s7 + $0xfc8] sm:$0xff] }
  0x9a   : > { %650 = vst [vmem:[%s2636_s8 + $0x7c8] sm:$0xff] %v649_v57  ;;  %652 = vst [vmem:[%s2636_s8 + $0x7d0] sm:$0xff] %v651_v58  ;;  %v659_v62 = vld [vmem:[%s2628_s7 + $0xfd0] sm:$0xff]  ;;  %v661_v63 = vld [vmem:[%s2628_s7 + $0xfd8] sm:$0xff] }
  0x9b   : > { %654 = vst [vmem:[%s2636_s8 + $0x7d8] sm:$0xff] %v653_v59  ;;  %656 = vst [vmem:[%s2636_s8 + $0x7e0] sm:$0xff] %v655_v60  ;;  %v663_v0 = vld [vmem:[%s2628_s7 + $0x1000] sm:$0xff]  ;;  %v665_v1 = vld [vmem:[%s2628_s7 + $0x1008] sm:$0xff] }
  0x9c   : > { %658 = vst [vmem:[%s2636_s8 + $0x7e8] sm:$0xff] %v657_v61  ;;  %660 = vst [vmem:[%s2636_s8 + $0x7f0] sm:$0xff] %v659_v62  ;;  %v667_v2 = vld [vmem:[%s2628_s7 + $0x1010] sm:$0xff]  ;;  %v669_v3 = vld [vmem:[%s2628_s7 + $0x1018] sm:$0xff] }
  0x9d   : > { %662 = vst [vmem:[%s2636_s8 + $0x7f8] sm:$0xff] %v661_v63  ;;  %664 = vst [vmem:[%s2636_s8 + $0x800] sm:$0xff] %v663_v0  ;;  %v671_v4 = vld [vmem:[%s2628_s7 + $0x1040] sm:$0xff]  ;;  %v673_v5 = vld [vmem:[%s2628_s7 + $0x1048] sm:$0xff] }
  0x9e   : > { %666 = vst [vmem:[%s2636_s8 + $0x808] sm:$0xff] %v665_v1  ;;  %668 = vst [vmem:[%s2636_s8 + $0x810] sm:$0xff] %v667_v2  ;;  %v675_v6 = vld [vmem:[%s2628_s7 + $0x1050] sm:$0xff]  ;;  %v677_v7 = vld [vmem:[%s2628_s7 + $0x1058] sm:$0xff] }
  0x9f   : > { %670 = vst [vmem:[%s2636_s8 + $0x818] sm:$0xff] %v669_v3  ;;  %672 = vst [vmem:[%s2636_s8 + $0x820] sm:$0xff] %v671_v4  ;;  %v679_v8 = vld [vmem:[%s2628_s7 + $0x1080] sm:$0xff]  ;;  %v681_v9 = vld [vmem:[%s2628_s7 + $0x1088] sm:$0xff] }
  0xa0   : > { %674 = vst [vmem:[%s2636_s8 + $0x828] sm:$0xff] %v673_v5  ;;  %676 = vst [vmem:[%s2636_s8 + $0x830] sm:$0xff] %v675_v6  ;;  %v683_v10 = vld [vmem:[%s2628_s7 + $0x1090] sm:$0xff]  ;;  %v685_v11 = vld [vmem:[%s2628_s7 + $0x1098] sm:$0xff] }
  0xa1   : > { %678 = vst [vmem:[%s2636_s8 + $0x838] sm:$0xff] %v677_v7  ;;  %680 = vst [vmem:[%s2636_s8 + $0x840] sm:$0xff] %v679_v8  ;;  %v687_v12 = vld [vmem:[%s2628_s7 + $0x10c0] sm:$0xff]  ;;  %v689_v13 = vld [vmem:[%s2628_s7 + $0x10c8] sm:$0xff] }
  0xa2   : > { %682 = vst [vmem:[%s2636_s8 + $0x848] sm:$0xff] %v681_v9  ;;  %684 = vst [vmem:[%s2636_s8 + $0x850] sm:$0xff] %v683_v10  ;;  %v691_v14 = vld [vmem:[%s2628_s7 + $0x10d0] sm:$0xff]  ;;  %v693_v15 = vld [vmem:[%s2628_s7 + $0x10d8] sm:$0xff] }
  0xa3   : > { %686 = vst [vmem:[%s2636_s8 + $0x858] sm:$0xff] %v685_v11  ;;  %688 = vst [vmem:[%s2636_s8 + $0x860] sm:$0xff] %v687_v12  ;;  %v695_v16 = vld [vmem:[%s2628_s7 + $0x1100] sm:$0xff]  ;;  %v697_v17 = vld [vmem:[%s2628_s7 + $0x1108] sm:$0xff] }
  0xa4   : > { %690 = vst [vmem:[%s2636_s8 + $0x868] sm:$0xff] %v689_v13  ;;  %692 = vst [vmem:[%s2636_s8 + $0x870] sm:$0xff] %v691_v14  ;;  %v699_v18 = vld [vmem:[%s2628_s7 + $0x1110] sm:$0xff]  ;;  %v701_v19 = vld [vmem:[%s2628_s7 + $0x1118] sm:$0xff] }
  0xa5   : > { %694 = vst [vmem:[%s2636_s8 + $0x878] sm:$0xff] %v693_v15  ;;  %696 = vst [vmem:[%s2636_s8 + $0x880] sm:$0xff] %v695_v16  ;;  %v703_v20 = vld [vmem:[%s2628_s7 + $0x1140] sm:$0xff]  ;;  %v705_v21 = vld [vmem:[%s2628_s7 + $0x1148] sm:$0xff] }
  0xa6   : > { %698 = vst [vmem:[%s2636_s8 + $0x888] sm:$0xff] %v697_v17  ;;  %700 = vst [vmem:[%s2636_s8 + $0x890] sm:$0xff] %v699_v18  ;;  %v707_v22 = vld [vmem:[%s2628_s7 + $0x1150] sm:$0xff]  ;;  %v709_v23 = vld [vmem:[%s2628_s7 + $0x1158] sm:$0xff] }
  0xa7   : > { %702 = vst [vmem:[%s2636_s8 + $0x898] sm:$0xff] %v701_v19  ;;  %704 = vst [vmem:[%s2636_s8 + $0x8a0] sm:$0xff] %v703_v20  ;;  %v711_v24 = vld [vmem:[%s2628_s7 + $0x1180] sm:$0xff]  ;;  %v713_v25 = vld [vmem:[%s2628_s7 + $0x1188] sm:$0xff] }
  0xa8   : > { %706 = vst [vmem:[%s2636_s8 + $0x8a8] sm:$0xff] %v705_v21  ;;  %708 = vst [vmem:[%s2636_s8 + $0x8b0] sm:$0xff] %v707_v22  ;;  %v715_v26 = vld [vmem:[%s2628_s7 + $0x1190] sm:$0xff]  ;;  %v717_v27 = vld [vmem:[%s2628_s7 + $0x1198] sm:$0xff] }
  0xa9   : > { %710 = vst [vmem:[%s2636_s8 + $0x8b8] sm:$0xff] %v709_v23  ;;  %712 = vst [vmem:[%s2636_s8 + $0x8c0] sm:$0xff] %v711_v24  ;;  %v719_v28 = vld [vmem:[%s2628_s7 + $0x11c0] sm:$0xff]  ;;  %v721_v29 = vld [vmem:[%s2628_s7 + $0x11c8] sm:$0xff] }
  0xaa   : > { %714 = vst [vmem:[%s2636_s8 + $0x8c8] sm:$0xff] %v713_v25  ;;  %716 = vst [vmem:[%s2636_s8 + $0x8d0] sm:$0xff] %v715_v26  ;;  %v723_v30 = vld [vmem:[%s2628_s7 + $0x11d0] sm:$0xff]  ;;  %v725_v31 = vld [vmem:[%s2628_s7 + $0x11d8] sm:$0xff] }
  0xab   : > { %718 = vst [vmem:[%s2636_s8 + $0x8d8] sm:$0xff] %v717_v27  ;;  %720 = vst [vmem:[%s2636_s8 + $0x8e0] sm:$0xff] %v719_v28  ;;  %v727_v32 = vld [vmem:[%s2628_s7 + $0x1200] sm:$0xff]  ;;  %v729_v33 = vld [vmem:[%s2628_s7 + $0x1208] sm:$0xff] }
  0xac   : > { %722 = vst [vmem:[%s2636_s8 + $0x8e8] sm:$0xff] %v721_v29  ;;  %724 = vst [vmem:[%s2636_s8 + $0x8f0] sm:$0xff] %v723_v30  ;;  %v731_v34 = vld [vmem:[%s2628_s7 + $0x1210] sm:$0xff]  ;;  %v733_v35 = vld [vmem:[%s2628_s7 + $0x1218] sm:$0xff] }
  0xad   : > { %726 = vst [vmem:[%s2636_s8 + $0x8f8] sm:$0xff] %v725_v31  ;;  %728 = vst [vmem:[%s2636_s8 + $0x900] sm:$0xff] %v727_v32  ;;  %v735_v36 = vld [vmem:[%s2628_s7 + $0x1240] sm:$0xff]  ;;  %v737_v37 = vld [vmem:[%s2628_s7 + $0x1248] sm:$0xff] }
  0xae   : > { %730 = vst [vmem:[%s2636_s8 + $0x908] sm:$0xff] %v729_v33  ;;  %732 = vst [vmem:[%s2636_s8 + $0x910] sm:$0xff] %v731_v34  ;;  %v739_v38 = vld [vmem:[%s2628_s7 + $0x1250] sm:$0xff]  ;;  %v741_v39 = vld [vmem:[%s2628_s7 + $0x1258] sm:$0xff] }
  0xaf   : > { %734 = vst [vmem:[%s2636_s8 + $0x918] sm:$0xff] %v733_v35  ;;  %736 = vst [vmem:[%s2636_s8 + $0x920] sm:$0xff] %v735_v36  ;;  %v743_v40 = vld [vmem:[%s2628_s7 + $0x1280] sm:$0xff]  ;;  %v745_v41 = vld [vmem:[%s2628_s7 + $0x1288] sm:$0xff] }
  0xb0   : > { %738 = vst [vmem:[%s2636_s8 + $0x928] sm:$0xff] %v737_v37  ;;  %740 = vst [vmem:[%s2636_s8 + $0x930] sm:$0xff] %v739_v38  ;;  %v747_v42 = vld [vmem:[%s2628_s7 + $0x1290] sm:$0xff]  ;;  %v749_v43 = vld [vmem:[%s2628_s7 + $0x1298] sm:$0xff] }
  0xb1   : > { %742 = vst [vmem:[%s2636_s8 + $0x938] sm:$0xff] %v741_v39  ;;  %744 = vst [vmem:[%s2636_s8 + $0x940] sm:$0xff] %v743_v40  ;;  %v751_v44 = vld [vmem:[%s2628_s7 + $0x12c0] sm:$0xff]  ;;  %v753_v45 = vld [vmem:[%s2628_s7 + $0x12c8] sm:$0xff] }
  0xb2   : > { %746 = vst [vmem:[%s2636_s8 + $0x948] sm:$0xff] %v745_v41  ;;  %748 = vst [vmem:[%s2636_s8 + $0x950] sm:$0xff] %v747_v42  ;;  %v755_v46 = vld [vmem:[%s2628_s7 + $0x12d0] sm:$0xff]  ;;  %v757_v47 = vld [vmem:[%s2628_s7 + $0x12d8] sm:$0xff] }
  0xb3   : > { %750 = vst [vmem:[%s2636_s8 + $0x958] sm:$0xff] %v749_v43  ;;  %752 = vst [vmem:[%s2636_s8 + $0x960] sm:$0xff] %v751_v44  ;;  %v759_v48 = vld [vmem:[%s2628_s7 + $0x1300] sm:$0xff]  ;;  %v761_v49 = vld [vmem:[%s2628_s7 + $0x1308] sm:$0xff] }
  0xb4   : > { %754 = vst [vmem:[%s2636_s8 + $0x968] sm:$0xff] %v753_v45  ;;  %756 = vst [vmem:[%s2636_s8 + $0x970] sm:$0xff] %v755_v46  ;;  %v763_v50 = vld [vmem:[%s2628_s7 + $0x1310] sm:$0xff]  ;;  %v765_v51 = vld [vmem:[%s2628_s7 + $0x1318] sm:$0xff] }
  0xb5   : > { %758 = vst [vmem:[%s2636_s8 + $0x978] sm:$0xff] %v757_v47  ;;  %760 = vst [vmem:[%s2636_s8 + $0x980] sm:$0xff] %v759_v48  ;;  %v767_v52 = vld [vmem:[%s2628_s7 + $0x1340] sm:$0xff]  ;;  %v769_v53 = vld [vmem:[%s2628_s7 + $0x1348] sm:$0xff] }
  0xb6   : > { %762 = vst [vmem:[%s2636_s8 + $0x988] sm:$0xff] %v761_v49  ;;  %764 = vst [vmem:[%s2636_s8 + $0x990] sm:$0xff] %v763_v50  ;;  %v771_v54 = vld [vmem:[%s2628_s7 + $0x1350] sm:$0xff]  ;;  %v773_v55 = vld [vmem:[%s2628_s7 + $0x1358] sm:$0xff] }
  0xb7   : > { %766 = vst [vmem:[%s2636_s8 + $0x998] sm:$0xff] %v765_v51  ;;  %768 = vst [vmem:[%s2636_s8 + $0x9a0] sm:$0xff] %v767_v52  ;;  %v775_v56 = vld [vmem:[%s2628_s7 + $0x1380] sm:$0xff]  ;;  %v777_v57 = vld [vmem:[%s2628_s7 + $0x1388] sm:$0xff] }
  0xb8   : > { %770 = vst [vmem:[%s2636_s8 + $0x9a8] sm:$0xff] %v769_v53  ;;  %772 = vst [vmem:[%s2636_s8 + $0x9b0] sm:$0xff] %v771_v54  ;;  %v779_v58 = vld [vmem:[%s2628_s7 + $0x1390] sm:$0xff]  ;;  %v781_v59 = vld [vmem:[%s2628_s7 + $0x1398] sm:$0xff] }
  0xb9   : > { %774 = vst [vmem:[%s2636_s8 + $0x9b8] sm:$0xff] %v773_v55  ;;  %776 = vst [vmem:[%s2636_s8 + $0x9c0] sm:$0xff] %v775_v56  ;;  %v783_v60 = vld [vmem:[%s2628_s7 + $0x13c0] sm:$0xff]  ;;  %v785_v61 = vld [vmem:[%s2628_s7 + $0x13c8] sm:$0xff] }
  0xba   : > { %778 = vst [vmem:[%s2636_s8 + $0x9c8] sm:$0xff] %v777_v57  ;;  %780 = vst [vmem:[%s2636_s8 + $0x9d0] sm:$0xff] %v779_v58  ;;  %v787_v62 = vld [vmem:[%s2628_s7 + $0x13d0] sm:$0xff]  ;;  %v789_v63 = vld [vmem:[%s2628_s7 + $0x13d8] sm:$0xff] }
  0xbb   : > { %782 = vst [vmem:[%s2636_s8 + $0x9d8] sm:$0xff] %v781_v59  ;;  %784 = vst [vmem:[%s2636_s8 + $0x9e0] sm:$0xff] %v783_v60  ;;  %v791_v0 = vld [vmem:[%s2628_s7 + $0x1400] sm:$0xff]  ;;  %v793_v1 = vld [vmem:[%s2628_s7 + $0x1408] sm:$0xff] }
  0xbc   : > { %786 = vst [vmem:[%s2636_s8 + $0x9e8] sm:$0xff] %v785_v61  ;;  %788 = vst [vmem:[%s2636_s8 + $0x9f0] sm:$0xff] %v787_v62  ;;  %v795_v2 = vld [vmem:[%s2628_s7 + $0x1410] sm:$0xff]  ;;  %v797_v3 = vld [vmem:[%s2628_s7 + $0x1418] sm:$0xff] }
  0xbd   : > { %790 = vst [vmem:[%s2636_s8 + $0x9f8] sm:$0xff] %v789_v63  ;;  %792 = vst [vmem:[%s2636_s8 + $0xa00] sm:$0xff] %v791_v0  ;;  %v799_v4 = vld [vmem:[%s2628_s7 + $0x1440] sm:$0xff]  ;;  %v801_v5 = vld [vmem:[%s2628_s7 + $0x1448] sm:$0xff] }
  0xbe   : > { %794 = vst [vmem:[%s2636_s8 + $0xa08] sm:$0xff] %v793_v1  ;;  %796 = vst [vmem:[%s2636_s8 + $0xa10] sm:$0xff] %v795_v2  ;;  %v803_v6 = vld [vmem:[%s2628_s7 + $0x1450] sm:$0xff]  ;;  %v805_v7 = vld [vmem:[%s2628_s7 + $0x1458] sm:$0xff] }
  0xbf   : > { %798 = vst [vmem:[%s2636_s8 + $0xa18] sm:$0xff] %v797_v3  ;;  %800 = vst [vmem:[%s2636_s8 + $0xa20] sm:$0xff] %v799_v4  ;;  %v807_v8 = vld [vmem:[%s2628_s7 + $0x1480] sm:$0xff]  ;;  %v809_v9 = vld [vmem:[%s2628_s7 + $0x1488] sm:$0xff] }
  0xc0   : > { %802 = vst [vmem:[%s2636_s8 + $0xa28] sm:$0xff] %v801_v5  ;;  %804 = vst [vmem:[%s2636_s8 + $0xa30] sm:$0xff] %v803_v6  ;;  %v811_v10 = vld [vmem:[%s2628_s7 + $0x1490] sm:$0xff]  ;;  %v813_v11 = vld [vmem:[%s2628_s7 + $0x1498] sm:$0xff] }
  0xc1   : > { %806 = vst [vmem:[%s2636_s8 + $0xa38] sm:$0xff] %v805_v7  ;;  %808 = vst [vmem:[%s2636_s8 + $0xa40] sm:$0xff] %v807_v8  ;;  %v815_v12 = vld [vmem:[%s2628_s7 + $0x14c0] sm:$0xff]  ;;  %v817_v13 = vld [vmem:[%s2628_s7 + $0x14c8] sm:$0xff] }
  0xc2   : > { %810 = vst [vmem:[%s2636_s8 + $0xa48] sm:$0xff] %v809_v9  ;;  %812 = vst [vmem:[%s2636_s8 + $0xa50] sm:$0xff] %v811_v10  ;;  %v819_v14 = vld [vmem:[%s2628_s7 + $0x14d0] sm:$0xff]  ;;  %v821_v15 = vld [vmem:[%s2628_s7 + $0x14d8] sm:$0xff] }
  0xc3   : > { %814 = vst [vmem:[%s2636_s8 + $0xa58] sm:$0xff] %v813_v11  ;;  %816 = vst [vmem:[%s2636_s8 + $0xa60] sm:$0xff] %v815_v12  ;;  %v823_v16 = vld [vmem:[%s2628_s7 + $0x1500] sm:$0xff]  ;;  %v825_v17 = vld [vmem:[%s2628_s7 + $0x1508] sm:$0xff] }
  0xc4   : > { %818 = vst [vmem:[%s2636_s8 + $0xa68] sm:$0xff] %v817_v13  ;;  %820 = vst [vmem:[%s2636_s8 + $0xa70] sm:$0xff] %v819_v14  ;;  %v827_v18 = vld [vmem:[%s2628_s7 + $0x1510] sm:$0xff]  ;;  %v829_v19 = vld [vmem:[%s2628_s7 + $0x1518] sm:$0xff] }
  0xc5   : > { %822 = vst [vmem:[%s2636_s8 + $0xa78] sm:$0xff] %v821_v15  ;;  %824 = vst [vmem:[%s2636_s8 + $0xa80] sm:$0xff] %v823_v16  ;;  %v831_v20 = vld [vmem:[%s2628_s7 + $0x1540] sm:$0xff]  ;;  %v833_v21 = vld [vmem:[%s2628_s7 + $0x1548] sm:$0xff] }
  0xc6   : > { %826 = vst [vmem:[%s2636_s8 + $0xa88] sm:$0xff] %v825_v17  ;;  %828 = vst [vmem:[%s2636_s8 + $0xa90] sm:$0xff] %v827_v18  ;;  %v835_v22 = vld [vmem:[%s2628_s7 + $0x1550] sm:$0xff]  ;;  %v837_v23 = vld [vmem:[%s2628_s7 + $0x1558] sm:$0xff] }
  0xc7   : > { %830 = vst [vmem:[%s2636_s8 + $0xa98] sm:$0xff] %v829_v19  ;;  %832 = vst [vmem:[%s2636_s8 + $0xaa0] sm:$0xff] %v831_v20  ;;  %v839_v24 = vld [vmem:[%s2628_s7 + $0x1580] sm:$0xff]  ;;  %v841_v25 = vld [vmem:[%s2628_s7 + $0x1588] sm:$0xff] }
  0xc8   : > { %834 = vst [vmem:[%s2636_s8 + $0xaa8] sm:$0xff] %v833_v21  ;;  %836 = vst [vmem:[%s2636_s8 + $0xab0] sm:$0xff] %v835_v22  ;;  %v843_v26 = vld [vmem:[%s2628_s7 + $0x1590] sm:$0xff]  ;;  %v845_v27 = vld [vmem:[%s2628_s7 + $0x1598] sm:$0xff] }
  0xc9   : > { %838 = vst [vmem:[%s2636_s8 + $0xab8] sm:$0xff] %v837_v23  ;;  %840 = vst [vmem:[%s2636_s8 + $0xac0] sm:$0xff] %v839_v24  ;;  %v847_v28 = vld [vmem:[%s2628_s7 + $0x15c0] sm:$0xff]  ;;  %v849_v29 = vld [vmem:[%s2628_s7 + $0x15c8] sm:$0xff] }
  0xca   : > { %842 = vst [vmem:[%s2636_s8 + $0xac8] sm:$0xff] %v841_v25  ;;  %844 = vst [vmem:[%s2636_s8 + $0xad0] sm:$0xff] %v843_v26  ;;  %v851_v30 = vld [vmem:[%s2628_s7 + $0x15d0] sm:$0xff]  ;;  %v853_v31 = vld [vmem:[%s2628_s7 + $0x15d8] sm:$0xff] }
  0xcb   : > { %846 = vst [vmem:[%s2636_s8 + $0xad8] sm:$0xff] %v845_v27  ;;  %848 = vst [vmem:[%s2636_s8 + $0xae0] sm:$0xff] %v847_v28  ;;  %v855_v32 = vld [vmem:[%s2628_s7 + $0x1600] sm:$0xff]  ;;  %v857_v33 = vld [vmem:[%s2628_s7 + $0x1608] sm:$0xff] }
  0xcc   : > { %850 = vst [vmem:[%s2636_s8 + $0xae8] sm:$0xff] %v849_v29  ;;  %852 = vst [vmem:[%s2636_s8 + $0xaf0] sm:$0xff] %v851_v30  ;;  %v859_v34 = vld [vmem:[%s2628_s7 + $0x1610] sm:$0xff]  ;;  %v861_v35 = vld [vmem:[%s2628_s7 + $0x1618] sm:$0xff] }
  0xcd   : > { %854 = vst [vmem:[%s2636_s8 + $0xaf8] sm:$0xff] %v853_v31  ;;  %856 = vst [vmem:[%s2636_s8 + $0xb00] sm:$0xff] %v855_v32  ;;  %v863_v36 = vld [vmem:[%s2628_s7 + $0x1640] sm:$0xff]  ;;  %v865_v37 = vld [vmem:[%s2628_s7 + $0x1648] sm:$0xff] }
  0xce   : > { %858 = vst [vmem:[%s2636_s8 + $0xb08] sm:$0xff] %v857_v33  ;;  %860 = vst [vmem:[%s2636_s8 + $0xb10] sm:$0xff] %v859_v34  ;;  %v867_v38 = vld [vmem:[%s2628_s7 + $0x1650] sm:$0xff]  ;;  %v869_v39 = vld [vmem:[%s2628_s7 + $0x1658] sm:$0xff] }
  0xcf   : > { %862 = vst [vmem:[%s2636_s8 + $0xb18] sm:$0xff] %v861_v35  ;;  %864 = vst [vmem:[%s2636_s8 + $0xb20] sm:$0xff] %v863_v36  ;;  %v871_v40 = vld [vmem:[%s2628_s7 + $0x1680] sm:$0xff]  ;;  %v873_v41 = vld [vmem:[%s2628_s7 + $0x1688] sm:$0xff] }
  0xd0   : > { %866 = vst [vmem:[%s2636_s8 + $0xb28] sm:$0xff] %v865_v37  ;;  %868 = vst [vmem:[%s2636_s8 + $0xb30] sm:$0xff] %v867_v38  ;;  %v875_v42 = vld [vmem:[%s2628_s7 + $0x1690] sm:$0xff]  ;;  %v877_v43 = vld [vmem:[%s2628_s7 + $0x1698] sm:$0xff] }
  0xd1   : > { %870 = vst [vmem:[%s2636_s8 + $0xb38] sm:$0xff] %v869_v39  ;;  %872 = vst [vmem:[%s2636_s8 + $0xb40] sm:$0xff] %v871_v40  ;;  %v879_v44 = vld [vmem:[%s2628_s7 + $0x16c0] sm:$0xff]  ;;  %v881_v45 = vld [vmem:[%s2628_s7 + $0x16c8] sm:$0xff] }
  0xd2   : > { %874 = vst [vmem:[%s2636_s8 + $0xb48] sm:$0xff] %v873_v41  ;;  %876 = vst [vmem:[%s2636_s8 + $0xb50] sm:$0xff] %v875_v42  ;;  %v883_v46 = vld [vmem:[%s2628_s7 + $0x16d0] sm:$0xff]  ;;  %v885_v47 = vld [vmem:[%s2628_s7 + $0x16d8] sm:$0xff] }
  0xd3   : > { %878 = vst [vmem:[%s2636_s8 + $0xb58] sm:$0xff] %v877_v43  ;;  %880 = vst [vmem:[%s2636_s8 + $0xb60] sm:$0xff] %v879_v44  ;;  %v887_v48 = vld [vmem:[%s2628_s7 + $0x1700] sm:$0xff]  ;;  %v889_v49 = vld [vmem:[%s2628_s7 + $0x1708] sm:$0xff] }
  0xd4   : > { %882 = vst [vmem:[%s2636_s8 + $0xb68] sm:$0xff] %v881_v45  ;;  %884 = vst [vmem:[%s2636_s8 + $0xb70] sm:$0xff] %v883_v46  ;;  %v891_v50 = vld [vmem:[%s2628_s7 + $0x1710] sm:$0xff]  ;;  %v893_v51 = vld [vmem:[%s2628_s7 + $0x1718] sm:$0xff] }
  0xd5   : > { %886 = vst [vmem:[%s2636_s8 + $0xb78] sm:$0xff] %v885_v47  ;;  %888 = vst [vmem:[%s2636_s8 + $0xb80] sm:$0xff] %v887_v48  ;;  %v895_v52 = vld [vmem:[%s2628_s7 + $0x1740] sm:$0xff]  ;;  %v897_v53 = vld [vmem:[%s2628_s7 + $0x1748] sm:$0xff] }
  0xd6   : > { %890 = vst [vmem:[%s2636_s8 + $0xb88] sm:$0xff] %v889_v49  ;;  %892 = vst [vmem:[%s2636_s8 + $0xb90] sm:$0xff] %v891_v50  ;;  %v899_v54 = vld [vmem:[%s2628_s7 + $0x1750] sm:$0xff]  ;;  %v901_v55 = vld [vmem:[%s2628_s7 + $0x1758] sm:$0xff] }
  0xd7   : > { %894 = vst [vmem:[%s2636_s8 + $0xb98] sm:$0xff] %v893_v51  ;;  %896 = vst [vmem:[%s2636_s8 + $0xba0] sm:$0xff] %v895_v52 }
  0xd8   : > { %898 = vst [vmem:[%s2636_s8 + $0xba8] sm:$0xff] %v897_v53  ;;  %900 = vst [vmem:[%s2636_s8 + $0xbb0] sm:$0xff] %v899_v54 }
  0xd9   : > { %902 = vst [vmem:[%s2636_s8 + $0xbb8] sm:$0xff] %v901_v55 }
  0xda PF: > { %p1961_p11 = scmp.ge.s32.totalorder %s2524_s17, 1  ;;  %p907_p12 = scmp.lt.s32.totalorder %s2524_s17, 5 }
  0xdc   : > { %p908_p13 = pnand %p1961_p11, %p907_p12 }
  0xdd   : > { %s914_s20 = sand.u32 (!%p908_p13), 1, %s2500_s11   ;;  %s1963_s11 = sshll.u32 (!%p908_p13), %s2508_s13, 1  ;;  %vm1338_vm0 = vcmask (!%p908_p13), 875520   ;;  %vm1345_vm1 = vcmask (!%p908_p13), 1042432   ;;  %vm2526_vm2 = vmmov (!%p908_p13), 1  }
  0xde   : > { %911 = sbr.rel (%p908_p13) target bundleno = 645 (0x285), region = 47  ;;  %p3460_p0 = scmp.lt.s32.totalorder (!%p908_p13), %s1963_s11, 3  ;;  %vm2167_vm3 = vmpackc.low (!%p908_p13), %vm1345_vm1, %vm2526_vm2 }
  0xdf   : > { %s2379_s21 = smul.u32 (!%p908_p13), 3008, %s914_s20  ;;  %s937_s3 = sand.u32 (!%p908_p13), 1, %s2492_s9  }
  0xe0   : > { %s1962_s4 = sshll.u32 (!%p908_p13), %s937_s3, 6 }
  0xe1   : > { %s3387_s22 = scalar_lea.vmem (!%p908_p13), [#allocation2], %s2379_s21  ;;  %s939_s5 = scalar_lea.vmem (!%p908_p13), [#allocation3], %s1962_s4 }
  0xe2   : > { %v963_v56 = vld [vmem:[%s3387_s22 + $0x8] sm:$0xff] (!%p908_p13)  ;;  %v965_v58 = vld [vmem:[%s3387_s22 + $0x18] sm:$0xff] (!%p908_p13)  ;;  %v962_v61 = vld [vmem:[%s3387_s22] sm:$0xff] (!%p908_p13) }
  0xe3   : > { %v967_v57 = vld [vmem:[%s3387_s22 + $0x28] sm:$0xff] (!%p908_p13)  ;;  %v969_v60 = vld [vmem:[%s3387_s22 + $0x38] sm:$0xff] (!%p908_p13)  ;;  %v966_v62 = vld [vmem:[%s3387_s22 + $0x20] sm:$0xff] (!%p908_p13) }
  0xe4   : > { %v1982_v59 = vpack.c.bf16 (!%p908_p13), %v967_v57, %v963_v56  ;;  %v2172_v63 = vpack.c.bf16 (!%p908_p13), %v969_v60, %v965_v58  ;;  %v1984_v0 = vpack.c.bf16 (!%p908_p13), %v966_v62, %v962_v61  ;;  %v964_v1 = vld [vmem:[%s3387_s22 + $0x10] sm:$0xff] (!%p908_p13)  ;;  %v971_v3 = vld [vmem:[%s3387_s22 + $0x48] sm:$0xff] (!%p908_p13)  ;;  %v973_v6 = vld [vmem:[%s3387_s22 + $0x58] sm:$0xff] (!%p908_p13) }
  0xe5   : > { %v968_v2 = vld [vmem:[%s3387_s22 + $0x30] sm:$0xff]  ;;  %v975_v5 = vld [vmem:[%s3387_s22 + $0x68] sm:$0xff]  ;;  %v977_v7 = vld [vmem:[%s3387_s22 + $0x78] sm:$0xff]  ;;  %s3856_s11 = smov (!%p3460_p0, %s1963_s11), 3  ;;  %s1975_s9 = sshll.u32 (%p2610_p9), %s2512_s14, 2 }
  0xe6   : > { %1983 = vmatprep.subr.bf16.mxu0 %v1982_v59  ;;  %v2174_v4 = vpack.c.bf16 %v968_v2, %v964_v1  ;;  %2173 = vmatprep.subr.bf16.mxu1 %v2172_v63  ;;  %v1986_v8 = vpack.c.bf16 %v975_v5, %v971_v3  ;;  %v2176_v9 = vpack.c.bf16 %v977_v7, %v973_v6  ;;  %v970_v10 = vld [vmem:[%s3387_s22 + $0x40] sm:$0xff]  ;;  %v972_v12 = vld [vmem:[%s3387_s22 + $0x50] sm:$0xff]  ;;  %v979_v15 = vld [vmem:[%s3387_s22 + $0x88] sm:$0xff]  ;;  %s2380_s24 = smul.u32 48, %s3856_s11  ;;  %s1981_s6 = sshll.u32 (%p2610_p9), %s2508_s13, 4 }
  0xe7   : > { %1985 = vmatpush1.bf16.msra.mxu0 %v1984_v0  ;;  %v974_v11 = vld [vmem:[%s3387_s22 + $0x60] sm:$0xff]  ;;  %v976_v14 = vld [vmem:[%s3387_s22 + $0x70] sm:$0xff]  ;;  %v983_v16 = vld [vmem:[%s3387_s22 + $0xa8] sm:$0xff]  ;;  %s1838_s7 = sadd.s32 (%p2610_p9), %s1981_s6, %s1975_s9 }
  0xe8   : > { %2175 = vmatpush1.bf16.msra.mxu1 %v2174_v4  ;;  %v1988_v13 = vpack.c.bf16 %v974_v11, %v970_v10  ;;  %1987 = vmatprep.subr.bf16.mxu0 %v1986_v8  ;;  %v2178_v17 = vpack.c.bf16 %v976_v14, %v972_v12  ;;  %v1990_v18 = vpack.c.bf16 %v983_v16, %v979_v15  ;;  %v981_v19 = vld [vmem:[%s3387_s22 + $0x98] sm:$0xff]  ;;  %v978_v21 = vld [vmem:[%s3387_s22 + $0x80] sm:$0xff]  ;;  %v980_v24 = vld [vmem:[%s3387_s22 + $0x90] sm:$0xff]  ;;  %s3498_s30 = scalar_lea.vmem %s3835_s0, %s2380_s24  ;;  %s1977_s8 = sshll.u32 (%p2610_p9), %s1838_s7, 3 }
  0xe9   : > { %2177 = vmatprep.subr.bf16.mxu1 %v2176_v9  ;;  %v985_v20 = vld [vmem:[%s3387_s22 + $0xb8] sm:$0xff]  ;;  %v982_v23 = vld [vmem:[%s3387_s22 + $0xa0] sm:$0xff]  ;;  %v984_v25 = vld [vmem:[%s3387_s22 + $0xb0] sm:$0xff] }
  0xea   : > { %v2180_v22 = vpack.c.bf16 %v985_v20, %v981_v19  ;;  %v1992_v26 = vpack.c.bf16 %v982_v23, %v978_v21  ;;  %v987_v27 = vld [vmem:[%s3387_s22 + $0xc8] sm:$0xff]  ;;  %v989_v29 = vld [vmem:[%s3387_s22 + $0xd8] sm:$0xff]  ;;  %v2182_v30 = vpack.c.bf16 %v984_v25, %v980_v24  ;;  %v986_v33 = vld [vmem:[%s3387_s22 + $0xc0] sm:$0xff] }
  0xeb   : > { %1989 = vmatpush1.bf16.msra.mxu0 %v1988_v13  ;;  %v991_v28 = vld [vmem:[%s3387_s22 + $0xe8] sm:$0xff]  ;;  %v993_v32 = vld [vmem:[%s3387_s22 + $0xf8] sm:$0xff]  ;;  %v990_v34 = vld [vmem:[%s3387_s22 + $0xe0] sm:$0xff] }
  0xec   : > { %2179 = vmatpush1.bf16.msra.mxu1 %v2178_v17  ;;  %1991 = vmatprep.subr.bf16.mxu0 %v1990_v18  ;;  %v1994_v31 = vpack.c.bf16 %v991_v28, %v987_v27  ;;  %v2184_v35 = vpack.c.bf16 %v993_v32, %v989_v29  ;;  %v988_v36 = vld [vmem:[%s3387_s22 + $0xd0] sm:$0xff]  ;;  %v995_v38 = vld [vmem:[%s3387_s22 + $0x108] sm:$0xff]  ;;  %v997_v40 = vld [vmem:[%s3387_s22 + $0x118] sm:$0xff]  ;;  %v1996_v42 = vpack.c.bf16 %v990_v34, %v986_v33 }
  0xed   : > { %2181 = vmatprep.subr.bf16.mxu1 %v2180_v22  ;;  %v992_v37 = vld [vmem:[%s3387_s22 + $0xf0] sm:$0xff]  ;;  %v999_v39 = vld [vmem:[%s3387_s22 + $0x128] sm:$0xff]  ;;  %v1001_v41 = vld [vmem:[%s3387_s22 + $0x138] sm:$0xff] }
  0xee   : > { %v2186_v43 = vpack.c.bf16 %v992_v37, %v988_v36  ;;  %v1998_v44 = vpack.c.bf16 %v999_v39, %v995_v38  ;;  %v994_v45 = vld [vmem:[%s3387_s22 + $0x100] sm:$0xff]  ;;  %v996_v47 = vld [vmem:[%s3387_s22 + $0x110] sm:$0xff]  ;;  %v2188_v48 = vpack.c.bf16 %v1001_v41, %v997_v40  ;;  %v1003_v50 = vld [vmem:[%s3387_s22 + $0x148] sm:$0xff] }
  0xef   : > { %1993 = vmatpush1.bf16.msra.mxu0 %v1992_v26  ;;  %v998_v46 = vld [vmem:[%s3387_s22 + $0x120] sm:$0xff]  ;;  %v1000_v49 = vld [vmem:[%s3387_s22 + $0x130] sm:$0xff]  ;;  %v1007_v51 = vld [vmem:[%s3387_s22 + $0x168] sm:$0xff] }
  0xf0   : > { %2183 = vmatpush1.bf16.msra.mxu1 %v2182_v30  ;;  %1995 = vmatprep.subr.bf16.mxu0 %v1994_v31  ;;  %v1005_v52 = vld [vmem:[%s3387_s22 + $0x158] sm:$0xff]  ;;  %v2000_v54 = vpack.c.bf16 %v998_v46, %v994_v45  ;;  %v2190_v55 = vpack.c.bf16 %v1000_v49, %v996_v47  ;;  %v2002_v56 = vpack.c.bf16 %v1007_v51, %v1003_v50  ;;  %v1002_v57 = vld [vmem:[%s3387_s22 + $0x140] sm:$0xff]  ;;  %v1004_v59 = vld [vmem:[%s3387_s22 + $0x150] sm:$0xff] }
  0xf1   : > { %2185 = vmatprep.subr.bf16.mxu1 %v2184_v35  ;;  %v1009_v53 = vld [vmem:[%s3387_s22 + $0x178] sm:$0xff]  ;;  %v1006_v58 = vld [vmem:[%s3387_s22 + $0x160] sm:$0xff]  ;;  %v1008_v61 = vld [vmem:[%s3387_s22 + $0x170] sm:$0xff] }
  0xf2   : > { %v2192_v60 = vpack.c.bf16 %v1009_v53, %v1005_v52  ;;  %v1011_v62 = vld [vmem:[%s3387_s22 + $0x188] sm:$0xff]  ;;  %v1013_v0 = vld [vmem:[%s3387_s22 + $0x198] sm:$0xff]  ;;  %v2004_v2 = vpack.c.bf16 %v1006_v58, %v1002_v57  ;;  %v2194_v3 = vpack.c.bf16 %v1008_v61, %v1004_v59  ;;  %v1010_v5 = vld [vmem:[%s3387_s22 + $0x180] sm:$0xff] }
  0xf3   : > { %1997 = vmatpush1.bf16.msra.mxu0 %v1996_v42  ;;  %v1015_v63 = vld [vmem:[%s3387_s22 + $0x1a8] sm:$0xff]  ;;  %v1017_v1 = vld [vmem:[%s3387_s22 + $0x1b8] sm:$0xff]  ;;  %v1014_v6 = vld [vmem:[%s3387_s22 + $0x1a0] sm:$0xff] }
  0xf4   : > { %2187 = vmatpush1.bf16.msra.mxu1 %v2186_v43  ;;  %1999 = vmatprep.subr.bf16.mxu0 %v1998_v44  ;;  %v2006_v4 = vpack.c.bf16 %v1015_v63, %v1011_v62  ;;  %v1012_v7 = vld [vmem:[%s3387_s22 + $0x190] sm:$0xff]  ;;  %v2196_v8 = vpack.c.bf16 %v1017_v1, %v1013_v0  ;;  %v1019_v10 = vld [vmem:[%s3387_s22 + $0x1c8] sm:$0xff]  ;;  %v1021_v12 = vld [vmem:[%s3387_s22 + $0x1d8] sm:$0xff]  ;;  %v2008_v14 = vpack.c.bf16 %v1014_v6, %v1010_v5 }
  0xf5   : > { %2189 = vmatprep.subr.bf16.mxu1 %v2188_v48  ;;  %v1016_v9 = vld [vmem:[%s3387_s22 + $0x1b0] sm:$0xff]  ;;  %v1023_v11 = vld [vmem:[%s3387_s22 + $0x1e8] sm:$0xff]  ;;  %v1025_v13 = vld [vmem:[%s3387_s22 + $0x1f8] sm:$0xff] }
  0xf6   : > { %v2198_v15 = vpack.c.bf16 %v1016_v9, %v1012_v7  ;;  %v2010_v16 = vpack.c.bf16 %v1023_v11, %v1019_v10  ;;  %v1018_v17 = vld [vmem:[%s3387_s22 + $0x1c0] sm:$0xff]  ;;  %v1020_v19 = vld [vmem:[%s3387_s22 + $0x1d0] sm:$0xff]  ;;  %v2200_v20 = vpack.c.bf16 %v1025_v13, %v1021_v12  ;;  %v1027_v22 = vld [vmem:[%s3387_s22 + $0x208] sm:$0xff] }
  0xf7   : > { %2001 = vmatpush1.bf16.msra.mxu0 %v2000_v54  ;;  %v1022_v18 = vld [vmem:[%s3387_s22 + $0x1e0] sm:$0xff]  ;;  %v1024_v21 = vld [vmem:[%s3387_s22 + $0x1f0] sm:$0xff]  ;;  %v1031_v23 = vld [vmem:[%s3387_s22 + $0x228] sm:$0xff] }
  0xf8   : > { %2191 = vmatpush1.bf16.msra.mxu1 %v2190_v55  ;;  %2003 = vmatprep.subr.bf16.mxu0 %v2002_v56  ;;  %v1029_v24 = vld [vmem:[%s3387_s22 + $0x218] sm:$0xff]  ;;  %v2012_v26 = vpack.c.bf16 %v1022_v18, %v1018_v17  ;;  %v2202_v27 = vpack.c.bf16 %v1024_v21, %v1020_v19  ;;  %v2014_v28 = vpack.c.bf16 %v1031_v23, %v1027_v22  ;;  %v1026_v29 = vld [vmem:[%s3387_s22 + $0x200] sm:$0xff]  ;;  %v1028_v31 = vld [vmem:[%s3387_s22 + $0x210] sm:$0xff] }
  0xf9   : > { %2193 = vmatprep.subr.bf16.mxu1 %v2192_v60  ;;  %v1033_v25 = vld [vmem:[%s3387_s22 + $0x238] sm:$0xff]  ;;  %v1030_v30 = vld [vmem:[%s3387_s22 + $0x220] sm:$0xff]  ;;  %v1032_v33 = vld [vmem:[%s3387_s22 + $0x230] sm:$0xff] }
  0xfa   : > { %v2204_v32 = vpack.c.bf16 %v1033_v25, %v1029_v24  ;;  %v1035_v34 = vld [vmem:[%s3387_s22 + $0x248] sm:$0xff]  ;;  %v1037_v36 = vld [vmem:[%s3387_s22 + $0x258] sm:$0xff]  ;;  %v2016_v38 = vpack.c.bf16 %v1030_v30, %v1026_v29  ;;  %v2206_v39 = vpack.c.bf16 %v1032_v33, %v1028_v31  ;;  %v1034_v41 = vld [vmem:[%s3387_s22 + $0x240] sm:$0xff] }
  0xfb   : > { %2005 = vmatpush1.bf16.msra.mxu0 %v2004_v2  ;;  %v1039_v35 = vld [vmem:[%s3387_s22 + $0x268] sm:$0xff]  ;;  %v1041_v37 = vld [vmem:[%s3387_s22 + $0x278] sm:$0xff]  ;;  %v1038_v42 = vld [vmem:[%s3387_s22 + $0x260] sm:$0xff] }
  0xfc   : > { %2195 = vmatpush1.bf16.msra.mxu1 %v2194_v3  ;;  %2007 = vmatprep.subr.bf16.mxu0 %v2006_v4  ;;  %v2018_v40 = vpack.c.bf16 %v1039_v35, %v1035_v34  ;;  %v1036_v43 = vld [vmem:[%s3387_s22 + $0x250] sm:$0xff]  ;;  %v2208_v44 = vpack.c.bf16 %v1041_v37, %v1037_v36  ;;  %v1043_v46 = vld [vmem:[%s3387_s22 + $0x288] sm:$0xff]  ;;  %v1045_v48 = vld [vmem:[%s3387_s22 + $0x298] sm:$0xff]  ;;  %v2020_v50 = vpack.c.bf16 %v1038_v42, %v1034_v41 }
  0xfd   : > { %2197 = vmatprep.subr.bf16.mxu1 %v2196_v8  ;;  %v1040_v45 = vld [vmem:[%s3387_s22 + $0x270] sm:$0xff]  ;;  %v1047_v47 = vld [vmem:[%s3387_s22 + $0x2a8] sm:$0xff]  ;;  %v1049_v49 = vld [vmem:[%s3387_s22 + $0x2b8] sm:$0xff] }
  0xfe   : > { %v2210_v51 = vpack.c.bf16 %v1040_v45, %v1036_v43  ;;  %v2022_v52 = vpack.c.bf16 %v1047_v47, %v1043_v46  ;;  %v1042_v53 = vld [vmem:[%s3387_s22 + $0x280] sm:$0xff]  ;;  %v1044_v55 = vld [vmem:[%s3387_s22 + $0x290] sm:$0xff]  ;;  %v2212_v56 = vpack.c.bf16 %v1049_v49, %v1045_v48  ;;  %v1051_v58 = vld [vmem:[%s3387_s22 + $0x2c8] sm:$0xff] }
  0xff   : > { %2009 = vmatpush1.bf16.msra.mxu0 %v2008_v14  ;;  %v1046_v54 = vld [vmem:[%s3387_s22 + $0x2a0] sm:$0xff]  ;;  %v1048_v57 = vld [vmem:[%s3387_s22 + $0x2b0] sm:$0xff]  ;;  %v1055_v59 = vld [vmem:[%s3387_s22 + $0x2e8] sm:$0xff] }
 0x100   : > { %2199 = vmatpush1.bf16.msra.mxu1 %v2198_v15  ;;  %2011 = vmatprep.subr.bf16.mxu0 %v2010_v16  ;;  %v1053_v60 = vld [vmem:[%s3387_s22 + $0x2d8] sm:$0xff]  ;;  %v2024_v62 = vpack.c.bf16 %v1046_v54, %v1042_v53  ;;  %v1050_v63 = vld [vmem:[%s3387_s22 + $0x2c0] sm:$0xff]  ;;  %v2214_v0 = vpack.c.bf16 %v1048_v57, %v1044_v55  ;;  %v2026_v1 = vpack.c.bf16 %v1055_v59, %v1051_v58  ;;  %v1052_v3 = vld [vmem:[%s3387_s22 + $0x2d0] sm:$0xff] }
 0x101   : > { %2201 = vmatprep.subr.bf16.mxu1 %v2200_v20  ;;  %v1057_v61 = vld [vmem:[%s3387_s22 + $0x2f8] sm:$0xff]  ;;  %v1054_v2 = vld [vmem:[%s3387_s22 + $0x2e0] sm:$0xff]  ;;  %v1056_v4 = vld [vmem:[%s3387_s22 + $0x2f0] sm:$0xff] }
 0x102   : > { %v2216_v5 = vpack.c.bf16 %v1057_v61, %v1053_v60  ;;  %v1059_v6 = vld [vmem:[%s3387_s22 + $0x308] sm:$0xff]  ;;  %v1061_v9 = vld [vmem:[%s3387_s22 + $0x318] sm:$0xff]  ;;  %v2028_v11 = vpack.c.bf16 %v1054_v2, %v1050_v63  ;;  %v2218_v12 = vpack.c.bf16 %v1056_v4, %v1052_v3  ;;  %v1058_v14 = vld [vmem:[%s3387_s22 + $0x300] sm:$0xff] }
 0x103   : > { %2013 = vmatpush1.bf16.msra.mxu0 %v2012_v26  ;;  %v1063_v7 = vld [vmem:[%s3387_s22 + $0x328] sm:$0xff]  ;;  %v1065_v10 = vld [vmem:[%s3387_s22 + $0x338] sm:$0xff]  ;;  %v1062_v15 = vld [vmem:[%s3387_s22 + $0x320] sm:$0xff] }
 0x104   : > { %2203 = vmatpush1.bf16.msra.mxu1 %v2202_v27  ;;  %2015 = vmatprep.subr.bf16.mxu0 %v2014_v28  ;;  %v951_v8 = vld [vmem:[%s3498_s30 + $0x8] sm:$0xff]  ;;  %v2030_v13 = vpack.c.bf16 %v1063_v7, %v1059_v6  ;;  %v1060_v16 = vld [vmem:[%s3387_s22 + $0x310] sm:$0xff]  ;;  %v2220_v17 = vpack.c.bf16 %v1065_v10, %v1061_v9  ;;  %v1069_v21 = vld [vmem:[%s3387_s22 + $0x358] sm:$0xff]  ;;  %v2032_v23 = vpack.c.bf16 %v1062_v15, %v1058_v14 }
 0x105   : > { %2205 = vmatprep.subr.bf16.mxu1 %v2204_v32  ;;  %1422 = vmatprep.mubr.f32.mxu0 %v951_v8  ;;  %v1064_v18 = vld [vmem:[%s3387_s22 + $0x330] sm:$0xff]  ;;  %v1067_v19 = vld [vmem:[%s3387_s22 + $0x348] sm:$0xff]  ;;  %v1073_v22 = vld [vmem:[%s3387_s22 + $0x378] sm:$0xff] }
 0x106   : > { %1653 = vmatprep.mubr.f32.mxu1 %v951_v8  ;;  %v1071_v20 = vld [vmem:[%s3387_s22 + $0x368] sm:$0xff]  ;;  %v2222_v24 = vpack.c.bf16 %v1064_v18, %v1060_v16  ;;  %v1066_v26 = vld [vmem:[%s3387_s22 + $0x340] sm:$0xff]  ;;  %v1068_v28 = vld [vmem:[%s3387_s22 + $0x350] sm:$0xff]  ;;  %v2224_v29 = vpack.c.bf16 %v1073_v22, %v1069_v21 }
 0x107   : > { %2017 = vmatpush1.bf16.msra.mxu0 %v2016_v38  ;;  %v2034_v25 = vpack.c.bf16 %v1071_v20, %v1067_v19  ;;  %v1070_v27 = vld [vmem:[%s3387_s22 + $0x360] sm:$0xff]  ;;  %v1072_v30 = vld [vmem:[%s3387_s22 + $0x370] sm:$0xff]  ;;  %v1075_v31 = vld [vmem:[%s3387_s22 + $0x388] sm:$0xff] }
 0x108   : > { %2207 = vmatpush1.bf16.msra.mxu1 %v2206_v39  ;;  %2019 = vmatprep.subr.bf16.mxu0 %v2018_v40  ;;  %v1079_v32 = vld [vmem:[%s3387_s22 + $0x3a8] sm:$0xff]  ;;  %v1077_v33 = vld [vmem:[%s3387_s22 + $0x398] sm:$0xff]  ;;  %v2036_v35 = vpack.c.bf16 %v1070_v27, %v1066_v26  ;;  %v2226_v36 = vpack.c.bf16 %v1072_v30, %v1068_v28  ;;  %v1074_v38 = vld [vmem:[%s3387_s22 + $0x380] sm:$0xff] }
 0x109   : > { %2209 = vmatprep.subr.bf16.mxu1 %v2208_v44  ;;  %v1081_v34 = vld [vmem:[%s3387_s22 + $0x3b8] sm:$0xff]  ;;  %v2038_v37 = vpack.c.bf16 %v1079_v32, %v1075_v31  ;;  %v1078_v39 = vld [vmem:[%s3387_s22 + $0x3a0] sm:$0xff]  ;;  %v1076_v40 = vld [vmem:[%s3387_s22 + $0x390] sm:$0xff] }
 0x10a   : > { %v2228_v41 = vpack.c.bf16 %v1081_v34, %v1077_v33  ;;  %v1080_v42 = vld [vmem:[%s3387_s22 + $0x3b0] sm:$0xff]  ;;  %v1083_v43 = vld [vmem:[%s3387_s22 + $0x3c8] sm:$0xff]  ;;  %v1085_v45 = vld [vmem:[%s3387_s22 + $0x3d8] sm:$0xff]  ;;  %v2040_v47 = vpack.c.bf16 %v1078_v39, %v1074_v38 }
 0x10b   : > { %2021 = vmatpush1.bf16.msra.mxu0 %v2020_v50  ;;  %v1087_v44 = vld [vmem:[%s3387_s22 + $0x3e8] sm:$0xff]  ;;  %v1089_v46 = vld [vmem:[%s3387_s22 + $0x3f8] sm:$0xff]  ;;  %v2230_v48 = vpack.c.bf16 %v1080_v42, %v1076_v40  ;;  %v1082_v50 = vld [vmem:[%s3387_s22 + $0x3c0] sm:$0xff] }
 0x10c   : > { %2211 = vmatpush1.bf16.msra.mxu1 %v2210_v51  ;;  %2023 = vmatprep.subr.bf16.mxu0 %v2022_v52  ;;  %v2042_v49 = vpack.c.bf16 %v1087_v44, %v1083_v43  ;;  %v1086_v51 = vld [vmem:[%s3387_s22 + $0x3e0] sm:$0xff]  ;;  %v1084_v52 = vld [vmem:[%s3387_s22 + $0x3d0] sm:$0xff]  ;;  %v2232_v53 = vpack.c.bf16 %v1089_v46, %v1085_v45  ;;  %v1091_v55 = vld [vmem:[%s3387_s22 + $0x408] sm:$0xff] }
 0x10d   : > { %2213 = vmatprep.subr.bf16.mxu1 %v2212_v56  ;;  %v1088_v54 = vld [vmem:[%s3387_s22 + $0x3f0] sm:$0xff]  ;;  %v1095_v56 = vld [vmem:[%s3387_s22 + $0x428] sm:$0xff]  ;;  %v1093_v57 = vld [vmem:[%s3387_s22 + $0x418] sm:$0xff]  ;;  %v2044_v59 = vpack.c.bf16 %v1086_v51, %v1082_v50 }
 0x10e   : > { %v1097_v58 = vld [vmem:[%s3387_s22 + $0x438] sm:$0xff]  ;;  %v2234_v60 = vpack.c.bf16 %v1088_v54, %v1084_v52  ;;  %v2046_v61 = vpack.c.bf16 %v1095_v56, %v1091_v55  ;;  %v1094_v63 = vld [vmem:[%s3387_s22 + $0x420] sm:$0xff]  ;;  %v1096_v2 = vld [vmem:[%s3387_s22 + $0x430] sm:$0xff] }
 0x10f   : > { %2025 = vmatpush1.bf16.msra.mxu0 %v2024_v62  ;;  %v1090_v62 = vld [vmem:[%s3387_s22 + $0x400] sm:$0xff]  ;;  %v1099_v3 = vld [vmem:[%s3387_s22 + $0x448] sm:$0xff]  ;;  %v1105_v6 = vld [vmem:[%s3387_s22 + $0x478] sm:$0xff] }
 0x110   : > { %2215 = vmatpush1.bf16.msra.mxu1 %v2214_v0  ;;  %2027 = vmatprep.subr.bf16.mxu0 %v2026_v1  ;;  %v1092_v0 = vld [vmem:[%s3387_s22 + $0x410] sm:$0xff]  ;;  %v2236_v1 = vpack.c.bf16 %v1097_v58, %v1093_v57  ;;  %v1103_v4 = vld [vmem:[%s3387_s22 + $0x468] sm:$0xff]  ;;  %v950_v7 = vld [vmem:[%s3498_s30] sm:$0xff]  ;;  %v2048_v8 = vpack.c.bf16 %v1094_v63, %v1090_v62 }
 0x111   : > { %2217 = vmatprep.subr.bf16.mxu1 %v2216_v5  ;;  %v1101_v5 = vld [vmem:[%s3387_s22 + $0x458] sm:$0xff]  ;;  %v2238_v9 = vpack.c.bf16 %v1096_v2, %v1092_v0  ;;  %v2050_v10 = vpack.c.bf16 %v1103_v4, %v1099_v3  ;;  %v1104_v15 = vld [vmem:[%s3387_s22 + $0x470] sm:$0xff]  ;;  %v1107_v16 = vld [vmem:[%s3387_s22 + $0x488] sm:$0xff] }
 0x112   : > { %v2240_v14 = vpack.c.bf16 %v1105_v6, %v1101_v5  ;;  %v1109_v18 = vld [vmem:[%s3387_s22 + $0x498] sm:$0xff]  ;;  %v1112_v27 = vld [vmem:[%s3387_s22 + $0x4b0] sm:$0xff]  ;;  %v1115_v28 = vld [vmem:[%s3387_s22 + $0x4c8] sm:$0xff] }
 0x113   : > { %2029 = vmatpush1.bf16.msra.mxu0 %v2028_v11  ;;  %v1098_v11 = vld [vmem:[%s3387_s22 + $0x440] sm:$0xff]  ;;  %v1113_v19 = vld [vmem:[%s3387_s22 + $0x4b8] sm:$0xff]  ;;  %v1120_v39 = vld [vmem:[%s3387_s22 + $0x4f0] sm:$0xff] }
 0x114   : > { %2219 = vmatpush1.bf16.msra.mxu1 %v2218_v12  ;;  %2031 = vmatprep.subr.bf16.mxu0 %v2030_v13  ;;  %v1102_v12 = vld [vmem:[%s3387_s22 + $0x460] sm:$0xff]  ;;  %v1100_v13 = vld [vmem:[%s3387_s22 + $0x450] sm:$0xff]  ;;  %v2244_v26 = vpack.c.bf16 %v1113_v19, %v1109_v18  ;;  %v1117_v30 = vld [vmem:[%s3387_s22 + $0x4d8] sm:$0xff] }
 0x115   : > { %2221 = vmatprep.subr.bf16.mxu1 %v2220_v17  ;;  %v1111_v17 = vld [vmem:[%s3387_s22 + $0x4a8] sm:$0xff]  ;;  %v2052_v20 = vpack.c.bf16 %v1102_v12, %v1098_v11  ;;  %v2242_v21 = vpack.c.bf16 %v1104_v15, %v1100_v13  ;;  %v1121_v31 = vld [vmem:[%s3387_s22 + $0x4f8] sm:$0xff]  ;;  %v1128_v51 = vld [vmem:[%s3387_s22 + $0x530] sm:$0xff] }
 0x116   : > { %v2054_v22 = vpack.c.bf16 %v1111_v17, %v1107_v16  ;;  %v2248_v38 = vpack.c.bf16 %v1121_v31, %v1117_v30  ;;  %v1123_v40 = vld [vmem:[%s3387_s22 + $0x508] sm:$0xff]  ;;  %v1125_v42 = vld [vmem:[%s3387_s22 + $0x518] sm:$0xff]  ;;  %v1136_v63 = vld [vmem:[%s3387_s22 + $0x570] sm:$0xff] }
 0x117   : > { %2033 = vmatpush1.bf16.msra.mxu0 %v2032_v23  ;;  %v1106_v23 = vld [vmem:[%s3387_s22 + $0x480] sm:$0xff]  ;;  %v1129_v43 = vld [vmem:[%s3387_s22 + $0x538] sm:$0xff]  ;;  %v1131_v52 = vld [vmem:[%s3387_s22 + $0x548] sm:$0xff] }
 0x118   : > { %2223 = vmatpush1.bf16.msra.mxu1 %v2222_v24  ;;  %2035 = vmatprep.subr.bf16.mxu0 %v2034_v25  ;;  %v1110_v24 = vld [vmem:[%s3387_s22 + $0x4a0] sm:$0xff]  ;;  %v1108_v25 = vld [vmem:[%s3387_s22 + $0x490] sm:$0xff]  ;;  %v2252_v50 = vpack.c.bf16 %v1129_v43, %v1125_v42  ;;  %v1133_v54 = vld [vmem:[%s3387_s22 + $0x558] sm:$0xff] }
 0x119   : > { %2225 = vmatprep.subr.bf16.mxu1 %v2224_v29  ;;  %v1119_v29 = vld [vmem:[%s3387_s22 + $0x4e8] sm:$0xff]  ;;  %v2056_v32 = vpack.c.bf16 %v1110_v24, %v1106_v23  ;;  %v2246_v33 = vpack.c.bf16 %v1112_v27, %v1108_v25  ;;  %v1137_v55 = vld [vmem:[%s3387_s22 + $0x578] sm:$0xff]  ;;  %v1138_v6 = vld [vmem:[%s3387_s22 + $0x580] sm:$0xff] }
 0x11a   : > { %v2058_v34 = vpack.c.bf16 %v1119_v29, %v1115_v28  ;;  %v2256_v62 = vpack.c.bf16 %v1137_v55, %v1133_v54  ;;  %v1139_v0 = vld [vmem:[%s3387_s22 + $0x588] sm:$0xff]  ;;  %v1141_v2 = vld [vmem:[%s3387_s22 + $0x598] sm:$0xff]  ;;  %v1144_v11 = vld [vmem:[%s3387_s22 + $0x5b0] sm:$0xff] }
 0x11b   : > { %2037 = vmatpush1.bf16.msra.mxu0 %v2036_v35  ;;  %v1114_v35 = vld [vmem:[%s3387_s22 + $0x4c0] sm:$0xff]  ;;  %v1145_v3 = vld [vmem:[%s3387_s22 + $0x5b8] sm:$0xff]  ;;  %v956_v12 = vld [vmem:[%s3498_s30 + $0x30] sm:$0xff] }
 0x11c   : > { %2227 = vmatpush1.bf16.msra.mxu1 %v2226_v36  ;;  %2039 = vmatprep.subr.bf16.mxu0 %v2038_v37  ;;  %v1118_v36 = vld [vmem:[%s3387_s22 + $0x4e0] sm:$0xff]  ;;  %v1116_v37 = vld [vmem:[%s3387_s22 + $0x4d0] sm:$0xff]  ;;  %v957_v4 = vld [vmem:[%s3498_s30 + $0x38] sm:$0xff]  ;;  %v2260_v13 = vpack.c.bf16 %v1145_v3, %v1141_v2 }
 0x11d   : > { %2229 = vmatprep.subr.bf16.mxu1 %v2228_v41  ;;  %v1127_v41 = vld [vmem:[%s3387_s22 + $0x528] sm:$0xff]  ;;  %v2060_v44 = vpack.c.bf16 %v1118_v36, %v1114_v35  ;;  %v2250_v45 = vpack.c.bf16 %v1120_v39, %v1116_v37  ;;  %v953_v16 = vld [vmem:[%s3498_s30 + $0x18] sm:$0xff]  ;;  %v1150_v23 = vld [vmem:[%s3387_s22 + $0x5e0] sm:$0xff] }
 0x11e   : > { %v2062_v46 = vpack.c.bf16 %v1127_v41, %v1123_v40  ;;  %v1151_v15 = vld [vmem:[%s3387_s22 + $0x5e8] sm:$0xff]  ;;  %v1149_v17 = vld [vmem:[%s3387_s22 + $0x5d8] sm:$0xff]  ;;  %v1148_v24 = vld [vmem:[%s3387_s22 + $0x5d0] sm:$0xff] }
 0x11f   : > { %2041 = vmatpush1.bf16.msra.mxu0 %v2040_v47  ;;  %v1122_v47 = vld [vmem:[%s3387_s22 + $0x500] sm:$0xff]  ;;  %v1153_v18 = vld [vmem:[%s3387_s22 + $0x5f8] sm:$0xff]  ;;  %v1155_v27 = vld [vmem:[%s3387_s22 + $0x608] sm:$0xff] }
 0x120   : > { %2231 = vmatpush1.bf16.msra.mxu1 %v2230_v48  ;;  %2043 = vmatprep.subr.bf16.mxu0 %v2042_v49  ;;  %v1126_v48 = vld [vmem:[%s3387_s22 + $0x520] sm:$0xff]  ;;  %v1124_v49 = vld [vmem:[%s3387_s22 + $0x510] sm:$0xff]  ;;  %v2264_v25 = vpack.c.bf16 %v1153_v18, %v1149_v17  ;;  %v1159_v28 = vld [vmem:[%s3387_s22 + $0x628] sm:$0xff] }
 0x121   : > { %2233 = vmatprep.subr.bf16.mxu1 %v2232_v53  ;;  %v1135_v53 = vld [vmem:[%s3387_s22 + $0x568] sm:$0xff]  ;;  %v2064_v56 = vpack.c.bf16 %v1126_v48, %v1122_v47  ;;  %v2254_v57 = vpack.c.bf16 %v1128_v51, %v1124_v49  ;;  %v1157_v29 = vld [vmem:[%s3387_s22 + $0x618] sm:$0xff]  ;;  %v1158_v35 = vld [vmem:[%s3387_s22 + $0x620] sm:$0xff] }
 0x122   : > { %v2066_v58 = vpack.c.bf16 %v1135_v53, %v1131_v52  ;;  %v1161_v30 = vld [vmem:[%s3387_s22 + $0x638] sm:$0xff]  ;;  %v1156_v36 = vld [vmem:[%s3387_s22 + $0x610] sm:$0xff]  ;;  %v1163_v39 = vld [vmem:[%s3387_s22 + $0x648] sm:$0xff] }
 0x123   : > { %2045 = vmatpush1.bf16.msra.mxu0 %v2044_v59  ;;  %v1130_v59 = vld [vmem:[%s3387_s22 + $0x540] sm:$0xff]  ;;  %v2268_v37 = vpack.c.bf16 %v1161_v30, %v1157_v29  ;;  %v1167_v40 = vld [vmem:[%s3387_s22 + $0x668] sm:$0xff]  ;;  %v1165_v41 = vld [vmem:[%s3387_s22 + $0x658] sm:$0xff] }
 0x124   : > { %2235 = vmatpush1.bf16.msra.mxu1 %v2234_v60  ;;  %2047 = vmatprep.subr.bf16.mxu0 %v2046_v61  ;;  %v1134_v60 = vld [vmem:[%s3387_s22 + $0x560] sm:$0xff]  ;;  %v1132_v61 = vld [vmem:[%s3387_s22 + $0x550] sm:$0xff]  ;;  %v1169_v42 = vld [vmem:[%s3387_s22 + $0x678] sm:$0xff] }
 0x125   : > { %2237 = vmatprep.subr.bf16.mxu1 %v2236_v1  ;;  %v1143_v1 = vld [vmem:[%s3387_s22 + $0x5a8] sm:$0xff]  ;;  %v2068_v5 = vpack.c.bf16 %v1134_v60, %v1130_v59  ;;  %v1166_v47 = vld [vmem:[%s3387_s22 + $0x660] sm:$0xff]  ;;  %v1164_v48 = vld [vmem:[%s3387_s22 + $0x650] sm:$0xff]  ;;  %v2272_v49 = vpack.c.bf16 %v1169_v42, %v1165_v41 }
 0x126   : > { %1423 = vmatmul.mubr.f32.vlgmr.msra.gmra.mrb[0].mxu0 %v950_v7  ;;  %v1171_v51 = vld [vmem:[%s3387_s22 + $0x688] sm:$0xff]  ;;  %v1173_v53 = vld [vmem:[%s3387_s22 + $0x698] sm:$0xff]  ;;  %v1174_v59 = vld [vmem:[%s3387_s22 + $0x6a0] sm:$0xff] }
 0x127   : > { %2049 = vmatpush1.bf16.msra.mxu0 %v2048_v8  ;;  %1654 = vmatmul.mubr.f32.vlgmr.msra.gmra.mrb[0].mxu1 %v950_v7  ;;  %v1142_v7 = vld [vmem:[%s3387_s22 + $0x5a0] sm:$0xff]  ;;  %v2258_v8 = vpack.c.bf16 %v1136_v63, %v1132_v61  ;;  %v1175_v52 = vld [vmem:[%s3387_s22 + $0x6a8] sm:$0xff]  ;;  %v1177_v54 = vld [vmem:[%s3387_s22 + $0x6b8] sm:$0xff] }
 0x128   : > { %2239 = vmatpush1.bf16.msra.mxu1 %v2238_v9  ;;  %2051 = vmatprep.subr.bf16.mxu0 %v2050_v10  ;;  %v2070_v9 = vpack.c.bf16 %v1143_v1, %v1139_v0  ;;  %v1140_v10 = vld [vmem:[%s3387_s22 + $0x590] sm:$0xff]  ;;  %v2072_v19 = vpack.c.bf16 %v1142_v7, %v1138_v6  ;;  %v2276_v61 = vpack.c.bf16 %v1177_v54, %v1173_v53  ;;  %v1179_v63 = vld [vmem:[%s3387_s22 + $0x6c8] sm:$0xff]  ;;  %v1181_v1 = vld [vmem:[%s3387_s22 + $0x6d8] sm:$0xff] }
 0x129   : > { %2241 = vmatprep.subr.bf16.mxu1 %v2240_v14  ;;  %1428 = vmatprep.mubr.f32.mxu0 %v957_v4  ;;  %v1147_v14 = vld [vmem:[%s3387_s22 + $0x5c8] sm:$0xff]  ;;  %v1172_v60 = vld [vmem:[%s3387_s22 + $0x690] sm:$0xff]  ;;  %v1185_v2 = vld [vmem:[%s3387_s22 + $0x6f8] sm:$0xff] }
 0x12a   : > { %1659 = vmatprep.mubr.f32.mxu1 %v957_v4  ;;  %1429 = vmatmul.mubr.f32.gmra.mrb[2].mxu0 %v956_v12  ;;  %v1183_v0 = vld [vmem:[%s3387_s22 + $0x6e8] sm:$0xff]  ;;  %v1178_v6 = vld [vmem:[%s3387_s22 + $0x6c0] sm:$0xff] }
 0x12b   : > { %2053 = vmatpush1.bf16.msra.mxu0 %v2052_v20  ;;  %1660 = vmatmul.mubr.f32.gmra.mrb[2].mxu1 %v956_v12  ;;  %v2262_v20 = vpack.c.bf16 %v1144_v11, %v1140_v10  ;;  %v1182_v7 = vld [vmem:[%s3387_s22 + $0x6e0] sm:$0xff]  ;;  %v1184_v10 = vld [vmem:[%s3387_s22 + $0x6f0] sm:$0xff]  ;;  %v1187_v11 = vld [vmem:[%s3387_s22 + $0x708] sm:$0xff] }
 0x12c   : > { %2243 = vmatpush1.bf16.msra.mxu1 %v2242_v21  ;;  %2055 = vmatprep.subr.bf16.mxu0 %v2054_v22  ;;  %v2074_v21 = vpack.c.bf16 %v1151_v15, %v1147_v14  ;;  %v1146_v22 = vld [vmem:[%s3387_s22 + $0x5c0] sm:$0xff]  ;;  %v1191_v12 = vld [vmem:[%s3387_s22 + $0x728] sm:$0xff]  ;;  %v1193_v14 = vld [vmem:[%s3387_s22 + $0x738] sm:$0xff]  ;;  %v2092_v15 = vpack.c.bf16 %v1182_v7, %v1178_v6 }
 0x12d   : > { %2245 = vmatprep.subr.bf16.mxu1 %v2244_v26  ;;  %1499 = vmatprep.mubr.f32.mxu0 %v953_v16  ;;  %v1152_v26 = vld [vmem:[%s3387_s22 + $0x5f0] sm:$0xff]  ;;  %v2076_v31 = vpack.c.bf16 %v1150_v23, %v1146_v22  ;;  %v2094_v17 = vpack.c.bf16 %v1191_v12, %v1187_v11  ;;  %v1186_v18 = vld [vmem:[%s3387_s22 + $0x700] sm:$0xff]  ;;  %v1195_v23 = vld [vmem:[%s3387_s22 + $0x748] sm:$0xff] }
 0x12e   : > { %1730 = vmatprep.mubr.f32.mxu1 %v953_v16  ;;  %v1192_v22 = vld [vmem:[%s3387_s22 + $0x730] sm:$0xff]  ;;  %v1194_v30 = vld [vmem:[%s3387_s22 + $0x740] sm:$0xff]  ;;  %v1227_v7 = vld [vmem:[%s3387_s22 + $0x848] sm:$0xff] }
 0x12f   : > { %2057 = vmatpush1.bf16.msra.mxu0 %v2056_v32  ;;  %v2266_v32 = vpack.c.bf16 %v1152_v26, %v1148_v24  ;;  %v1199_v24 = vld [vmem:[%s3387_s22 + $0x768] sm:$0xff]  ;;  %v1201_v26 = vld [vmem:[%s3387_s22 + $0x778] sm:$0xff]  ;;  %v1202_v42 = vld [vmem:[%s3387_s22 + $0x780] sm:$0xff] }
 0x130   : > { %2247 = vmatpush1.bf16.msra.mxu1 %v2246_v33  ;;  %2059 = vmatprep.subr.bf16.mxu0 %v2058_v34  ;;  %v2078_v33 = vpack.c.bf16 %v1159_v28, %v1155_v27  ;;  %v1154_v34 = vld [vmem:[%s3387_s22 + $0x600] sm:$0xff]  ;;  %v2098_v29 = vpack.c.bf16 %v1199_v24, %v1195_v23  ;;  %v1224_v6 = vld [vmem:[%s3387_s22 + $0x830] sm:$0xff]  ;;  %v1241_v23 = vld [vmem:[%s3387_s22 + $0x8b8] sm:$0xff] }
 0x131   : > { %2249 = vmatprep.subr.bf16.mxu1 %v2248_v38  ;;  %v1160_v38 = vld [vmem:[%s3387_s22 + $0x630] sm:$0xff]  ;;  %v2080_v43 = vpack.c.bf16 %v1158_v35, %v1154_v34  ;;  %v1203_v35 = vld [vmem:[%s3387_s22 + $0x788] sm:$0xff]  ;;  %v1210_v54 = vld [vmem:[%s3387_s22 + $0x7c0] sm:$0xff] }
 0x132   : > { %v1200_v34 = vld [vmem:[%s3387_s22 + $0x770] sm:$0xff]  ;;  %v959_v24 = vld [vmem:[%s3498_s30 + $0x48] sm:$0xff] }
 0x133   : > { %2061 = vmatpush1.bf16.msra.mxu0 %v2060_v44  ;;  %v2270_v44 = vpack.c.bf16 %v1160_v38, %v1156_v36  ;;  %v1207_v36 = vld [vmem:[%s3387_s22 + $0x7a8] sm:$0xff]  ;;  %v1209_v38 = vld [vmem:[%s3387_s22 + $0x7b8] sm:$0xff]  ;;  %v952_v11 = vld [vmem:[%s3498_s30 + $0x10] sm:$0xff] }
 0x134   : > { %2251 = vmatpush1.bf16.msra.mxu1 %v2250_v45  ;;  %2063 = vmatprep.subr.bf16.mxu0 %v2062_v46  ;;  %v2082_v45 = vpack.c.bf16 %v1167_v40, %v1163_v39  ;;  %v1162_v46 = vld [vmem:[%s3387_s22 + $0x640] sm:$0xff]  ;;  %v2102_v41 = vpack.c.bf16 %v1207_v36, %v1203_v35  ;;  %v1247_v35 = vld [vmem:[%s3387_s22 + $0x8e8] sm:$0xff]  ;;  %v1245_v36 = vld [vmem:[%s3387_s22 + $0x8d8] sm:$0xff] }
 0x135   : > { %2253 = vmatprep.subr.bf16.mxu1 %v2252_v50  ;;  %v1168_v50 = vld [vmem:[%s3387_s22 + $0x670] sm:$0xff]  ;;  %v2084_v55 = vpack.c.bf16 %v1166_v47, %v1162_v46  ;;  %v1211_v47 = vld [vmem:[%s3387_s22 + $0x7c8] sm:$0xff] }
 0x136   : > { %v1208_v46 = vld [vmem:[%s3387_s22 + $0x7b0] sm:$0xff] }
 0x137   : > { %2065 = vmatpush1.bf16.msra.mxu0 %v2064_v56  ;;  %v2274_v56 = vpack.c.bf16 %v1168_v50, %v1164_v48  ;;  %v1215_v48 = vld [vmem:[%s3387_s22 + $0x7e8] sm:$0xff]  ;;  %v1217_v50 = vld [vmem:[%s3387_s22 + $0x7f8] sm:$0xff] }
 0x138   : > { %2255 = vmatpush1.bf16.msra.mxu1 %v2254_v57  ;;  %2067 = vmatprep.subr.bf16.mxu0 %v2066_v58  ;;  %v2086_v57 = vpack.c.bf16 %v1175_v52, %v1171_v51  ;;  %v1170_v58 = vld [vmem:[%s3387_s22 + $0x680] sm:$0xff]  ;;  %v2106_v53 = vpack.c.bf16 %v1215_v48, %v1211_v47  ;;  %v1251_v47 = vld [vmem:[%s3387_s22 + $0x908] sm:$0xff] }
 0x139   : > { %2257 = vmatprep.subr.bf16.mxu1 %v2256_v62  ;;  %v1176_v62 = vld [vmem:[%s3387_s22 + $0x6b0] sm:$0xff]  ;;  %v2088_v3 = vpack.c.bf16 %v1174_v59, %v1170_v58  ;;  %v1219_v59 = vld [vmem:[%s3387_s22 + $0x808] sm:$0xff] }
 0x13a   : > { %v2278_v4 = vpack.c.bf16 %v1176_v62, %v1172_v60  ;;  %v1216_v58 = vld [vmem:[%s3387_s22 + $0x7f0] sm:$0xff]  ;;  %v1223_v60 = vld [vmem:[%s3387_s22 + $0x828] sm:$0xff]  ;;  %v1225_v62 = vld [vmem:[%s3387_s22 + $0x838] sm:$0xff] }
 0x13b   : > { %2069 = vmatpush1.bf16.msra.mxu0 %v2068_v5  ;;  %v2090_v5 = vpack.c.bf16 %v1183_v0, %v1179_v63  ;;  %v1255_v48 = vld [vmem:[%s3387_s22 + $0x928] sm:$0xff] }
 0x13c   : > { %2259 = vmatpush1.bf16.msra.mxu1 %v2258_v8  ;;  %2071 = vmatprep.subr.bf16.mxu0 %v2070_v9  ;;  %v1180_v8 = vld [vmem:[%s3387_s22 + $0x6d0] sm:$0xff]  ;;  %v2280_v9 = vpack.c.bf16 %v1185_v2, %v1181_v1  ;;  %v2110_v1 = vpack.c.bf16 %v1223_v60, %v1219_v59  ;;  %v1218_v2 = vld [vmem:[%s3387_s22 + $0x800] sm:$0xff]  ;;  %v1259_v59 = vld [vmem:[%s3387_s22 + $0x948] sm:$0xff] }
 0x13d   : > { %2261 = vmatprep.subr.bf16.mxu1 %v2260_v13  ;;  %v1189_v13 = vld [vmem:[%s3387_s22 + $0x718] sm:$0xff]  ;;  %v2282_v16 = vpack.c.bf16 %v1184_v10, %v1180_v8  ;;  %v1231_v8 = vld [vmem:[%s3387_s22 + $0x868] sm:$0xff] }
 0x13e   : > { %v1233_v10 = vld [vmem:[%s3387_s22 + $0x878] sm:$0xff]  ;;  %v1263_v60 = vld [vmem:[%s3387_s22 + $0x968] sm:$0xff] }
 0x13f   : > { %2073 = vmatpush1.bf16.msra.mxu0 %v2072_v19  ;;  %v1190_v19 = vld [vmem:[%s3387_s22 + $0x720] sm:$0xff] }
 0x140   : > { %2263 = vmatpush1.bf16.msra.mxu1 %v2262_v20  ;;  %2075 = vmatprep.subr.bf16.mxu0 %v2074_v21  ;;  %v1188_v20 = vld [vmem:[%s3387_s22 + $0x710] sm:$0xff]  ;;  %v2284_v21 = vpack.c.bf16 %v1193_v14, %v1189_v13  ;;  %v2096_v27 = vpack.c.bf16 %v1190_v19, %v1186_v18  ;;  %v2114_v14 = vpack.c.bf16 %v1231_v8, %v1227_v7  ;;  %v1267_v7 = vld [vmem:[%s3387_s22 + $0x988] sm:$0xff] }
 0x141   : > { %2265 = vmatprep.subr.bf16.mxu1 %v2264_v25  ;;  %v1197_v25 = vld [vmem:[%s3387_s22 + $0x758] sm:$0xff]  ;;  %v2286_v28 = vpack.c.bf16 %v1192_v22, %v1188_v20  ;;  %v1232_v19 = vld [vmem:[%s3387_s22 + $0x870] sm:$0xff]  ;;  %v1235_v20 = vld [vmem:[%s3387_s22 + $0x888] sm:$0xff] }
 0x142   : > { %v1237_v22 = vld [vmem:[%s3387_s22 + $0x898] sm:$0xff]  ;;  %v1271_v8 = vld [vmem:[%s3387_s22 + $0x9a8] sm:$0xff] }
 0x143   : > { %2077 = vmatpush1.bf16.msra.mxu0 %v2076_v31  ;;  %v1198_v31 = vld [vmem:[%s3387_s22 + $0x760] sm:$0xff] }
 0x144   : > { %2267 = vmatpush1.bf16.msra.mxu1 %v2266_v32  ;;  %2079 = vmatprep.subr.bf16.mxu0 %v2078_v33  ;;  %v1196_v32 = vld [vmem:[%s3387_s22 + $0x750] sm:$0xff]  ;;  %v2288_v33 = vpack.c.bf16 %v1201_v26, %v1197_v25  ;;  %v2100_v39 = vpack.c.bf16 %v1198_v31, %v1194_v30  ;;  %v958_v26 = vld [vmem:[%s3498_s30 + $0x40] sm:$0xff] }
 0x145   : > { %2269 = vmatprep.subr.bf16.mxu1 %v2268_v37  ;;  %v1205_v37 = vld [vmem:[%s3387_s22 + $0x798] sm:$0xff]  ;;  %v2290_v40 = vpack.c.bf16 %v1200_v34, %v1196_v32  ;;  %v1238_v30 = vld [vmem:[%s3387_s22 + $0x8a0] sm:$0xff]  ;;  %v1236_v31 = vld [vmem:[%s3387_s22 + $0x890] sm:$0xff]  ;;  %v2308_v32 = vpack.c.bf16 %v1241_v23, %v1237_v22 }
 0x146   : > { %v1243_v34 = vld [vmem:[%s3387_s22 + $0x8c8] sm:$0xff]  ;;  %v1281_v22 = vld [vmem:[%s3387_s22 + $0x9f8] sm:$0xff] }
 0x147   : > { %2081 = vmatpush1.bf16.msra.mxu0 %v2080_v43  ;;  %v1206_v43 = vld [vmem:[%s3387_s22 + $0x7a0] sm:$0xff] }
 0x148   : > { %2271 = vmatpush1.bf16.msra.mxu1 %v2270_v44  ;;  %2083 = vmatprep.subr.bf16.mxu0 %v2082_v45  ;;  %v1204_v44 = vld [vmem:[%s3387_s22 + $0x790] sm:$0xff]  ;;  %v2292_v45 = vpack.c.bf16 %v1209_v38, %v1205_v37  ;;  %v2104_v51 = vpack.c.bf16 %v1206_v43, %v1202_v42  ;;  %v1249_v37 = vld [vmem:[%s3387_s22 + $0x8f8] sm:$0xff]  ;;  %v955_v38 = vld [vmem:[%s3498_s30 + $0x28] sm:$0xff] }
 0x149   : > { %2273 = vmatprep.subr.bf16.mxu1 %v2272_v49  ;;  %v1213_v49 = vld [vmem:[%s3387_s22 + $0x7d8] sm:$0xff]  ;;  %v2294_v52 = vpack.c.bf16 %v1208_v46, %v1204_v44  ;;  %v1242_v42 = vld [vmem:[%s3387_s22 + $0x8c0] sm:$0xff]  ;;  %v1244_v44 = vld [vmem:[%s3387_s22 + $0x8d0] sm:$0xff] }
 0x14a   : > { %v1246_v43 = vld [vmem:[%s3387_s22 + $0x8e0] sm:$0xff]  ;;  %v1248_v46 = vld [vmem:[%s3387_s22 + $0x8f0] sm:$0xff] }
 0x14b   : > { %2085 = vmatpush1.bf16.msra.mxu0 %v2084_v55  ;;  %v1214_v55 = vld [vmem:[%s3387_s22 + $0x7e0] sm:$0xff] }
 0x14c   : > { %2275 = vmatpush1.bf16.msra.mxu1 %v2274_v56  ;;  %2087 = vmatprep.subr.bf16.mxu0 %v2086_v57  ;;  %v1212_v56 = vld [vmem:[%s3387_s22 + $0x7d0] sm:$0xff]  ;;  %v2296_v57 = vpack.c.bf16 %v1217_v50, %v1213_v49  ;;  %v2108_v63 = vpack.c.bf16 %v1214_v55, %v1210_v54  ;;  %v1253_v49 = vld [vmem:[%s3387_s22 + $0x918] sm:$0xff]  ;;  %v1250_v54 = vld [vmem:[%s3387_s22 + $0x900] sm:$0xff] }
 0x14d   : > { %2277 = vmatprep.subr.bf16.mxu1 %v2276_v61  ;;  %v1221_v61 = vld [vmem:[%s3387_s22 + $0x818] sm:$0xff]  ;;  %v2298_v0 = vpack.c.bf16 %v1216_v58, %v1212_v56  ;;  %v1254_v55 = vld [vmem:[%s3387_s22 + $0x920] sm:$0xff]  ;;  %v1252_v56 = vld [vmem:[%s3387_s22 + $0x910] sm:$0xff] }
 0x14e   : > { %v1257_v50 = vld [vmem:[%s3387_s22 + $0x938] sm:$0xff]  ;;  %v1256_v58 = vld [vmem:[%s3387_s22 + $0x930] sm:$0xff] }
 0x14f   : > { %2089 = vmatpush1.bf16.msra.mxu0 %v2088_v3  ;;  %v1222_v3 = vld [vmem:[%s3387_s22 + $0x820] sm:$0xff] }
 0x150   : > { %2279 = vmatpush1.bf16.msra.mxu1 %v2278_v4  ;;  %2091 = vmatprep.subr.bf16.mxu0 %v2090_v5  ;;  %v1220_v4 = vld [vmem:[%s3387_s22 + $0x810] sm:$0xff]  ;;  %v2300_v5 = vpack.c.bf16 %v1225_v62, %v1221_v61  ;;  %v2112_v12 = vpack.c.bf16 %v1222_v3, %v1218_v2  ;;  %v1261_v61 = vld [vmem:[%s3387_s22 + $0x958] sm:$0xff]  ;;  %v1258_v2 = vld [vmem:[%s3387_s22 + $0x940] sm:$0xff] }
 0x151   : > { %2281 = vmatprep.subr.bf16.mxu1 %v2280_v9  ;;  %v1229_v9 = vld [vmem:[%s3387_s22 + $0x858] sm:$0xff]  ;;  %v2302_v13 = vpack.c.bf16 %v1224_v6, %v1220_v4  ;;  %v1262_v3 = vld [vmem:[%s3387_s22 + $0x960] sm:$0xff]  ;;  %v1260_v4 = vld [vmem:[%s3387_s22 + $0x950] sm:$0xff] }
 0x152   : > { %v2304_v18 = vpack.c.bf16 %v1233_v10, %v1229_v9  ;;  %v1265_v62 = vld [vmem:[%s3387_s22 + $0x978] sm:$0xff]  ;;  %v1264_v6 = vld [vmem:[%s3387_s22 + $0x970] sm:$0xff] }
 0x153   : > { %2093 = vmatpush1.bf16.msra.mxu0 %v2092_v15  ;;  %v1226_v15 = vld [vmem:[%s3387_s22 + $0x840] sm:$0xff]  ;;  %v1269_v9 = vld [vmem:[%s3387_s22 + $0x998] sm:$0xff] }
 0x154   : > { %2283 = vmatpush1.bf16.msra.mxu1 %v2282_v16  ;;  %2095 = vmatprep.subr.bf16.mxu0 %v2094_v17  ;;  %v1230_v16 = vld [vmem:[%s3387_s22 + $0x860] sm:$0xff]  ;;  %v1228_v17 = vld [vmem:[%s3387_s22 + $0x850] sm:$0xff]  ;;  %v1273_v10 = vld [vmem:[%s3387_s22 + $0x9b8] sm:$0xff] }
 0x155   : > { %2285 = vmatprep.subr.bf16.mxu1 %v2284_v21  ;;  %v1239_v21 = vld [vmem:[%s3387_s22 + $0x8a8] sm:$0xff]  ;;  %v2116_v25 = vpack.c.bf16 %v1230_v16, %v1226_v15  ;;  %v1270_v15 = vld [vmem:[%s3387_s22 + $0x9a0] sm:$0xff]  ;;  %v1268_v16 = vld [vmem:[%s3387_s22 + $0x990] sm:$0xff] }
 0x157   : > { %2097 = vmatpush1.bf16.msra.mxu0 %v2096_v27  ;;  %v2306_v27 = vpack.c.bf16 %v1232_v19, %v1228_v17  ;;  %v2324_v17 = vpack.c.bf16 %v1273_v10, %v1269_v9  ;;  %v1275_v19 = vld [vmem:[%s3387_s22 + $0x9c8] sm:$0xff]  ;;  %v1306_v10 = vld [vmem:[%s3387_s22 + $0xac0] sm:$0xff] }
 0x158   : > { %2287 = vmatpush1.bf16.msra.mxu1 %v2286_v28  ;;  %2099 = vmatprep.subr.bf16.mxu0 %v2098_v29  ;;  %v2118_v28 = vpack.c.bf16 %v1239_v21, %v1235_v20  ;;  %v1234_v29 = vld [vmem:[%s3387_s22 + $0x880] sm:$0xff]  ;;  %v1279_v20 = vld [vmem:[%s3387_s22 + $0x9e8] sm:$0xff]  ;;  %v1277_v21 = vld [vmem:[%s3387_s22 + $0x9d8] sm:$0xff] }
 0x159   : > { %2289 = vmatprep.subr.bf16.mxu1 %v2288_v33  ;;  %v1240_v33 = vld [vmem:[%s3387_s22 + $0x8b0] sm:$0xff] }
 0x15b   : > { %2101 = vmatpush1.bf16.msra.mxu0 %v2100_v39  ;;  %v2120_v39 = vpack.c.bf16 %v1238_v30, %v1234_v29  ;;  %v2328_v29 = vpack.c.bf16 %v1281_v22, %v1277_v21  ;;  %v1280_v30 = vld [vmem:[%s3387_s22 + $0x9f0] sm:$0xff]  ;;  %v1314_v22 = vld [vmem:[%s3387_s22 + $0xb00] sm:$0xff] }
 0x15c   : > { %2291 = vmatpush1.bf16.msra.mxu1 %v2290_v40  ;;  %2103 = vmatprep.subr.bf16.mxu0 %v2102_v41  ;;  %v2310_v40 = vpack.c.bf16 %v1240_v33, %v1236_v31  ;;  %v2122_v41 = vpack.c.bf16 %v1247_v35, %v1243_v34  ;;  %v1283_v31 = vld [vmem:[%s3387_s22 + $0xa08] sm:$0xff]  ;;  %v1285_v33 = vld [vmem:[%s3387_s22 + $0xa18] sm:$0xff] }
 0x15d   : > { %2293 = vmatprep.subr.bf16.mxu1 %v2292_v45  ;;  %v2312_v45 = vpack.c.bf16 %v1249_v37, %v1245_v36  ;;  %v1289_v34 = vld [vmem:[%s3387_s22 + $0xa38] sm:$0xff] }
 0x15f   : > { %2105 = vmatpush1.bf16.msra.mxu0 %v2104_v51  ;;  %v2124_v51 = vpack.c.bf16 %v1246_v43, %v1242_v42  ;;  %v1288_v42 = vld [vmem:[%s3387_s22 + $0xa30] sm:$0xff]  ;;  %v1291_v43 = vld [vmem:[%s3387_s22 + $0xa48] sm:$0xff] }
 0x160   : > { %2295 = vmatpush1.bf16.msra.mxu1 %v2294_v52  ;;  %2107 = vmatprep.subr.bf16.mxu0 %v2106_v53  ;;  %v2314_v52 = vpack.c.bf16 %v1248_v46, %v1244_v44  ;;  %v2126_v53 = vpack.c.bf16 %v1255_v48, %v1251_v47  ;;  %v1295_v44 = vld [vmem:[%s3387_s22 + $0xa68] sm:$0xff]  ;;  %v1297_v46 = vld [vmem:[%s3387_s22 + $0xa78] sm:$0xff] }
 0x161   : > { %2297 = vmatprep.subr.bf16.mxu1 %v2296_v57  ;;  %v2316_v57 = vpack.c.bf16 %v1257_v50, %v1253_v49  ;;  %v2146_v49 = vpack.c.bf16 %v1295_v44, %v1291_v43  ;;  %v1290_v50 = vld [vmem:[%s3387_s22 + $0xa40] sm:$0xff] }
 0x163   : > { %2109 = vmatpush1.bf16.msra.mxu0 %v2108_v63  ;;  %v2128_v63 = vpack.c.bf16 %v1254_v55, %v1250_v54  ;;  %v1296_v54 = vld [vmem:[%s3387_s22 + $0xa70] sm:$0xff]  ;;  %v1299_v55 = vld [vmem:[%s3387_s22 + $0xa88] sm:$0xff] }
 0x164   : > { %2299 = vmatpush1.bf16.msra.mxu1 %v2298_v0  ;;  %2111 = vmatprep.subr.bf16.mxu0 %v2110_v1  ;;  %v2318_v0 = vpack.c.bf16 %v1256_v58, %v1252_v56  ;;  %v2130_v1 = vpack.c.bf16 %v1263_v60, %v1259_v59  ;;  %v1303_v56 = vld [vmem:[%s3387_s22 + $0xaa8] sm:$0xff]  ;;  %v1305_v58 = vld [vmem:[%s3387_s22 + $0xab8] sm:$0xff] }
 0x165   : > { %2301 = vmatprep.subr.bf16.mxu1 %v2300_v5  ;;  %v2320_v5 = vpack.c.bf16 %v1265_v62, %v1261_v61  ;;  %v2150_v61 = vpack.c.bf16 %v1303_v56, %v1299_v55  ;;  %v1298_v62 = vld [vmem:[%s3387_s22 + $0xa80] sm:$0xff]  ;;  %v960_v55 = vld [vmem:[%s3498_s30 + $0x50] sm:$0xff] }
 0x166   : > { %1500 = vmatmul.mubr.f32.vlgmr.msra.gmra.mrb[0].mxu0 %v952_v11 }
 0x167   : > { %2113 = vmatpush1.bf16.msra.mxu0 %v2112_v12  ;;  %1731 = vmatmul.mubr.f32.vlgmr.msra.gmra.mrb[0].mxu1 %v952_v11  ;;  %v2132_v11 = vpack.c.bf16 %v1262_v3, %v1258_v2  ;;  %v2322_v12 = vpack.c.bf16 %v1264_v6, %v1260_v4  ;;  %v1304_v2 = vld [vmem:[%s3387_s22 + $0xab0] sm:$0xff]  ;;  %v1307_v3 = vld [vmem:[%s3387_s22 + $0xac8] sm:$0xff]  ;;  %v1313_v6 = vld [vmem:[%s3387_s22 + $0xaf8] sm:$0xff] }
 0x168   : > { %2303 = vmatpush1.bf16.msra.mxu1 %v2302_v13  ;;  %2115 = vmatprep.subr.bf16.mxu0 %v2114_v14  ;;  %v2134_v13 = vpack.c.bf16 %v1271_v8, %v1267_v7  ;;  %v1266_v14 = vld [vmem:[%s3387_s22 + $0x980] sm:$0xff]  ;;  %v1311_v4 = vld [vmem:[%s3387_s22 + $0xae8] sm:$0xff] }
 0x169   : > { %2305 = vmatprep.subr.bf16.mxu1 %v2304_v18  ;;  %1505 = vmatprep.mubr.f32.mxu0 %v959_v24  ;;  %v1272_v18 = vld [vmem:[%s3387_s22 + $0x9b0] sm:$0xff]  ;;  %v2136_v23 = vpack.c.bf16 %v1270_v15, %v1266_v14  ;;  %v2154_v9 = vpack.c.bf16 %v1311_v4, %v1307_v3  ;;  %v1315_v15 = vld [vmem:[%s3387_s22 + $0xb08] sm:$0xff] }
 0x16a   : > { %1736 = vmatprep.mubr.f32.mxu1 %v959_v24  ;;  %1506 = vmatmul.mubr.f32.gmra.mrb[2].mxu0 %v958_v26  ;;  %v2326_v24 = vpack.c.bf16 %v1272_v18, %v1268_v16  ;;  %v1312_v14 = vld [vmem:[%s3387_s22 + $0xaf0] sm:$0xff]  ;;  %v1319_v16 = vld [vmem:[%s3387_s22 + $0xb28] sm:$0xff]  ;;  %v1321_v18 = vld [vmem:[%s3387_s22 + $0xb38] sm:$0xff] }
 0x16b   : > { %2117 = vmatpush1.bf16.msra.mxu0 %v2116_v25  ;;  %1737 = vmatmul.mubr.f32.gmra.mrb[2].mxu1 %v958_v26  ;;  %v2138_v25 = vpack.c.bf16 %v1279_v20, %v1275_v19  ;;  %v1274_v26 = vld [vmem:[%s3387_s22 + $0x9c0] sm:$0xff]  ;;  %v2158_v21 = vpack.c.bf16 %v1319_v16, %v1315_v15 }
 0x16c   : > { %2307 = vmatpush1.bf16.msra.mxu1 %v2306_v27  ;;  %2119 = vmatprep.subr.bf16.mxu0 %v2118_v28  ;;  %v1278_v27 = vld [vmem:[%s3387_s22 + $0x9e0] sm:$0xff]  ;;  %v1276_v28 = vld [vmem:[%s3387_s22 + $0x9d0] sm:$0xff] }
 0x16d   : > { %2309 = vmatprep.subr.bf16.mxu1 %v2308_v32  ;;  %1967 = vmatprep.mubr.msk.f32.mxu0 %vm1338_vm0, %v955_v38  ;;  %v1287_v32 = vld [vmem:[%s3387_s22 + $0xa28] sm:$0xff]  ;;  %v2140_v35 = vpack.c.bf16 %v1278_v27, %v1274_v26  ;;  %v2330_v36 = vpack.c.bf16 %v1280_v30, %v1276_v28  ;;  %v1320_v26 = vld [vmem:[%s3387_s22 + $0xb30] sm:$0xff]  ;;  %v1329_v30 = vld [vmem:[%s3387_s22 + $0xb78] sm:$0xff] }
 0x16e   : > { %1971 = vmatprep.mubr.msk.f32.mxu1 %vm1338_vm0, %v955_v38  ;;  %v2142_v37 = vpack.c.bf16 %v1287_v32, %v1283_v31  ;;  %v1282_v38 = vld [vmem:[%s3387_s22 + $0xa00] sm:$0xff]  ;;  %v1323_v27 = vld [vmem:[%s3387_s22 + $0xb48] sm:$0xff] }
 0x16f   : > { %2121 = vmatpush1.bf16.msra.mxu0 %v2120_v39  ;;  %v1286_v39 = vld [vmem:[%s3387_s22 + $0xa20] sm:$0xff]  ;;  %v1327_v28 = vld [vmem:[%s3387_s22 + $0xb68] sm:$0xff] }
 0x170   : > { %2311 = vmatpush1.bf16.msra.mxu1 %v2310_v40  ;;  %2123 = vmatprep.subr.bf16.mxu0 %v2122_v41  ;;  %v1284_v40 = vld [vmem:[%s3387_s22 + $0xa10] sm:$0xff]  ;;  %v2332_v41 = vpack.c.bf16 %v1289_v34, %v1285_v33  ;;  %v2144_v47 = vpack.c.bf16 %v1286_v39, %v1282_v38  ;;  %v2162_v33 = vpack.c.bf16 %v1327_v28, %v1323_v27  ;;  %v1322_v34 = vld [vmem:[%s3387_s22 + $0xb40] sm:$0xff]  ;;  %v1331_v39 = vld [vmem:[%s3387_s22 + $0xb88] sm:$0xff] }
 0x171   : > { %2313 = vmatprep.subr.bf16.mxu1 %v2312_v45  ;;  %v1293_v45 = vld [vmem:[%s3387_s22 + $0xa58] sm:$0xff]  ;;  %v2334_v48 = vpack.c.bf16 %v1288_v42, %v1284_v40  ;;  %v1328_v38 = vld [vmem:[%s3387_s22 + $0xb70] sm:$0xff]  ;;  %v1335_v40 = vld [vmem:[%s3387_s22 + $0xba8] sm:$0x7] }
 0x172   : > { %v1337_v42 = vld [vmem:[%s3387_s22 + $0xbb8] sm:$0x7] }
 0x173   : > { %2125 = vmatpush1.bf16.msra.mxu0 %v2124_v51  ;;  %v1294_v51 = vld [vmem:[%s3387_s22 + $0xa60] sm:$0xff] }
 0x174   : > { %2315 = vmatpush1.bf16.msra.mxu1 %v2314_v52  ;;  %2127 = vmatprep.subr.bf16.mxu0 %v2126_v53  ;;  %v1292_v52 = vld [vmem:[%s3387_s22 + $0xa50] sm:$0xff]  ;;  %v2336_v53 = vpack.c.bf16 %v1297_v46, %v1293_v45  ;;  %v2148_v59 = vpack.c.bf16 %v1294_v51, %v1290_v50  ;;  %v2166_v45 = vpack.c.bf16 %v1335_v40, %v1331_v39  ;;  %v1330_v46 = vld [vmem:[%s3387_s22 + $0xb80] sm:$0xff] }
 0x175   : > { %2317 = vmatprep.subr.bf16.mxu1 %v2316_v57  ;;  %v1301_v57 = vld [vmem:[%s3387_s22 + $0xa98] sm:$0xff]  ;;  %v2338_v60 = vpack.c.bf16 %v1296_v54, %v1292_v52  ;;  %v1336_v50 = vld [vmem:[%s3387_s22 + $0xbb0] sm:$0x7] }
 0x176   : > { %v961_v54 = vld [vmem:[%s3498_s30 + $0x58] sm:$0xff] }
 0x177   : > { %2129 = vmatpush1.bf16.msra.mxu0 %v2128_v63  ;;  %v1302_v63 = vld [vmem:[%s3387_s22 + $0xaa0] sm:$0xff] }
 0x178   : > { %2319 = vmatpush1.bf16.msra.mxu1 %v2318_v0  ;;  %2131 = vmatprep.subr.bf16.mxu0 %v2130_v1  ;;  %v1300_v0 = vld [vmem:[%s3387_s22 + $0xa90] sm:$0xff]  ;;  %v2340_v1 = vpack.c.bf16 %v1305_v58, %v1301_v57  ;;  %v2152_v7 = vpack.c.bf16 %v1302_v63, %v1298_v62 }
 0x179   : > { %2321 = vmatprep.subr.bf16.mxu1 %v2320_v5  ;;  %v1309_v5 = vld [vmem:[%s3387_s22 + $0xad8] sm:$0xff]  ;;  %v2342_v8 = vpack.c.bf16 %v1304_v2, %v1300_v0 }
 0x17b   : > { %2133 = vmatpush1.bf16.msra.mxu0 %v2132_v11  ;;  %v1310_v11 = vld [vmem:[%s3387_s22 + $0xae0] sm:$0xff] }
 0x17c   : > { %2323 = vmatpush1.bf16.msra.mxu1 %v2322_v12  ;;  %2135 = vmatprep.subr.bf16.mxu0 %v2134_v13  ;;  %v1308_v12 = vld [vmem:[%s3387_s22 + $0xad0] sm:$0xff]  ;;  %v2344_v13 = vpack.c.bf16 %v1313_v6, %v1309_v5  ;;  %v2156_v19 = vpack.c.bf16 %v1310_v11, %v1306_v10 }
 0x17d   : > { %2325 = vmatprep.subr.bf16.mxu1 %v2324_v17  ;;  %v1317_v17 = vld [vmem:[%s3387_s22 + $0xb18] sm:$0xff]  ;;  %v2346_v20 = vpack.c.bf16 %v1312_v14, %v1308_v12 }
 0x17f   : > { %2137 = vmatpush1.bf16.msra.mxu0 %v2136_v23  ;;  %v1318_v23 = vld [vmem:[%s3387_s22 + $0xb20] sm:$0xff] }
 0x180   : > { %2327 = vmatpush1.bf16.msra.mxu1 %v2326_v24  ;;  %2139 = vmatprep.subr.bf16.mxu0 %v2138_v25  ;;  %v1316_v24 = vld [vmem:[%s3387_s22 + $0xb10] sm:$0xff]  ;;  %v2348_v25 = vpack.c.bf16 %v1321_v18, %v1317_v17  ;;  %v2160_v31 = vpack.c.bf16 %v1318_v23, %v1314_v22 }
 0x181   : > { %2329 = vmatprep.subr.bf16.mxu1 %v2328_v29  ;;  %v1325_v29 = vld [vmem:[%s3387_s22 + $0xb58] sm:$0xff]  ;;  %v2350_v32 = vpack.c.bf16 %v1320_v26, %v1316_v24 }
 0x183   : > { %2141 = vmatpush1.bf16.msra.mxu0 %v2140_v35  ;;  %v1326_v35 = vld [vmem:[%s3387_s22 + $0xb60] sm:$0xff] }
 0x184   : > { %2331 = vmatpush1.bf16.msra.mxu1 %v2330_v36  ;;  %2143 = vmatprep.subr.bf16.mxu0 %v2142_v37  ;;  %v1324_v36 = vld [vmem:[%s3387_s22 + $0xb50] sm:$0xff]  ;;  %v2352_v37 = vpack.c.bf16 %v1329_v30, %v1325_v29  ;;  %v2164_v43 = vpack.c.bf16 %v1326_v35, %v1322_v34 }
 0x185   : > { %2333 = vmatprep.subr.bf16.mxu1 %v2332_v41  ;;  %v1333_v41 = vld [vmem:[%s3387_s22 + $0xb98] sm:$0xff]  ;;  %v2354_v44 = vpack.c.bf16 %v1328_v38, %v1324_v36 }
 0x187   : > { %2145 = vmatpush1.bf16.msra.mxu0 %v2144_v47  ;;  %v1334_v47 = vld [vmem:[%s3387_s22 + $0xba0] sm:$0x7] }
 0x188   : > { %2335 = vmatpush1.bf16.msra.mxu1 %v2334_v48  ;;  %2147 = vmatprep.subr.bf16.mxu0 %v2146_v49  ;;  %v2356_v48 = vpack.c.bf16 %v1337_v42, %v1333_v41  ;;  %v1332_v49 = vld [vmem:[%s3387_s22 + $0xb90] sm:$0xff]  ;;  %v2169_v51 = vpack.c.bf16 %v1334_v47, %v1330_v46  ;;  %s1840_s22 = scalar_lea.vmem (%p2610_p9), %s3837_s2, %s1977_s8 }
 0x189   : > { %2337 = vmatprep.subr.bf16.mxu1 %v2336_v53  ;;  %v2359_v52 = vpack.c.bf16 %v1336_v50, %v1332_v49  ;;  %v954_v53 = vld [vmem:[%s3498_s30 + $0x20] sm:$0xff] }
 0x18b   : > { %2149 = vmatpush1.bf16.msra.mxu0 %v2148_v59 }
 0x18c   : > { %2339 = vmatpush1.bf16.msra.mxu1 %v2338_v60  ;;  %2151 = vmatprep.subr.bf16.mxu0 %v2150_v61 }
 0x18d   : > { %2341 = vmatprep.subr.bf16.mxu1 %v2340_v1 }
 0x18f   : > { %2153 = vmatpush1.bf16.msra.mxu0 %v2152_v7 }
 0x190   : > { %2343 = vmatpush1.bf16.msra.mxu1 %v2342_v8  ;;  %2155 = vmatprep.subr.bf16.mxu0 %v2154_v9 }
 0x191   : > { %2345 = vmatprep.subr.bf16.mxu1 %v2344_v13 }
 0x193   : > { %2157 = vmatpush1.bf16.msra.mxu0 %v2156_v19 }
 0x194   : > { %2347 = vmatpush1.bf16.msra.mxu1 %v2346_v20  ;;  %2159 = vmatprep.subr.bf16.mxu0 %v2158_v21 }
 0x195   : > { %2349 = vmatprep.subr.bf16.mxu1 %v2348_v25 }
 0x197   : > { %2161 = vmatpush1.bf16.msra.mxu0 %v2160_v31 }
 0x198   : > { %2351 = vmatpush1.bf16.msra.mxu1 %v2350_v32  ;;  %2163 = vmatprep.subr.bf16.mxu0 %v2162_v33 }
 0x199   : > { %2353 = vmatprep.subr.bf16.mxu1 %v2352_v37 }
 0x19b   : > { %2165 = vmatpush1.bf16.msra.mxu0 %v2164_v43 }
 0x19c   : > { %2355 = vmatpush1.bf16.msra.mxu1 %v2354_v44  ;;  %2168 = vmatprep.subr.msk.bf16.mxu0 %vm2167_vm3, %v2166_v45 }
 0x19d   : > { %2358 = vmatprep.subr.msk.bf16.mxu1 %vm2167_vm3, %v2356_v48 }
 0x19f   : > { %2171 = vmatpush1.bf16.msk.msra.mxu0 %vm2167_vm3, %v2169_v51 }
 0x1a0   : > { %2361 = vmatpush1.bf16.msk.msra.mxu1 %vm2167_vm3, %v2359_v52 }
 0x1a2   : > { %1577 = vmatmul.mubr.f32.vlgmr.msra.gmra.mrb[0].mxu0 %v954_v53 }
 0x1a3   : > { %1808 = vmatmul.mubr.f32.vlgmr.msra.gmra.mrb[0].mxu1 %v954_v53  ;;  %1968 = vmatprep.mubr.msk.f32.mxu0 %vm1338_vm0, %v961_v54 }
 0x1a4   : > { %1972 = vmatprep.mubr.msk.f32.mxu1 %vm1338_vm0, %v961_v54 }
 0x1a6   : > { %1583 = vmatmul.mubr.f32.gmra.mrb[2].mxu0 %v960_v55 }
 0x1a7   : > { %1814 = vmatmul.mubr.f32.gmra.mrb[2].mxu1 %v960_v55 }
 0x275   : > { %v1578_v56 = vpop.f32.mrb[0].mxu0 }
 0x276   : > { %1820 = vst [vmem:[%s939_s5] sm:$0xff] %v1578_v56  ;;  %v1809_v57 = vpop.f32.mrb[0].mxu1  ;;  %v1580_v58 = vpop.f32.mrb[1].mxu0  ;;  %1834 = sbr.rel (!%p2610_p9) target bundleno = 645 (0x285), region = 55 }
 0x277   : > { %1822 = vst [vmem:[%s939_s5 + $0x10] sm:$0xff] %v1809_v57  ;;  %1821 = vst [vmem:[%s939_s5 + $0x8] sm:$0xff] %v1580_v58  ;;  %v1811_v59 = vpop.f32.mrb[1].mxu1 }
 0x278   : > { %1823 = vst [vmem:[%s939_s5 + $0x18] sm:$0xff] %v1811_v59 }
 0x279   : > { %v1584_v60 = vpop.f32.mrb[2].mxu0 }
 0x27a   : > { %1824 = vst [vmem:[%s939_s5 + $0x20] sm:$0xff] %v1584_v60  ;;  %v1815_v61 = vpop.f32.mrb[2].mxu1  ;;  %v1586_v62 = vpop.f32.mrb[3].mxu0 }
 0x27b   : > { %1826 = vst [vmem:[%s939_s5 + $0x30] sm:$0xff] %v1815_v61  ;;  %1825 = vst [vmem:[%s939_s5 + $0x28] sm:$0xff] %v1586_v62  ;;  %v1817_v63 = vpop.f32.mrb[3].mxu1 }
 0x27c   : > { %1827 = vst [vmem:[%s939_s5 + $0x38] sm:$0xff] %v1817_v63 }
 0x27d   : > { %v1853_v0 = vld [vmem:[%s939_s5] sm:$0xff] }
 0x27e   : > { %v1855_v1 = vld [vmem:[%s939_s5 + $0x8] sm:$0xff]  ;;  %v1857_v2 = vld [vmem:[%s939_s5 + $0x10] sm:$0xff]  ;;  %1854 = vst [vmem:[%s1840_s22] sm:$0xff] %v1853_v0 }
 0x27f   : > { %v1859_v3 = vld [vmem:[%s939_s5 + $0x18] sm:$0xff]  ;;  %1856 = vst [vmem:[%s1840_s22 + $0x8] sm:$0xff] %v1855_v1  ;;  %1858 = vst [vmem:[%s1840_s22 + $0x10] sm:$0xff] %v1857_v2 }
 0x280   : > { %1860 = vst [vmem:[%s1840_s22 + $0x18] sm:$0xff] %v1859_v3 }
 0x281   : > { %v1861_v4 = vld [vmem:[%s939_s5 + $0x20] sm:$0xff] }
 0x282   : > { %v1863_v5 = vld [vmem:[%s939_s5 + $0x28] sm:$0xff]  ;;  %v1865_v6 = vld [vmem:[%s939_s5 + $0x30] sm:$0xff]  ;;  %1862 = vst [vmem:[%s1840_s22 + $0x40] sm:$0xff] %v1861_v4 }
 0x283   : > { %v1867_v7 = vld [vmem:[%s939_s5 + $0x38] sm:$0xff]  ;;  %1864 = vst [vmem:[%s1840_s22 + $0x48] sm:$0xff] %v1863_v5  ;;  %1866 = vst [vmem:[%s1840_s22 + $0x50] sm:$0xff] %v1865_v6 }
 0x284   : > { %1868 = vst [vmem:[%s1840_s22 + $0x58] sm:$0xff] %v1867_v7 }
 0x285 PF: > { %s12_s17 = sadd.s32 1, %s2524_s17   ;;  %s3841_s9 = smov %s2496_s10 }
 0x286   : > { %p9_p1 = scmp.ge.s32.totalorder %s12_s17, 6   ;;  %s3842_s10 = smov %s2618_s29 }
 0x287   : > { %s3843_s11 = smov %s2504_s12  ;;  %s3844_s12 = smov %s2615_s28 }
 0x288   : > { %s3845_s13 = smov %s2516_s15  ;;  %s3846_s14 = smov %s2520_s16 }
 0x289   : > { %s3847_s15 = smov %s3850_s18  ;;  %s3848_s16 = smov %s3854_s19 }
 0x28a   :  { %11 = sbr.rel (!%p9_p1) target bundleno = 5 (0x5), region = 112 }

// kernel: conv_decoder_forward.6
= control target key start
LH: loop header
LB: loop body
LE: loop exit
PB: predicated region body
PF: predicated region fallthrough
CT: control target
= control target key end

     0   :  { %s1149_s12 = smov 0   ;;  %s1151_s13 = smov 0   ;;  %s1539_s0 = inlined_call_operand.vmem [shape: f32[272,64], index: 0, kind: input, shape index: {}]   ;;  %s1540_s1 = inlined_call_operand.vmem [shape: f32[1,64], index: 1, kind: input, shape index: {}]   ;;  %s1541_s2 = inlined_call_operand.vmem [shape: f32[64,512], index: 2, kind: input, shape index: {}]   ;;  %s1542_s3 = inlined_call_operand.vmem [shape: f32[272,512], index: 3, kind: output, shape index: {}]  }
   0x1   :  { %s1153_s14 = smov 0  }
   0x2 LB: > { %s22_s15 = sadd.s32 1, %s1122_s13  ;;  %p954_p0 = scmp.ge.s32.totalorder %s1126_s14, 1  ;;  %s1126_s14 = sphi %s1153_s14, %s13_s14   ;;  %s1122_s13 = sphi %s1151_s13, %s1544_s13   ;;  %s1118_s12 = sphi %s1149_s12, %s1543_s12  }
   0x3   : > { %p23_p1 = scmp.ge.s32.totalorder %s22_s15, 2  ;;  %p163_p2 = scmp.lt.s32.totalorder %s1126_s14, 3 }
   0x5   : > { %s1546_s15 = smov (%p23_p1, %s22_s15), 0  ;;  %p164_p3 = pnand %p954_p0, %p163_p2 }
   0x6   : > { %v365_v0 = vld [vmem:[%s1541_s2 + $0x8] sm:$0xff] (!%p164_p3)  ;;  %v367_v2 = vld [vmem:[%s1541_s2 + $0x18] sm:$0xff] (!%p164_p3)  ;;  %s197_s22 = smul.u32 (!%p164_p3), 17, %s1118_s12  ;;  %v364_v5 = vld [vmem:[%s1541_s2] sm:$0xff] (!%p164_p3)  ;;  %v1128_v7 = vmov (!%p164_p3), 0.0   ;;  %vm396_vm1 = vcmask (!%p164_p3), 523264  }
   0x7   : > { %167 = sbr.rel (%p164_p3) target bundleno = 316 (0x13c), region = 32  ;;  %v369_v1 = vld [vmem:[%s1541_s2 + $0x28] sm:$0xff] (!%p164_p3)  ;;  %v371_v4 = vld [vmem:[%s1541_s2 + $0x38] sm:$0xff] (!%p164_p3)  ;;  %v368_v6 = vld [vmem:[%s1541_s2 + $0x20] sm:$0xff] (!%p164_p3)  ;;  %512 = vmatprep.mubr.f32.mxu0 (!%p164_p3), %v1128_v7  ;;  %679 = vmatprep.mubr.f32.mxu1 (!%p164_p3), %v1128_v7 }
   0x8   : > { %v1013_v3 = vpack.c.bf16 (!%p164_p3), %v369_v1, %v365_v0  ;;  %v1029_v8 = vpack.c.bf16 (!%p164_p3), %v371_v4, %v367_v2  ;;  %v1015_v9 = vpack.c.bf16 (!%p164_p3), %v368_v6, %v364_v5  ;;  %v366_v10 = vld [vmem:[%s1541_s2 + $0x10] sm:$0xff] (!%p164_p3)  ;;  %v373_v12 = vld [vmem:[%s1541_s2 + $0x48] sm:$0xff] (!%p164_p3)  ;;  %p198_p4 = scmp.lt.s32.totalorder (!%p164_p3), %s197_s22, 33  ;;  %v375_v15 = vld [vmem:[%s1541_s2 + $0x58] sm:$0xff] (!%p164_p3) }
   0x9   : > { %v370_v11 = vld [vmem:[%s1541_s2 + $0x30] sm:$0xff] (!%p164_p3)  ;;  %v377_v14 = vld [vmem:[%s1541_s2 + $0x68] sm:$0xff] (!%p164_p3)  ;;  %v379_v16 = vld [vmem:[%s1541_s2 + $0x78] sm:$0xff] (!%p164_p3) }
   0xa   : > { %1014 = vmatprep.subr.bf16.mxu0 (!%p164_p3), %v1013_v3  ;;  %v1031_v13 = vpack.c.bf16 (!%p164_p3), %v370_v11, %v366_v10  ;;  %1030 = vmatprep.subr.bf16.mxu1 (!%p164_p3), %v1029_v8  ;;  %v1017_v17 = vpack.c.bf16 (!%p164_p3), %v377_v14, %v373_v12  ;;  %v1033_v18 = vpack.c.bf16 (!%p164_p3), %v379_v16, %v375_v15  ;;  %v372_v19 = vld [vmem:[%s1541_s2 + $0x40] sm:$0xff] (!%p164_p3)  ;;  %v374_v21 = vld [vmem:[%s1541_s2 + $0x50] sm:$0xff] (!%p164_p3)  ;;  %v381_v24 = vld [vmem:[%s1541_s2 + $0x88] sm:$0xff] (!%p164_p3) }
   0xb   : > { %1016 = vmatpush1.bf16.msra.mxu0 (!%p164_p3), %v1015_v9  ;;  %v376_v20 = vld [vmem:[%s1541_s2 + $0x60] sm:$0xff] (!%p164_p3)  ;;  %v378_v23 = vld [vmem:[%s1541_s2 + $0x70] sm:$0xff] (!%p164_p3)  ;;  %v385_v25 = vld [vmem:[%s1541_s2 + $0xa8] sm:$0xff] (!%p164_p3) }
   0xc   : > { %1032 = vmatpush1.bf16.msra.mxu1 (!%p164_p3), %v1031_v13  ;;  %v1019_v22 = vpack.c.bf16 (!%p164_p3), %v376_v20, %v372_v19  ;;  %1018 = vmatprep.subr.bf16.mxu0 (!%p164_p3), %v1017_v17  ;;  %v1035_v26 = vpack.c.bf16 (!%p164_p3), %v378_v23, %v374_v21  ;;  %v1021_v27 = vpack.c.bf16 (!%p164_p3), %v385_v25, %v381_v24  ;;  %v383_v28 = vld [vmem:[%s1541_s2 + $0x98] sm:$0xff] (!%p164_p3)  ;;  %v380_v30 = vld [vmem:[%s1541_s2 + $0x80] sm:$0xff] (!%p164_p3)  ;;  %v382_v33 = vld [vmem:[%s1541_s2 + $0x90] sm:$0xff] (!%p164_p3) }
   0xd   : > { %1034 = vmatprep.subr.bf16.mxu1 (!%p164_p3), %v1033_v18  ;;  %v387_v29 = vld [vmem:[%s1541_s2 + $0xb8] sm:$0xff] (!%p164_p3)  ;;  %v384_v32 = vld [vmem:[%s1541_s2 + $0xa0] sm:$0xff] (!%p164_p3)  ;;  %v386_v34 = vld [vmem:[%s1541_s2 + $0xb0] sm:$0xff] (!%p164_p3) }
   0xe   : > { %s1548_s22 = smov (!%p198_p4, %s197_s22), 33  ;;  %v1037_v31 = vpack.c.bf16 %v387_v29, %v383_v28  ;;  %v1023_v35 = vpack.c.bf16 %v384_v32, %v380_v30  ;;  %v389_v36 = vld [vmem:[%s1541_s2 + $0xc8] sm:$0xff]  ;;  %v391_v38 = vld [vmem:[%s1541_s2 + $0xd8] sm:$0xff]  ;;  %v1039_v39 = vpack.c.bf16 %v386_v34, %v382_v33  ;;  %v388_v42 = vld [vmem:[%s1541_s2 + $0xc0] sm:$0xff] }
   0xf   : > { %s955_s9 = sshll.u32 %s1548_s22, 3  ;;  %1020 = vmatpush1.bf16.msra.mxu0 %v1019_v22  ;;  %v393_v37 = vld [vmem:[%s1541_s2 + $0xe8] sm:$0xff]  ;;  %v395_v41 = vld [vmem:[%s1541_s2 + $0xf8] sm:$0xff]  ;;  %v392_v43 = vld [vmem:[%s1541_s2 + $0xe0] sm:$0xff]  ;;  %s1012_s17 = sshll.u32 %s1548_s22, 5 }
  0x10   : > { %s1250_s21 = scalar_lea.vmem %s1539_s0, %s955_s9  ;;  %1036 = vmatpush1.bf16.msra.mxu1 %v1035_v26  ;;  %1022 = vmatprep.subr.bf16.mxu0 %v1021_v27  ;;  %v1025_v40 = vpack.c.bf16 %v393_v37, %v389_v36  ;;  %v1041_v44 = vpack.c.bf16 %v395_v41, %v391_v38  ;;  %v390_v45 = vld [vmem:[%s1541_s2 + $0xd0] sm:$0xff]  ;;  %v1280_v48 = vld [vmem:[%s1540_s1] ss:$0 sm:$0xff]  ;;  %v1027_v51 = vpack.c.bf16 %v392_v43, %v388_v42  ;;  %s1460_s20 = scalar_lea.vmem %s1542_s3, %s1012_s17 }
  0x11   : > { %1038 = vmatprep.subr.bf16.mxu1 %v1037_v31  ;;  %v394_v46 = vld [vmem:[%s1541_s2 + $0xf0] sm:$0xff]  ;;  %v221_v47 = vld [vmem:[%s1250_s21] sm:$0xff]  ;;  %v222_v49 = vld [vmem:[%s1250_s21 + $0x8] sm:$0xff] }
  0x12   : > { %v223_v50 = vld [vmem:[%s1250_s21 + $0x10] sm:$0xff]  ;;  %v245_v52 = vadd.f32 %v1280_v48, %v221_v47  ;;  %v246_v53 = vadd.f32 %v1280_v48, %v222_v49  ;;  %v224_v55 = vld [vmem:[%s1250_s21 + $0x18] sm:$0xff]  ;;  %v1043_v56 = vpack.c.bf16 %v394_v46, %v390_v45  ;;  %v225_v58 = vld [vmem:[%s1250_s21 + $0x20] sm:$0xff] }
  0x13   : > { %1024 = vmatpush1.bf16.msra.mxu0 %v1023_v35  ;;  %v1287_v54 = vadd.f32 %v1280_v48, %v223_v50  ;;  %v1291_v57 = vadd.f32 %v1280_v48, %v224_v55  ;;  %v1297_v1 = vadd.f32 %v1280_v48, %v225_v58  ;;  %v226_v3 = vld [vmem:[%s1250_s21 + $0x28] sm:$0xff]  ;;  %v227_v8 = vld [vmem:[%s1250_s21 + $0x30] sm:$0xff]  ;;  %v228_v12 = vld [vmem:[%s1250_s21 + $0x38] sm:$0xff] }
  0x14   : > { %1040 = vmatpush1.bf16.msra.mxu1 %v1039_v39  ;;  %1026 = vmatprep.subr.bf16.mxu0 %v1025_v40  ;;  %v279_v59 = vmin.f32 %v245_v52, 0.0  ;;  %v280_v60 = vmin.f32 %v246_v53, 0.0  ;;  %v1302_v6 = vadd.f32 %v1280_v48, %v226_v3  ;;  %v1307_v11 = vadd.f32 %v1280_v48, %v227_v8  ;;  %v237_v13 = vld [vmem:[%s1250_s21 + $0x80] sm:$0xff]  ;;  %v230_v30 = vld [vmem:[%s1250_s21 + $0x48] sm:$0xff]  ;;  %v231_v37 = vld [vmem:[%s1250_s21 + $0x50] sm:$0xff] }
  0x15   : > { %1042 = vmatprep.subr.bf16.mxu1 %v1041_v44  ;;  %v281_v61 = vmin.f32 %v1287_v54, 0.0  ;;  %v282_v0 = vmin.f32 %v1291_v57, 0.0  ;;  %v283_v5 = vmin.f32 %v1297_v1, 0.0  ;;  %vm262_vm0 = vcmp.gt.f32.partialorder %v245_v52, 0.0  ;;  %v229_v20 = vld [vmem:[%s1250_s21 + $0x40] sm:$0xff]  ;;  %v232_v44 = vld [vmem:[%s1250_s21 + $0x58] sm:$0xff] }
  0x16   : > { %v296_v62 = vmul.f32 1.442695, %v279_v59  ;;  %v298_v63 = vmul.f32 1.442695, %v280_v60  ;;  %v284_v10 = vmin.f32 %v1302_v6, 0.0  ;;  %v285_v16 = vmin.f32 %v1307_v11, 0.0 }
  0x17   : > { %1028 = vmatpush1.bf16.msra.mxu0 %v1027_v51  ;;  %v300_v2 = vmul.f32 1.442695, %v281_v61  ;;  %v302_v4 = vmul.f32 1.442695, %v282_v0  ;;  %v304_v9 = vmul.f32 1.442695, %v283_v5  ;;  %v1313_v17 = vadd.f32 %v1280_v48, %v228_v12 }
  0x18   : > { %1044 = vmatpush1.bf16.msra.mxu1 %v1043_v56  ;;  %1070 = vpow2.f32 %v296_v62  ;;  %v306_v15 = vmul.f32 1.442695, %v284_v10  ;;  %v1317_v21 = vadd.f32 %v1280_v48, %v237_v13  ;;  %vm263_vm2 = vcmp.gt.f32.partialorder %v246_v53, 0.0  ;;  %v234_v59 = vld [vmem:[%s1250_s21 + $0x68] sm:$0xff]  ;;  %v236_v10 = vld [vmem:[%s1250_s21 + $0x78] sm:$0xff] }
  0x19   : > { %1072 = vpow2.f32 %v298_v63  ;;  %v308_v25 = vmul.f32 1.442695, %v285_v16  ;;  %v286_v26 = vmin.f32 %v1313_v17, 0.0  ;;  %v1323_v27 = vadd.f32 %v1280_v48, %v229_v20 }
  0x1a   : > { %1074 = vpow2.f32 %v300_v2  ;;  %vm264_vm3 = vcmp.gt.f32.partialorder %v1287_v54, 0.0  ;;  %v1333_v34 = vadd.f32 %v1280_v48, %v230_v30  ;;  %vm265_vm4 = vcmp.gt.f32.partialorder %v1291_v57, 0.0  ;;  %v235_v2 = vld [vmem:[%s1250_s21 + $0x70] sm:$0xff] }
  0x1b   : > { %1076 = vpow2.f32 %v302_v4  ;;  %v310_v32 = vmul.f32 1.442695, %v286_v26  ;;  %v287_v33 = vmin.f32 %v1323_v27, 0.0  ;;  %v1344_v41 = vadd.f32 %v1280_v48, %v231_v37 }
  0x1c   : > { %1078 = vpow2.f32 %v304_v9  ;;  %v288_v40 = vmin.f32 %v1333_v34, 0.0  ;;  %vm266_vm5 = vcmp.gt.f32.partialorder %v1297_v1, 0.0  ;;  %v1355_v49 = vadd.f32 %v1280_v48, %v232_v44 }
  0x1d   : > { %1080 = vpow2.f32 %v306_v15  ;;  %v312_v39 = vmul.f32 1.442695, %v287_v33  ;;  %v289_v47 = vmin.f32 %v1344_v41, 0.0  ;;  %vm267_vm6 = vcmp.gt.f32.partialorder %v1302_v6, 0.0 }
  0x1e   : > { %1082 = vpow2.f32 %v308_v25  ;;  %v314_v46 = vmul.f32 1.442695, %v288_v40  ;;  %v290_v55 = vmin.f32 %v1355_v49, 0.0  ;;  %vm268_vm7 = vcmp.gt.f32.partialorder %v1307_v11, 0.0 }
  0x1f   : > { %1084 = vpow2.f32 %v310_v32  ;;  %v1377_v63 = vadd.f32 %v1280_v48, %v234_v59  ;;  %vm269_vm8 = vcmp.gt.f32.partialorder %v1313_v17, 0.0  ;;  %vm270_vm9 = vcmp.gt.f32.partialorder %v1323_v27, 0.0 }
  0x20   : > { %1086 = vpow2.f32 %v312_v39  ;;  %v318_v61 = vmul.f32 1.442695, %v290_v55  ;;  %vm271_vm10 = vcmp.gt.f32.partialorder %v1333_v34, 0.0  ;;  %vm272_vm11 = vcmp.gt.f32.partialorder %v1344_v41, 0.0 }
  0x21   : > { %1088 = vpow2.f32 %v314_v46  ;;  %v292_v5 = vmin.f32 %v1377_v63, 0.0  ;;  %vm273_vm12 = vcmp.gt.f32.partialorder %v1355_v49, 0.0  ;;  %vm275_vm14 = vcmp.gt.f32.partialorder %v1377_v63, 0.0 }
  0x22   : > { %v1071_v14 = vpop.eup %1070 }
  0x23   : > { %v1073_v18 = vpop.eup %1072  ;;  %v959_v19 = vadd.f32 -1.0, %v1071_v14  ;;  %v322_v12 = vmul.f32 1.442695, %v292_v5  ;;  %v1399_v14 = vadd.f32 %v1280_v48, %v236_v10 }
  0x24   : > { %v1075_v22 = vpop.eup %1074  ;;  %v960_v23 = vadd.f32 -1.0, %v1073_v18 }
  0x25   : > { %v347_v24 = vsel %vm262_vm0, %v245_v52, %v959_v19  ;;  %v961_v29 = vadd.f32 -1.0, %v1075_v22  ;;  %v1077_v31 = vpop.eup %1076  ;;  %v233_v52 = vld [vmem:[%s1250_s21 + $0x60] sm:$0xff]  ;;  %v294_v19 = vmin.f32 %v1399_v14, 0.0  ;;  %vm277_vm0 = vcmp.gt.f32.partialorder %v1399_v14, 0.0 }
  0x26   : > { %976 = vmatmul.mubr.msk.f32.vlgmr.msra.gmra.mrb[0].mxu0 %vm396_vm1, %v347_v24  ;;  %993 = vmatmul.mubr.msk.f32.vlgmr.msra.gmra.mrb[0].mxu1 %vm396_vm1, %v347_v24  ;;  %v348_v28 = vsel %vm263_vm2, %v246_v53, %v960_v23  ;;  %v962_v36 = vadd.f32 -1.0, %v1077_v31  ;;  %v1079_v38 = vpop.eup %1078  ;;  %v1366_v56 = vadd.f32 %v1280_v48, %v233_v52  ;;  %v295_v24 = vmin.f32 %v1317_v21, 0.0 }
  0x27   : > { %518 = vmatprep.mubr.f32.mxu0 %v1128_v7  ;;  %685 = vmatprep.mubr.f32.mxu1 %v1128_v7  ;;  %v349_v35 = vsel %vm264_vm3, %v1287_v54, %v961_v29  ;;  %v963_v43 = vadd.f32 -1.0, %v1079_v38  ;;  %v1081_v45 = vpop.eup %1080  ;;  %v316_v54 = vmul.f32 1.442695, %v289_v47  ;;  %v326_v23 = vmul.f32 1.442695, %v294_v19 }
  0x28   : > { %v350_v42 = vsel %vm265_vm4, %v1291_v57, %v962_v36  ;;  %v964_v51 = vadd.f32 -1.0, %v1081_v45  ;;  %v1083_v53 = vpop.eup %1082  ;;  %v291_v62 = vmin.f32 %v1366_v56, 0.0  ;;  %vm274_vm13 = vcmp.gt.f32.partialorder %v1366_v56, 0.0 }
  0x29   : > { %v351_v50 = vsel %vm266_vm5, %v1297_v1, %v963_v43  ;;  %v965_v58 = vadd.f32 -1.0, %v1083_v53  ;;  %v1085_v60 = vpop.eup %1084  ;;  %1090 = vpow2.f32 %v316_v54  ;;  %vm278_vm2 = vcmp.gt.f32.partialorder %v1317_v21, 0.0 }
  0x2a   : > { %977 = vmatmul.mubr.msk.f32.gmra.mrb[2].mxu0 %vm396_vm1, %v348_v28  ;;  %994 = vmatmul.mubr.msk.f32.gmra.mrb[2].mxu1 %vm396_vm1, %v348_v28  ;;  %v352_v57 = vsel %vm267_vm6, %v1302_v6, %v964_v51  ;;  %v966_v1 = vadd.f32 -1.0, %v1085_v60  ;;  %v1087_v3 = vpop.eup %1086  ;;  %1092 = vpow2.f32 %v318_v61  ;;  %v320_v4 = vmul.f32 1.442695, %v291_v62 }
  0x2b   : > { %524 = vmatprep.mubr.f32.mxu0 %v1128_v7  ;;  %691 = vmatprep.mubr.f32.mxu1 %v1128_v7  ;;  %v353_v0 = vsel %vm268_vm7, %v1307_v11, %v965_v58  ;;  %v1388_v6 = vadd.f32 %v1280_v48, %v235_v2  ;;  %v967_v9 = vadd.f32 -1.0, %v1087_v3  ;;  %v1089_v11 = vpop.eup %1088  ;;  %v328_v28 = vmul.f32 1.442695, %v295_v24 }
  0x2c   : > { %v354_v8 = vsel %vm269_vm8, %v1313_v17, %v966_v1  ;;  %1094 = vpow2.f32 %v320_v4  ;;  %v968_v16 = vadd.f32 -1.0, %v1089_v11 }
  0x2d   : > { %v293_v13 = vmin.f32 %v1388_v6, 0.0  ;;  %v355_v15 = vsel %vm270_vm9, %v1323_v27, %v967_v9  ;;  %1096 = vpow2.f32 %v322_v12  ;;  %vm276_vm15 = vcmp.gt.f32.partialorder %v1388_v6, 0.0 }
  0x2e   : > { %978 = vmatmul.mubr.msk.f32.gmra.mrb[4].mxu0 %vm396_vm1, %v349_v35  ;;  %995 = vmatmul.mubr.msk.f32.gmra.mrb[4].mxu1 %vm396_vm1, %v349_v35  ;;  %v356_v48 = vsel %vm271_vm10, %v1333_v34, %v968_v16 }
  0x2f   : > { %530 = vmatprep.mubr.f32.mxu0 %v1128_v7  ;;  %697 = vmatprep.mubr.f32.mxu1 %v1128_v7  ;;  %v324_v18 = vmul.f32 1.442695, %v293_v13 }
  0x31   : > { %1098 = vpow2.f32 %v324_v18 }
  0x32   : > { %979 = vmatmul.mubr.msk.f32.gmra.mrb[6].mxu0 %vm396_vm1, %v350_v42  ;;  %996 = vmatmul.mubr.msk.f32.gmra.mrb[6].mxu1 %vm396_vm1, %v350_v42  ;;  %1100 = vpow2.f32 %v326_v23 }
  0x33   : > { %536 = vmatprep.mubr.f32.mxu0 %v1128_v7  ;;  %703 = vmatprep.mubr.f32.mxu1 %v1128_v7  ;;  %v1091_v17 = vpop.eup %1090  ;;  %1102 = vpow2.f32 %v328_v28 }
  0x34   : > { %v969_v20 = vadd.f32 -1.0, %v1091_v17  ;;  %v1093_v22 = vpop.eup %1092 }
  0x35   : > { %v970_v26 = vadd.f32 -1.0, %v1093_v22 }
  0x36   : > { %980 = vmatmul.mubr.msk.f32.gmra.mrb[8].mxu0 %vm396_vm1, %v351_v50  ;;  %997 = vmatmul.mubr.msk.f32.gmra.mrb[8].mxu1 %vm396_vm1, %v351_v50  ;;  %v357_v25 = vsel %vm272_vm11, %v1344_v41, %v969_v20  ;;  %v1095_v27 = vpop.eup %1094 }
  0x37   : > { %542 = vmatprep.mubr.f32.mxu0 %v1128_v7  ;;  %709 = vmatprep.mubr.f32.mxu1 %v1128_v7  ;;  %v358_v29 = vsel %vm273_vm12, %v1355_v49, %v970_v26  ;;  %v971_v30 = vadd.f32 -1.0, %v1095_v27  ;;  %v1097_v31 = vpop.eup %1096 }
  0x38   : > { %v972_v33 = vadd.f32 -1.0, %v1097_v31 }
  0x39   : > { %v359_v32 = vsel %vm274_vm13, %v1366_v56, %v971_v30 }
  0x3a   : > { %981 = vmatmul.mubr.msk.f32.gmra.mrb[10].mxu0 %vm396_vm1, %v352_v57  ;;  %998 = vmatmul.mubr.msk.f32.gmra.mrb[10].mxu1 %vm396_vm1, %v352_v57  ;;  %v360_v35 = vsel %vm275_vm14, %v1377_v63, %v972_v33 }
  0x3b   : > { %548 = vmatprep.mubr.f32.mxu0 %v1128_v7  ;;  %715 = vmatprep.mubr.f32.mxu1 %v1128_v7  ;;  %v1099_v34 = vpop.eup %1098 }
  0x3c   : > { %v973_v36 = vadd.f32 -1.0, %v1099_v34  ;;  %v1101_v37 = vpop.eup %1100 }
  0x3d   : > { %v974_v39 = vadd.f32 -1.0, %v1101_v37  ;;  %v1103_v40 = vpop.eup %1102 }
  0x3e   : > { %982 = vmatmul.mubr.msk.f32.gmra.mrb[12].mxu0 %vm396_vm1, %v353_v0  ;;  %999 = vmatmul.mubr.msk.f32.gmra.mrb[12].mxu1 %vm396_vm1, %v353_v0  ;;  %v361_v38 = vsel %vm276_vm15, %v1388_v6, %v973_v36  ;;  %v975_v42 = vadd.f32 -1.0, %v1103_v40 }
  0x3f   : > { %554 = vmatprep.mubr.f32.mxu0 %v1128_v7  ;;  %721 = vmatprep.mubr.f32.mxu1 %v1128_v7  ;;  %v362_v41 = vsel %vm277_vm0, %v1399_v14, %v974_v39 }
  0x40   : > { %v363_v43 = vsel %vm278_vm2, %v1317_v21, %v975_v42 }
  0x42   : > { %983 = vmatmul.mubr.msk.f32.gmra.mrb[14].mxu0 %vm396_vm1, %v354_v8  ;;  %1000 = vmatmul.mubr.msk.f32.gmra.mrb[14].mxu1 %vm396_vm1, %v354_v8 }
  0x43   : > { %560 = vmatprep.mubr.f32.mxu0 %v1128_v7  ;;  %727 = vmatprep.mubr.f32.mxu1 %v1128_v7 }
  0x46   : > { %984 = vmatmul.mubr.msk.f32.gmra.mrb[16].mxu0 %vm396_vm1, %v355_v15  ;;  %1001 = vmatmul.mubr.msk.f32.gmra.mrb[16].mxu1 %vm396_vm1, %v355_v15 }
  0x47   : > { %566 = vmatprep.mubr.f32.mxu0 %v1128_v7  ;;  %733 = vmatprep.mubr.f32.mxu1 %v1128_v7 }
  0x4a   : > { %985 = vmatmul.mubr.msk.f32.gmra.mrb[18].mxu0 %vm396_vm1, %v356_v48  ;;  %1002 = vmatmul.mubr.msk.f32.gmra.mrb[18].mxu1 %vm396_vm1, %v356_v48 }
  0x4b   : > { %572 = vmatprep.mubr.f32.mxu0 %v1128_v7  ;;  %739 = vmatprep.mubr.f32.mxu1 %v1128_v7 }
  0x4e   : > { %986 = vmatmul.mubr.msk.f32.gmra.mrb[20].mxu0 %vm396_vm1, %v357_v25  ;;  %1003 = vmatmul.mubr.msk.f32.gmra.mrb[20].mxu1 %vm396_vm1, %v357_v25 }
  0x4f   : > { %578 = vmatprep.mubr.f32.mxu0 %v1128_v7  ;;  %745 = vmatprep.mubr.f32.mxu1 %v1128_v7 }
  0x52   : > { %987 = vmatmul.mubr.msk.f32.gmra.mrb[22].mxu0 %vm396_vm1, %v358_v29  ;;  %1004 = vmatmul.mubr.msk.f32.gmra.mrb[22].mxu1 %vm396_vm1, %v358_v29 }
  0x53   : > { %584 = vmatprep.mubr.f32.mxu0 %v1128_v7  ;;  %751 = vmatprep.mubr.f32.mxu1 %v1128_v7 }
  0x56   : > { %988 = vmatmul.mubr.msk.f32.gmra.mrb[24].mxu0 %vm396_vm1, %v359_v32  ;;  %1005 = vmatmul.mubr.msk.f32.gmra.mrb[24].mxu1 %vm396_vm1, %v359_v32 }
  0x57   : > { %590 = vmatprep.mubr.f32.mxu0 %v1128_v7  ;;  %757 = vmatprep.mubr.f32.mxu1 %v1128_v7 }
  0x5a   : > { %989 = vmatmul.mubr.msk.f32.gmra.mrb[26].mxu0 %vm396_vm1, %v360_v35  ;;  %1006 = vmatmul.mubr.msk.f32.gmra.mrb[26].mxu1 %vm396_vm1, %v360_v35 }
  0x5b   : > { %596 = vmatprep.mubr.f32.mxu0 %v1128_v7  ;;  %763 = vmatprep.mubr.f32.mxu1 %v1128_v7 }
  0x5e   : > { %990 = vmatmul.mubr.msk.f32.gmra.mrb[28].mxu0 %vm396_vm1, %v361_v38  ;;  %1007 = vmatmul.mubr.msk.f32.gmra.mrb[28].mxu1 %vm396_vm1, %v361_v38 }
  0x5f   : > { %602 = vmatprep.mubr.f32.mxu0 %v1128_v7  ;;  %769 = vmatprep.mubr.f32.mxu1 %v1128_v7 }
  0x62   : > { %991 = vmatmul.mubr.msk.f32.gmra.mrb[30].mxu0 %vm396_vm1, %v362_v41  ;;  %1008 = vmatmul.mubr.msk.f32.gmra.mrb[30].mxu1 %vm396_vm1, %v362_v41 }
  0x63   : > { %608 = vmatprep.mubr.f32.mxu0 %v1128_v7  ;;  %775 = vmatprep.mubr.f32.mxu1 %v1128_v7 }
  0x66   : > { %992 = vmatmul.mubr.msk.f32.gmra.mrb[32].mxu0 %vm396_vm1, %v363_v43  ;;  %1009 = vmatmul.mubr.msk.f32.gmra.mrb[32].mxu1 %vm396_vm1, %v363_v43 }
  0xf9   : > { %v514_v7 = vpop.f32.mrb[0].mxu0  ;;  %v681_v21 = vpop.f32.mrb[0].mxu1 }
  0xfa   : > { %782 = vst [vmem:[%s1460_s20] sm:$0xff] %v514_v7  ;;  %784 = vst [vmem:[%s1460_s20 + $0x10] sm:$0xff] %v681_v21  ;;  %v516_v44 = vpop.f32.mrb[1].mxu0  ;;  %v683_v45 = vpop.f32.mrb[1].mxu1 }
  0xfb   : > { %783 = vst [vmem:[%s1460_s20 + $0x8] sm:$0xff] %v516_v44  ;;  %785 = vst [vmem:[%s1460_s20 + $0x18] sm:$0xff] %v683_v45 }
  0xfd   : > { %v520_v46 = vpop.f32.mrb[2].mxu0  ;;  %v687_v47 = vpop.f32.mrb[2].mxu1 }
  0xfe   : > { %786 = vst [vmem:[%s1460_s20 + $0x20] sm:$0xff] %v520_v46  ;;  %788 = vst [vmem:[%s1460_s20 + $0x30] sm:$0xff] %v687_v47  ;;  %v522_v49 = vpop.f32.mrb[3].mxu0  ;;  %v689_v50 = vpop.f32.mrb[3].mxu1 }
  0xff   : > { %787 = vst [vmem:[%s1460_s20 + $0x28] sm:$0xff] %v522_v49  ;;  %789 = vst [vmem:[%s1460_s20 + $0x38] sm:$0xff] %v689_v50 }
 0x101   : > { %v526_v51 = vpop.f32.mrb[4].mxu0  ;;  %v693_v52 = vpop.f32.mrb[4].mxu1 }
 0x102   : > { %790 = vst [vmem:[%s1460_s20 + $0x40] sm:$0xff] %v526_v51  ;;  %792 = vst [vmem:[%s1460_s20 + $0x50] sm:$0xff] %v693_v52  ;;  %v528_v53 = vpop.f32.mrb[5].mxu0  ;;  %v695_v54 = vpop.f32.mrb[5].mxu1 }
 0x103   : > { %791 = vst [vmem:[%s1460_s20 + $0x48] sm:$0xff] %v528_v53  ;;  %793 = vst [vmem:[%s1460_s20 + $0x58] sm:$0xff] %v695_v54 }
 0x105   : > { %v532_v55 = vpop.f32.mrb[6].mxu0  ;;  %v699_v56 = vpop.f32.mrb[6].mxu1 }
 0x106   : > { %794 = vst [vmem:[%s1460_s20 + $0x60] sm:$0xff] %v532_v55  ;;  %796 = vst [vmem:[%s1460_s20 + $0x70] sm:$0xff] %v699_v56  ;;  %v534_v57 = vpop.f32.mrb[7].mxu0  ;;  %v701_v58 = vpop.f32.mrb[7].mxu1 }
 0x107   : > { %795 = vst [vmem:[%s1460_s20 + $0x68] sm:$0xff] %v534_v57  ;;  %797 = vst [vmem:[%s1460_s20 + $0x78] sm:$0xff] %v701_v58 }
 0x109   : > { %v538_v59 = vpop.f32.mrb[8].mxu0  ;;  %v705_v60 = vpop.f32.mrb[8].mxu1 }
 0x10a   : > { %798 = vst [vmem:[%s1460_s20 + $0x80] sm:$0xff] %v538_v59  ;;  %800 = vst [vmem:[%s1460_s20 + $0x90] sm:$0xff] %v705_v60  ;;  %v540_v61 = vpop.f32.mrb[9].mxu0  ;;  %v707_v62 = vpop.f32.mrb[9].mxu1 }
 0x10b   : > { %799 = vst [vmem:[%s1460_s20 + $0x88] sm:$0xff] %v540_v61  ;;  %801 = vst [vmem:[%s1460_s20 + $0x98] sm:$0xff] %v707_v62 }
 0x10d   : > { %v544_v63 = vpop.f32.mrb[10].mxu0  ;;  %v711_v0 = vpop.f32.mrb[10].mxu1 }
 0x10e   : > { %802 = vst [vmem:[%s1460_s20 + $0xa0] sm:$0xff] %v544_v63  ;;  %804 = vst [vmem:[%s1460_s20 + $0xb0] sm:$0xff] %v711_v0  ;;  %v546_v1 = vpop.f32.mrb[11].mxu0  ;;  %v713_v2 = vpop.f32.mrb[11].mxu1 }
 0x10f   : > { %803 = vst [vmem:[%s1460_s20 + $0xa8] sm:$0xff] %v546_v1  ;;  %805 = vst [vmem:[%s1460_s20 + $0xb8] sm:$0xff] %v713_v2 }
 0x111   : > { %v550_v3 = vpop.f32.mrb[12].mxu0  ;;  %v717_v4 = vpop.f32.mrb[12].mxu1 }
 0x112   : > { %806 = vst [vmem:[%s1460_s20 + $0xc0] sm:$0xff] %v550_v3  ;;  %808 = vst [vmem:[%s1460_s20 + $0xd0] sm:$0xff] %v717_v4  ;;  %v552_v5 = vpop.f32.mrb[13].mxu0  ;;  %v719_v6 = vpop.f32.mrb[13].mxu1 }
 0x113   : > { %807 = vst [vmem:[%s1460_s20 + $0xc8] sm:$0xff] %v552_v5  ;;  %809 = vst [vmem:[%s1460_s20 + $0xd8] sm:$0xff] %v719_v6 }
 0x115   : > { %v556_v8 = vpop.f32.mrb[14].mxu0  ;;  %v723_v9 = vpop.f32.mrb[14].mxu1 }
 0x116   : > { %810 = vst [vmem:[%s1460_s20 + $0xe0] sm:$0xff] %v556_v8  ;;  %812 = vst [vmem:[%s1460_s20 + $0xf0] sm:$0xff] %v723_v9  ;;  %v558_v10 = vpop.f32.mrb[15].mxu0  ;;  %v725_v11 = vpop.f32.mrb[15].mxu1 }
 0x117   : > { %811 = vst [vmem:[%s1460_s20 + $0xe8] sm:$0xff] %v558_v10  ;;  %813 = vst [vmem:[%s1460_s20 + $0xf8] sm:$0xff] %v725_v11 }
 0x119   : > { %v562_v12 = vpop.f32.mrb[16].mxu0  ;;  %v729_v13 = vpop.f32.mrb[16].mxu1 }
 0x11a   : > { %814 = vst [vmem:[%s1460_s20 + $0x100] sm:$0xff] %v562_v12  ;;  %816 = vst [vmem:[%s1460_s20 + $0x110] sm:$0xff] %v729_v13  ;;  %v564_v14 = vpop.f32.mrb[17].mxu0  ;;  %v731_v15 = vpop.f32.mrb[17].mxu1 }
 0x11b   : > { %815 = vst [vmem:[%s1460_s20 + $0x108] sm:$0xff] %v564_v14  ;;  %817 = vst [vmem:[%s1460_s20 + $0x118] sm:$0xff] %v731_v15 }
 0x11d   : > { %v568_v16 = vpop.f32.mrb[18].mxu0  ;;  %v735_v17 = vpop.f32.mrb[18].mxu1 }
 0x11e   : > { %818 = vst [vmem:[%s1460_s20 + $0x120] sm:$0xff] %v568_v16  ;;  %820 = vst [vmem:[%s1460_s20 + $0x130] sm:$0xff] %v735_v17  ;;  %v570_v18 = vpop.f32.mrb[19].mxu0  ;;  %v737_v19 = vpop.f32.mrb[19].mxu1 }
 0x11f   : > { %819 = vst [vmem:[%s1460_s20 + $0x128] sm:$0xff] %v570_v18  ;;  %821 = vst [vmem:[%s1460_s20 + $0x138] sm:$0xff] %v737_v19 }
 0x121   : > { %v574_v48 = vpop.f32.mrb[20].mxu0  ;;  %v741_v20 = vpop.f32.mrb[20].mxu1 }
 0x122   : > { %822 = vst [vmem:[%s1460_s20 + $0x140] sm:$0xff] %v574_v48  ;;  %824 = vst [vmem:[%s1460_s20 + $0x150] sm:$0xff] %v741_v20  ;;  %v576_v22 = vpop.f32.mrb[21].mxu0  ;;  %v743_v23 = vpop.f32.mrb[21].mxu1 }
 0x123   : > { %823 = vst [vmem:[%s1460_s20 + $0x148] sm:$0xff] %v576_v22  ;;  %825 = vst [vmem:[%s1460_s20 + $0x158] sm:$0xff] %v743_v23 }
 0x125   : > { %v580_v24 = vpop.f32.mrb[22].mxu0  ;;  %v747_v25 = vpop.f32.mrb[22].mxu1 }
 0x126   : > { %826 = vst [vmem:[%s1460_s20 + $0x160] sm:$0xff] %v580_v24  ;;  %828 = vst [vmem:[%s1460_s20 + $0x170] sm:$0xff] %v747_v25  ;;  %v582_v26 = vpop.f32.mrb[23].mxu0  ;;  %v749_v27 = vpop.f32.mrb[23].mxu1 }
 0x127   : > { %827 = vst [vmem:[%s1460_s20 + $0x168] sm:$0xff] %v582_v26  ;;  %829 = vst [vmem:[%s1460_s20 + $0x178] sm:$0xff] %v749_v27 }
 0x129   : > { %v586_v28 = vpop.f32.mrb[24].mxu0  ;;  %v753_v29 = vpop.f32.mrb[24].mxu1 }
 0x12a   : > { %830 = vst [vmem:[%s1460_s20 + $0x180] sm:$0xff] %v586_v28  ;;  %832 = vst [vmem:[%s1460_s20 + $0x190] sm:$0xff] %v753_v29  ;;  %v588_v30 = vpop.f32.mrb[25].mxu0  ;;  %v755_v31 = vpop.f32.mrb[25].mxu1 }
 0x12b   : > { %831 = vst [vmem:[%s1460_s20 + $0x188] sm:$0xff] %v588_v30  ;;  %833 = vst [vmem:[%s1460_s20 + $0x198] sm:$0xff] %v755_v31 }
 0x12d   : > { %v592_v32 = vpop.f32.mrb[26].mxu0  ;;  %v759_v33 = vpop.f32.mrb[26].mxu1 }
 0x12e   : > { %834 = vst [vmem:[%s1460_s20 + $0x1a0] sm:$0xff] %v592_v32  ;;  %836 = vst [vmem:[%s1460_s20 + $0x1b0] sm:$0xff] %v759_v33  ;;  %v594_v34 = vpop.f32.mrb[27].mxu0  ;;  %v761_v35 = vpop.f32.mrb[27].mxu1 }
 0x12f   : > { %835 = vst [vmem:[%s1460_s20 + $0x1a8] sm:$0xff] %v594_v34  ;;  %837 = vst [vmem:[%s1460_s20 + $0x1b8] sm:$0xff] %v761_v35 }
 0x131   : > { %v598_v36 = vpop.f32.mrb[28].mxu0  ;;  %v765_v37 = vpop.f32.mrb[28].mxu1 }
 0x132   : > { %838 = vst [vmem:[%s1460_s20 + $0x1c0] sm:$0xff] %v598_v36  ;;  %840 = vst [vmem:[%s1460_s20 + $0x1d0] sm:$0xff] %v765_v37  ;;  %v600_v38 = vpop.f32.mrb[29].mxu0  ;;  %v767_v39 = vpop.f32.mrb[29].mxu1 }
 0x133   : > { %839 = vst [vmem:[%s1460_s20 + $0x1c8] sm:$0xff] %v600_v38  ;;  %841 = vst [vmem:[%s1460_s20 + $0x1d8] sm:$0xff] %v767_v39 }
 0x135   : > { %v604_v40 = vpop.f32.mrb[30].mxu0  ;;  %v771_v41 = vpop.f32.mrb[30].mxu1 }
 0x136   : > { %842 = vst [vmem:[%s1460_s20 + $0x1e0] sm:$0xff] %v604_v40  ;;  %844 = vst [vmem:[%s1460_s20 + $0x1f0] sm:$0xff] %v771_v41  ;;  %v606_v42 = vpop.f32.mrb[31].mxu0  ;;  %v773_v43 = vpop.f32.mrb[31].mxu1 }
 0x137   : > { %843 = vst [vmem:[%s1460_s20 + $0x1e8] sm:$0xff] %v606_v42  ;;  %845 = vst [vmem:[%s1460_s20 + $0x1f8] sm:$0xff] %v773_v43 }
 0x139   : > { %v610_v7 = vpop.f32.mrb[32].mxu0  ;;  %v777_v21 = vpop.f32.mrb[32].mxu1 }
 0x13a   : > { %846 = vst [vmem:[%s1460_s20 + $0x200] sm:$0xff] %v610_v7  ;;  %848 = vst [vmem:[%s1460_s20 + $0x210] sm:$0xff] %v777_v21  ;;  %v612_v44 = vpop.f32.mrb[33].mxu0  ;;  %v779_v45 = vpop.f32.mrb[33].mxu1 }
 0x13b   : > { %847 = vst [vmem:[%s1460_s20 + $0x208] sm:$0xff] %v612_v44  ;;  %849 = vst [vmem:[%s1460_s20 + $0x218] sm:$0xff] %v779_v45 }
 0x13c PF: > { %s13_s14 = sadd.s32 1, %s1126_s14   ;;  %s1543_s12 = smov %s1122_s13 }
 0x13d   : > { %p10_p5 = scmp.ge.s32.totalorder %s13_s14, 4   ;;  %s1544_s13 = smov %s1546_s15 }
 0x13f   :  { %12 = sbr.rel (!%p10_p5) target bundleno = 2 (0x2), region = 65 }

// kernel: conv_decoder_forward.7
= control target key start
LH: loop header
LB: loop body
LE: loop exit
PB: predicated region body
PF: predicated region fallthrough
CT: control target
= control target key end

     0   :  { %s5317_s21 = smov 0   ;;  %s5319_s22 = smov 0   ;;  %s7415_s0 = inlined_call_operand.vmem [shape: f32[2496,32], index: 0, kind: input, shape index: {}]   ;;  %s7416_s1 = inlined_call_operand.vmem [shape: f32[1,32], index: 1, kind: input, shape index: {}]   ;;  %s7417_s2 = inlined_call_operand.vmem [shape: f32[32,64], index: 2, kind: input, shape index: {}]   ;;  %s7418_s3 = inlined_call_operand.vmem [shape: f32[1,64], index: 3, kind: input, shape index: {}]   ;;  %s7419_s4 = inlined_call_operand.vmem [shape: f32[64,48], index: 4, kind: input, shape index: {}]   ;;  %s7420_s5 = inlined_call_operand.vmem [shape: f32[1,48], index: 5, kind: input, shape index: {}]   ;;  %s7421_s6 = inlined_call_operand.vmem [shape: f32[2496,48], index: 6, kind: output, shape index: {}]  }
   0x1   :  { %s5321_s23 = smov 0  }
   0x2 LB: > { %s25_s24 = sadd.s32 1, %s5276_s22  ;;  %p3804_p0 = scmp.ge.s32.totalorder %s5280_s23, 1  ;;  %s5280_s23 = sphi %s5321_s23, %s16_s23   ;;  %s5276_s22 = sphi %s5319_s22, %s7423_s22   ;;  %s5272_s21 = sphi %s5317_s21, %s7422_s21  }
   0x3   : > { %p26_p1 = scmp.ge.s32.totalorder %s25_s24, 3  ;;  %p244_p2 = scmp.lt.s32.totalorder %s5280_s23, 4 }
   0x5   : > { %s7425_s24 = smov (%p26_p1, %s25_s24), 0  ;;  %p245_p3 = pnand %p3804_p0, %p244_p2 }
   0x6   : > { %v1145_v0 = vld [vmem:[%s7417_s2] sm:$0xff] (!%p245_p3)  ;;  %v1146_v1 = vld [vmem:[%s7417_s2 + $0x8] sm:$0xff] (!%p245_p3)  ;;  %v1147_v2 = vld [vmem:[%s7417_s2 + $0x10] sm:$0xff] (!%p245_p3)  ;;  %s284_s7 = smul.u32 (!%p245_p3), 104, %s5272_s21  ;;  %vm1156_vm0 = vcmask (!%p245_p3), 261120  }
   0x7   : > { %248 = sbr.rel (%p245_p3) target bundleno = 693 (0x2b5), region = 44  ;;  %v4784_v3 = vpack.c.bf16 (!%p245_p3), %v1146_v1, %v1145_v0  ;;  %v1148_v4 = vld [vmem:[%s7417_s2 + $0x18] sm:$0xff] (!%p245_p3)  ;;  %v5353_v6 = vld [vmem:[%s7416_s1] ss:$0 sm:$0xff] (!%p245_p3) }
   0x8   : > { %v4788_v5 = vpack.c.bf16 (!%p245_p3), %v1148_v4, %v1147_v2  ;;  %p285_p4 = scmp.lt.s32.totalorder (!%p245_p3), %s284_s7, 311 }
   0x9   : > { %4785 = vmatprep.subr.bf16.mxu0 (!%p245_p3), %v4784_v3 }
   0xa   : > { %4787 = vmatpush3.bf16.msra.mxu0 (!%p245_p3), %v4784_v3 }
   0xb   : > { %4789 = vmatprep.subr.bf16.mxu0 (!%p245_p3), %v4788_v5 }
   0xe   : > { %s7427_s7 = smov (!%p285_p4, %s284_s7), 311  ;;  %4791 = vmatpush3.bf16.msra.mxu0 %v4788_v5 }
   0xf   : > { %s3805_s10 = sshll.u32 %s7427_s7, 3 }
  0x10   : > { %s5360_s15 = scalar_lea.vmem %s7415_s0, %s3805_s10  ;;  %s7092_s26 = scalar_lea.vmem %s7421_s6, %s3805_s10 }
  0x11   : > { %v306_v7 = vld [vmem:[%s5360_s15] sm:$0xff]  ;;  %v307_v8 = vld [vmem:[%s5360_s15 + $0x8] sm:$0xff]  ;;  %v308_v9 = vld [vmem:[%s5360_s15 + $0x10] sm:$0xff] }
  0x12   : > { %v5366_v10 = vadd.f32 %v5353_v6, %v306_v7  ;;  %v5369_v11 = vadd.f32 %v5353_v6, %v307_v8  ;;  %v5372_v12 = vadd.f32 %v5353_v6, %v308_v9  ;;  %v309_v13 = vld [vmem:[%s5360_s15 + $0x18] sm:$0xff]  ;;  %v310_v14 = vld [vmem:[%s5360_s15 + $0x20] sm:$0xff]  ;;  %v311_v15 = vld [vmem:[%s5360_s15 + $0x28] sm:$0xff] }
  0x13   : > { %v5378_v16 = vadd.f32 %v5353_v6, %v309_v13  ;;  %v5381_v17 = vadd.f32 %v5353_v6, %v310_v14  ;;  %v5384_v18 = vadd.f32 %v5353_v6, %v311_v15  ;;  %v312_v23 = vld [vmem:[%s5360_s15 + $0x30] sm:$0xff]  ;;  %v313_v24 = vld [vmem:[%s5360_s15 + $0x38] sm:$0xff]  ;;  %v314_v25 = vld [vmem:[%s5360_s15 + $0x40] sm:$0xff] }
  0x14   : > { %v625_v19 = vmin.f32 %v5366_v10, 0.0  ;;  %v626_v20 = vmin.f32 %v5369_v11, 0.0  ;;  %v627_v21 = vmin.f32 %v5372_v12, 0.0  ;;  %v315_v29 = vld [vmem:[%s5360_s15 + $0x48] sm:$0xff]  ;;  %v5397_v34 = vadd.f32 %v5353_v6, %v312_v23  ;;  %v316_v40 = vld [vmem:[%s5360_s15 + $0x50] sm:$0xff]  ;;  %v317_v43 = vld [vmem:[%s5360_s15 + $0x58] sm:$0xff] }
  0x15   : > { %v628_v22 = vmin.f32 %v5378_v16, 0.0  ;;  %v629_v28 = vmin.f32 %v5381_v17, 0.0  ;;  %v630_v32 = vmin.f32 %v5384_v18, 0.0  ;;  %v5400_v35 = vadd.f32 %v5353_v6, %v313_v24  ;;  %v318_v44 = vld [vmem:[%s5360_s15 + $0x60] sm:$0xff]  ;;  %v319_v47 = vld [vmem:[%s5360_s15 + $0x68] sm:$0xff]  ;;  %v320_v56 = vld [vmem:[%s5360_s15 + $0x70] sm:$0xff] }
  0x16   : > { %v729_v26 = vmul.f32 1.442695, %v625_v19  ;;  %v731_v27 = vmul.f32 1.442695, %v626_v20  ;;  %v733_v30 = vmul.f32 1.442695, %v627_v21  ;;  %v5403_v37 = vadd.f32 %v5353_v6, %v314_v25 }
  0x17   : > { %v735_v31 = vmul.f32 1.442695, %v628_v22  ;;  %v737_v33 = vmul.f32 1.442695, %v629_v28  ;;  %v739_v36 = vmul.f32 1.442695, %v630_v32  ;;  %v5406_v38 = vadd.f32 %v5353_v6, %v315_v29 }
  0x18   : > { %4840 = vpow2.f32 %v729_v26  ;;  %v631_v39 = vmin.f32 %v5397_v34, 0.0  ;;  %v632_v41 = vmin.f32 %v5400_v35, 0.0  ;;  %v633_v42 = vmin.f32 %v5403_v37, 0.0  ;;  %v321_v58 = vld [vmem:[%s5360_s15 + $0x78] sm:$0xff]  ;;  %v322_v61 = vld [vmem:[%s5360_s15 + $0x80] sm:$0xff]  ;;  %v324_v32 = vld [vmem:[%s5360_s15 + $0x90] sm:$0xff] }
  0x19   : > { %4842 = vpow2.f32 %v731_v27  ;;  %v634_v46 = vmin.f32 %v5406_v38, 0.0  ;;  %v5417_v50 = vadd.f32 %v5353_v6, %v316_v40  ;;  %v5420_v51 = vadd.f32 %v5353_v6, %v317_v43  ;;  %v323_v27 = vld [vmem:[%s5360_s15 + $0x88] sm:$0xff]  ;;  %v325_v43 = vld [vmem:[%s5360_s15 + $0x98] sm:$0xff] }
  0x1a   : > { %4844 = vpow2.f32 %v733_v30  ;;  %v741_v45 = vmul.f32 1.442695, %v631_v39  ;;  %v743_v48 = vmul.f32 1.442695, %v632_v41  ;;  %v745_v49 = vmul.f32 1.442695, %v633_v42 }
  0x1b   : > { %4846 = vpow2.f32 %v735_v31  ;;  %v5423_v52 = vadd.f32 %v5353_v6, %v318_v44  ;;  %v747_v53 = vmul.f32 1.442695, %v634_v46  ;;  %v635_v54 = vmin.f32 %v5417_v50, 0.0  ;;  %v327_v46 = vld [vmem:[%s5360_s15 + $0xa8] sm:$0xff] }
  0x1c   : > { %4848 = vpow2.f32 %v737_v33  ;;  %v5427_v55 = vadd.f32 %v5353_v6, %v319_v47  ;;  %v636_v57 = vmin.f32 %v5420_v51, 0.0  ;;  %vm521_vm1 = vcmp.gt.f32.partialorder %v5366_v10, 0.0 }
  0x1d   : > { %4850 = vpow2.f32 %v739_v36  ;;  %vm522_vm2 = vcmp.gt.f32.partialorder %v5369_v11, 0.0  ;;  %v749_v59 = vmul.f32 1.442695, %v635_v54  ;;  %v637_v60 = vmin.f32 %v5423_v52, 0.0 }
  0x1e   : > { %4852 = vpow2.f32 %v741_v45  ;;  %vm523_vm3 = vcmp.gt.f32.partialorder %v5372_v12, 0.0  ;;  %v751_v63 = vmul.f32 1.442695, %v636_v57  ;;  %v638_v0 = vmin.f32 %v5427_v55, 0.0 }
  0x1f   : > { %4854 = vpow2.f32 %v743_v48  ;;  %v5439_v1 = vadd.f32 %v5353_v6, %v320_v56  ;;  %v753_v4 = vmul.f32 1.442695, %v637_v60  ;;  %v5442_v5 = vadd.f32 %v5353_v6, %v321_v58 }
  0x20   : > { %4856 = vpow2.f32 %v745_v49  ;;  %vm524_vm4 = vcmp.gt.f32.partialorder %v5378_v16, 0.0  ;;  %v5446_v9 = vadd.f32 %v5353_v6, %v322_v61  ;;  %vm525_vm5 = vcmp.gt.f32.partialorder %v5381_v17, 0.0 }
  0x21   : > { %4858 = vpow2.f32 %v747_v53  ;;  %v639_v19 = vmin.f32 %v5439_v1, 0.0  ;;  %v755_v23 = vmul.f32 1.442695, %v638_v0  ;;  %v640_v26 = vmin.f32 %v5442_v5, 0.0  ;;  %v328_v0 = vld [vmem:[%s5360_s15 + $0xb0] sm:$0xff] }
  0x22   : > { %v4841_v62 = vpop.eup %4840  ;;  %4860 = vpow2.f32 %v749_v59  ;;  %v641_v31 = vmin.f32 %v5446_v9, 0.0  ;;  %vm526_vm6 = vcmp.gt.f32.partialorder %v5384_v18, 0.0  ;;  %vm527_vm7 = vcmp.gt.f32.partialorder %v5397_v34, 0.0 }
  0x23   : > { %v4843_v2 = vpop.eup %4842  ;;  %v3808_v3 = vadd.f32 -1.0, %v4841_v62  ;;  %4862 = vpow2.f32 %v751_v63  ;;  %v757_v30 = vmul.f32 1.442695, %v639_v19  ;;  %v5475_v40 = vadd.f32 %v5353_v6, %v323_v27 }
  0x24   : > { %v4845_v7 = vpop.eup %4844  ;;  %v3809_v8 = vadd.f32 -1.0, %v4843_v2  ;;  %4864 = vpow2.f32 %v753_v4  ;;  %v5479_v42 = vadd.f32 %v5353_v6, %v324_v32  ;;  %vm528_vm8 = vcmp.gt.f32.partialorder %v5400_v35, 0.0  ;;  %v329_v4 = vld [vmem:[%s5360_s15 + $0xb8] sm:$0xff] }
  0x25   : > { %v4847_v13 = vpop.eup %4846  ;;  %v1041_v14 = vsel %vm521_vm1, %v5366_v10, %v3808_v3  ;;  %v3810_v15 = vadd.f32 -1.0, %v4845_v7  ;;  %4866 = vpow2.f32 %v755_v23  ;;  %v761_v45 = vmul.f32 1.442695, %v641_v31 }
  0x26   : > { %v4849_v20 = vpop.eup %4848  ;;  %4456 = vmatprep.mubr.msk.f32.mxu0 %vm1156_vm0, %v1041_v14  ;;  %v1042_v21 = vsel %vm522_vm2, %v5369_v11, %v3809_v8  ;;  %v3811_v22 = vadd.f32 -1.0, %v4847_v13  ;;  %4868 = vpow2.f32 %v757_v30  ;;  %v642_v53 = vmin.f32 %v5475_v40, 0.0  ;;  %v330_v13 = vld [vmem:[%s5360_s15 + $0xc0] sm:$0xff]  ;;  %v333_v30 = vld [vmem:[%s5360_s15 + $0xd8] sm:$0xff] }
  0x27   : > { %v4851_v24 = vpop.eup %4850  ;;  %4457 = vmatmul.mubr.msk.f32.vlgmr.msra.gmra.mrb[0].mxu0 %vm1156_vm0, %v1042_v21  ;;  %v1043_v10 = vsel %vm523_vm3, %v5372_v12, %v3810_v15  ;;  %v3812_v25 = vadd.f32 -1.0, %v4849_v20  ;;  %v643_v54 = vmin.f32 %v5479_v42, 0.0  ;;  %vm529_vm9 = vcmp.gt.f32.partialorder %v5403_v37, 0.0 }
  0x28   : > { %v4853_v28 = vpop.eup %4852  ;;  %4459 = vmatprep.mubr.msk.f32.mxu0 %vm1156_vm0, %v1043_v10  ;;  %v1044_v11 = vsel %vm524_vm4, %v5378_v16, %v3811_v22  ;;  %v3813_v29 = vadd.f32 -1.0, %v4851_v24  ;;  %v759_v16 = vmul.f32 1.442695, %v640_v26  ;;  %v763_v58 = vmul.f32 1.442695, %v642_v53  ;;  %v331_v26 = vld [vmem:[%s5360_s15 + $0xc8] sm:$0xff] }
  0x29   : > { %v4855_v12 = vpop.eup %4854  ;;  %v1045_v33 = vsel %vm525_vm5, %v5381_v17, %v3812_v25  ;;  %v3814_v36 = vadd.f32 -1.0, %v4853_v28  ;;  %v326_v17 = vld [vmem:[%s5360_s15 + $0xa0] sm:$0xff]  ;;  %v5502_v59 = vadd.f32 %v5353_v6, %v327_v46  ;;  %v765_v62 = vmul.f32 1.442695, %v643_v54  ;;  %v332_v28 = vld [vmem:[%s5360_s15 + $0xd0] sm:$0xff]  ;;  %v335_v46 = vld [vmem:[%s5360_s15 + $0xe8] sm:$0xff] }
  0x2a   : > { %v4857_v39 = vpop.eup %4856  ;;  %v3815_v41 = vadd.f32 -1.0, %v4855_v12  ;;  %v1046_v44 = vsel %vm526_vm6, %v5384_v18, %v3813_v29  ;;  %4870 = vpow2.f32 %v759_v16  ;;  %v5494_v18 = vadd.f32 %v5353_v6, %v325_v43  ;;  %v334_v16 = vld [vmem:[%s5360_s15 + $0xe0] sm:$0xff] }
  0x2b   : > { %4460 = vmatmul.mubr.msk.f32.gmra.mrb[2].mxu0 %vm1156_vm0, %v1044_v11  ;;  %v4859_v47 = vpop.eup %4858  ;;  %v1047_v48 = vsel %vm527_vm7, %v5397_v34, %v3814_v36  ;;  %v3816_v49 = vadd.f32 -1.0, %v4857_v39  ;;  %v5497_v57 = vadd.f32 %v5353_v6, %v326_v17  ;;  %4872 = vpow2.f32 %v761_v45 }
  0x2c   : > { %4462 = vmatprep.mubr.msk.f32.mxu0 %vm1156_vm0, %v1045_v33  ;;  %v4861_v56 = vpop.eup %4860  ;;  %v1048_v34 = vsel %vm528_vm8, %v5400_v35, %v3815_v41  ;;  %v3817_v61 = vadd.f32 -1.0, %v4859_v47  ;;  %v644_v63 = vmin.f32 %v5494_v18, 0.0  ;;  %vm530_vm10 = vcmp.gt.f32.partialorder %v5406_v38, 0.0 }
  0x2d   : > { %v4863_v60 = vpop.eup %4862  ;;  %v1049_v3 = vsel %vm529_vm9, %v5403_v37, %v3816_v49  ;;  %v3818_v35 = vadd.f32 -1.0, %v4861_v56  ;;  %vm531_vm11 = vcmp.gt.f32.partialorder %v5417_v50, 0.0  ;;  %4874 = vpow2.f32 %v763_v58  ;;  %v336_v56 = vld [vmem:[%s5360_s15 + $0xf0] sm:$0xff] }
  0x2e   : > { %v4865_v2 = vpop.eup %4864  ;;  %v767_v7 = vmul.f32 1.442695, %v644_v63  ;;  %v645_v8 = vmin.f32 %v5497_v57, 0.0  ;;  %vm532_vm12 = vcmp.gt.f32.partialorder %v5420_v51, 0.0  ;;  %v3819_v14 = vadd.f32 -1.0, %v4863_v60  ;;  %v337_v63 = vld [vmem:[%s5360_s15 + $0xf8] sm:$0xff] }
  0x2f   : > { %4463 = vmatmul.mubr.msk.f32.gmra.mrb[4].mxu0 %vm1156_vm0, %v1046_v44  ;;  %v646_v15 = vmin.f32 %v5502_v59, 0.0  ;;  %v5519_v37 = vadd.f32 %v5353_v6, %v328_v0  ;;  %v4867_v19 = vpop.eup %4866  ;;  %v1050_v20 = vsel %vm530_vm10, %v5406_v38, %v3817_v61  ;;  %4876 = vpow2.f32 %v765_v62 }
  0x30   : > { %4465 = vmatprep.mubr.msk.f32.mxu0 %vm1156_vm0, %v1047_v48  ;;  %v769_v21 = vmul.f32 1.442695, %v645_v8  ;;  %v5524_v22 = vadd.f32 %v5353_v6, %v329_v4  ;;  %v1051_v23 = vsel %vm531_vm11, %v5417_v50, %v3818_v35  ;;  %v3820_v24 = vadd.f32 -1.0, %v4865_v2  ;;  %v4869_v27 = vpop.eup %4868 }
  0x31   : > { %v647_v10 = vmin.f32 %v5519_v37, 0.0  ;;  %v5531_v25 = vadd.f32 %v5353_v6, %v330_v13  ;;  %vm533_vm13 = vcmp.gt.f32.partialorder %v5423_v52, 0.0  ;;  %4878 = vpow2.f32 %v767_v7  ;;  %v338_v7 = vld [vmem:[%s5360_s15 + $0x100] sm:$0xff] }
  0x32   : > { %v771_v38 = vmul.f32 1.442695, %v646_v15  ;;  %v1052_v50 = vsel %vm532_vm12, %v5420_v51, %v3819_v14  ;;  %vm534_vm14 = vcmp.gt.f32.partialorder %v5427_v55, 0.0  ;;  %v3821_v11 = vadd.f32 -1.0, %v4867_v19 }
  0x33   : > { %4466 = vmatmul.mubr.msk.f32.gmra.mrb[6].mxu0 %vm1156_vm0, %v1048_v34  ;;  %v648_v29 = vmin.f32 %v5524_v22, 0.0  ;;  %4880 = vpow2.f32 %v769_v21  ;;  %v773_v32 = vmul.f32 1.442695, %v647_v10  ;;  %v649_v12 = vmin.f32 %v5531_v25, 0.0 }
  0x34   : > { %4468 = vmatprep.mubr.msk.f32.mxu0 %vm1156_vm0, %v1049_v3  ;;  %v4871_v31 = vpop.eup %4870  ;;  %v5546_v33 = vadd.f32 %v5353_v6, %v331_v26  ;;  %v1053_v51 = vsel %vm533_vm13, %v5423_v52, %v3820_v24  ;;  %vm535_vm15 = vcmp.gt.f32.partialorder %v5439_v1, 0.0  ;;  %v3822_v36 = vadd.f32 -1.0, %v4869_v27  ;;  %v340_v27 = vld [vmem:[%s5360_s15 + $0x110] sm:$0xff] }
  0x35   : > { %v5553_v39 = vadd.f32 %v5353_v6, %v332_v28  ;;  %v4873_v41 = vpop.eup %4872  ;;  %4882 = vpow2.f32 %v771_v38  ;;  %v775_v43 = vmul.f32 1.442695, %v648_v29  ;;  %v5558_v44 = vadd.f32 %v5353_v6, %v333_v30  ;;  %v341_v30 = vld [vmem:[%s5360_s15 + $0x118] sm:$0xff] }
  0x36   : > { %v650_v17 = vmin.f32 %v5546_v33, 0.0  ;;  %v1054_v52 = vsel %vm534_vm14, %v5427_v55, %v3821_v11  ;;  %vm536_vm1 = vcmp.gt.f32.partialorder %v5442_v5, 0.0  ;;  %v3823_v45 = vadd.f32 -1.0, %v4871_v31 }
  0x37   : > { %4469 = vmatmul.mubr.msk.f32.gmra.mrb[8].mxu0 %vm1156_vm0, %v1050_v20  ;;  %v4875_v47 = vpop.eup %4874  ;;  %4884 = vpow2.f32 %v773_v32  ;;  %v777_v48 = vmul.f32 1.442695, %v649_v12  ;;  %v651_v49 = vmin.f32 %v5553_v39, 0.0  ;;  %v5569_v53 = vadd.f32 %v5353_v6, %v334_v16  ;;  %v339_v20 = vld [vmem:[%s5360_s15 + $0x108] sm:$0xff]  ;;  %v342_v16 = vld [vmem:[%s5360_s15 + $0x120] sm:$0xff] }
  0x38   : > { %4471 = vmatprep.mubr.msk.f32.mxu0 %vm1156_vm0, %v1051_v23  ;;  %v1055_v54 = vsel %vm535_vm15, %v5439_v1, %v3822_v36  ;;  %vm537_vm2 = vcmp.gt.f32.partialorder %v5446_v9, 0.0  ;;  %v3824_v55 = vadd.f32 -1.0, %v4873_v41  ;;  %4886 = vpow2.f32 %v775_v43 }
  0x39   : > { %v4877_v34 = vpop.eup %4876  ;;  %v779_v58 = vmul.f32 1.442695, %v650_v17  ;;  %v652_v60 = vmin.f32 %v5558_v44, 0.0  ;;  %v5578_v61 = vadd.f32 %v5353_v6, %v335_v46  ;;  %v1056_v62 = vsel %vm536_vm1, %v5442_v5, %v3823_v45  ;;  %v343_v46 = vld [vmem:[%s5360_s15 + $0x128] sm:$0xff] }
  0x3a   : > { %vm538_vm3 = vcmp.gt.f32.partialorder %v5475_v40, 0.0  ;;  %v3825_v1 = vadd.f32 -1.0, %v4875_v47  ;;  %4888 = vpow2.f32 %v777_v48  ;;  %v781_v2 = vmul.f32 1.442695, %v651_v49 }
  0x3b   : > { %4472 = vmatmul.mubr.msk.f32.gmra.mrb[10].mxu0 %vm1156_vm0, %v1052_v50  ;;  %v4879_v0 = vpop.eup %4878  ;;  %v653_v3 = vmin.f32 %v5569_v53, 0.0  ;;  %v5589_v35 = vadd.f32 %v5353_v6, %v336_v56  ;;  %v1057_v4 = vsel %vm537_vm2, %v5446_v9, %v3824_v55  ;;  %vm539_vm4 = vcmp.gt.f32.partialorder %v5479_v42, 0.0  ;;  %v344_v56 = vld [vmem:[%s5360_s15 + $0x130] sm:$0xff] }
  0x3c   : > { %4474 = vmatprep.mubr.msk.f32.mxu0 %vm1156_vm0, %v1053_v51  ;;  %v3826_v5 = vadd.f32 -1.0, %v4877_v34  ;;  %4890 = vpow2.f32 %v779_v58  ;;  %v783_v13 = vmul.f32 1.442695, %v652_v60  ;;  %v654_v14 = vmin.f32 %v5578_v61, 0.0 }
  0x3d   : > { %v4881_v8 = vpop.eup %4880  ;;  %v5598_v15 = vadd.f32 %v5353_v6, %v337_v63  ;;  %v1058_v19 = vsel %vm538_vm3, %v5475_v40, %v3825_v1  ;;  %vm540_vm5 = vcmp.gt.f32.partialorder %v5494_v18, 0.0  ;;  %v3827_v9 = vadd.f32 -1.0, %v4879_v0  ;;  %v345_v63 = vld [vmem:[%s5360_s15 + $0x138] sm:$0xff] }
  0x3e   : > { %4892 = vpow2.f32 %v781_v2  ;;  %v785_v23 = vmul.f32 1.442695, %v653_v3  ;;  %v655_v24 = vmin.f32 %v5589_v35, 0.0  ;;  %v5609_v10 = vadd.f32 %v5353_v6, %v338_v7  ;;  %v346_v7 = vld [vmem:[%s5360_s15 + $0x140] sm:$0xff] }
  0x3f   : > { %4475 = vmatmul.mubr.msk.f32.gmra.mrb[12].mxu0 %vm1156_vm0, %v1054_v52  ;;  %v4883_v21 = vpop.eup %4882  ;;  %v1059_v26 = vsel %vm539_vm4, %v5479_v42, %v3826_v5  ;;  %vm541_vm6 = vcmp.gt.f32.partialorder %v5497_v57, 0.0  ;;  %v3828_v40 = vadd.f32 -1.0, %v4881_v8  ;;  %4894 = vpow2.f32 %v783_v13 }
  0x40   : > { %4477 = vmatprep.mubr.msk.f32.mxu0 %vm1156_vm0, %v1055_v54  ;;  %v787_v28 = vmul.f32 1.442695, %v654_v14  ;;  %v656_v50 = vmin.f32 %v5598_v15, 0.0  ;;  %v5618_v11 = vadd.f32 %v5353_v6, %v339_v20  ;;  %v1060_v29 = vsel %vm540_vm5, %v5494_v18, %v3827_v9  ;;  %v347_v9 = vld [vmem:[%s5360_s15 + $0x148] sm:$0xff] }
  0x41   : > { %v4885_v38 = vpop.eup %4884  ;;  %vm542_vm7 = vcmp.gt.f32.partialorder %v5502_v59, 0.0  ;;  %v3829_v42 = vadd.f32 -1.0, %v4883_v21  ;;  %4896 = vpow2.f32 %v785_v23  ;;  %v789_v32 = vmul.f32 1.442695, %v655_v24 }
  0x42   : > { %v4887_v31 = vpop.eup %4886  ;;  %v657_v12 = vmin.f32 %v5609_v10, 0.0  ;;  %v5629_v51 = vadd.f32 %v5353_v6, %v340_v27  ;;  %v1061_v36 = vsel %vm541_vm6, %v5497_v57, %v3828_v40  ;;  %vm543_vm8 = vcmp.gt.f32.partialorder %v5519_v37, 0.0 }
  0x43   : > { %4478 = vmatmul.mubr.msk.f32.gmra.mrb[14].mxu0 %vm1156_vm0, %v1056_v62  ;;  %v3830_v18 = vadd.f32 -1.0, %v4885_v38  ;;  %4898 = vpow2.f32 %v787_v28  ;;  %v791_v43 = vmul.f32 1.442695, %v656_v50  ;;  %v658_v17 = vmin.f32 %v5618_v11, 0.0  ;;  %v348_v38 = vld [vmem:[%s5360_s15 + $0x150] sm:$0xff] }
  0x44   : > { %4480 = vmatprep.mubr.msk.f32.mxu0 %vm1156_vm0, %v1057_v4  ;;  %v4889_v41 = vpop.eup %4888  ;;  %v5638_v52 = vadd.f32 %v5353_v6, %v341_v30  ;;  %v1062_v45 = vsel %vm542_vm7, %v5502_v59, %v3829_v42  ;;  %vm544_vm9 = vcmp.gt.f32.partialorder %v5524_v22, 0.0  ;;  %v3831_v57 = vadd.f32 -1.0, %v4887_v31  ;;  %v349_v30 = vld [vmem:[%s5360_s15 + $0x158] sm:$0xff] }
  0x45   : > { %4900 = vpow2.f32 %v789_v32  ;;  %v793_v48 = vmul.f32 1.442695, %v657_v12  ;;  %v659_v49 = vmin.f32 %v5629_v51, 0.0  ;;  %v5649_v54 = vadd.f32 %v5353_v6, %v342_v16 }
  0x46   : > { %v4891_v47 = vpop.eup %4890  ;;  %v1063_v55 = vsel %vm543_vm8, %v5519_v37, %v3830_v18  ;;  %vm545_vm10 = vcmp.gt.f32.partialorder %v5531_v25, 0.0  ;;  %v3832_v59 = vadd.f32 -1.0, %v4889_v41  ;;  %4902 = vpow2.f32 %v791_v43  ;;  %v350_v41 = vld [vmem:[%s5360_s15 + $0x160] sm:$0xff] }
  0x47   : > { %4481 = vmatmul.mubr.msk.f32.gmra.mrb[16].mxu0 %vm1156_vm0, %v1058_v19  ;;  %v795_v58 = vmul.f32 1.442695, %v658_v17  ;;  %v660_v60 = vmin.f32 %v5638_v52, 0.0  ;;  %v5658_v62 = vadd.f32 %v5353_v6, %v343_v46  ;;  %v1064_v1 = vsel %vm544_vm9, %v5524_v22, %v3831_v57  ;;  %v351_v46 = vld [vmem:[%s5360_s15 + $0x168] sm:$0xff] }
  0x48   : > { %4483 = vmatprep.mubr.msk.f32.mxu0 %vm1156_vm0, %v1059_v26  ;;  %v4893_v34 = vpop.eup %4892  ;;  %vm546_vm11 = vcmp.gt.f32.partialorder %v5546_v33, 0.0  ;;  %v3833_v37 = vadd.f32 -1.0, %v4891_v47  ;;  %4904 = vpow2.f32 %v793_v48  ;;  %v797_v2 = vmul.f32 1.442695, %v659_v49 }
  0x49   : > { %v4895_v0 = vpop.eup %4894  ;;  %v661_v3 = vmin.f32 %v5649_v54, 0.0  ;;  %v5669_v4 = vadd.f32 %v5353_v6, %v344_v56  ;;  %v1065_v5 = vsel %vm545_vm10, %v5531_v25, %v3832_v59  ;;  %vm547_vm12 = vcmp.gt.f32.partialorder %v5553_v39, 0.0 }
  0x4a   : > { %v3834_v22 = vadd.f32 -1.0, %v4893_v34  ;;  %4906 = vpow2.f32 %v795_v58  ;;  %v799_v13 = vmul.f32 1.442695, %v660_v60  ;;  %v662_v14 = vmin.f32 %v5658_v62, 0.0 }
  0x4b   : > { %4484 = vmatmul.mubr.msk.f32.gmra.mrb[18].mxu0 %vm1156_vm0, %v1060_v29  ;;  %v4897_v8 = vpop.eup %4896  ;;  %v5678_v19 = vadd.f32 %v5353_v6, %v345_v63  ;;  %v1066_v25 = vsel %vm546_vm11, %v5546_v33, %v3833_v37  ;;  %vm548_vm13 = vcmp.gt.f32.partialorder %v5558_v44, 0.0  ;;  %v3835_v20 = vadd.f32 -1.0, %v4895_v0  ;;  %v353_v63 = vld [vmem:[%s5360_s15 + $0x178] sm:$0xff] }
  0x4c   : > { %4486 = vmatprep.mubr.msk.f32.mxu0 %vm1156_vm0, %v1061_v36  ;;  %4908 = vpow2.f32 %v797_v2  ;;  %v801_v23 = vmul.f32 1.442695, %v661_v3  ;;  %v663_v24 = vmin.f32 %v5669_v4, 0.0  ;;  %v5689_v26 = vadd.f32 %v5353_v6, %v346_v7 }
  0x4d   : > { %v4899_v21 = vpop.eup %4898  ;;  %v1067_v40 = vsel %vm547_vm12, %v5553_v39, %v3834_v22  ;;  %v3836_v27 = vadd.f32 -1.0, %v4897_v8  ;;  %v5695_v33 = vadd.f32 %v5353_v6, %v347_v9  ;;  %vm549_vm14 = vcmp.gt.f32.partialorder %v5569_v53, 0.0  ;;  %v354_v8 = vld [vmem:[%s5360_s15 + $0x180] sm:$0xff] }
  0x4e   : > { %4910 = vpow2.f32 %v799_v13  ;;  %v803_v50 = vmul.f32 1.442695, %v662_v14  ;;  %v664_v29 = vmin.f32 %v5678_v19, 0.0  ;;  %v1068_v42 = vsel %vm548_vm13, %v5558_v44, %v3835_v20 }
  0x4f   : > { %4487 = vmatmul.mubr.msk.f32.gmra.mrb[20].mxu0 %vm1156_vm0, %v1062_v45  ;;  %v4901_v28 = vpop.eup %4900  ;;  %vm550_vm15 = vcmp.gt.f32.partialorder %v5578_v61, 0.0  ;;  %v3837_v39 = vadd.f32 -1.0, %v4899_v21  ;;  %4912 = vpow2.f32 %v801_v23  ;;  %v805_v32 = vmul.f32 1.442695, %v663_v24 }
  0x50   : > { %4489 = vmatprep.mubr.msk.f32.mxu0 %vm1156_vm0, %v1063_v55  ;;  %v4903_v31 = vpop.eup %4902  ;;  %v665_v12 = vmin.f32 %v5689_v26, 0.0  ;;  %v5709_v36 = vadd.f32 %v5353_v6, %v348_v38  ;;  %v1069_v18 = vsel %vm549_vm14, %v5569_v53, %v3836_v27  ;;  %v3838_v16 = vadd.f32 -1.0, %v4901_v28  ;;  %v356_v28 = vld [vmem:[%s5360_s15 + $0x190] sm:$0xff] }
  0x51   : > { %v666_v44 = vmin.f32 %v5695_v33, 0.0  ;;  %vm551_vm1 = vcmp.gt.f32.partialorder %v5589_v35, 0.0  ;;  %4914 = vpow2.f32 %v803_v50  ;;  %v807_v17 = vmul.f32 1.442695, %v664_v29 }
  0x52   : > { %v4905_v43 = vpop.eup %4904  ;;  %v5716_v45 = vadd.f32 %v5353_v6, %v349_v30  ;;  %v1070_v57 = vsel %vm550_vm15, %v5578_v61, %v3837_v39  ;;  %vm552_vm2 = vcmp.gt.f32.partialorder %v5598_v15, 0.0  ;;  %v3839_v53 = vadd.f32 -1.0, %v4903_v31  ;;  %v352_v61 = vld [vmem:[%s5360_s15 + $0x170] sm:$0xff] }
  0x53   : > { %4490 = vmatmul.mubr.msk.f32.gmra.mrb[22].mxu0 %vm1156_vm0, %v1064_v1  ;;  %4916 = vpow2.f32 %v805_v32  ;;  %v809_v48 = vmul.f32 1.442695, %v665_v12  ;;  %v667_v49 = vmin.f32 %v5709_v36, 0.0  ;;  %v5727_v55 = vadd.f32 %v5353_v6, %v350_v41 }
  0x54   : > { %4492 = vmatprep.mubr.msk.f32.mxu0 %vm1156_vm0, %v1065_v5  ;;  %v4907_v47 = vpop.eup %4906  ;;  %v1071_v59 = vsel %vm551_vm1, %v5589_v35, %v3838_v16  ;;  %v3840_v56 = vadd.f32 -1.0, %v4905_v43  ;;  %v811_v34 = vmul.f32 1.442695, %v666_v44  ;;  %vm553_vm3 = vcmp.gt.f32.partialorder %v5609_v10, 0.0  ;;  %v358_v44 = vld [vmem:[%s5360_s15 + $0x1a0] sm:$0xff] }
  0x55   : > { %4918 = vpow2.f32 %v807_v17  ;;  %v668_v60 = vmin.f32 %v5716_v45, 0.0  ;;  %v5734_v1 = vadd.f32 %v5353_v6, %v351_v46  ;;  %v1072_v37 = vsel %vm552_vm2, %v5598_v15, %v3839_v53  ;;  %v359_v17 = vld [vmem:[%s5360_s15 + $0x1a8] sm:$0xff] }
  0x56   : > { %v4909_v58 = vpop.eup %4908  ;;  %vm554_vm4 = vcmp.gt.f32.partialorder %v5618_v11, 0.0  ;;  %v3841_v35 = vadd.f32 -1.0, %v4907_v47  ;;  %4920 = vpow2.f32 %v809_v48  ;;  %v813_v2 = vmul.f32 1.442695, %v667_v49 }
  0x57   : > { %4493 = vmatmul.mubr.msk.f32.gmra.mrb[24].mxu0 %vm1156_vm0, %v1066_v25  ;;  %v669_v3 = vmin.f32 %v5727_v55, 0.0  ;;  %v5745_v5 = vadd.f32 %v5353_v6, %v352_v61  ;;  %v1073_v22 = vsel %vm553_vm3, %v5609_v10, %v3840_v56  ;;  %v3842_v7 = vadd.f32 -1.0, %v4909_v58  ;;  %v360_v61 = vld [vmem:[%s5360_s15 + $0x1b0] sm:$0xff] }
  0x58   : > { %4495 = vmatprep.mubr.msk.f32.mxu0 %vm1156_vm0, %v1067_v40  ;;  %v4911_v0 = vpop.eup %4910  ;;  %4922 = vpow2.f32 %v811_v34  ;;  %vm555_vm5 = vcmp.gt.f32.partialorder %v5629_v51, 0.0  ;;  %v815_v13 = vmul.f32 1.442695, %v668_v60  ;;  %v670_v14 = vmin.f32 %v5734_v1, 0.0  ;;  %v355_v40 = vld [vmem:[%s5360_s15 + $0x188] sm:$0xff] }
  0x59   : > { %v4913_v15 = vpop.eup %4912  ;;  %v5752_v9 = vadd.f32 %v5353_v6, %v353_v63  ;;  %v1074_v10 = vsel %vm554_vm4, %v5618_v11, %v3841_v35  ;;  %vm556_vm6 = vcmp.gt.f32.partialorder %v5638_v52, 0.0  ;;  %v3843_v25 = vadd.f32 -1.0, %v4911_v0 }
  0x5a   : > { %4924 = vpow2.f32 %v813_v2  ;;  %v817_v21 = vmul.f32 1.442695, %v669_v3  ;;  %v671_v23 = vmin.f32 %v5745_v5, 0.0  ;;  %v5762_v24 = vadd.f32 %v5353_v6, %v354_v8 }
  0x5b   : > { %4496 = vmatmul.mubr.msk.f32.gmra.mrb[26].mxu0 %vm1156_vm0, %v1068_v42  ;;  %v4915_v20 = vpop.eup %4914  ;;  %v1075_v27 = vsel %vm555_vm5, %v5629_v51, %v3842_v7  ;;  %v3844_v38 = vadd.f32 -1.0, %v4913_v15  ;;  %vm557_vm7 = vcmp.gt.f32.partialorder %v5649_v54, 0.0  ;;  %4926 = vpow2.f32 %v815_v13  ;;  %v362_v15 = vld [vmem:[%s5360_s15 + $0x1c0] sm:$0xff] }
  0x5c   : > { %4498 = vmatprep.mubr.msk.f32.mxu0 %vm1156_vm0, %v1069_v18  ;;  %v819_v11 = vmul.f32 1.442695, %v670_v14  ;;  %v672_v29 = vmin.f32 %v5752_v9, 0.0  ;;  %v1076_v42 = vsel %vm556_vm6, %v5638_v52, %v3843_v25  ;;  %vm558_vm8 = vcmp.gt.f32.partialorder %v5658_v62, 0.0  ;;  %v357_v18 = vld [vmem:[%s5360_s15 + $0x198] sm:$0xff] }
  0x5d   : > { %v4917_v50 = vpop.eup %4916  ;;  %v3845_v51 = vadd.f32 -1.0, %v4915_v20  ;;  %v5775_v39 = vadd.f32 %v5353_v6, %v355_v40  ;;  %4928 = vpow2.f32 %v817_v21  ;;  %v821_v31 = vmul.f32 1.442695, %v671_v23 }
  0x5e   : > { %v673_v32 = vmin.f32 %v5762_v24, 0.0  ;;  %v5780_v12 = vadd.f32 %v5353_v6, %v356_v28  ;;  %v1077_v52 = vsel %vm557_vm7, %v5649_v54, %v3844_v38  ;;  %v3846_v16 = vadd.f32 -1.0, %v4917_v50 }
  0x5f   : > { %4499 = vmatmul.mubr.msk.f32.gmra.mrb[28].mxu0 %vm1156_vm0, %v1070_v57  ;;  %v4919_v30 = vpop.eup %4918  ;;  %vm559_vm9 = vcmp.gt.f32.partialorder %v5669_v4, 0.0  ;;  %vm560_vm10 = vcmp.gt.f32.partialorder %v5678_v19, 0.0  ;;  %4930 = vpow2.f32 %v819_v11  ;;  %v823_v43 = vmul.f32 1.442695, %v672_v29  ;;  %v364_v11 = vld [vmem:[%s5360_s15 + $0x1d0] sm:$0xff] }
  0x60   : > { %4501 = vmatprep.mubr.msk.f32.mxu0 %vm1156_vm0, %v1071_v59  ;;  %v4921_v41 = vpop.eup %4920  ;;  %v1078_v53 = vsel %vm558_vm8, %v5658_v62, %v3845_v51  ;;  %v3847_v46 = vadd.f32 -1.0, %v4919_v30  ;;  %v674_v54 = vmin.f32 %v5775_v39, 0.0  ;;  %v5796_v47 = vadd.f32 %v5353_v6, %v357_v18  ;;  %v365_v30 = vld [vmem:[%s5360_s15 + $0x1d8] sm:$0xff]  ;;  %v5857_v18 = vld [vmem:[%s7416_s1] ss:$0 sm:$0xff] }
  0x61   : > { %4932 = vpow2.f32 %v821_v31  ;;  %v825_v48 = vmul.f32 1.442695, %v673_v32  ;;  %v675_v49 = vmin.f32 %v5780_v12, 0.0  ;;  %v5801_v59 = vadd.f32 %v5353_v6, %v358_v44 }
  0x62   : > { %v4923_v57 = vpop.eup %4922  ;;  %v1079_v56 = vsel %vm559_vm9, %v5669_v4, %v3846_v16  ;;  %v3848_v62 = vadd.f32 -1.0, %v4921_v41  ;;  %v5807_v34 = vadd.f32 %v5353_v6, %v359_v17  ;;  %vm561_vm11 = vcmp.gt.f32.partialorder %v5689_v26, 0.0 }
  0x63   : > { %4502 = vmatmul.mubr.msk.f32.gmra.mrb[30].mxu0 %vm1156_vm0, %v1072_v37  ;;  %v3849_v60 = vadd.f32 -1.0, %v4923_v57  ;;  %4934 = vpow2.f32 %v823_v43  ;;  %v1080_v37 = vsel %vm560_vm10, %v5678_v19, %v3847_v46  ;;  %vm562_vm12 = vcmp.gt.f32.partialorder %v5695_v33, 0.0 }
  0x64   : > { %4504 = vmatprep.mubr.msk.f32.mxu0 %vm1156_vm0, %v1073_v22  ;;  %v4925_v58 = vpop.eup %4924  ;;  %v827_v4 = vmul.f32 1.442695, %v674_v54  ;;  %v676_v35 = vmin.f32 %v5796_v47, 0.0  ;;  %4936 = vpow2.f32 %v825_v48  ;;  %v829_v0 = vmul.f32 1.442695, %v675_v49  ;;  %v361_v22 = vld [vmem:[%s5360_s15 + $0x1b8] sm:$0xff] }
  0x65   : > { %v4927_v63 = vpop.eup %4926  ;;  %v677_v2 = vmin.f32 %v5801_v59, 0.0  ;;  %v5820_v3 = vadd.f32 %v5353_v6, %v360_v61  ;;  %v1081_v7 = vsel %vm561_vm11, %v5689_v26, %v3848_v62  ;;  %v3850_v19 = vadd.f32 -1.0, %v4925_v58  ;;  %v367_v49 = vld [vmem:[%s5360_s15 + $0x1e8] sm:$0xff] }
  0x66   : > { %v678_v8 = vmin.f32 %v5807_v34, 0.0  ;;  %v1082_v14 = vsel %vm562_vm12, %v5695_v33, %v3849_v60  ;;  %vm563_vm13 = vcmp.gt.f32.partialorder %v5709_v36, 0.0  ;;  %vm564_vm14 = vcmp.gt.f32.partialorder %v5716_v45, 0.0  ;;  %v368_v60 = vld [vmem:[%s5360_s15 + $0x1f0] sm:$0xff] }
  0x67   : > { %4505 = vmatmul.mubr.msk.f32.gmra.mrb[32].mxu0 %vm1156_vm0, %v1074_v10  ;;  %v4929_v13 = vpop.eup %4928  ;;  %v363_v10 = vld [vmem:[%s5360_s15 + $0x1c8] sm:$0xff]  ;;  %v3851_v25 = vadd.f32 -1.0, %v4927_v63  ;;  %4938 = vpow2.f32 %v827_v4  ;;  %v831_v20 = vmul.f32 1.442695, %v676_v35  ;;  %v5832_v26 = vadd.f32 %v5353_v6, %v361_v22  ;;  %v369_v63 = vld [vmem:[%s5360_s15 + $0x1f8] sm:$0xff] }
  0x68   : > { %4507 = vmatprep.mubr.msk.f32.mxu0 %vm1156_vm0, %v1075_v27  ;;  %4940 = vpow2.f32 %v829_v0  ;;  %v833_v23 = vmul.f32 1.442695, %v677_v2  ;;  %v679_v33 = vmin.f32 %v5820_v3, 0.0  ;;  %v5837_v40 = vadd.f32 %v5353_v6, %v362_v15 }
  0x69   : > { %v4931_v21 = vpop.eup %4930  ;;  %v1083_v27 = vsel %vm563_vm13, %v5709_v36, %v3850_v19  ;;  %v3852_v38 = vadd.f32 -1.0, %v4929_v13  ;;  %v835_v28 = vmul.f32 1.442695, %v678_v8  ;;  %v5841_v50 = vadd.f32 %v5353_v6, %v363_v10 }
  0x6a   : > { %vm565_vm15 = vcmp.gt.f32.partialorder %v5727_v55, 0.0  ;;  %vm566_vm1 = vcmp.gt.f32.partialorder %v5734_v1, 0.0  ;;  %v3853_v51 = vadd.f32 -1.0, %v4931_v21  ;;  %4942 = vpow2.f32 %v831_v20 }
  0x6b   : > { %4508 = vmatmul.mubr.msk.f32.gmra.mrb[34].mxu0 %vm1156_vm0, %v1076_v42  ;;  %v4933_v29 = vpop.eup %4932  ;;  %v1084_v42 = vsel %vm564_vm14, %v5716_v45, %v3851_v25  ;;  %v680_v36 = vmin.f32 %v5832_v26, 0.0  ;;  %4944 = vpow2.f32 %v833_v23  ;;  %v837_v31 = vmul.f32 1.442695, %v679_v33  ;;  %v366_v45 = vld [vmem:[%s5360_s15 + $0x1e0] sm:$0xff] }
  0x6c   : > { %4510 = vmatprep.mubr.msk.f32.mxu0 %vm1156_vm0, %v1077_v52  ;;  %v681_v32 = vmin.f32 %v5837_v40, 0.0  ;;  %v5860_v52 = vadd.f32 %v5857_v18, %v364_v11  ;;  %v1085_v16 = vsel %vm565_vm15, %v5727_v55, %v3852_v38  ;;  %v3854_v44 = vadd.f32 -1.0, %v4933_v29  ;;  %v372_v11 = vld [vmem:[%s5360_s15 + $0x210] sm:$0xff] }
  0x6d   : > { %v4935_v6 = vpop.eup %4934  ;;  %4946 = vpow2.f32 %v835_v28  ;;  %v682_v41 = vmin.f32 %v5841_v50, 0.0  ;;  %vm567_vm2 = vcmp.gt.f32.partialorder %v5745_v5, 0.0  ;;  %v5869_v17 = vadd.f32 %v5857_v18, %v365_v30 }
  0x6e   : > { %v4937_v43 = vpop.eup %4936  ;;  %vm568_vm3 = vcmp.gt.f32.partialorder %v5752_v9, 0.0  ;;  %v3855_v57 = vadd.f32 -1.0, %v4935_v6  ;;  %v5874_v55 = vadd.f32 %v5857_v18, %v366_v45  ;;  %v1086_v46 = vsel %vm566_vm1, %v5734_v1, %v3853_v51 }
  0x6f   : > { %4511 = vmatmul.mubr.msk.f32.gmra.mrb[36].mxu0 %vm1156_vm0, %v1078_v53  ;;  %v839_v53 = vmul.f32 1.442695, %v680_v36  ;;  %4948 = vpow2.f32 %v837_v31  ;;  %v841_v54 = vmul.f32 1.442695, %v681_v32  ;;  %v683_v48 = vmin.f32 %v5860_v52, 0.0  ;;  %v373_v32 = vld [vmem:[%s5360_s15 + $0x218] sm:$0xff] }
  0x70   : > { %4513 = vmatprep.mubr.msk.f32.mxu0 %vm1156_vm0, %v1079_v56  ;;  %v1087_v62 = vsel %vm567_vm2, %v5745_v5, %v3854_v44  ;;  %v3856_v61 = vadd.f32 -1.0, %v4937_v43  ;;  %v843_v58 = vmul.f32 1.442695, %v682_v41  ;;  %vm569_vm4 = vcmp.gt.f32.partialorder %v5762_v24, 0.0  ;;  %v374_v41 = vld [vmem:[%s5360_s15 + $0x220] sm:$0xff] }
  0x71   : > { %v4939_v56 = vpop.eup %4938  ;;  %v684_v4 = vmin.f32 %v5869_v17, 0.0  ;;  %v1088_v1 = vsel %vm568_vm3, %v5752_v9, %v3855_v57  ;;  %4950 = vpow2.f32 %v839_v53  ;;  %v685_v35 = vmin.f32 %v5874_v55, 0.0  ;;  %v375_v53 = vld [vmem:[%s5360_s15 + $0x228] sm:$0xff] }
  0x72   : > { %v5892_v5 = vadd.f32 %v5857_v18, %v367_v49  ;;  %v3857_v0 = vadd.f32 -1.0, %v4939_v56  ;;  %4952 = vpow2.f32 %v841_v54  ;;  %v845_v2 = vmul.f32 1.442695, %v683_v48  ;;  %v376_v49 = vld [vmem:[%s5360_s15 + $0x230] sm:$0xff] }
  0x73   : > { %4514 = vmatmul.mubr.msk.f32.gmra.mrb[38].mxu0 %vm1156_vm0, %v1080_v37  ;;  %v4941_v37 = vpop.eup %4940  ;;  %v5897_v22 = vadd.f32 %v5857_v18, %v368_v60  ;;  %v1089_v8 = vsel %vm569_vm4, %v5762_v24, %v3856_v61  ;;  %vm570_vm5 = vcmp.gt.f32.partialorder %v5775_v39, 0.0  ;;  %4954 = vpow2.f32 %v843_v58 }
  0x74   : > { %4516 = vmatprep.mubr.msk.f32.mxu0 %vm1156_vm0, %v1081_v7  ;;  %v370_v7 = vld [vmem:[%s5360_s15 + $0x200] sm:$0xff]  ;;  %v4943_v19 = vpop.eup %4942  ;;  %v3858_v9 = vadd.f32 -1.0, %v4941_v37  ;;  %vm571_vm6 = vcmp.gt.f32.partialorder %v5780_v12, 0.0  ;;  %v847_v13 = vmul.f32 1.442695, %v684_v4  ;;  %v686_v20 = vmin.f32 %v5892_v5, 0.0 }
  0x75   : > { %v4945_v15 = vpop.eup %4944  ;;  %v849_v25 = vmul.f32 1.442695, %v685_v35  ;;  %v5909_v24 = vadd.f32 %v5857_v18, %v370_v7  ;;  %v1090_v21 = vsel %vm570_vm5, %v5775_v39, %v3857_v0  ;;  %v3859_v23 = vadd.f32 -1.0, %v4943_v19  ;;  %v377_v19 = vld [vmem:[%s5360_s15 + $0x238] sm:$0xff] }
  0x76   : > { %4956 = vpow2.f32 %v845_v2  ;;  %v687_v33 = vmin.f32 %v5897_v22, 0.0  ;;  %v1091_v38 = vsel %vm571_vm6, %v5780_v12, %v3858_v9  ;;  %vm572_vm7 = vcmp.gt.f32.partialorder %v5796_v47, 0.0 }
  0x77   : > { %4517 = vmatmul.mubr.msk.f32.gmra.mrb[40].mxu0 %vm1156_vm0, %v1082_v14  ;;  %v5904_v14 = vadd.f32 %v5857_v18, %v369_v63  ;;  %v4947_v10 = vpop.eup %4946  ;;  %vm573_vm8 = vcmp.gt.f32.partialorder %v5801_v59, 0.0  ;;  %v3860_v28 = vadd.f32 -1.0, %v4945_v15  ;;  %vm574_vm9 = vcmp.gt.f32.partialorder %v5807_v34, 0.0 }
  0x78   : > { %4519 = vmatprep.mubr.msk.f32.mxu0 %vm1156_vm0, %v1083_v27  ;;  %v371_v27 = vld [vmem:[%s5360_s15 + $0x208] sm:$0xff]  ;;  %4958 = vpow2.f32 %v847_v13  ;;  %v851_v51 = vmul.f32 1.442695, %v686_v20  ;;  %v689_v12 = vmin.f32 %v5909_v24, 0.0  ;;  %v1092_v30 = vsel %vm572_vm7, %v5796_v47, %v3859_v23 }
  0x79   : > { %v4949_v29 = vpop.eup %4948  ;;  %v688_v39 = vmin.f32 %v5904_v14, 0.0  ;;  %4960 = vpow2.f32 %v849_v25  ;;  %v5924_v36 = vadd.f32 %v5857_v18, %v371_v27  ;;  %v853_v6 = vmul.f32 1.442695, %v687_v33  ;;  %v379_v20 = vld [vmem:[%s5360_s15 + $0x248] sm:$0xff]  ;;  %v380_v33 = vld [vmem:[%s5360_s15 + $0x250] sm:$0xff] }
  0x7a   : > { %v5929_v31 = vadd.f32 %v5857_v18, %v372_v11  ;;  %v3862_v44 = vadd.f32 -1.0, %v4949_v29  ;;  %vm575_vm10 = vcmp.gt.f32.partialorder %v5820_v3, 0.0  ;;  %4962 = vpow2.f32 %v851_v51 }
  0x7b   : > { %4520 = vmatmul.mubr.msk.f32.gmra.mrb[42].mxu0 %vm1156_vm0, %v1084_v42  ;;  %v3861_v42 = vadd.f32 -1.0, %v4947_v10  ;;  %v4951_v45 = vpop.eup %4950  ;;  %v855_v47 = vmul.f32 1.442695, %v688_v39  ;;  %v857_v54 = vmul.f32 1.442695, %v689_v12  ;;  %v690_v48 = vmin.f32 %v5924_v36, 0.0 }
  0x7c   : > { %4522 = vmatprep.mubr.msk.f32.mxu0 %vm1156_vm0, %v1085_v16  ;;  %v1093_v16 = vsel %vm573_vm8, %v5801_v59, %v3860_v28  ;;  %v4953_v43 = vpop.eup %4952  ;;  %v5944_v59 = vadd.f32 %v5857_v18, %v373_v32  ;;  %v3863_v56 = vadd.f32 -1.0, %v4951_v45  ;;  %4964 = vpow2.f32 %v853_v6  ;;  %v378_v10 = vld [vmem:[%s5360_s15 + $0x240] sm:$0xff] }
  0x7d   : > { %v1094_v57 = vsel %vm574_vm9, %v5807_v34, %v3861_v42  ;;  %v691_v34 = vmin.f32 %v5929_v31, 0.0  ;;  %v1095_v61 = vsel %vm575_vm10, %v5820_v3, %v3862_v44  ;;  %vm576_vm11 = vcmp.gt.f32.partialorder %v5832_v26, 0.0  ;;  %v382_v32 = vld [vmem:[%s5360_s15 + $0x260] sm:$0xff] }
  0x7e   : > { %v3864_v58 = vadd.f32 -1.0, %v4953_v43  ;;  %v5955_v60 = vadd.f32 %v5857_v18, %v375_v53  ;;  %vm577_vm12 = vcmp.gt.f32.partialorder %v5837_v40, 0.0  ;;  %4966 = vpow2.f32 %v855_v47 }
  0x7f   : > { %4523 = vmatmul.mubr.msk.f32.gmra.mrb[44].mxu0 %vm1156_vm0, %v1086_v46  ;;  %v4955_v46 = vpop.eup %4954  ;;  %vm578_vm13 = vcmp.gt.f32.partialorder %v5841_v50, 0.0  ;;  %4968 = vpow2.f32 %v857_v54  ;;  %v859_v3 = vmul.f32 1.442695, %v690_v48  ;;  %v692_v35 = vmin.f32 %v5944_v59, 0.0  ;;  %v383_v48 = vld [vmem:[%s5360_s15 + $0x268] sm:$0xff] }
  0x80   : > { %4525 = vmatprep.mubr.msk.f32.mxu0 %vm1156_vm0, %v1087_v62  ;;  %v5950_v62 = vadd.f32 %v5857_v18, %v374_v41  ;;  %v4957_v37 = vpop.eup %4956  ;;  %v3865_v4 = vadd.f32 -1.0, %v4955_v46  ;;  %v1096_v0 = vsel %vm576_vm11, %v5832_v26, %v3863_v56  ;;  %v861_v2 = vmul.f32 1.442695, %v691_v34 }
  0x81   : > { %v1097_v9 = vsel %vm577_vm12, %v5837_v40, %v3864_v58  ;;  %v3866_v15 = vadd.f32 -1.0, %v4957_v37  ;;  %v694_v13 = vmin.f32 %v5955_v60, 0.0  ;;  %vm579_vm14 = vcmp.gt.f32.partialorder %v5860_v52, 0.0 }
  0x82   : > { %v4959_v63 = vpop.eup %4958  ;;  %v693_v7 = vmin.f32 %v5950_v62, 0.0  ;;  %v1098_v25 = vsel %vm578_vm13, %v5841_v50, %v3865_v4  ;;  %vm580_vm15 = vcmp.gt.f32.partialorder %v5869_v17, 0.0  ;;  %4970 = vpow2.f32 %v859_v3  ;;  %v384_v3 = vld [vmem:[%s5360_s15 + $0x270] sm:$0xff] }
  0x83   : > { %4526 = vmatmul.mubr.msk.f32.gmra.mrb[46].mxu0 %vm1156_vm0, %v1088_v1  ;;  %v5959_v1 = vadd.f32 %v5857_v18, %v376_v49  ;;  %v863_v23 = vmul.f32 1.442695, %v692_v35  ;;  %v5980_v40 = vadd.f32 %v5857_v18, %v377_v19  ;;  %4972 = vpow2.f32 %v861_v2  ;;  %v385_v2 = vld [vmem:[%s5360_s15 + $0x278] sm:$0xff] }
  0x84   : > { %4528 = vmatprep.mubr.msk.f32.mxu0 %vm1156_vm0, %v1089_v8  ;;  %v4961_v8 = vpop.eup %4960  ;;  %v865_v27 = vmul.f32 1.442695, %v693_v7  ;;  %v1099_v11 = vsel %vm579_vm14, %v5860_v52, %v3866_v15  ;;  %vm581_vm1 = vcmp.gt.f32.partialorder %v5874_v55, 0.0  ;;  %v867_v29 = vmul.f32 1.442695, %v694_v13 }
  0x85   : > { %v695_v26 = vmin.f32 %v5959_v1, 0.0  ;;  %v3868_v50 = vadd.f32 -1.0, %v4961_v8  ;;  %v4963_v28 = vpop.eup %4962  ;;  %v5992_v42 = vadd.f32 %v5857_v18, %v379_v20  ;;  %v5995_v12 = vadd.f32 %v5857_v18, %v380_v33 }
  0x86   : > { %v4965_v39 = vpop.eup %4964  ;;  %vm582_vm2 = vcmp.gt.f32.partialorder %v5892_v5, 0.0  ;;  %4974 = vpow2.f32 %v863_v23  ;;  %v696_v52 = vmin.f32 %v5980_v40, 0.0  ;;  %v3869_v44 = vadd.f32 -1.0, %v4963_v28  ;;  %v387_v23 = vld [vmem:[%s5360_s15 + $0x288] sm:$0xff] }
  0x87   : > { %4529 = vmatmul.mubr.msk.f32.gmra.mrb[48].mxu0 %vm1156_vm0, %v1090_v21  ;;  %v3867_v21 = vadd.f32 -1.0, %v4959_v63  ;;  %v869_v51 = vmul.f32 1.442695, %v695_v26  ;;  %4976 = vpow2.f32 %v865_v27  ;;  %vm583_vm3 = vcmp.gt.f32.partialorder %v5897_v22, 0.0 }
  0x88   : > { %4531 = vmatprep.mubr.msk.f32.mxu0 %vm1156_vm0, %v1091_v38  ;;  %v5985_v38 = vadd.f32 %v5857_v18, %v378_v10  ;;  %v4967_v45 = vpop.eup %4966  ;;  %4978 = vpow2.f32 %v867_v29  ;;  %v699_v53 = vmin.f32 %v5995_v12, 0.0  ;;  %v871_v54 = vmul.f32 1.442695, %v696_v52  ;;  %v389_v52 = vld [vmem:[%s5360_s15 + $0x298] sm:$0xff] }
  0x89   : > { %v1100_v6 = vsel %vm580_vm15, %v5869_v17, %v3867_v21  ;;  %v4969_v43 = vpop.eup %4968  ;;  %v698_v17 = vmin.f32 %v5992_v42, 0.0  ;;  %4980 = vpow2.f32 %v869_v51  ;;  %v3871_v46 = vadd.f32 -1.0, %v4967_v45  ;;  %v388_v51 = vld [vmem:[%s5360_s15 + $0x290] sm:$0xff] }
  0x8a   : > { %v697_v41 = vmin.f32 %v5985_v38, 0.0  ;;  %v1102_v49 = vsel %vm582_vm2, %v5892_v5, %v3869_v44  ;;  %vm584_vm4 = vcmp.gt.f32.partialorder %v5904_v14, 0.0  ;;  %v3872_v56 = vadd.f32 -1.0, %v4969_v43 }
  0x8b   : > { %4532 = vmatmul.mubr.msk.f32.gmra.mrb[50].mxu0 %vm1156_vm0, %v1092_v30  ;;  %v381_v30 = vld [vmem:[%s5360_s15 + $0x258] sm:$0xff]  ;;  %vm585_vm5 = vcmp.gt.f32.partialorder %v5909_v24, 0.0  ;;  %v875_v37 = vmul.f32 1.442695, %v698_v17  ;;  %v877_v63 = vmul.f32 1.442695, %v699_v53  ;;  %v6030_v5 = vadd.f32 %v5857_v18, %v383_v48 }
  0x8c   : > { %4534 = vmatprep.mubr.msk.f32.mxu0 %vm1156_vm0, %v1093_v16  ;;  %v1101_v16 = vsel %vm581_vm1, %v5874_v55, %v3868_v50  ;;  %v6010_v47 = vadd.f32 %v5857_v18, %v381_v30  ;;  %v6015_v55 = vadd.f32 %v5857_v18, %v382_v32  ;;  %v873_v34 = vmul.f32 1.442695, %v697_v41  ;;  %v390_v53 = vld [vmem:[%s5360_s15 + $0x2a0] sm:$0xff]  ;;  %v391_v48 = vld [vmem:[%s5360_s15 + $0x2a8] sm:$0xff] }
  0x8d   : > { %v1104_v7 = vsel %vm584_vm4, %v5904_v14, %v3871_v46  ;;  %vm586_vm6 = vcmp.gt.f32.partialorder %v5924_v36, 0.0  ;;  %vm587_vm7 = vcmp.gt.f32.partialorder %v5929_v31, 0.0  ;;  %4982 = vpow2.f32 %v871_v54 }
  0x8e   : > { %v700_v4 = vmin.f32 %v6010_v47, 0.0  ;;  %v1105_v19 = vsel %vm585_vm5, %v5909_v24, %v3872_v56  ;;  %4984 = vpow2.f32 %v873_v34  ;;  %v6046_v10 = vadd.f32 %v5857_v18, %v385_v2 }
  0x8f   : > { %4535 = vmatmul.mubr.msk.f32.gmra.mrb[52].mxu0 %vm1156_vm0, %v1094_v57  ;;  %v3870_v57 = vadd.f32 -1.0, %v4965_v39  ;;  %4986 = vpow2.f32 %v875_v37  ;;  %v702_v20 = vmin.f32 %v6030_v5, 0.0  ;;  %vm588_vm8 = vcmp.gt.f32.partialorder %v5944_v59, 0.0 }
  0x90   : > { %4537 = vmatprep.mubr.msk.f32.mxu0 %vm1156_vm0, %v1095_v61  ;;  %v4971_v61 = vpop.eup %4970  ;;  %v879_v13 = vmul.f32 1.442695, %v700_v4  ;;  %4988 = vpow2.f32 %v877_v63  ;;  %vm589_vm9 = vcmp.gt.f32.partialorder %v5950_v62, 0.0  ;;  %v704_v39 = vmin.f32 %v6046_v10, 0.0  ;;  %v393_v63 = vld [vmem:[%s5360_s15 + $0x2b8] sm:$0xff] }
  0x91   : > { %v1103_v58 = vsel %vm583_vm3, %v5897_v22, %v3870_v57  ;;  %v4973_v35 = vpop.eup %4972  ;;  %v386_v22 = vld [vmem:[%s5360_s15 + $0x280] sm:$0xff]  ;;  %v3873_v8 = vadd.f32 -1.0, %v4971_v61  ;;  %v883_v30 = vmul.f32 1.442695, %v702_v20  ;;  %vm590_vm10 = vcmp.gt.f32.partialorder %v5955_v60, 0.0 }
  0x92   : > { %v4975_v15 = vpop.eup %4974  ;;  %v3874_v14 = vadd.f32 -1.0, %v4973_v35  ;;  %v6050_v24 = vadd.f32 %v5857_v18, %v386_v22  ;;  %4990 = vpow2.f32 %v879_v13  ;;  %vm591_vm11 = vcmp.gt.f32.partialorder %v5959_v1, 0.0 }
  0x93   : > { %4538 = vmatmul.mubr.msk.f32.gmra.mrb[54].mxu0 %vm1156_vm0, %v1096_v0  ;;  %v701_v0 = vmin.f32 %v6015_v55, 0.0  ;;  %v1106_v50 = vsel %vm586_vm6, %v5924_v36, %v3873_v8  ;;  %v3875_v27 = vadd.f32 -1.0, %v4975_v15  ;;  %v6068_v36 = vadd.f32 %v5857_v18, %v387_v23 }
  0x94   : > { %4540 = vmatprep.mubr.msk.f32.mxu0 %vm1156_vm0, %v1097_v9  ;;  %v6043_v9 = vadd.f32 %v5857_v18, %v384_v3  ;;  %v6079_v44 = vadd.f32 %v5857_v18, %v388_v51  ;;  %v887_v57 = vmul.f32 1.442695, %v704_v39  ;;  %v6085_v17 = vadd.f32 %v5857_v18, %v389_v52 }
  0x95   : > { %v881_v26 = vmul.f32 1.442695, %v701_v0  ;;  %v1108_v45 = vsel %vm588_vm8, %v5944_v59, %v3875_v27  ;;  %v706_v59 = vmin.f32 %v6068_v36, 0.0  ;;  %vm592_vm12 = vcmp.gt.f32.partialorder %v5980_v40, 0.0 }
  0x96   : > { %v703_v28 = vmin.f32 %v6043_v9, 0.0  ;;  %v6101_v37 = vadd.f32 %v5857_v18, %v390_v53  ;;  %v6105_v3 = vadd.f32 %v5857_v18, %v391_v48  ;;  %vm593_vm13 = vcmp.gt.f32.partialorder %v5985_v38, 0.0 }
  0x97   : > { %4541 = vmatmul.mubr.msk.f32.gmra.mrb[56].mxu0 %vm1156_vm0, %v1098_v25  ;;  %v4977_v25 = vpop.eup %4976  ;;  %4992 = vpow2.f32 %v881_v26  ;;  %v891_v35 = vmul.f32 1.442695, %v706_v59  ;;  %vm594_vm14 = vcmp.gt.f32.partialorder %v5992_v42, 0.0  ;;  %vm595_vm15 = vcmp.gt.f32.partialorder %v5995_v12, 0.0 }
  0x98   : > { %4543 = vmatprep.mubr.msk.f32.mxu0 %vm1156_vm0, %v1099_v11  ;;  %v4979_v21 = vpop.eup %4978  ;;  %v1107_v11 = vsel %vm587_vm7, %v5929_v31, %v3874_v14  ;;  %v3876_v29 = vadd.f32 -1.0, %v4977_v25  ;;  %4994 = vpow2.f32 %v883_v30  ;;  %v709_v15 = vmin.f32 %v6101_v37, 0.0 }
  0x99   : > { %v4981_v33 = vpop.eup %4980  ;;  %v3877_v32 = vadd.f32 -1.0, %v4979_v21  ;;  %v710_v26 = vmin.f32 %v6105_v3, 0.0  ;;  %v6126_v20 = vadd.f32 %v5857_v18, %v393_v63  ;;  %v394_v21 = vld [vmem:[%s5360_s15 + $0x2c0] sm:$0xff]  ;;  %vm596_vm1 = vcmp.gt.f32.partialorder %v6010_v47, 0.0 }
  0x9a   : > { %v3878_v31 = vadd.f32 -1.0, %v4981_v33  ;;  %v4983_v41 = vpop.eup %4982  ;;  %v1109_v43 = vsel %vm589_vm9, %v5950_v62, %v3876_v29  ;;  %vm597_vm2 = vcmp.gt.f32.partialorder %v6015_v55, 0.0  ;;  %v6142_v29 = vadd.f32 %v5857_v18, %v394_v21  ;;  %v401_v21 = vld [vmem:[%s5360_s15 + $0x2f8] sm:$0xff] }
  0x9b   : > { %4544 = vmatmul.mubr.msk.f32.gmra.mrb[58].mxu0 %vm1156_vm0, %v1100_v6  ;;  %v705_v6 = vmin.f32 %v6050_v24, 0.0  ;;  %v4985_v46 = vpop.eup %4984  ;;  %v1110_v56 = vsel %vm590_vm10, %v5955_v60, %v3877_v32  ;;  %v3879_v61 = vadd.f32 -1.0, %v4983_v41  ;;  %v708_v60 = vmin.f32 %v6085_v17, 0.0 }
  0x9c   : > { %4546 = vmatprep.mubr.msk.f32.mxu0 %vm1156_vm0, %v1101_v16  ;;  %v885_v16 = vmul.f32 1.442695, %v703_v28  ;;  %v1111_v62 = vsel %vm591_vm11, %v5959_v1, %v3878_v31  ;;  %v3880_v4 = vadd.f32 -1.0, %v4985_v46  ;;  %v392_v1 = vld [vmem:[%s5360_s15 + $0x2b0] sm:$0xff]  ;;  %v897_v28 = vmul.f32 1.442695, %v709_v15 }
  0x9d   : > { %v889_v54 = vmul.f32 1.442695, %v705_v6  ;;  %v6119_v14 = vadd.f32 %v5857_v18, %v392_v1  ;;  %v895_v25 = vmul.f32 1.442695, %v708_v60  ;;  %v899_v39 = vmul.f32 1.442695, %v710_v26 }
  0x9e   : > { %4996 = vpow2.f32 %v885_v16  ;;  %v1113_v13 = vsel %vm593_vm13, %v5985_v38, %v3880_v4  ;;  %vm598_vm3 = vcmp.gt.f32.partialorder %v6030_v5, 0.0  ;;  %v713_v41 = vmin.f32 %v6142_v29, 0.0  ;;  %v398_v46 = vld [vmem:[%s5360_s15 + $0x2e0] sm:$0xff]  ;;  %v400_v60 = vld [vmem:[%s5360_s15 + $0x2f0] sm:$0xff] }
  0x9f   : > { %4547 = vmatmul.mubr.msk.f32.gmra.mrb[60].mxu0 %vm1156_vm0, %v1102_v49  ;;  %v4987_v49 = vpop.eup %4986  ;;  %4998 = vpow2.f32 %v887_v57  ;;  %v397_v57 = vld [vmem:[%s5360_s15 + $0x2d8] sm:$0xff]  ;;  %vm599_vm4 = vcmp.gt.f32.partialorder %v6043_v9, 0.0  ;;  %vm600_vm5 = vcmp.gt.f32.partialorder %v6046_v10, 0.0  ;;  %vm601_vm6 = vcmp.gt.f32.partialorder %v6050_v24, 0.0  ;;  %v2678_v1 = vld [vmem:[%s7419_s4] sm:$0xff] }
  0xa0   : > { %4549 = vmatprep.mubr.msk.f32.mxu0 %vm1156_vm0, %v1103_v58  ;;  %v4989_v34 = vpop.eup %4988  ;;  %v707_v58 = vmin.f32 %v6079_v44, 0.0  ;;  %5000 = vpow2.f32 %v889_v54  ;;  %v3881_v2 = vadd.f32 -1.0, %v4987_v49  ;;  %v6173_v49 = vadd.f32 %v5857_v18, %v397_v57 }
  0xa1   : > { %v4991_v0 = vpop.eup %4990  ;;  %5002 = vpow2.f32 %v891_v35  ;;  %vm602_vm7 = vcmp.gt.f32.partialorder %v6068_v36, 0.0  ;;  %v6210_v26 = vadd.f32 %v5857_v18, %v400_v60  ;;  %vm603_vm8 = vcmp.gt.f32.partialorder %v6079_v44, 0.0 }
  0xa2   : > { %v4993_v22 = vpop.eup %4992  ;;  %v893_v8 = vmul.f32 1.442695, %v707_v58  ;;  %v1114_v38 = vsel %vm594_vm14, %v5992_v42, %v3881_v2  ;;  %v3883_v33 = vadd.f32 -1.0, %v4991_v0  ;;  %v712_v42 = vmin.f32 %v6126_v20, 0.0  ;;  %v2679_v0 = vld [vmem:[%s7419_s4 + $0x8] sm:$0xff]  ;;  %v2681_v2 = vld [vmem:[%s7419_s4 + $0x18] sm:$0xff] }
  0xa3   : > { %4550 = vmatmul.mubr.msk.f32.gmra.mrb[62].mxu0 %vm1156_vm0, %v1104_v7  ;;  %v3882_v7 = vadd.f32 -1.0, %v4989_v34  ;;  %v4995_v27 = vpop.eup %4994  ;;  %v905_v34 = vmul.f32 1.442695, %v713_v41  ;;  %v6179_v58 = vadd.f32 %v5857_v18, %v398_v46  ;;  %v716_v15 = vmin.f32 %v6173_v49, 0.0 }
  0xa4   : > { %4552 = vmatprep.mubr.msk.f32.mxu0 %vm1156_vm0, %v1105_v19  ;;  %v1112_v19 = vsel %vm592_vm12, %v5980_v40, %v3879_v61  ;;  %v395_v40 = vld [vmem:[%s5360_s15 + $0x2c8] sm:$0xff]  ;;  %5004 = vpow2.f32 %v893_v8  ;;  %v1116_v52 = vsel %vm596_vm1, %v6010_v47, %v3883_v33  ;;  %v3885_v31 = vadd.f32 -1.0, %v4995_v27 }
  0xa5   : > { %v1115_v23 = vsel %vm595_vm15, %v5995_v12, %v3882_v7  ;;  %5006 = vpow2.f32 %v895_v25  ;;  %v6146_v51 = vadd.f32 %v5857_v18, %v395_v40  ;;  %v396_v12 = vld [vmem:[%s5360_s15 + $0x2d0] sm:$0xff]  ;;  %v903_v53 = vmul.f32 1.442695, %v712_v42  ;;  %v2683_v27 = vld [vmem:[%s7419_s4 + $0x28] sm:$0xff] }
  0xa6   : > { %5008 = vpow2.f32 %v897_v28  ;;  %v1118_v54 = vsel %vm598_vm3, %v6030_v5, %v3885_v31  ;;  %v717_v25 = vmin.f32 %v6179_v58, 0.0  ;;  %vm604_vm9 = vcmp.gt.f32.partialorder %v6085_v17, 0.0 }
  0xa7   : > { %4553 = vmatmul.mubr.msk.f32.gmra.mrb[64].mxu0 %vm1156_vm0, %v1106_v50  ;;  %v3884_v50 = vadd.f32 -1.0, %v4993_v22  ;;  %5010 = vpow2.f32 %v899_v39  ;;  %v911_v39 = vmul.f32 1.442695, %v716_v15  ;;  %vm605_vm10 = vcmp.gt.f32.partialorder %v6101_v37, 0.0 }
  0xa8   : > { %4555 = vmatprep.mubr.msk.f32.mxu0 %vm1156_vm0, %v1107_v11  ;;  %v711_v11 = vmin.f32 %v6119_v14, 0.0  ;;  %v4997_v30 = vpop.eup %4996  ;;  %vm606_vm11 = vcmp.gt.f32.partialorder %v6105_v3, 0.0  ;;  %vm607_vm12 = vcmp.gt.f32.partialorder %v6119_v14, 0.0  ;;  %vm608_vm13 = vcmp.gt.f32.partialorder %v6126_v20, 0.0 }
  0xa9   : > { %v4999_v6 = vpop.eup %4998  ;;  %v1117_v32 = vsel %vm597_vm2, %v6015_v55, %v3884_v50  ;;  %v3886_v47 = vadd.f32 -1.0, %v4997_v30  ;;  %v714_v55 = vmin.f32 %v6146_v51, 0.0  ;;  %v2682_v50 = vld [vmem:[%s7419_s4 + $0x20] sm:$0xff]  ;;  %v913_v30 = vmul.f32 1.442695, %v717_v25 }
  0xaa   : > { %v901_v16 = vmul.f32 1.442695, %v711_v11  ;;  %v3887_v59 = vadd.f32 -1.0, %v4999_v6  ;;  %v719_v6 = vmin.f32 %v6210_v26, 0.0  ;;  %vm609_vm14 = vcmp.gt.f32.partialorder %v6142_v29, 0.0 }
  0xab   : > { %4556 = vmatmul.mubr.msk.f32.gmra.mrb[66].mxu0 %vm1156_vm0, %v1108_v45  ;;  %v5001_v45 = vpop.eup %5000  ;;  %v1119_v4 = vsel %vm599_vm4, %v6043_v9, %v3886_v47  ;;  %v907_v5 = vmul.f32 1.442695, %v714_v55  ;;  %v2680_v9 = vld [vmem:[%s7419_s4 + $0x10] sm:$0xff]  ;;  %vm610_vm15 = vcmp.gt.f32.partialorder %v6146_v51, 0.0  ;;  %vm612_vm2 = vcmp.gt.f32.partialorder %v6173_v49, 0.0 }
  0xac   : > { %4558 = vmatprep.mubr.msk.f32.mxu0 %vm1156_vm0, %v1109_v43  ;;  %v6160_v43 = vadd.f32 %v5857_v18, %v396_v12  ;;  %v3888_v48 = vadd.f32 -1.0, %v5001_v45  ;;  %5012 = vpow2.f32 %v901_v16  ;;  %v1120_v22 = vsel %vm600_vm5, %v6046_v10, %v3887_v59  ;;  %v402_v10 = vld [vmem:[%s5360_s15 + $0x300] sm:$0xff]  ;;  %v404_v45 = vld [vmem:[%s5360_s15 + $0x310] sm:$0xff] }
  0xad   : > { %5014 = vpow2.f32 %v903_v53  ;;  %v6228_v12 = vadd.f32 %v5857_v18, %v401_v21  ;;  %v4800_v16 = vpack.c.bf16 %v2683_v27, %v2682_v50  ;;  %v2685_v53 = vld [vmem:[%s7419_s4 + $0x38] sm:$0xff]  ;;  %v917_v59 = vmul.f32 1.442695, %v719_v6 }
  0xae   : > { %v715_v61 = vmin.f32 %v6160_v43, 0.0  ;;  %5016 = vpow2.f32 %v905_v34  ;;  %vm611_vm1 = vcmp.gt.f32.partialorder %v6160_v43, 0.0  ;;  %vm613_vm3 = vcmp.gt.f32.partialorder %v6179_v58, 0.0 }
  0xaf   : > { %4559 = vmatmul.mubr.msk.f32.gmra.mrb[68].mxu0 %vm1156_vm0, %v1110_v56  ;;  %v399_v56 = vld [vmem:[%s5360_s15 + $0x2e8] sm:$0xff]  ;;  %5018 = vpow2.f32 %v907_v5  ;;  %v720_v46 = vmin.f32 %v6228_v12, 0.0  ;;  %vm615_vm5 = vcmp.gt.f32.partialorder %v6210_v26, 0.0 }
  0xb0   : > { %4561 = vmatprep.mubr.msk.f32.mxu0 %vm1156_vm0, %v1111_v62  ;;  %v5003_v62 = vpop.eup %5002  ;;  %v6188_v63 = vadd.f32 %v5857_v18, %v399_v56  ;;  %v6259_v56 = vadd.f32 %v5857_v18, %v404_v45 }
  0xb1   : > { %v5005_v35 = vpop.eup %5004  ;;  %v3889_v8 = vadd.f32 -1.0, %v5003_v62  ;;  %v405_v62 = vld [vmem:[%s5360_s15 + $0x318] sm:$0xff] }
  0xb2   : > { %v5007_v7 = vpop.eup %5006  ;;  %v3890_v40 = vadd.f32 -1.0, %v5005_v35  ;;  %v718_v42 = vmin.f32 %v6188_v63, 0.0  ;;  %vm614_vm4 = vcmp.gt.f32.partialorder %v6188_v63, 0.0 }
  0xb3   : > { %4562 = vmatmul.mubr.msk.f32.gmra.mrb[70].mxu0 %vm1156_vm0, %v1112_v19  ;;  %v1121_v19 = vsel %vm601_vm6, %v6050_v24, %v3888_v48  ;;  %v5009_v33 = vpop.eup %5008  ;;  %v3891_v24 = vadd.f32 -1.0, %v5007_v7  ;;  %v1122_v11 = vsel %vm602_vm7, %v6068_v36, %v3889_v8  ;;  %v723_v7 = vmin.f32 %v6259_v56, 0.0 }
  0xb4   : > { %4564 = vmatprep.mubr.msk.f32.mxu0 %vm1156_vm0, %v1113_v13  ;;  %v909_v13 = vmul.f32 1.442695, %v715_v61  ;;  %v5011_v28 = vpop.eup %5010  ;;  %v1123_v36 = vsel %vm603_vm8, %v6079_v44, %v3890_v40  ;;  %v3892_v31 = vadd.f32 -1.0, %v5009_v33  ;;  %v2684_v44 = vld [vmem:[%s7419_s4 + $0x30] sm:$0xff]  ;;  %vm616_vm6 = vcmp.gt.f32.partialorder %v6228_v12, 0.0 }
  0xb5   : > { %v1124_v57 = vsel %vm604_vm9, %v6085_v17, %v3891_v24  ;;  %v3893_v47 = vadd.f32 -1.0, %v5011_v28  ;;  %v915_v17 = vmul.f32 1.442695, %v718_v42  ;;  %v4804_v5 = vpack.c.bf16 %v2685_v53, %v2684_v44  ;;  %v409_v24 = vld [vmem:[%s5360_s15 + $0x338] sm:$0xff] }
  0xb6   : > { %5020 = vpow2.f32 %v909_v13  ;;  %v5013_v41 = vpop.eup %5012  ;;  %v1125_v34 = vsel %vm605_vm10, %v6101_v37, %v3892_v31  ;;  %v919_v37 = vmul.f32 1.442695, %v720_v46  ;;  %v408_v13 = vld [vmem:[%s5360_s15 + $0x330] sm:$0xff]  ;;  %v6312_v6 = vadd.f32 %v5857_v18, %v409_v24 }
  0xb7   : > { %4565 = vmatmul.mubr.msk.f32.gmra.mrb[72].mxu0 %vm1156_vm0, %v1114_v38  ;;  %v4792_v38 = vpack.c.bf16 %v2679_v0, %v2678_v1  ;;  %v5015_v55 = vpop.eup %5014  ;;  %5022 = vpow2.f32 %v911_v39  ;;  %v3894_v61 = vadd.f32 -1.0, %v5013_v41  ;;  %v1126_v1 = vsel %vm606_vm11, %v6105_v3, %v3893_v47 }
  0xb8   : > { %4567 = vmatprep.mubr.msk.f32.mxu0 %vm1156_vm0, %v1115_v23  ;;  %v4796_v23 = vpack.c.bf16 %v2681_v2, %v2680_v9  ;;  %5024 = vpow2.f32 %v913_v30  ;;  %v5017_v60 = vpop.eup %5016  ;;  %v3895_v35 = vadd.f32 -1.0, %v5015_v55  ;;  %v6274_v2 = vadd.f32 %v5857_v18, %v405_v62 }
  0xb9   : > { %4793 = vmatprep.subr.bf16.mxu0 %v4792_v38  ;;  %4808 = vmatprep.subr.bf16.mxu1 %v4792_v38  ;;  %v5019_v0 = vpop.eup %5018  ;;  %5026 = vpow2.f32 %v915_v17  ;;  %v1127_v8 = vsel %vm607_vm12, %v6119_v14, %v3894_v61  ;;  %v3896_v15 = vadd.f32 -1.0, %v5017_v60  ;;  %v6299_v33 = vadd.f32 %v5857_v18, %v408_v13 }
  0xba   : > { %4795 = vmatpush3.bf16.msra.mxu0 %v4792_v38  ;;  %4812 = vmatpush3.bf16.msra.mxu1 %v4792_v38  ;;  %5028 = vpow2.f32 %v917_v59  ;;  %v1128_v21 = vsel %vm608_vm13, %v6126_v20, %v3895_v35  ;;  %v3897_v40 = vadd.f32 -1.0, %v5019_v0  ;;  %v724_v14 = vmin.f32 %v6274_v2, 0.0 }
  0xbb   : > { %4568 = vmatmul.mubr.msk.f32.gmra.mrb[74].mxu0 %vm1156_vm0, %v1116_v52  ;;  %v6233_v52 = vadd.f32 %v5857_v18, %v402_v10  ;;  %4797 = vmatprep.subr.bf16.mxu0 %v4796_v23  ;;  %5030 = vpow2.f32 %v919_v37  ;;  %v925_v20 = vmul.f32 1.442695, %v723_v7  ;;  %v1129_v27 = vsel %vm609_vm14, %v6142_v29, %v3896_v15 }
  0xbc   : > { %4570 = vmatprep.mubr.msk.f32.mxu0 %vm1156_vm0, %v1117_v32  ;;  %v403_v32 = vld [vmem:[%s5360_s15 + $0x308] sm:$0xff]  ;;  %4809 = vmatprep.subr.bf16.mxu1 %v4796_v23  ;;  %v1130_v39 = vsel %vm610_vm15, %v6146_v51, %v3897_v40  ;;  %v927_v42 = vmul.f32 1.442695, %v724_v14  ;;  %v728_v41 = vmin.f32 %v6312_v6, 0.0  ;;  %vm619_vm9 = vcmp.gt.f32.partialorder %v6259_v56, 0.0 }
  0xbd   : > { %v721_v48 = vmin.f32 %v6233_v52, 0.0  ;;  %vm617_vm7 = vcmp.gt.f32.partialorder %v6233_v52, 0.0  ;;  %vm620_vm10 = vcmp.gt.f32.partialorder %v6274_v2, 0.0  ;;  %vm623_vm13 = vcmp.gt.f32.partialorder %v6299_v33, 0.0 }
  0xbe   : > { %4799 = vmatpush3.bf16.msra.mxu0 %v4796_v23  ;;  %4813 = vmatpush3.bf16.msra.mxu1 %v4796_v23  ;;  %v935_v46 = vmul.f32 1.442695, %v728_v41  ;;  %vm624_vm14 = vcmp.gt.f32.partialorder %v6312_v6, 0.0 }
  0xbf   : > { %4571 = vmatmul.mubr.msk.f32.gmra.mrb[76].mxu0 %vm1156_vm0, %v1118_v54  ;;  %v6254_v54 = vadd.f32 %v5857_v18, %v403_v32  ;;  %4801 = vmatprep.subr.bf16.mxu0 %v4800_v16  ;;  %v921_v3 = vmul.f32 1.442695, %v721_v48 }
  0xc0   : > { %4573 = vmatprep.mubr.msk.f32.mxu0 %vm1156_vm0, %v1119_v4  ;;  %v406_v4 = vld [vmem:[%s5360_s15 + $0x320] sm:$0xff]  ;;  %4810 = vmatprep.subr.bf16.mxu1 %v4800_v16  ;;  %v5021_v25 = vpop.eup %5020 }
  0xc1   : > { %v722_v9 = vmin.f32 %v6254_v54, 0.0  ;;  %5032 = vpow2.f32 %v921_v3  ;;  %v5023_v50 = vpop.eup %5022  ;;  %v3898_v28 = vadd.f32 -1.0, %v5021_v25  ;;  %vm618_vm8 = vcmp.gt.f32.partialorder %v6254_v54, 0.0 }
  0xc2   : > { %4803 = vmatpush3.bf16.msra.mxu0 %v4800_v16  ;;  %4814 = vmatpush3.bf16.msra.mxu1 %v4800_v16  ;;  %v3899_v29 = vadd.f32 -1.0, %v5023_v50 }
  0xc3   : > { %4574 = vmatmul.mubr.msk.f32.gmra.mrb[78].mxu0 %vm1156_vm0, %v1120_v22  ;;  %v6279_v22 = vadd.f32 %v5857_v18, %v406_v4  ;;  %4805 = vmatprep.subr.bf16.mxu0 %v4804_v5  ;;  %v923_v10 = vmul.f32 1.442695, %v722_v9  ;;  %v1131_v31 = vsel %vm611_vm1, %v6160_v43, %v3898_v28 }
  0xc4   : > { %4576 = vmatprep.mubr.msk.f32.mxu0 %vm1156_vm0, %v1121_v19  ;;  %v407_v19 = vld [vmem:[%s5360_s15 + $0x328] sm:$0xff]  ;;  %4811 = vmatprep.subr.bf16.mxu1 %v4804_v5 }
  0xc5   : > { %v6294_v38 = vadd.f32 %v5857_v18, %v407_v19  ;;  %v725_v23 = vmin.f32 %v6279_v22, 0.0  ;;  %5034 = vpow2.f32 %v923_v10  ;;  %vm621_vm11 = vcmp.gt.f32.partialorder %v6279_v22, 0.0 }
  0xc6   : > { %4807 = vmatpush3.bf16.msra.mxu0 %v4804_v5  ;;  %4815 = vmatpush3.bf16.msra.mxu1 %v4804_v5  ;;  %5036 = vpow2.f32 %v925_v20 }
  0xc7   : > { %4577 = vmatmul.mubr.msk.f32.gmra.mrb[80].mxu0 %vm1156_vm0, %v1122_v11  ;;  %v5025_v11 = vpop.eup %5024  ;;  %v726_v30 = vmin.f32 %v6294_v38, 0.0  ;;  %v929_v32 = vmul.f32 1.442695, %v725_v23  ;;  %5038 = vpow2.f32 %v927_v42  ;;  %vm622_vm12 = vcmp.gt.f32.partialorder %v6294_v38, 0.0 }
  0xc8   : > { %4579 = vmatprep.mubr.msk.f32.mxu0 %vm1156_vm0, %v1123_v36  ;;  %v727_v36 = vmin.f32 %v6299_v33, 0.0  ;;  %v5027_v51 = vpop.eup %5026  ;;  %v3900_v45 = vadd.f32 -1.0, %v5025_v11 }
  0xc9   : > { %v5029_v16 = vpop.eup %5028  ;;  %v931_v18 = vmul.f32 1.442695, %v726_v30  ;;  %v3901_v47 = vadd.f32 -1.0, %v5027_v51  ;;  %5040 = vpow2.f32 %v929_v32 }
  0xca   : > { %v933_v44 = vmul.f32 1.442695, %v727_v36  ;;  %v5031_v43 = vpop.eup %5030  ;;  %v1133_v53 = vsel %vm613_vm3, %v6179_v58, %v3900_v45  ;;  %v3902_v55 = vadd.f32 -1.0, %v5029_v16 }
  0xcb   : > { %4580 = vmatmul.mubr.msk.f32.gmra.mrb[82].mxu0 %vm1156_vm0, %v1124_v57  ;;  %v1132_v57 = vsel %vm612_vm2, %v6173_v49, %v3899_v29  ;;  %v5033_v17 = vpop.eup %5032  ;;  %5042 = vpow2.f32 %v931_v18  ;;  %v1134_v49 = vsel %vm614_vm4, %v6188_v63, %v3901_v47  ;;  %v3903_v59 = vadd.f32 -1.0, %v5031_v43 }
  0xcc   : > { %4582 = vmatprep.mubr.msk.f32.mxu0 %vm1156_vm0, %v1125_v34  ;;  %5044 = vpow2.f32 %v933_v44  ;;  %v1135_v62 = vsel %vm615_vm5, %v6210_v26, %v3902_v55  ;;  %v3904_v58 = vadd.f32 -1.0, %v5033_v17 }
  0xcd   : > { %5046 = vpow2.f32 %v935_v46  ;;  %v1136_v61 = vsel %vm616_vm6, %v6228_v12, %v3903_v59 }
  0xce   : > { %v1137_v5 = vsel %vm617_vm7, %v6233_v52, %v3904_v58 }
  0xcf   : > { %4583 = vmatmul.mubr.msk.f32.gmra.mrb[84].mxu0 %vm1156_vm0, %v1126_v1  ;;  %v5035_v48 = vpop.eup %5034 }
  0xd0   : > { %4585 = vmatprep.mubr.msk.f32.mxu0 %vm1156_vm0, %v1127_v8  ;;  %v5037_v34 = vpop.eup %5036  ;;  %v3905_v4 = vadd.f32 -1.0, %v5035_v48 }
  0xd1   : > { %v5039_v63 = vpop.eup %5038  ;;  %v3906_v26 = vadd.f32 -1.0, %v5037_v34 }
  0xd2   : > { %v1138_v1 = vsel %vm618_vm8, %v6254_v54, %v3905_v4  ;;  %v3907_v35 = vadd.f32 -1.0, %v5039_v63 }
  0xd3   : > { %4586 = vmatmul.mubr.msk.f32.gmra.mrb[86].mxu0 %vm1156_vm0, %v1128_v21  ;;  %v5041_v60 = vpop.eup %5040  ;;  %v1139_v12 = vsel %vm619_vm9, %v6259_v56, %v3906_v26 }
  0xd4   : > { %4588 = vmatprep.mubr.msk.f32.mxu0 %vm1156_vm0, %v1129_v27  ;;  %v3908_v37 = vadd.f32 -1.0, %v5041_v60  ;;  %v1140_v9 = vsel %vm620_vm10, %v6274_v2, %v3907_v35 }
  0xd5   : > { %v5043_v0 = vpop.eup %5042 }
  0xd6   : > { %v5045_v52 = vpop.eup %5044  ;;  %v3909_v3 = vadd.f32 -1.0, %v5043_v0  ;;  %v1141_v54 = vsel %vm621_vm11, %v6279_v22, %v3908_v37  ;;  %v6362_v22 = vld [vmem:[%s7418_s3] ss:$0 sm:$0xff] }
  0xd7   : > { %4589 = vmatmul.mubr.msk.f32.gmra.mrb[88].mxu0 %vm1156_vm0, %v1130_v39  ;;  %v5047_v7 = vpop.eup %5046  ;;  %v3910_v19 = vadd.f32 -1.0, %v5045_v52 }
  0xd8   : > { %4591 = vmatprep.mubr.msk.f32.mxu0 %vm1156_vm0, %v1131_v31  ;;  %v1142_v56 = vsel %vm622_vm12, %v6294_v38, %v3909_v3  ;;  %v3911_v8 = vadd.f32 -1.0, %v5047_v7 }
  0xd9   : > { %v1143_v15 = vsel %vm623_vm13, %v6299_v33, %v3910_v19 }
  0xda   : > { %v1144_v2 = vsel %vm624_vm14, %v6312_v6, %v3911_v8 }
  0xdb   : > { %4592 = vmatmul.mubr.msk.f32.gmra.mrb[90].mxu0 %vm1156_vm0, %v1132_v57 }
  0xdc   : > { %4594 = vmatprep.mubr.msk.f32.mxu0 %vm1156_vm0, %v1133_v53 }
  0xdf   : > { %4595 = vmatmul.mubr.msk.f32.gmra.mrb[92].mxu0 %vm1156_vm0, %v1134_v49 }
  0xe0   : > { %4597 = vmatprep.mubr.msk.f32.mxu0 %vm1156_vm0, %v1135_v62 }
  0xe3   : > { %4598 = vmatmul.mubr.msk.f32.gmra.mrb[94].mxu0 %vm1156_vm0, %v1136_v61 }
  0xe4   : > { %4600 = vmatprep.mubr.msk.f32.mxu0 %vm1156_vm0, %v1137_v5 }
  0xe7   : > { %4601 = vmatmul.mubr.msk.f32.gmra.mrb[96].mxu0 %vm1156_vm0, %v1138_v1 }
  0xe8   : > { %4603 = vmatprep.mubr.msk.f32.mxu0 %vm1156_vm0, %v1139_v12 }
  0xeb   : > { %4604 = vmatmul.mubr.msk.f32.gmra.mrb[98].mxu0 %vm1156_vm0, %v1140_v9 }
  0xec   : > { %4606 = vmatprep.mubr.msk.f32.mxu0 %vm1156_vm0, %v1141_v54 }
  0xef   : > { %4607 = vmatmul.mubr.msk.f32.gmra.mrb[100].mxu0 %vm1156_vm0, %v1142_v56 }
  0xf0   : > { %4609 = vmatprep.mubr.msk.f32.mxu0 %vm1156_vm0, %v1143_v15 }
  0xf3   : > { %4610 = vmatmul.mubr.msk.f32.gmra.mrb[102].mxu0 %vm1156_vm0, %v1144_v2  ;;  %vm2693_vm0 = vcmask 523264  }
  0xfa   : > { %v4458_v13 = vpop.f32.mrb[0].mxu0 }
  0xfb   : > { %v1541_v25 = vadd.f32 %v4458_v13, %v6362_v22  ;;  %v1535_v21 = vpop.f32.mrb[1].mxu0 }
  0xfc   : > { %v1536_v40 = vadd.f32 %v6362_v22, %v1535_v21 }
  0xfd   : > { %v2159_v10 = vmin.f32 %v1541_v25, 0.0  ;;  %vm2055_vm1 = vcmp.gt.f32.partialorder %v1541_v25, 0.0 }
  0xfe   : > { %v2158_v14 = vmin.f32 %v1536_v40, 0.0  ;;  %v4461_v38 = vpop.f32.mrb[2].mxu0  ;;  %vm2054_vm15 = vcmp.gt.f32.partialorder %v1536_v40, 0.0 }
  0xff   : > { %v2264_v20 = vmul.f32 1.442695, %v2159_v10  ;;  %v6367_v23 = vadd.f32 %v4461_v38, %v6362_v22  ;;  %v1545_v33 = vpop.f32.mrb[3].mxu0 }
 0x100   : > { %v2262_v24 = vmul.f32 1.442695, %v2158_v14  ;;  %v6370_v50 = vadd.f32 %v6362_v22, %v1545_v33 }
 0x101   : > { %5048 = vpow2.f32 %v2264_v20  ;;  %v2161_v27 = vmin.f32 %v6367_v23, 0.0  ;;  %vm2057_vm3 = vcmp.gt.f32.partialorder %v6367_v23, 0.0 }
 0x102   : > { %5050 = vpow2.f32 %v2262_v24  ;;  %v2160_v28 = vmin.f32 %v6370_v50, 0.0  ;;  %v4464_v11 = vpop.f32.mrb[4].mxu0  ;;  %vm2056_vm2 = vcmp.gt.f32.partialorder %v6370_v50, 0.0 }
 0x103   : > { %v2268_v39 = vmul.f32 1.442695, %v2161_v27  ;;  %v6375_v42 = vadd.f32 %v4464_v11, %v6362_v22  ;;  %v1555_v30 = vpop.f32.mrb[5].mxu0 }
 0x104   : > { %v2266_v6 = vmul.f32 1.442695, %v2160_v28  ;;  %v6378_v29 = vadd.f32 %v6362_v22, %v1555_v30 }
 0x105   : > { %5052 = vpow2.f32 %v2268_v39  ;;  %v2163_v32 = vmin.f32 %v6375_v42, 0.0  ;;  %vm2059_vm5 = vcmp.gt.f32.partialorder %v6375_v42, 0.0 }
 0x106   : > { %5054 = vpow2.f32 %v2266_v6  ;;  %v2162_v36 = vmin.f32 %v6378_v29, 0.0  ;;  %v4467_v51 = vpop.f32.mrb[6].mxu0  ;;  %vm2058_vm4 = vcmp.gt.f32.partialorder %v6378_v29, 0.0 }
 0x107   : > { %v2272_v31 = vmul.f32 1.442695, %v2163_v32  ;;  %v6383_v45 = vadd.f32 %v4467_v51, %v6362_v22  ;;  %v1565_v16 = vpop.f32.mrb[7].mxu0 }
 0x108   : > { %v2270_v18 = vmul.f32 1.442695, %v2162_v36  ;;  %v6386_v41 = vadd.f32 %v6362_v22, %v1565_v16 }
 0x109   : > { %5056 = vpow2.f32 %v2272_v31  ;;  %v2165_v57 = vmin.f32 %v6383_v45, 0.0  ;;  %vm2061_vm7 = vcmp.gt.f32.partialorder %v6383_v45, 0.0 }
 0x10a   : > { %5058 = vpow2.f32 %v2270_v18  ;;  %v2164_v47 = vmin.f32 %v6386_v41, 0.0  ;;  %v4470_v44 = vpop.f32.mrb[8].mxu0  ;;  %vm2060_vm6 = vcmp.gt.f32.partialorder %v6386_v41, 0.0 }
 0x10b   : > { %v5049_v43 = vpop.eup %5048  ;;  %v2276_v53 = vmul.f32 1.442695, %v2165_v57  ;;  %v6391_v55 = vadd.f32 %v4470_v44, %v6362_v22  ;;  %v1575_v17 = vpop.f32.mrb[9].mxu0 }
 0x10c   : > { %v5051_v46 = vpop.eup %5050  ;;  %v4018_v49 = vadd.f32 -1.0, %v5049_v43  ;;  %v2274_v59 = vmul.f32 1.442695, %v2164_v47  ;;  %v6394_v48 = vadd.f32 %v6362_v22, %v1575_v17 }
 0x10d   : > { %5060 = vpow2.f32 %v2276_v53  ;;  %v2167_v62 = vmin.f32 %v6391_v55, 0.0  ;;  %v4017_v58 = vadd.f32 -1.0, %v5051_v46  ;;  %vm2063_vm9 = vcmp.gt.f32.partialorder %v6391_v55, 0.0 }
 0x10e   : > { %5062 = vpow2.f32 %v2274_v59  ;;  %v2166_v34 = vmin.f32 %v6394_v48, 0.0  ;;  %v4473_v61 = vpop.f32.mrb[10].mxu0  ;;  %v2575_v35 = vsel %vm2055_vm1, %v1541_v25, %v4018_v49  ;;  %vm2062_vm8 = vcmp.gt.f32.partialorder %v6394_v48, 0.0 }
 0x10f   : > { %v5053_v4 = vpop.eup %5052  ;;  %v2280_v63 = vmul.f32 1.442695, %v2167_v62  ;;  %v6399_v5 = vadd.f32 %v4473_v61, %v6362_v22  ;;  %v1585_v26 = vpop.f32.mrb[11].mxu0  ;;  %v2574_v60 = vsel %vm2054_vm15, %v1536_v40, %v4017_v58 }
 0x110   : > { %v5055_v1 = vpop.eup %5054  ;;  %v2278_v0 = vmul.f32 1.442695, %v2166_v34  ;;  %v6402_v12 = vadd.f32 %v6362_v22, %v1585_v26  ;;  %4628 = vmatprep.mubr.msk.f32.mxu0 %vm2693_vm0, %v2574_v60  ;;  %v4020_v37 = vadd.f32 -1.0, %v5053_v4 }
 0x111   : > { %5064 = vpow2.f32 %v2280_v63  ;;  %v2169_v52 = vmin.f32 %v6399_v5, 0.0  ;;  %4629 = vmatmul.mubr.msk.f32.vlgmr.msra.gmra.mrb[104].mxu0 %vm2693_vm0, %v2575_v35  ;;  %v4019_v9 = vadd.f32 -1.0, %v5055_v1  ;;  %vm2065_vm11 = vcmp.gt.f32.partialorder %v6399_v5, 0.0 }
 0x112   : > { %5066 = vpow2.f32 %v2278_v0  ;;  %v2168_v3 = vmin.f32 %v6402_v12, 0.0  ;;  %v4476_v7 = vpop.f32.mrb[12].mxu0  ;;  %v2577_v21 = vsel %vm2057_vm3, %v6367_v23, %v4020_v37  ;;  %vm2064_vm10 = vcmp.gt.f32.partialorder %v6402_v12, 0.0 }
 0x113   : > { %v5057_v54 = vpop.eup %5056  ;;  %v2284_v19 = vmul.f32 1.442695, %v2169_v52  ;;  %v6411_v56 = vadd.f32 %v4476_v7, %v6362_v22  ;;  %v1595_v8 = vpop.f32.mrb[13].mxu0  ;;  %v2576_v15 = vsel %vm2056_vm2, %v6370_v50, %v4019_v9 }
 0x114   : > { %v5059_v2 = vpop.eup %5058  ;;  %v2282_v13 = vmul.f32 1.442695, %v2168_v3  ;;  %v6415_v25 = vadd.f32 %v6362_v22, %v1595_v8  ;;  %4631 = vmatprep.mubr.msk.f32.mxu1 %vm2693_vm0, %v2576_v15  ;;  %v4022_v40 = vadd.f32 -1.0, %v5057_v54 }
 0x115   : > { %5068 = vpow2.f32 %v2284_v19  ;;  %v2171_v10 = vmin.f32 %v6411_v56, 0.0  ;;  %4632 = vmatmul.mubr.msk.f32.vlgmr.msra.gmra.mrb[0].mxu1 %vm2693_vm0, %v2577_v21  ;;  %v4021_v14 = vadd.f32 -1.0, %v5059_v2  ;;  %vm2067_vm13 = vcmp.gt.f32.partialorder %v6411_v56, 0.0 }
 0x116   : > { %5070 = vpow2.f32 %v2282_v13  ;;  %v2170_v38 = vmin.f32 %v6415_v25, 0.0  ;;  %v4479_v20 = vpop.f32.mrb[14].mxu0  ;;  %v2579_v30 = vsel %vm2059_vm5, %v6375_v42, %v4022_v40  ;;  %vm2066_vm12 = vcmp.gt.f32.partialorder %v6415_v25, 0.0 }
 0x117   : > { %v5061_v33 = vpop.eup %5060  ;;  %v2288_v24 = vmul.f32 1.442695, %v2171_v10  ;;  %v6425_v50 = vadd.f32 %v4479_v20, %v6362_v22  ;;  %v1605_v23 = vpop.f32.mrb[15].mxu0  ;;  %v2578_v27 = vsel %vm2058_vm4, %v6378_v29, %v4021_v14 }
 0x118   : > { %v5063_v28 = vpop.eup %5062  ;;  %v2286_v11 = vmul.f32 1.442695, %v2170_v38  ;;  %v6429_v39 = vadd.f32 %v6362_v22, %v1605_v23  ;;  %4634 = vmatprep.mubr.msk.f32.mxu1 %vm2693_vm0, %v2578_v27  ;;  %v4024_v6 = vadd.f32 -1.0, %v5061_v33 }
 0x119   : > { %5072 = vpow2.f32 %v2288_v24  ;;  %v2173_v32 = vmin.f32 %v6425_v50, 0.0  ;;  %4635 = vmatmul.mubr.msk.f32.gmra.mrb[2].mxu1 %vm2693_vm0, %v2579_v30  ;;  %v4023_v36 = vadd.f32 -1.0, %v5063_v28  ;;  %vm2069_vm15 = vcmp.gt.f32.partialorder %v6425_v50, 0.0 }
 0x11a   : > { %5074 = vpow2.f32 %v2286_v11  ;;  %v2172_v29 = vmin.f32 %v6429_v39, 0.0  ;;  %v4482_v51 = vpop.f32.mrb[16].mxu0  ;;  %v2581_v53 = vsel %vm2061_vm7, %v6383_v45, %v4024_v6  ;;  %vm2068_vm14 = vcmp.gt.f32.partialorder %v6429_v39, 0.0 }
 0x11b   : > { %v5065_v31 = vpop.eup %5064  ;;  %v2292_v16 = vmul.f32 1.442695, %v2173_v32  ;;  %v6439_v18 = vadd.f32 %v4482_v51, %v6362_v22  ;;  %v1615_v42 = vpop.f32.mrb[17].mxu0  ;;  %v2580_v57 = vsel %vm2060_vm6, %v6386_v41, %v4023_v36 }
 0x11c   : > { %v5067_v47 = vpop.eup %5066  ;;  %v2290_v44 = vmul.f32 1.442695, %v2172_v29  ;;  %v6443_v43 = vadd.f32 %v6362_v22, %v1615_v42  ;;  %4637 = vmatprep.mubr.msk.f32.mxu1 %vm2693_vm0, %v2580_v57  ;;  %v4026_v17 = vadd.f32 -1.0, %v5065_v31 }
 0x11d   : > { %5076 = vpow2.f32 %v2292_v16  ;;  %v2175_v46 = vmin.f32 %v6439_v18, 0.0  ;;  %4638 = vmatmul.mubr.msk.f32.gmra.mrb[4].mxu1 %vm2693_vm0, %v2581_v53  ;;  %v4025_v49 = vadd.f32 -1.0, %v5067_v47  ;;  %vm2071_vm2 = vcmp.gt.f32.partialorder %v6439_v18, 0.0 }
 0x11e   : > { %5078 = vpow2.f32 %v2290_v44  ;;  %v2174_v41 = vmin.f32 %v6443_v43, 0.0  ;;  %v4485_v59 = vpop.f32.mrb[18].mxu0  ;;  %v2583_v60 = vsel %vm2063_vm9, %v6391_v55, %v4026_v17  ;;  %vm2070_vm1 = vcmp.gt.f32.partialorder %v6443_v43, 0.0 }
 0x11f   : > { %v5069_v62 = vpop.eup %5068  ;;  %v2296_v58 = vmul.f32 1.442695, %v2175_v46  ;;  %v6453_v34 = vadd.f32 %v4485_v59, %v6362_v22  ;;  %v1625_v45 = vpop.f32.mrb[19].mxu0  ;;  %v2582_v61 = vsel %vm2062_vm8, %v6394_v48, %v4025_v49 }
 0x120   : > { %v5071_v4 = vpop.eup %5070  ;;  %v2294_v63 = vmul.f32 1.442695, %v2174_v41  ;;  %v6457_v26 = vadd.f32 %v6362_v22, %v1625_v45  ;;  %4640 = vmatprep.mubr.msk.f32.mxu1 %vm2693_vm0, %v2582_v61  ;;  %v4028_v1 = vadd.f32 -1.0, %v5069_v62 }
 0x121   : > { %5080 = vpow2.f32 %v2296_v58  ;;  %v2177_v35 = vmin.f32 %v6453_v34, 0.0  ;;  %4641 = vmatmul.mubr.msk.f32.gmra.mrb[6].mxu1 %vm2693_vm0, %v2583_v60  ;;  %v4027_v0 = vadd.f32 -1.0, %v5071_v4  ;;  %vm2073_vm4 = vcmp.gt.f32.partialorder %v6453_v34, 0.0 }
 0x122   : > { %5082 = vpow2.f32 %v2294_v63  ;;  %v2176_v48 = vmin.f32 %v6457_v26, 0.0  ;;  %v4488_v37 = vpop.f32.mrb[20].mxu0  ;;  %v2585_v15 = vsel %vm2065_vm11, %v6399_v5, %v4028_v1  ;;  %vm2072_vm3 = vcmp.gt.f32.partialorder %v6457_v26, 0.0 }
 0x123   : > { %v5073_v52 = vpop.eup %5072  ;;  %v2300_v9 = vmul.f32 1.442695, %v2177_v35  ;;  %v6467_v3 = vadd.f32 %v4488_v37, %v6362_v22  ;;  %v1635_v55 = vpop.f32.mrb[21].mxu0  ;;  %v2584_v7 = vsel %vm2064_vm10, %v6402_v12, %v4027_v0 }
 0x124   : > { %v5075_v54 = vpop.eup %5074  ;;  %v2298_v19 = vmul.f32 1.442695, %v2176_v48  ;;  %v6471_v8 = vadd.f32 %v6362_v22, %v1635_v55  ;;  %4643 = vmatprep.mubr.msk.f32.mxu1 %vm2693_vm0, %v2584_v7  ;;  %v4030_v2 = vadd.f32 -1.0, %v5073_v52 }
 0x125   : > { %5084 = vpow2.f32 %v2300_v9  ;;  %v2179_v13 = vmin.f32 %v6467_v3, 0.0  ;;  %4644 = vmatmul.mubr.msk.f32.gmra.mrb[8].mxu1 %vm2693_vm0, %v2585_v15  ;;  %v4029_v21 = vadd.f32 -1.0, %v5075_v54  ;;  %vm2075_vm6 = vcmp.gt.f32.partialorder %v6467_v3, 0.0 }
 0x126   : > { %5086 = vpow2.f32 %v2298_v19  ;;  %v2178_v12 = vmin.f32 %v6471_v8, 0.0  ;;  %v4491_v40 = vpop.f32.mrb[22].mxu0  ;;  %v2587_v27 = vsel %vm2067_vm13, %v6411_v56, %v4030_v2  ;;  %vm2074_vm5 = vcmp.gt.f32.partialorder %v6471_v8, 0.0 }
 0x127   : > { %v5077_v10 = vpop.eup %5076  ;;  %v2304_v14 = vmul.f32 1.442695, %v2179_v13  ;;  %v6481_v38 = vadd.f32 %v4491_v40, %v6362_v22  ;;  %v1645_v5 = vpop.f32.mrb[23].mxu0  ;;  %v2586_v20 = vsel %vm2066_vm12, %v6415_v25, %v4029_v21 }
 0x128   : > { %v5079_v33 = vpop.eup %5078  ;;  %v2302_v24 = vmul.f32 1.442695, %v2178_v12  ;;  %v6485_v23 = vadd.f32 %v6362_v22, %v1645_v5  ;;  %4646 = vmatprep.mubr.msk.f32.mxu1 %vm2693_vm0, %v2586_v20  ;;  %v4032_v28 = vadd.f32 -1.0, %v5077_v10 }
 0x129   : > { %5088 = vpow2.f32 %v2304_v14  ;;  %v2181_v11 = vmin.f32 %v6481_v38, 0.0  ;;  %4647 = vmatmul.mubr.msk.f32.gmra.mrb[10].mxu1 %vm2693_vm0, %v2587_v27  ;;  %v4031_v30 = vadd.f32 -1.0, %v5079_v33  ;;  %vm2077_vm8 = vcmp.gt.f32.partialorder %v6481_v38, 0.0 }
 0x12a   : > { %5090 = vpow2.f32 %v2302_v24  ;;  %v2180_v25 = vmin.f32 %v6485_v23, 0.0  ;;  %v4494_v6 = vpop.f32.mrb[24].mxu0  ;;  %v2589_v57 = vsel %vm2069_vm15, %v6425_v50, %v4032_v28  ;;  %vm2076_vm7 = vcmp.gt.f32.partialorder %v6485_v23, 0.0 }
 0x12b   : > { %v5081_v32 = vpop.eup %5080  ;;  %v2308_v36 = vmul.f32 1.442695, %v2181_v11  ;;  %v6495_v29 = vadd.f32 %v4494_v6, %v6362_v22  ;;  %v1655_v56 = vpop.f32.mrb[25].mxu0  ;;  %v2588_v51 = vsel %vm2068_vm14, %v6429_v39, %v4031_v30 }
 0x12c   : > { %v5083_v31 = vpop.eup %5082  ;;  %v2306_v16 = vmul.f32 1.442695, %v2180_v25  ;;  %v6499_v42 = vadd.f32 %v6362_v22, %v1655_v56  ;;  %4649 = vmatprep.mubr.msk.f32.mxu1 %vm2693_vm0, %v2588_v51  ;;  %v4034_v47 = vadd.f32 -1.0, %v5081_v32 }
 0x12d   : > { %5092 = vpow2.f32 %v2308_v36  ;;  %v2183_v44 = vmin.f32 %v6495_v29, 0.0  ;;  %4650 = vmatmul.mubr.msk.f32.gmra.mrb[12].mxu1 %vm2693_vm0, %v2589_v57  ;;  %v4033_v53 = vadd.f32 -1.0, %v5083_v31  ;;  %vm2079_vm10 = vcmp.gt.f32.partialorder %v6495_v29, 0.0 }
 0x12e   : > { %5094 = vpow2.f32 %v2306_v16  ;;  %v2182_v39 = vmin.f32 %v6499_v42, 0.0  ;;  %v4497_v17 = vpop.f32.mrb[26].mxu0  ;;  %v2591_v61 = vsel %vm2071_vm2, %v6439_v18, %v4034_v47  ;;  %vm2078_vm9 = vcmp.gt.f32.partialorder %v6499_v42, 0.0 }
 0x12f   : > { %v5085_v46 = vpop.eup %5084  ;;  %v2312_v49 = vmul.f32 1.442695, %v2183_v44  ;;  %v6509_v41 = vadd.f32 %v4497_v17, %v6362_v22  ;;  %v1665_v50 = vpop.f32.mrb[27].mxu0  ;;  %v2590_v59 = vsel %vm2070_vm1, %v6443_v43, %v4033_v53 }
 0x130   : > { %v5087_v62 = vpop.eup %5086  ;;  %v2310_v58 = vmul.f32 1.442695, %v2182_v39  ;;  %v6513_v45 = vadd.f32 %v6362_v22, %v1665_v50  ;;  %4652 = vmatprep.mubr.msk.f32.mxu1 %vm2693_vm0, %v2590_v59  ;;  %v4036_v4 = vadd.f32 -1.0, %v5085_v46 }
 0x131   : > { %5096 = vpow2.f32 %v2312_v49  ;;  %v2185_v63 = vmin.f32 %v6509_v41, 0.0  ;;  %4653 = vmatmul.mubr.msk.f32.gmra.mrb[14].mxu1 %vm2693_vm0, %v2591_v61  ;;  %v4035_v60 = vadd.f32 -1.0, %v5087_v62  ;;  %vm2081_vm12 = vcmp.gt.f32.partialorder %v6509_v41, 0.0 }
 0x132   : > { %5098 = vpow2.f32 %v2310_v58  ;;  %v2184_v43 = vmin.f32 %v6513_v45, 0.0  ;;  %v4500_v1 = vpop.f32.mrb[28].mxu0  ;;  %v2593_v7 = vsel %vm2073_vm4, %v6453_v34, %v4036_v4  ;;  %vm2080_vm11 = vcmp.gt.f32.partialorder %v6513_v45, 0.0 }
 0x133   : > { %v5089_v35 = vpop.eup %5088  ;;  %v2316_v0 = vmul.f32 1.442695, %v2185_v63  ;;  %v6523_v48 = vadd.f32 %v4500_v1, %v6362_v22  ;;  %v1675_v18 = vpop.f32.mrb[29].mxu0  ;;  %v2592_v37 = vsel %vm2072_vm3, %v6457_v26, %v4035_v60 }
 0x134   : > { %v5091_v52 = vpop.eup %5090  ;;  %v2314_v9 = vmul.f32 1.442695, %v2184_v43  ;;  %v6527_v55 = vadd.f32 %v6362_v22, %v1675_v18  ;;  %4655 = vmatprep.mubr.msk.f32.mxu1 %vm2693_vm0, %v2592_v37  ;;  %v4038_v54 = vadd.f32 -1.0, %v5089_v35 }
 0x135   : > { %5100 = vpow2.f32 %v2316_v0  ;;  %v2187_v19 = vmin.f32 %v6523_v48, 0.0  ;;  %4656 = vmatmul.mubr.msk.f32.gmra.mrb[16].mxu1 %vm2693_vm0, %v2593_v7  ;;  %v4037_v15 = vadd.f32 -1.0, %v5091_v52  ;;  %vm2083_vm14 = vcmp.gt.f32.partialorder %v6523_v48, 0.0 }
 0x136   : > { %5102 = vpow2.f32 %v2314_v9  ;;  %v2186_v26 = vmin.f32 %v6527_v55, 0.0  ;;  %v4503_v2 = vpop.f32.mrb[30].mxu0  ;;  %v2595_v20 = vsel %vm2075_vm6, %v6467_v3, %v4038_v54  ;;  %vm2082_vm13 = vcmp.gt.f32.partialorder %v6527_v55, 0.0 }
 0x137   : > { %v5093_v13 = vpop.eup %5092  ;;  %v2320_v21 = vmul.f32 1.442695, %v2187_v19  ;;  %v6537_v12 = vadd.f32 %v4503_v2, %v6362_v22  ;;  %v1685_v34 = vpop.f32.mrb[31].mxu0  ;;  %v2594_v40 = vsel %vm2074_vm5, %v6471_v8, %v4037_v15 }
 0x138   : > { %v5095_v10 = vpop.eup %5094  ;;  %v2318_v14 = vmul.f32 1.442695, %v2186_v26  ;;  %v6541_v5 = vadd.f32 %v6362_v22, %v1685_v34  ;;  %4658 = vmatprep.mubr.msk.f32.mxu1 %vm2693_vm0, %v2594_v40  ;;  %v4040_v33 = vadd.f32 -1.0, %v5093_v13 }
 0x139   : > { %5104 = vpow2.f32 %v2320_v21  ;;  %v2189_v24 = vmin.f32 %v6537_v12, 0.0  ;;  %4659 = vmatmul.mubr.msk.f32.gmra.mrb[18].mxu1 %vm2693_vm0, %v2595_v20  ;;  %v4039_v27 = vadd.f32 -1.0, %v5095_v10  ;;  %vm2085_vm1 = vcmp.gt.f32.partialorder %v6537_v12, 0.0 }
 0x13a   : > { %5106 = vpow2.f32 %v2318_v14  ;;  %v2188_v8 = vmin.f32 %v6541_v5, 0.0  ;;  %v4506_v28 = vpop.f32.mrb[32].mxu0  ;;  %v2597_v51 = vsel %vm2077_vm8, %v6481_v38, %v4040_v33  ;;  %vm2084_vm15 = vcmp.gt.f32.partialorder %v6541_v5, 0.0 }
 0x13b   : > { %v5097_v11 = vpop.eup %5096  ;;  %v2324_v30 = vmul.f32 1.442695, %v2189_v24  ;;  %v6551_v25 = vadd.f32 %v4506_v28, %v6362_v22  ;;  %v1695_v3 = vpop.f32.mrb[33].mxu0  ;;  %v2596_v6 = vsel %vm2076_vm7, %v6485_v23, %v4039_v27 }
 0x13c   : > { %v5099_v32 = vpop.eup %5098  ;;  %v2322_v36 = vmul.f32 1.442695, %v2188_v8  ;;  %v6555_v56 = vadd.f32 %v6362_v22, %v1695_v3  ;;  %4661 = vmatprep.mubr.msk.f32.mxu1 %vm2693_vm0, %v2596_v6  ;;  %v4042_v31 = vadd.f32 -1.0, %v5097_v11 }
 0x13d   : > { %5108 = vpow2.f32 %v2324_v30  ;;  %v2191_v16 = vmin.f32 %v6551_v25, 0.0  ;;  %4662 = vmatmul.mubr.msk.f32.gmra.mrb[20].mxu1 %vm2693_vm0, %v2597_v51  ;;  %v4041_v57 = vadd.f32 -1.0, %v5099_v32  ;;  %vm2087_vm3 = vcmp.gt.f32.partialorder %v6551_v25, 0.0 }
 0x13e   : > { %5110 = vpow2.f32 %v2322_v36  ;;  %v2190_v23 = vmin.f32 %v6555_v56, 0.0  ;;  %v4509_v47 = vpop.f32.mrb[34].mxu0  ;;  %v2599_v59 = vsel %vm2079_vm10, %v6495_v29, %v4042_v31  ;;  %vm2086_vm2 = vcmp.gt.f32.partialorder %v6555_v56, 0.0 }
 0x13f   : > { %v5101_v44 = vpop.eup %5100  ;;  %v2328_v53 = vmul.f32 1.442695, %v2191_v16  ;;  %v6565_v39 = vadd.f32 %v4509_v47, %v6362_v22  ;;  %v1705_v38 = vpop.f32.mrb[35].mxu0  ;;  %v2598_v17 = vsel %vm2078_vm9, %v6499_v42, %v4041_v57 }
 0x140   : > { %v5103_v46 = vpop.eup %5102  ;;  %v2326_v49 = vmul.f32 1.442695, %v2190_v23  ;;  %v6569_v50 = vadd.f32 %v6362_v22, %v1705_v38  ;;  %4664 = vmatprep.mubr.msk.f32.mxu1 %vm2693_vm0, %v2598_v17  ;;  %v4044_v62 = vadd.f32 -1.0, %v5101_v44 }
 0x141   : > { %5112 = vpow2.f32 %v2328_v53  ;;  %v2193_v58 = vmin.f32 %v6565_v39, 0.0  ;;  %4665 = vmatmul.mubr.msk.f32.gmra.mrb[22].mxu1 %vm2693_vm0, %v2599_v59  ;;  %v4043_v61 = vadd.f32 -1.0, %v5103_v46  ;;  %vm2089_vm5 = vcmp.gt.f32.partialorder %v6565_v39, 0.0 }
 0x142   : > { %5114 = vpow2.f32 %v2326_v49  ;;  %v2192_v42 = vmin.f32 %v6569_v50, 0.0  ;;  %v4512_v4 = vpop.f32.mrb[36].mxu0  ;;  %v2601_v37 = vsel %vm2081_vm12, %v6509_v41, %v4044_v62  ;;  %vm2088_vm4 = vcmp.gt.f32.partialorder %v6569_v50, 0.0 }
 0x143   : > { %v5105_v63 = vpop.eup %5104  ;;  %v2332_v60 = vmul.f32 1.442695, %v2193_v58  ;;  %v6579_v43 = vadd.f32 %v4512_v4, %v6362_v22  ;;  %v1715_v29 = vpop.f32.mrb[37].mxu0  ;;  %v2600_v1 = vsel %vm2080_vm11, %v6513_v45, %v4043_v61 }
 0x144   : > { %v5107_v35 = vpop.eup %5106  ;;  %v2330_v0 = vmul.f32 1.442695, %v2192_v42  ;;  %v6583_v18 = vadd.f32 %v6362_v22, %v1715_v29  ;;  %4667 = vmatprep.mubr.msk.f32.mxu1 %vm2693_vm0, %v2600_v1  ;;  %v4046_v52 = vadd.f32 -1.0, %v5105_v63 }
 0x145   : > { %5116 = vpow2.f32 %v2332_v60  ;;  %v2195_v9 = vmin.f32 %v6579_v43, 0.0  ;;  %4668 = vmatmul.mubr.msk.f32.gmra.mrb[24].mxu1 %vm2693_vm0, %v2601_v37  ;;  %v4045_v7 = vadd.f32 -1.0, %v5107_v35  ;;  %vm2091_vm7 = vcmp.gt.f32.partialorder %v6579_v43, 0.0 }
 0x146   : > { %5118 = vpow2.f32 %v2330_v0  ;;  %v2194_v45 = vmin.f32 %v6583_v18, 0.0  ;;  %v4515_v54 = vpop.f32.mrb[38].mxu0  ;;  %v2603_v40 = vsel %vm2083_vm14, %v6523_v48, %v4046_v52  ;;  %vm2090_vm6 = vcmp.gt.f32.partialorder %v6583_v18, 0.0 }
 0x147   : > { %v5109_v19 = vpop.eup %5108  ;;  %v2336_v15 = vmul.f32 1.442695, %v2195_v9  ;;  %v6593_v26 = vadd.f32 %v4515_v54, %v6362_v22  ;;  %v1725_v41 = vpop.f32.mrb[39].mxu0  ;;  %v2602_v2 = vsel %vm2082_vm13, %v6527_v55, %v4045_v7 }
 0x148   : > { %v5111_v13 = vpop.eup %5110  ;;  %v2334_v21 = vmul.f32 1.442695, %v2194_v45  ;;  %v6597_v34 = vadd.f32 %v6362_v22, %v1725_v41  ;;  %4670 = vmatprep.mubr.msk.f32.mxu1 %vm2693_vm0, %v2602_v2  ;;  %v4048_v10 = vadd.f32 -1.0, %v5109_v19 }
 0x149   : > { %5120 = vpow2.f32 %v2336_v15  ;;  %v2197_v14 = vmin.f32 %v6593_v26, 0.0  ;;  %4671 = vmatmul.mubr.msk.f32.gmra.mrb[26].mxu1 %vm2693_vm0, %v2603_v40  ;;  %v4047_v20 = vadd.f32 -1.0, %v5111_v13  ;;  %vm2093_vm9 = vcmp.gt.f32.partialorder %v6593_v26, 0.0 }
 0x14a   : > { %5122 = vpow2.f32 %v2334_v21  ;;  %v2196_v55 = vmin.f32 %v6597_v34, 0.0  ;;  %v4518_v33 = vpop.f32.mrb[40].mxu0  ;;  %v2605_v6 = vsel %vm2085_vm1, %v6537_v12, %v4048_v10  ;;  %vm2092_vm8 = vcmp.gt.f32.partialorder %v6597_v34, 0.0 }
 0x14b   : > { %v5113_v24 = vpop.eup %5112  ;;  %v2340_v27 = vmul.f32 1.442695, %v2197_v14  ;;  %v6607_v8 = vadd.f32 %v4518_v33, %v6362_v22  ;;  %v1735_v48 = vpop.f32.mrb[41].mxu0  ;;  %v2604_v28 = vsel %vm2084_vm15, %v6541_v5, %v4047_v20 }
 0x14c   : > { %v5115_v11 = vpop.eup %5114  ;;  %v2338_v30 = vmul.f32 1.442695, %v2196_v55  ;;  %v6611_v3 = vadd.f32 %v6362_v22, %v1735_v48  ;;  %4673 = vmatprep.mubr.msk.f32.mxu1 %vm2693_vm0, %v2604_v28  ;;  %v4050_v32 = vadd.f32 -1.0, %v5113_v24 }
 0x14d   : > { %5124 = vpow2.f32 %v2340_v27  ;;  %v2199_v36 = vmin.f32 %v6607_v8, 0.0  ;;  %4674 = vmatmul.mubr.msk.f32.gmra.mrb[28].mxu1 %vm2693_vm0, %v2605_v6  ;;  %v4049_v51 = vadd.f32 -1.0, %v5115_v11  ;;  %vm2095_vm11 = vcmp.gt.f32.partialorder %v6607_v8, 0.0 }
 0x14e   : > { %5126 = vpow2.f32 %v2338_v30  ;;  %v2198_v5 = vmin.f32 %v6611_v3, 0.0  ;;  %v4521_v31 = vpop.f32.mrb[42].mxu0  ;;  %v2607_v17 = vsel %vm2087_vm3, %v6551_v25, %v4050_v32  ;;  %vm2094_vm10 = vcmp.gt.f32.partialorder %v6611_v3, 0.0 }
 0x14f   : > { %v5117_v16 = vpop.eup %5116  ;;  %v2344_v57 = vmul.f32 1.442695, %v2199_v36  ;;  %v6621_v23 = vadd.f32 %v4521_v31, %v6362_v22  ;;  %v1745_v12 = vpop.f32.mrb[43].mxu0  ;;  %v2606_v47 = vsel %vm2086_vm2, %v6555_v56, %v4049_v51 }
 0x150   : > { %v5119_v44 = vpop.eup %5118  ;;  %v2342_v53 = vmul.f32 1.442695, %v2198_v5  ;;  %v6625_v38 = vadd.f32 %v6362_v22, %v1745_v12  ;;  %4676 = vmatprep.mubr.msk.f32.mxu1 %vm2693_vm0, %v2606_v47  ;;  %v4052_v46 = vadd.f32 -1.0, %v5117_v16 }
 0x151   : > { %5128 = vpow2.f32 %v2344_v57  ;;  %v2201_v49 = vmin.f32 %v6621_v23, 0.0  ;;  %4677 = vmatmul.mubr.msk.f32.gmra.mrb[30].mxu1 %vm2693_vm0, %v2607_v17  ;;  %v4051_v59 = vadd.f32 -1.0, %v5119_v44  ;;  %vm2097_vm13 = vcmp.gt.f32.partialorder %v6621_v23, 0.0 }
 0x152   : > { %5130 = vpow2.f32 %v2342_v53  ;;  %v2200_v56 = vmin.f32 %v6625_v38, 0.0  ;;  %v4524_v62 = vpop.f32.mrb[44].mxu0  ;;  %v2609_v1 = vsel %vm2089_vm5, %v6565_v39, %v4052_v46  ;;  %vm2096_vm12 = vcmp.gt.f32.partialorder %v6625_v38, 0.0 }
 0x153   : > { %v5121_v58 = vpop.eup %5120  ;;  %v2348_v61 = vmul.f32 1.442695, %v2201_v49  ;;  %v6635_v42 = vadd.f32 %v4524_v62, %v6362_v22  ;;  %v1755_v25 = vpop.f32.mrb[45].mxu0  ;;  %v2608_v4 = vsel %vm2088_vm4, %v6569_v50, %v4051_v59 }
 0x154   : > { %v5123_v63 = vpop.eup %5122  ;;  %v2346_v60 = vmul.f32 1.442695, %v2200_v56  ;;  %v6639_v29 = vadd.f32 %v6362_v22, %v1755_v25  ;;  %4679 = vmatprep.mubr.msk.f32.mxu1 %vm2693_vm0, %v2608_v4  ;;  %v4054_v35 = vadd.f32 -1.0, %v5121_v58 }
 0x155   : > { %5132 = vpow2.f32 %v2348_v61  ;;  %v2203_v0 = vmin.f32 %v6635_v42, 0.0  ;;  %4680 = vmatmul.mubr.msk.f32.gmra.mrb[32].mxu1 %vm2693_vm0, %v2609_v1  ;;  %v4053_v37 = vadd.f32 -1.0, %v5123_v63  ;;  %vm2099_vm15 = vcmp.gt.f32.partialorder %v6635_v42, 0.0 }
 0x156   : > { %5134 = vpow2.f32 %v2346_v60  ;;  %v2202_v50 = vmin.f32 %v6639_v29, 0.0  ;;  %v4527_v52 = vpop.f32.mrb[46].mxu0  ;;  %v2611_v2 = vsel %vm2091_vm7, %v6579_v43, %v4054_v35  ;;  %vm2098_vm14 = vcmp.gt.f32.partialorder %v6639_v29, 0.0 }
 0x157   : > { %v5125_v9 = vpop.eup %5124  ;;  %v2352_v7 = vmul.f32 1.442695, %v2203_v0  ;;  %v6649_v45 = vadd.f32 %v4527_v52, %v6362_v22  ;;  %v1765_v39 = vpop.f32.mrb[47].mxu0  ;;  %v2610_v54 = vsel %vm2090_vm6, %v6583_v18, %v4053_v37 }
 0x158   : > { %v5127_v19 = vpop.eup %5126  ;;  %v2350_v15 = vmul.f32 1.442695, %v2202_v50  ;;  %v6653_v41 = vadd.f32 %v6362_v22, %v1765_v39  ;;  %4682 = vmatprep.mubr.msk.f32.mxu1 %vm2693_vm0, %v2610_v54  ;;  %v4056_v13 = vadd.f32 -1.0, %v5125_v9 }
 0x159   : > { %5136 = vpow2.f32 %v2352_v7  ;;  %v2205_v21 = vmin.f32 %v6649_v45, 0.0  ;;  %4683 = vmatmul.mubr.msk.f32.gmra.mrb[34].mxu1 %vm2693_vm0, %v2611_v2  ;;  %v4055_v40 = vadd.f32 -1.0, %v5127_v19  ;;  %vm2101_vm2 = vcmp.gt.f32.partialorder %v6649_v45, 0.0 }
 0x15a   : > { %5138 = vpow2.f32 %v2350_v15  ;;  %v2204_v18 = vmin.f32 %v6653_v41, 0.0  ;;  %v4530_v10 = vpop.f32.mrb[48].mxu0  ;;  %v2613_v28 = vsel %vm2093_vm9, %v6593_v26, %v4056_v13  ;;  %vm2100_vm1 = vcmp.gt.f32.partialorder %v6653_v41, 0.0 }
 0x15b   : > { %v5129_v14 = vpop.eup %5128  ;;  %v2356_v20 = vmul.f32 1.442695, %v2205_v21  ;;  %v6663_v55 = vadd.f32 %v4530_v10, %v6362_v22  ;;  %v1775_v43 = vpop.f32.mrb[49].mxu0  ;;  %v2612_v33 = vsel %vm2092_vm8, %v6597_v34, %v4055_v40 }
 0x15c   : > { %v5131_v24 = vpop.eup %5130  ;;  %v2354_v27 = vmul.f32 1.442695, %v2204_v18  ;;  %v6667_v48 = vadd.f32 %v6362_v22, %v1775_v43  ;;  %4685 = vmatprep.mubr.msk.f32.mxu1 %vm2693_vm0, %v2612_v33  ;;  %v4058_v11 = vadd.f32 -1.0, %v5129_v14 }
 0x15d   : > { %5140 = vpow2.f32 %v2356_v20  ;;  %v2207_v30 = vmin.f32 %v6663_v55, 0.0  ;;  %4686 = vmatmul.mubr.msk.f32.gmra.mrb[36].mxu1 %vm2693_vm0, %v2613_v28  ;;  %v4057_v6 = vadd.f32 -1.0, %v5131_v24  ;;  %vm2103_vm4 = vcmp.gt.f32.partialorder %v6663_v55, 0.0 }
 0x15e   : > { %5142 = vpow2.f32 %v2354_v27  ;;  %v2206_v34 = vmin.f32 %v6667_v48, 0.0  ;;  %v4533_v32 = vpop.f32.mrb[50].mxu0  ;;  %v2615_v47 = vsel %vm2095_vm11, %v6607_v8, %v4058_v11  ;;  %vm2102_vm3 = vcmp.gt.f32.partialorder %v6667_v48, 0.0 }
 0x15f   : > { %v5133_v36 = vpop.eup %5132  ;;  %v2360_v51 = vmul.f32 1.442695, %v2207_v30  ;;  %v6677_v5 = vadd.f32 %v4533_v32, %v6362_v22  ;;  %v1785_v26 = vpop.f32.mrb[51].mxu0  ;;  %v2614_v31 = vsel %vm2094_vm10, %v6611_v3, %v4057_v6 }
 0x160   : > { %v5135_v16 = vpop.eup %5134  ;;  %v2358_v57 = vmul.f32 1.442695, %v2206_v34  ;;  %v6681_v12 = vadd.f32 %v6362_v22, %v1785_v26  ;;  %4688 = vmatprep.mubr.msk.f32.mxu1 %vm2693_vm0, %v2614_v31  ;;  %v4060_v44 = vadd.f32 -1.0, %v5133_v36 }
 0x161   : > { %5144 = vpow2.f32 %v2360_v51  ;;  %v2209_v53 = vmin.f32 %v6677_v5, 0.0  ;;  %4689 = vmatmul.mubr.msk.f32.gmra.mrb[38].mxu1 %vm2693_vm0, %v2615_v47  ;;  %v4059_v17 = vadd.f32 -1.0, %v5135_v16  ;;  %vm2105_vm6 = vcmp.gt.f32.partialorder %v6677_v5, 0.0 }
 0x162   : > { %5146 = vpow2.f32 %v2358_v57  ;;  %v2208_v3 = vmin.f32 %v6681_v12, 0.0  ;;  %v4536_v46 = vpop.f32.mrb[52].mxu0  ;;  %v2617_v4 = vsel %vm2097_vm13, %v6621_v23, %v4060_v44  ;;  %vm2104_vm5 = vcmp.gt.f32.partialorder %v6681_v12, 0.0 }
 0x163   : > { %v5137_v49 = vpop.eup %5136  ;;  %v2364_v59 = vmul.f32 1.442695, %v2209_v53  ;;  %v6691_v56 = vadd.f32 %v4536_v46, %v6362_v22  ;;  %v1795_v8 = vpop.f32.mrb[53].mxu0  ;;  %v2616_v62 = vsel %vm2096_vm12, %v6625_v38, %v4059_v17 }
 0x164   : > { %v5139_v58 = vpop.eup %5138  ;;  %v2362_v61 = vmul.f32 1.442695, %v2208_v3  ;;  %v6695_v25 = vadd.f32 %v6362_v22, %v1795_v8  ;;  %4691 = vmatprep.mubr.msk.f32.mxu1 %vm2693_vm0, %v2616_v62  ;;  %v4062_v63 = vadd.f32 -1.0, %v5137_v49 }
 0x165   : > { %5148 = vpow2.f32 %v2364_v59  ;;  %v2211_v60 = vmin.f32 %v6691_v56, 0.0  ;;  %4692 = vmatmul.mubr.msk.f32.gmra.mrb[40].mxu1 %vm2693_vm0, %v2617_v4  ;;  %v4061_v1 = vadd.f32 -1.0, %v5139_v58  ;;  %vm2107_vm8 = vcmp.gt.f32.partialorder %v6691_v56, 0.0 }
 0x166   : > { %5150 = vpow2.f32 %v2362_v61  ;;  %v2210_v38 = vmin.f32 %v6695_v25, 0.0  ;;  %v4539_v35 = vpop.f32.mrb[54].mxu0  ;;  %v2619_v54 = vsel %vm2099_vm15, %v6635_v42, %v4062_v63  ;;  %v6721_v42 = vld [vmem:[%s7418_s3] ss:$0 sm:$0xff]  ;;  %vm2106_vm7 = vcmp.gt.f32.partialorder %v6695_v25, 0.0 }
 0x167   : > { %v5141_v0 = vpop.eup %5140  ;;  %v2368_v37 = vmul.f32 1.442695, %v2211_v60  ;;  %v6705_v50 = vadd.f32 %v4539_v35, %v6362_v22  ;;  %v1805_v23 = vpop.f32.mrb[55].mxu0  ;;  %v2618_v52 = vsel %vm2098_vm14, %v6639_v29, %v4061_v1 }
 0x168   : > { %v5143_v9 = vpop.eup %5142  ;;  %v2366_v7 = vmul.f32 1.442695, %v2210_v38  ;;  %v6709_v39 = vadd.f32 %v6362_v22, %v1805_v23  ;;  %4694 = vmatprep.mubr.msk.f32.mxu1 %vm2693_vm0, %v2618_v52  ;;  %v4064_v19 = vadd.f32 -1.0, %v5141_v0 }
 0x169   : > { %5152 = vpow2.f32 %v2368_v37  ;;  %v2213_v15 = vmin.f32 %v6705_v50, 0.0  ;;  %4695 = vmatmul.mubr.msk.f32.gmra.mrb[42].mxu1 %vm2693_vm0, %v2619_v54  ;;  %v4063_v2 = vadd.f32 -1.0, %v5143_v9  ;;  %vm2109_vm10 = vcmp.gt.f32.partialorder %v6705_v50, 0.0 }
 0x16a   : > { %5154 = vpow2.f32 %v2366_v7  ;;  %v2212_v29 = vmin.f32 %v6709_v39, 0.0  ;;  %v4542_v13 = vpop.f32.mrb[56].mxu0  ;;  %v2621_v33 = vsel %vm2101_vm2, %v6649_v45, %v4064_v19  ;;  %vm2108_vm9 = vcmp.gt.f32.partialorder %v6709_v39, 0.0 }
 0x16b   : > { %v5145_v21 = vpop.eup %5144  ;;  %v2372_v22 = vmul.f32 1.442695, %v2213_v15  ;;  %v6724_v40 = vadd.f32 %v6721_v42, %v4542_v13  ;;  %v1815_v18 = vpop.f32.mrb[57].mxu0  ;;  %v2620_v10 = vsel %vm2100_vm1, %v6653_v41, %v4063_v2 }
 0x16c   : > { %v5147_v14 = vpop.eup %5146  ;;  %v2370_v20 = vmul.f32 1.442695, %v2212_v29  ;;  %v6728_v43 = vadd.f32 %v6721_v42, %v1815_v18  ;;  %4697 = vmatprep.mubr.msk.f32.mxu1 %vm2693_vm0, %v2620_v10  ;;  %v4066_v24 = vadd.f32 -1.0, %v5145_v21 }
 0x16d   : > { %5156 = vpow2.f32 %v2372_v22  ;;  %v2215_v27 = vmin.f32 %v6724_v40, 0.0  ;;  %4698 = vmatmul.mubr.msk.f32.gmra.mrb[44].mxu1 %vm2693_vm0, %v2621_v33  ;;  %v4065_v28 = vadd.f32 -1.0, %v5147_v14  ;;  %vm2111_vm12 = vcmp.gt.f32.partialorder %v6724_v40, 0.0 }
 0x16e   : > { %5158 = vpow2.f32 %v2370_v20  ;;  %v2214_v41 = vmin.f32 %v6728_v43, 0.0  ;;  %v4545_v11 = vpop.f32.mrb[58].mxu0  ;;  %v2623_v31 = vsel %vm2103_vm4, %v6663_v55, %v4066_v24  ;;  %vm2110_vm11 = vcmp.gt.f32.partialorder %v6728_v43, 0.0 }
 0x16f   : > { %v5149_v30 = vpop.eup %5148  ;;  %v2376_v6 = vmul.f32 1.442695, %v2215_v27  ;;  %v6738_v34 = vadd.f32 %v6721_v42, %v4545_v11  ;;  %v1825_v45 = vpop.f32.mrb[59].mxu0  ;;  %v2622_v32 = vsel %vm2102_vm3, %v6667_v48, %v4065_v28 }
 0x170   : > { %v5151_v36 = vpop.eup %5150  ;;  %v2374_v51 = vmul.f32 1.442695, %v2214_v41  ;;  %v6742_v26 = vadd.f32 %v6721_v42, %v1825_v45  ;;  %4700 = vmatprep.mubr.msk.f32.mxu1 %vm2693_vm0, %v2622_v32  ;;  %v4068_v16 = vadd.f32 -1.0, %v5149_v30 }
 0x171   : > { %5160 = vpow2.f32 %v2376_v6  ;;  %v2217_v57 = vmin.f32 %v6738_v34, 0.0  ;;  %4701 = vmatmul.mubr.msk.f32.gmra.mrb[46].mxu1 %vm2693_vm0, %v2623_v31  ;;  %v4067_v47 = vadd.f32 -1.0, %v5151_v36  ;;  %vm2113_vm14 = vcmp.gt.f32.partialorder %v6738_v34, 0.0 }
 0x172   : > { %5162 = vpow2.f32 %v2374_v51  ;;  %v2216_v48 = vmin.f32 %v6742_v26, 0.0  ;;  %v4548_v44 = vpop.f32.mrb[60].mxu0  ;;  %v2625_v62 = vsel %vm2105_vm6, %v6677_v5, %v4068_v16  ;;  %vm2112_vm13 = vcmp.gt.f32.partialorder %v6742_v26, 0.0 }
 0x173   : > { %v5153_v53 = vpop.eup %5152  ;;  %v2380_v17 = vmul.f32 1.442695, %v2217_v57  ;;  %v6752_v3 = vadd.f32 %v6721_v42, %v4548_v44  ;;  %v1835_v55 = vpop.f32.mrb[61].mxu0  ;;  %v2624_v46 = vsel %vm2104_vm5, %v6681_v12, %v4067_v47 }
 0x174   : > { %v5155_v49 = vpop.eup %5154  ;;  %v2378_v59 = vmul.f32 1.442695, %v2216_v48  ;;  %v6756_v8 = vadd.f32 %v6721_v42, %v1835_v55  ;;  %4703 = vmatprep.mubr.msk.f32.mxu1 %vm2693_vm0, %v2624_v46  ;;  %v4070_v58 = vadd.f32 -1.0, %v5153_v53 }
 0x175   : > { %5164 = vpow2.f32 %v2380_v17  ;;  %v2219_v61 = vmin.f32 %v6752_v3, 0.0  ;;  %4704 = vmatmul.mubr.msk.f32.gmra.mrb[48].mxu1 %vm2693_vm0, %v2625_v62  ;;  %v4069_v4 = vadd.f32 -1.0, %v5155_v49  ;;  %vm2115_vm1 = vcmp.gt.f32.partialorder %v6752_v3, 0.0 }
 0x176   : > { %5166 = vpow2.f32 %v2378_v59  ;;  %v2218_v12 = vmin.f32 %v6756_v8, 0.0  ;;  %v4551_v63 = vpop.f32.mrb[62].mxu0  ;;  %v2627_v52 = vsel %vm2107_vm8, %v6691_v56, %v4070_v58  ;;  %vm2114_vm15 = vcmp.gt.f32.partialorder %v6756_v8, 0.0 }
 0x177   : > { %v5157_v60 = vpop.eup %5156  ;;  %v2384_v1 = vmul.f32 1.442695, %v2219_v61  ;;  %v6766_v38 = vadd.f32 %v6721_v42, %v4551_v63  ;;  %v1845_v5 = vpop.f32.mrb[63].mxu0  ;;  %v2626_v35 = vsel %vm2106_vm7, %v6695_v25, %v4069_v4 }
 0x178   : > { %v5159_v0 = vpop.eup %5158  ;;  %v2382_v37 = vmul.f32 1.442695, %v2218_v12  ;;  %v6770_v23 = vadd.f32 %v6721_v42, %v1845_v5  ;;  %4706 = vmatprep.mubr.msk.f32.mxu1 %vm2693_vm0, %v2626_v35  ;;  %v4072_v9 = vadd.f32 -1.0, %v5157_v60 }
 0x179   : > { %5168 = vpow2.f32 %v2384_v1  ;;  %v2221_v7 = vmin.f32 %v6766_v38, 0.0  ;;  %4707 = vmatmul.mubr.msk.f32.gmra.mrb[50].mxu1 %vm2693_vm0, %v2627_v52  ;;  %v4071_v54 = vadd.f32 -1.0, %v5159_v0  ;;  %vm2117_vm3 = vcmp.gt.f32.partialorder %v6766_v38, 0.0 }
 0x17a   : > { %5170 = vpow2.f32 %v2382_v37  ;;  %v2220_v25 = vmin.f32 %v6770_v23, 0.0  ;;  %v4554_v19 = vpop.f32.mrb[64].mxu0  ;;  %v2629_v10 = vsel %vm2109_vm10, %v6705_v50, %v4072_v9  ;;  %vm2116_vm2 = vcmp.gt.f32.partialorder %v6770_v23, 0.0 }
 0x17b   : > { %v5161_v15 = vpop.eup %5160  ;;  %v2388_v2 = vmul.f32 1.442695, %v2221_v7  ;;  %v6780_v29 = vadd.f32 %v6721_v42, %v4554_v19  ;;  %v1855_v56 = vpop.f32.mrb[65].mxu0  ;;  %v2628_v13 = vsel %vm2108_vm9, %v6709_v39, %v4071_v54 }
 0x17c   : > { %v5163_v21 = vpop.eup %5162  ;;  %v2386_v22 = vmul.f32 1.442695, %v2220_v25  ;;  %v6784_v18 = vadd.f32 %v6721_v42, %v1855_v56  ;;  %4709 = vmatprep.mubr.msk.f32.mxu1 %vm2693_vm0, %v2628_v13  ;;  %v4074_v14 = vadd.f32 -1.0, %v5161_v15 }
 0x17d   : > { %5172 = vpow2.f32 %v2388_v2  ;;  %v2223_v20 = vmin.f32 %v6780_v29, 0.0  ;;  %4710 = vmatmul.mubr.msk.f32.gmra.mrb[52].mxu1 %vm2693_vm0, %v2629_v10  ;;  %v4073_v33 = vadd.f32 -1.0, %v5163_v21  ;;  %vm2119_vm5 = vcmp.gt.f32.partialorder %v6780_v29, 0.0 }
 0x17e   : > { %5174 = vpow2.f32 %v2386_v22  ;;  %v2222_v39 = vmin.f32 %v6784_v18, 0.0  ;;  %v4557_v24 = vpop.f32.mrb[66].mxu0  ;;  %v2631_v32 = vsel %vm2111_vm12, %v6724_v40, %v4074_v14  ;;  %vm2118_vm4 = vcmp.gt.f32.partialorder %v6784_v18, 0.0 }
 0x17f   : > { %v5165_v27 = vpop.eup %5164  ;;  %v2392_v28 = vmul.f32 1.442695, %v2223_v20  ;;  %v6794_v41 = vadd.f32 %v6721_v42, %v4557_v24  ;;  %v1865_v50 = vpop.f32.mrb[67].mxu0  ;;  %v2630_v11 = vsel %vm2110_vm11, %v6728_v43, %v4073_v33 }
 0x180   : > { %v5167_v30 = vpop.eup %5166  ;;  %v2390_v6 = vmul.f32 1.442695, %v2222_v39  ;;  %v6798_v45 = vadd.f32 %v6721_v42, %v1865_v50  ;;  %4712 = vmatprep.mubr.msk.f32.mxu1 %vm2693_vm0, %v2630_v11  ;;  %v4076_v36 = vadd.f32 -1.0, %v5165_v27 }
 0x181   : > { %5176 = vpow2.f32 %v2392_v28  ;;  %v2225_v51 = vmin.f32 %v6794_v41, 0.0  ;;  %4713 = vmatmul.mubr.msk.f32.gmra.mrb[54].mxu1 %vm2693_vm0, %v2631_v32  ;;  %v4075_v31 = vadd.f32 -1.0, %v5167_v30  ;;  %vm2121_vm7 = vcmp.gt.f32.partialorder %v6794_v41, 0.0 }
 0x182   : > { %5178 = vpow2.f32 %v2390_v6  ;;  %v2224_v43 = vmin.f32 %v6798_v45, 0.0  ;;  %v4560_v16 = vpop.f32.mrb[68].mxu0  ;;  %v2633_v46 = vsel %vm2113_vm14, %v6738_v34, %v4076_v36  ;;  %vm2120_vm6 = vcmp.gt.f32.partialorder %v6798_v45, 0.0 }
 0x183   : > { %v5169_v57 = vpop.eup %5168  ;;  %v2396_v47 = vmul.f32 1.442695, %v2225_v51  ;;  %v6808_v48 = vadd.f32 %v6721_v42, %v4560_v16  ;;  %v1875_v40 = vpop.f32.mrb[69].mxu0  ;;  %v2632_v44 = vsel %vm2112_vm13, %v6742_v26, %v4075_v31 }
 0x184   : > { %v5171_v53 = vpop.eup %5170  ;;  %v2394_v17 = vmul.f32 1.442695, %v2224_v43  ;;  %v6812_v55 = vadd.f32 %v6721_v42, %v1875_v40  ;;  %4715 = vmatprep.mubr.msk.f32.mxu1 %vm2693_vm0, %v2632_v44  ;;  %v4078_v49 = vadd.f32 -1.0, %v5169_v57 }
 0x185   : > { %5180 = vpow2.f32 %v2396_v47  ;;  %v2227_v59 = vmin.f32 %v6808_v48, 0.0  ;;  %4716 = vmatmul.mubr.msk.f32.gmra.mrb[56].mxu1 %vm2693_vm0, %v2633_v46  ;;  %v4077_v62 = vadd.f32 -1.0, %v5171_v53  ;;  %vm2123_vm9 = vcmp.gt.f32.partialorder %v6808_v48, 0.0 }
 0x186   : > { %5182 = vpow2.f32 %v2394_v17  ;;  %v2226_v26 = vmin.f32 %v6812_v55, 0.0  ;;  %v4563_v58 = vpop.f32.mrb[70].mxu0  ;;  %v2635_v35 = vsel %vm2115_vm1, %v6752_v3, %v4078_v49  ;;  %vm2122_vm8 = vcmp.gt.f32.partialorder %v6812_v55, 0.0 }
 0x187   : > { %v5173_v61 = vpop.eup %5172  ;;  %v2400_v4 = vmul.f32 1.442695, %v2227_v59  ;;  %v6822_v12 = vadd.f32 %v6721_v42, %v4563_v58  ;;  %v1885_v34 = vpop.f32.mrb[71].mxu0  ;;  %v2634_v63 = vsel %vm2114_vm15, %v6756_v8, %v4077_v62 }
 0x188   : > { %v5175_v60 = vpop.eup %5174  ;;  %v2398_v1 = vmul.f32 1.442695, %v2226_v26  ;;  %v6826_v5 = vadd.f32 %v6721_v42, %v1885_v34  ;;  %4718 = vmatprep.mubr.msk.f32.mxu1 %vm2693_vm0, %v2634_v63  ;;  %v4080_v0 = vadd.f32 -1.0, %v5173_v61 }
 0x189   : > { %5184 = vpow2.f32 %v2400_v4  ;;  %v2229_v37 = vmin.f32 %v6822_v12, 0.0  ;;  %4719 = vmatmul.mubr.msk.f32.gmra.mrb[58].mxu1 %vm2693_vm0, %v2635_v35  ;;  %v4079_v52 = vadd.f32 -1.0, %v5175_v60  ;;  %vm2125_vm11 = vcmp.gt.f32.partialorder %v6822_v12, 0.0 }
 0x18a   : > { %5186 = vpow2.f32 %v2398_v1  ;;  %v2228_v8 = vmin.f32 %v6826_v5, 0.0  ;;  %v4566_v9 = vpop.f32.mrb[72].mxu0  ;;  %v2637_v13 = vsel %vm2117_vm3, %v6766_v38, %v4080_v0  ;;  %vm2124_vm10 = vcmp.gt.f32.partialorder %v6826_v5, 0.0 }
 0x18b   : > { %v5177_v7 = vpop.eup %5176  ;;  %v2404_v54 = vmul.f32 1.442695, %v2229_v37  ;;  %v6836_v25 = vadd.f32 %v6721_v42, %v4566_v9  ;;  %v1895_v3 = vpop.f32.mrb[73].mxu0  ;;  %v2636_v19 = vsel %vm2116_vm2, %v6770_v23, %v4079_v52 }
 0x18c   : > { %v5179_v15 = vpop.eup %5178  ;;  %v2402_v2 = vmul.f32 1.442695, %v2228_v8  ;;  %v6840_v56 = vadd.f32 %v6721_v42, %v1895_v3  ;;  %4721 = vmatprep.mubr.msk.f32.mxu1 %vm2693_vm0, %v2636_v19  ;;  %v4082_v21 = vadd.f32 -1.0, %v5177_v7 }
 0x18d   : > { %5188 = vpow2.f32 %v2404_v54  ;;  %v2231_v22 = vmin.f32 %v6836_v25, 0.0  ;;  %4722 = vmatmul.mubr.msk.f32.gmra.mrb[60].mxu1 %vm2693_vm0, %v2637_v13  ;;  %v4081_v10 = vadd.f32 -1.0, %v5179_v15  ;;  %vm2127_vm13 = vcmp.gt.f32.partialorder %v6836_v25, 0.0 }
 0x18e   : > { %5190 = vpow2.f32 %v2402_v2  ;;  %v2230_v23 = vmin.f32 %v6840_v56, 0.0  ;;  %v4569_v14 = vpop.f32.mrb[74].mxu0  ;;  %v2639_v11 = vsel %vm2119_vm5, %v6780_v29, %v4082_v21  ;;  %vm2126_vm12 = vcmp.gt.f32.partialorder %v6840_v56, 0.0 }
 0x18f   : > { %v5181_v20 = vpop.eup %5180  ;;  %v2408_v33 = vmul.f32 1.442695, %v2231_v22  ;;  %v6850_v39 = vadd.f32 %v6721_v42, %v4569_v14  ;;  %v1905_v38 = vpop.f32.mrb[75].mxu0  ;;  %v2638_v24 = vsel %vm2118_vm4, %v6784_v18, %v4081_v10 }
 0x190   : > { %v5183_v27 = vpop.eup %5182  ;;  %v2406_v28 = vmul.f32 1.442695, %v2230_v23  ;;  %v6854_v50 = vadd.f32 %v6721_v42, %v1905_v38  ;;  %4724 = vmatprep.mubr.msk.f32.mxu1 %vm2693_vm0, %v2638_v24  ;;  %v4084_v30 = vadd.f32 -1.0, %v5181_v20 }
 0x191   : > { %5192 = vpow2.f32 %v2408_v33  ;;  %v2233_v6 = vmin.f32 %v6850_v39, 0.0  ;;  %4725 = vmatmul.mubr.msk.f32.gmra.mrb[62].mxu1 %vm2693_vm0, %v2639_v11  ;;  %v4083_v32 = vadd.f32 -1.0, %v5183_v27  ;;  %vm2129_vm15 = vcmp.gt.f32.partialorder %v6850_v39, 0.0 }
 0x192   : > { %5194 = vpow2.f32 %v2406_v28  ;;  %v2232_v18 = vmin.f32 %v6854_v50, 0.0  ;;  %v4572_v36 = vpop.f32.mrb[76].mxu0  ;;  %v2641_v44 = vsel %vm2121_vm7, %v6794_v41, %v4084_v30  ;;  %vm2128_vm14 = vcmp.gt.f32.partialorder %v6854_v50, 0.0 }
 0x193   : > { %v5185_v51 = vpop.eup %5184  ;;  %v2412_v31 = vmul.f32 1.442695, %v2233_v6  ;;  %v6864_v43 = vadd.f32 %v6721_v42, %v4572_v36  ;;  %v1915_v29 = vpop.f32.mrb[77].mxu0  ;;  %v2640_v16 = vsel %vm2120_vm6, %v6798_v45, %v4083_v32 }
 0x194   : > { %v5187_v57 = vpop.eup %5186  ;;  %v2410_v47 = vmul.f32 1.442695, %v2232_v18  ;;  %v6868_v40 = vadd.f32 %v6721_v42, %v1915_v29  ;;  %4727 = vmatprep.mubr.msk.f32.mxu1 %vm2693_vm0, %v2640_v16  ;;  %v4086_v53 = vadd.f32 -1.0, %v5185_v51 }
 0x195   : > { %5196 = vpow2.f32 %v2412_v31  ;;  %v2235_v17 = vmin.f32 %v6864_v43, 0.0  ;;  %4728 = vmatmul.mubr.msk.f32.gmra.mrb[64].mxu1 %vm2693_vm0, %v2641_v44  ;;  %v4085_v46 = vadd.f32 -1.0, %v5187_v57  ;;  %vm2131_vm2 = vcmp.gt.f32.partialorder %v6864_v43, 0.0 }
 0x196   : > { %5198 = vpow2.f32 %v2410_v47  ;;  %v2234_v45 = vmin.f32 %v6868_v40, 0.0  ;;  %v4575_v49 = vpop.f32.mrb[78].mxu0  ;;  %v2643_v63 = vsel %vm2123_vm9, %v6808_v48, %v4086_v53  ;;  %vm2130_vm1 = vcmp.gt.f32.partialorder %v6868_v40, 0.0 }
 0x197   : > { %v5189_v59 = vpop.eup %5188  ;;  %v2416_v62 = vmul.f32 1.442695, %v2235_v17  ;;  %v6878_v26 = vadd.f32 %v6721_v42, %v4575_v49  ;;  %v1925_v41 = vpop.f32.mrb[79].mxu0  ;;  %v2642_v58 = vsel %vm2122_vm8, %v6812_v55, %v4085_v46 }
 0x198   : > { %v5191_v61 = vpop.eup %5190  ;;  %v2414_v4 = vmul.f32 1.442695, %v2234_v45  ;;  %v6882_v34 = vadd.f32 %v6721_v42, %v1925_v41  ;;  %4730 = vmatprep.mubr.msk.f32.mxu1 %vm2693_vm0, %v2642_v58  ;;  %v4088_v60 = vadd.f32 -1.0, %v5189_v59 }
 0x199   : > { %5200 = vpow2.f32 %v2416_v62  ;;  %v2237_v1 = vmin.f32 %v6878_v26, 0.0  ;;  %4731 = vmatmul.mubr.msk.f32.gmra.mrb[66].mxu1 %vm2693_vm0, %v2643_v63  ;;  %v4087_v35 = vadd.f32 -1.0, %v5191_v61  ;;  %vm2133_vm4 = vcmp.gt.f32.partialorder %v6878_v26, 0.0 }
 0x19a   : > { %5202 = vpow2.f32 %v2414_v4  ;;  %v2236_v55 = vmin.f32 %v6882_v34, 0.0  ;;  %v4578_v0 = vpop.f32.mrb[80].mxu0  ;;  %v2645_v19 = vsel %vm2125_vm11, %v6822_v12, %v4088_v60  ;;  %vm2132_vm3 = vcmp.gt.f32.partialorder %v6882_v34, 0.0 }
 0x19b   : > { %v5193_v37 = vpop.eup %5192  ;;  %v2420_v52 = vmul.f32 1.442695, %v2237_v1  ;;  %v6892_v8 = vadd.f32 %v6721_v42, %v4578_v0  ;;  %v1935_v48 = vpop.f32.mrb[81].mxu0  ;;  %v2644_v9 = vsel %vm2124_vm10, %v6826_v5, %v4087_v35 }
 0x19c   : > { %v5195_v7 = vpop.eup %5194  ;;  %v2418_v54 = vmul.f32 1.442695, %v2236_v55  ;;  %v6896_v3 = vadd.f32 %v6721_v42, %v1935_v48  ;;  %4733 = vmatprep.mubr.msk.f32.mxu1 %vm2693_vm0, %v2644_v9  ;;  %v4090_v15 = vadd.f32 -1.0, %v5193_v37 }
 0x19d   : > { %5204 = vpow2.f32 %v2420_v52  ;;  %v2239_v2 = vmin.f32 %v6892_v8, 0.0  ;;  %4734 = vmatmul.mubr.msk.f32.gmra.mrb[68].mxu1 %vm2693_vm0, %v2645_v19  ;;  %v4089_v13 = vadd.f32 -1.0, %v5195_v7  ;;  %vm2135_vm6 = vcmp.gt.f32.partialorder %v6892_v8, 0.0 }
 0x19e   : > { %5206 = vpow2.f32 %v2418_v54  ;;  %v2238_v5 = vmin.f32 %v6896_v3, 0.0  ;;  %v4581_v21 = vpop.f32.mrb[82].mxu0  ;;  %v2647_v24 = vsel %vm2127_vm13, %v6836_v25, %v4090_v15  ;;  %vm2134_vm5 = vcmp.gt.f32.partialorder %v6896_v3, 0.0 }
 0x19f   : > { %v5197_v22 = vpop.eup %5196  ;;  %v2424_v10 = vmul.f32 1.442695, %v2239_v2  ;;  %v6906_v23 = vadd.f32 %v6721_v42, %v4581_v21  ;;  %v1945_v12 = vpop.f32.mrb[83].mxu0  ;;  %v2646_v14 = vsel %vm2126_vm12, %v6840_v56, %v4089_v13 }
 0x1a0   : > { %v5199_v20 = vpop.eup %5198  ;;  %v2422_v33 = vmul.f32 1.442695, %v2238_v5  ;;  %v6910_v38 = vadd.f32 %v6721_v42, %v1945_v12  ;;  %4736 = vmatprep.mubr.msk.f32.mxu1 %vm2693_vm0, %v2646_v14  ;;  %v4092_v27 = vadd.f32 -1.0, %v5197_v22 }
 0x1a1   : > { %5208 = vpow2.f32 %v2424_v10  ;;  %v2241_v28 = vmin.f32 %v6906_v23, 0.0  ;;  %4737 = vmatmul.mubr.msk.f32.gmra.mrb[70].mxu1 %vm2693_vm0, %v2647_v24  ;;  %v4091_v11 = vadd.f32 -1.0, %v5199_v20  ;;  %vm2137_vm8 = vcmp.gt.f32.partialorder %v6906_v23, 0.0 }
 0x1a2   : > { %5210 = vpow2.f32 %v2422_v33  ;;  %v2240_v56 = vmin.f32 %v6910_v38, 0.0  ;;  %v4584_v30 = vpop.f32.mrb[84].mxu0  ;;  %v2649_v16 = vsel %vm2129_vm15, %v6850_v39, %v4092_v27  ;;  %vm2136_vm7 = vcmp.gt.f32.partialorder %v6910_v38, 0.0 }
 0x1a3   : > { %v5201_v6 = vpop.eup %5200  ;;  %v2428_v32 = vmul.f32 1.442695, %v2241_v28  ;;  %v6920_v18 = vadd.f32 %v6721_v42, %v4584_v30  ;;  %v1955_v25 = vpop.f32.mrb[85].mxu0  ;;  %v2648_v36 = vsel %vm2128_vm14, %v6854_v50, %v4091_v11 }
 0x1a4   : > { %v5203_v51 = vpop.eup %5202  ;;  %v2426_v31 = vmul.f32 1.442695, %v2240_v56  ;;  %v6924_v29 = vadd.f32 %v6721_v42, %v1955_v25  ;;  %4739 = vmatprep.mubr.msk.f32.mxu1 %vm2693_vm0, %v2648_v36  ;;  %v4094_v57 = vadd.f32 -1.0, %v5201_v6 }
 0x1a5   : > { %5212 = vpow2.f32 %v2428_v32  ;;  %v2243_v47 = vmin.f32 %v6920_v18, 0.0  ;;  %4740 = vmatmul.mubr.msk.f32.gmra.mrb[72].mxu1 %vm2693_vm0, %v2649_v16  ;;  %v4093_v44 = vadd.f32 -1.0, %v5203_v51  ;;  %vm2139_vm10 = vcmp.gt.f32.partialorder %v6920_v18, 0.0 }
 0x1a6   : > { %5214 = vpow2.f32 %v2426_v31  ;;  %v2242_v50 = vmin.f32 %v6924_v29, 0.0  ;;  %v4587_v53 = vpop.f32.mrb[86].mxu0  ;;  %v2651_v58 = vsel %vm2131_vm2, %v6864_v43, %v4094_v57  ;;  %vm2138_vm9 = vcmp.gt.f32.partialorder %v6924_v29, 0.0 }
 0x1a7   : > { %v5205_v17 = vpop.eup %5204  ;;  %v2432_v46 = vmul.f32 1.442695, %v2243_v47  ;;  %v6934_v45 = vadd.f32 %v6721_v42, %v4587_v53  ;;  %v1965_v39 = vpop.f32.mrb[87].mxu0  ;;  %v2650_v49 = vsel %vm2130_vm1, %v6868_v40, %v4093_v44 }
 0x1a8   : > { %v5207_v59 = vpop.eup %5206  ;;  %v2430_v62 = vmul.f32 1.442695, %v2242_v50  ;;  %v6938_v41 = vadd.f32 %v6721_v42, %v1965_v39  ;;  %4742 = vmatprep.mubr.msk.f32.mxu1 %vm2693_vm0, %v2650_v49  ;;  %v4096_v61 = vadd.f32 -1.0, %v5205_v17 }
 0x1a9   : > { %5216 = vpow2.f32 %v2432_v46  ;;  %v2245_v4 = vmin.f32 %v6934_v45, 0.0  ;;  %4743 = vmatmul.mubr.msk.f32.gmra.mrb[74].mxu1 %vm2693_vm0, %v2651_v58  ;;  %v4095_v63 = vadd.f32 -1.0, %v5207_v59  ;;  %vm2141_vm12 = vcmp.gt.f32.partialorder %v6934_v45, 0.0 }
 0x1aa   : > { %5218 = vpow2.f32 %v2430_v62  ;;  %v2244_v40 = vmin.f32 %v6938_v41, 0.0  ;;  %v4590_v60 = vpop.f32.mrb[88].mxu0  ;;  %v2653_v9 = vsel %vm2133_vm4, %v6878_v26, %v4096_v61  ;;  %vm2140_vm11 = vcmp.gt.f32.partialorder %v6938_v41, 0.0 }
 0x1ab   : > { %v5209_v1 = vpop.eup %5208  ;;  %v2436_v35 = vmul.f32 1.442695, %v2245_v4  ;;  %v6948_v55 = vadd.f32 %v6721_v42, %v4590_v60  ;;  %v1975_v43 = vpop.f32.mrb[89].mxu0  ;;  %v2652_v0 = vsel %vm2132_vm3, %v6882_v34, %v4095_v63 }
 0x1ac   : > { %v5211_v37 = vpop.eup %5210  ;;  %v2434_v52 = vmul.f32 1.442695, %v2244_v40  ;;  %v6952_v48 = vadd.f32 %v6721_v42, %v1975_v43  ;;  %4745 = vmatprep.mubr.msk.f32.mxu1 %vm2693_vm0, %v2652_v0  ;;  %v4098_v7 = vadd.f32 -1.0, %v5209_v1 }
 0x1ad   : > { %5220 = vpow2.f32 %v2436_v35  ;;  %v2247_v54 = vmin.f32 %v6948_v55, 0.0  ;;  %4746 = vmatmul.mubr.msk.f32.gmra.mrb[76].mxu1 %vm2693_vm0, %v2653_v9  ;;  %v4097_v19 = vadd.f32 -1.0, %v5211_v37  ;;  %vm2143_vm14 = vcmp.gt.f32.partialorder %v6948_v55, 0.0 }
 0x1ae   : > { %5222 = vpow2.f32 %v2434_v52  ;;  %v2246_v34 = vmin.f32 %v6952_v48, 0.0  ;;  %v4593_v15 = vpop.f32.mrb[90].mxu0  ;;  %v2655_v14 = vsel %vm2135_vm6, %v6892_v8, %v4098_v7  ;;  %vm2142_vm13 = vcmp.gt.f32.partialorder %v6952_v48, 0.0 }
 0x1af   : > { %v5213_v2 = vpop.eup %5212  ;;  %v2440_v13 = vmul.f32 1.442695, %v2247_v54  ;;  %v6962_v5 = vadd.f32 %v6721_v42, %v4593_v15  ;;  %v1985_v26 = vpop.f32.mrb[91].mxu0  ;;  %v2654_v21 = vsel %vm2134_vm5, %v6896_v3, %v4097_v19 }
 0x1b0   : > { %v5215_v22 = vpop.eup %5214  ;;  %v2438_v10 = vmul.f32 1.442695, %v2246_v34  ;;  %v6966_v12 = vadd.f32 %v6721_v42, %v1985_v26  ;;  %4748 = vmatprep.mubr.msk.f32.mxu1 %vm2693_vm0, %v2654_v21  ;;  %v4100_v20 = vadd.f32 -1.0, %v5213_v2 }
 0x1b1   : > { %5224 = vpow2.f32 %v2440_v13  ;;  %v2249_v33 = vmin.f32 %v6962_v5, 0.0  ;;  %4749 = vmatmul.mubr.msk.f32.gmra.mrb[78].mxu1 %vm2693_vm0, %v2655_v14  ;;  %v4099_v24 = vadd.f32 -1.0, %v5215_v22  ;;  %vm2145_vm1 = vcmp.gt.f32.partialorder %v6962_v5, 0.0 }
 0x1b2   : > { %5226 = vpow2.f32 %v2438_v10  ;;  %v2248_v3 = vmin.f32 %v6966_v12, 0.0  ;;  %v4596_v27 = vpop.f32.mrb[92].mxu0  ;;  %v2657_v36 = vsel %vm2137_vm8, %v6906_v23, %v4100_v20  ;;  %vm2144_vm15 = vcmp.gt.f32.partialorder %v6966_v12, 0.0 }
 0x1b3   : > { %v5217_v28 = vpop.eup %5216  ;;  %v2444_v11 = vmul.f32 1.442695, %v2249_v33  ;;  %v6976_v56 = vadd.f32 %v6721_v42, %v4596_v27  ;;  %v1995_v8 = vpop.f32.mrb[93].mxu0  ;;  %v2656_v30 = vsel %vm2136_vm7, %v6910_v38, %v4099_v24 }
 0x1b4   : > { %v5219_v6 = vpop.eup %5218  ;;  %v2442_v32 = vmul.f32 1.442695, %v2248_v3  ;;  %v6980_v25 = vadd.f32 %v6721_v42, %v1995_v8  ;;  %4751 = vmatprep.mubr.msk.f32.mxu1 %vm2693_vm0, %v2656_v30  ;;  %v4102_v51 = vadd.f32 -1.0, %v5217_v28 }
 0x1b5   : > { %5228 = vpow2.f32 %v2444_v11  ;;  %v2251_v31 = vmin.f32 %v6976_v56, 0.0  ;;  %4752 = vmatmul.mubr.msk.f32.gmra.mrb[80].mxu1 %vm2693_vm0, %v2657_v36  ;;  %v4101_v16 = vadd.f32 -1.0, %v5219_v6  ;;  %vm2147_vm3 = vcmp.gt.f32.partialorder %v6976_v56, 0.0 }
 0x1b6   : > { %5230 = vpow2.f32 %v2442_v32  ;;  %v2250_v38 = vmin.f32 %v6980_v25, 0.0  ;;  %v4599_v57 = vpop.f32.mrb[94].mxu0  ;;  %v2659_v49 = vsel %vm2139_vm10, %v6920_v18, %v4102_v51  ;;  %vm2146_vm2 = vcmp.gt.f32.partialorder %v6980_v25, 0.0 }
 0x1b7   : > { %v5221_v47 = vpop.eup %5220  ;;  %v2448_v44 = vmul.f32 1.442695, %v2251_v31  ;;  %v6990_v50 = vadd.f32 %v6721_v42, %v4599_v57  ;;  %v2005_v23 = vpop.f32.mrb[95].mxu0  ;;  %v2658_v53 = vsel %vm2138_vm9, %v6924_v29, %v4101_v16 }
 0x1b8   : > { %v5223_v17 = vpop.eup %5222  ;;  %v2446_v46 = vmul.f32 1.442695, %v2250_v38  ;;  %v6994_v39 = vadd.f32 %v6721_v42, %v2005_v23  ;;  %4754 = vmatprep.mubr.msk.f32.mxu1 %vm2693_vm0, %v2658_v53  ;;  %v4104_v59 = vadd.f32 -1.0, %v5221_v47 }
 0x1b9   : > { %5232 = vpow2.f32 %v2448_v44  ;;  %v2253_v62 = vmin.f32 %v6990_v50, 0.0  ;;  %4755 = vmatmul.mubr.msk.f32.gmra.mrb[82].mxu1 %vm2693_vm0, %v2659_v49  ;;  %v4103_v58 = vadd.f32 -1.0, %v5223_v17  ;;  %vm2149_vm5 = vcmp.gt.f32.partialorder %v6990_v50, 0.0 }
 0x1ba   : > { %5234 = vpow2.f32 %v2446_v46  ;;  %v2252_v29 = vmin.f32 %v6994_v39, 0.0  ;;  %v4602_v61 = vpop.f32.mrb[96].mxu0  ;;  %v2661_v0 = vsel %vm2141_vm12, %v6934_v45, %v4104_v59  ;;  %vm2148_vm4 = vcmp.gt.f32.partialorder %v6994_v39, 0.0 }
 0x1bb   : > { %v5225_v4 = vpop.eup %5224  ;;  %v2452_v63 = vmul.f32 1.442695, %v2253_v62  ;;  %v7004_v40 = vadd.f32 %v6721_v42, %v4602_v61  ;;  %v2015_v18 = vpop.f32.mrb[97].mxu0  ;;  %v2660_v60 = vsel %vm2140_vm11, %v6938_v41, %v4103_v58 }
 0x1bc   : > { %v5227_v1 = vpop.eup %5226  ;;  %v2450_v35 = vmul.f32 1.442695, %v2252_v29  ;;  %v7008_v43 = vadd.f32 %v6721_v42, %v2015_v18  ;;  %4757 = vmatprep.mubr.msk.f32.mxu1 %vm2693_vm0, %v2660_v60  ;;  %v4106_v37 = vadd.f32 -1.0, %v5225_v4 }
 0x1bd   : > { %5236 = vpow2.f32 %v2452_v63  ;;  %v2255_v52 = vmin.f32 %v7004_v40, 0.0  ;;  %4758 = vmatmul.mubr.msk.f32.gmra.mrb[84].mxu1 %vm2693_vm0, %v2661_v0  ;;  %v4105_v9 = vadd.f32 -1.0, %v5227_v1  ;;  %vm2151_vm7 = vcmp.gt.f32.partialorder %v7004_v40, 0.0 }
 0x1be   : > { %5238 = vpow2.f32 %v2450_v35  ;;  %v2254_v41 = vmin.f32 %v7008_v43, 0.0  ;;  %v4605_v7 = vpop.f32.mrb[98].mxu0  ;;  %v2663_v21 = vsel %vm2143_vm14, %v6948_v55, %v4106_v37  ;;  %vm2150_vm6 = vcmp.gt.f32.partialorder %v7008_v43, 0.0 }
 0x1bf   : > { %v5229_v54 = vpop.eup %5228  ;;  %v2456_v19 = vmul.f32 1.442695, %v2255_v52  ;;  %v7018_v34 = vadd.f32 %v6721_v42, %v4605_v7  ;;  %v2025_v45 = vpop.f32.mrb[99].mxu0  ;;  %v2662_v15 = vsel %vm2142_vm13, %v6952_v48, %v4105_v9  ;;  %vm3591_vm14 = vcmask 392192  }
 0x1c0   : > { %v5231_v2 = vpop.eup %5230  ;;  %v2454_v13 = vmul.f32 1.442695, %v2254_v41  ;;  %v7022_v26 = vadd.f32 %v6721_v42, %v2025_v45  ;;  %4760 = vmatprep.mubr.msk.f32.mxu1 %vm2693_vm0, %v2662_v15  ;;  %v4108_v22 = vadd.f32 -1.0, %v5229_v54 }
 0x1c1   : > { %5240 = vpow2.f32 %v2456_v19  ;;  %v2257_v10 = vmin.f32 %v7018_v34, 0.0  ;;  %4761 = vmatmul.mubr.msk.f32.gmra.mrb[86].mxu1 %vm2693_vm0, %v2663_v21  ;;  %v4107_v14 = vadd.f32 -1.0, %v5231_v2  ;;  %vm2153_vm9 = vcmp.gt.f32.partialorder %v7018_v34, 0.0  ;;  %v7085_v2 = vld [vmem:[%s7420_s5] ss:$0 sm:$0xff] }
 0x1c2   : > { %5242 = vpow2.f32 %v2454_v13  ;;  %v2256_v48 = vmin.f32 %v7022_v26, 0.0  ;;  %v4608_v20 = vpop.f32.mrb[100].mxu0  ;;  %v2665_v30 = vsel %vm2145_vm1, %v6962_v5, %v4108_v22  ;;  %vm2152_vm8 = vcmp.gt.f32.partialorder %v7022_v26, 0.0 }
 0x1c3   : > { %v5233_v33 = vpop.eup %5232  ;;  %v2460_v24 = vmul.f32 1.442695, %v2257_v10  ;;  %v7032_v3 = vadd.f32 %v6721_v42, %v4608_v20  ;;  %v2035_v55 = vpop.f32.mrb[101].mxu0  ;;  %v2664_v27 = vsel %vm2144_vm15, %v6966_v12, %v4107_v14 }
 0x1c4   : > { %v5235_v28 = vpop.eup %5234  ;;  %v2458_v11 = vmul.f32 1.442695, %v2256_v48  ;;  %v7036_v8 = vadd.f32 %v6721_v42, %v2035_v55  ;;  %4763 = vmatprep.mubr.msk.f32.mxu1 %vm2693_vm0, %v2664_v27  ;;  %v4110_v6 = vadd.f32 -1.0, %v5233_v33 }
 0x1c5   : > { %5244 = vpow2.f32 %v2460_v24  ;;  %v2259_v32 = vmin.f32 %v7032_v3, 0.0  ;;  %4764 = vmatmul.mubr.msk.f32.gmra.mrb[88].mxu1 %vm2693_vm0, %v2665_v30  ;;  %v4109_v36 = vadd.f32 -1.0, %v5235_v28  ;;  %vm2155_vm11 = vcmp.gt.f32.partialorder %v7032_v3, 0.0 }
 0x1c6   : > { %5246 = vpow2.f32 %v2458_v11  ;;  %v2258_v12 = vmin.f32 %v7036_v8, 0.0  ;;  %v4611_v51 = vpop.f32.mrb[102].mxu0  ;;  %v2667_v53 = vsel %vm2147_vm3, %v6976_v56, %v4110_v6  ;;  %vm2154_vm10 = vcmp.gt.f32.partialorder %v7036_v8, 0.0 }
 0x1c7   : > { %v5237_v31 = vpop.eup %5236  ;;  %v2464_v16 = vmul.f32 1.442695, %v2259_v32  ;;  %v7046_v38 = vadd.f32 %v6721_v42, %v4611_v51  ;;  %v2045_v5 = vpop.f32.mrb[103].mxu0  ;;  %v2666_v57 = vsel %vm2146_vm2, %v6980_v25, %v4109_v36 }
 0x1c8   : > { %v5239_v47 = vpop.eup %5238  ;;  %v2462_v44 = vmul.f32 1.442695, %v2258_v12  ;;  %v2046_v23 = vadd.f32 %v6721_v42, %v2045_v5  ;;  %4766 = vmatprep.mubr.msk.f32.mxu1 %vm2693_vm0, %v2666_v57  ;;  %v4112_v17 = vadd.f32 -1.0, %v5237_v31 }
 0x1c9   : > { %5248 = vpow2.f32 %v2464_v16  ;;  %v2261_v46 = vmin.f32 %v7046_v38, 0.0  ;;  %4767 = vmatmul.mubr.msk.f32.gmra.mrb[90].mxu1 %vm2693_vm0, %v2667_v53  ;;  %v4111_v49 = vadd.f32 -1.0, %v5239_v47  ;;  %vm2157_vm13 = vcmp.gt.f32.partialorder %v7046_v38, 0.0 }
 0x1ca   : > { %5250 = vpow2.f32 %v2462_v44  ;;  %v2260_v59 = vmin.f32 %v2046_v23, 0.0  ;;  %v2669_v56 = vsel %vm2149_vm5, %v6990_v50, %v4112_v17  ;;  %vm2156_vm12 = vcmp.gt.f32.partialorder %v2046_v23, 0.0 }
 0x1cb   : > { %v5241_v25 = vpop.eup %5240  ;;  %v2468_v62 = vmul.f32 1.442695, %v2261_v46  ;;  %v2668_v42 = vsel %vm2148_vm4, %v6994_v39, %v4111_v49 }
 0x1cc   : > { %v5243_v58 = vpop.eup %5242  ;;  %v2466_v29 = vmul.f32 1.442695, %v2260_v59  ;;  %4769 = vmatprep.mubr.msk.f32.mxu1 %vm2693_vm0, %v2668_v42  ;;  %v4114_v61 = vadd.f32 -1.0, %v5241_v25 }
 0x1cd   : > { %5252 = vpow2.f32 %v2468_v62  ;;  %4770 = vmatmul.mubr.msk.f32.gmra.mrb[92].mxu1 %vm2693_vm0, %v2669_v56  ;;  %v4113_v4 = vadd.f32 -1.0, %v5243_v58 }
 0x1ce   : > { %5254 = vpow2.f32 %v2466_v29  ;;  %v2671_v60 = vsel %vm2151_vm7, %v7004_v40, %v4114_v61 }
 0x1cf   : > { %v5245_v63 = vpop.eup %5244  ;;  %v2670_v18 = vsel %vm2150_vm6, %v7008_v43, %v4113_v4 }
 0x1d0   : > { %v5247_v39 = vpop.eup %5246  ;;  %4772 = vmatprep.mubr.msk.f32.mxu1 %vm2693_vm0, %v2670_v18  ;;  %v4116_v1 = vadd.f32 -1.0, %v5245_v63 }
 0x1d1   : > { %4773 = vmatmul.mubr.msk.f32.gmra.mrb[94].mxu1 %vm2693_vm0, %v2671_v60  ;;  %v4115_v50 = vadd.f32 -1.0, %v5247_v39 }
 0x1d2   : > { %v2673_v43 = vsel %vm2153_vm9, %v7018_v34, %v4116_v1 }
 0x1d3   : > { %v5249_v35 = vpop.eup %5248  ;;  %v2672_v0 = vsel %vm2152_vm8, %v7022_v26, %v4115_v50 }
 0x1d4   : > { %v5251_v37 = vpop.eup %5250  ;;  %4775 = vmatprep.mubr.msk.f32.mxu1 %vm2693_vm0, %v2672_v0  ;;  %v4118_v52 = vadd.f32 -1.0, %v5249_v35 }
 0x1d5   : > { %4776 = vmatmul.mubr.msk.f32.gmra.mrb[96].mxu1 %vm2693_vm0, %v2673_v43  ;;  %v4117_v40 = vadd.f32 -1.0, %v5251_v37 }
 0x1d6   : > { %v2675_v54 = vsel %vm2155_vm11, %v7032_v3, %v4118_v52 }
 0x1d7   : > { %v5253_v9 = vpop.eup %5252  ;;  %v2674_v41 = vsel %vm2154_vm10, %v7036_v8, %v4117_v40 }
 0x1d8   : > { %v5255_v7 = vpop.eup %5254  ;;  %4778 = vmatprep.mubr.msk.f32.mxu1 %vm2693_vm0, %v2674_v41  ;;  %v4120_v19 = vadd.f32 -1.0, %v5253_v9 }
 0x1d9   : > { %4779 = vmatmul.mubr.msk.f32.gmra.mrb[98].mxu1 %vm2693_vm0, %v2675_v54  ;;  %v4119_v34 = vadd.f32 -1.0, %v5255_v7 }
 0x1da   : > { %v2677_v15 = vsel %vm2157_vm13, %v7046_v38, %v4120_v19 }
 0x1db   : > { %v2676_v45 = vsel %vm2156_vm12, %v2046_v23, %v4119_v34 }
 0x1dc   : > { %4781 = vmatprep.mubr.msk.f32.mxu1 %vm2693_vm0, %v2676_v45 }
 0x1dd   : > { %4782 = vmatmul.mubr.msk.f32.gmra.mrb[100].mxu1 %vm2693_vm0, %v2677_v15 }
 0x1e4   : > { %v4630_v13 = vpop.f32.mrb[104].mxu0 }
 0x1e5   : > { %v3078_v26 = vadd.f32 %v4630_v13, %v7085_v2  ;;  %v3072_v21 = vpop.f32.mrb[105].mxu0 }
 0x1e6   : > { %v3073_v22 = vadd.f32 %v7085_v2, %v3072_v21 }
 0x1e7   : > { %3593 = vst.msk [vmem:[%s7092_s26 + $0x8] sm:$0xff] %vm3591_vm14, %v3078_v26 }
 0x1e8   : > { %3592 = vst.msk [vmem:[%s7092_s26] sm:$0xff] %vm3591_vm14, %v3073_v22  ;;  %v4633_v10 = vpop.f32.mrb[0].mxu1 }
 0x1e9   : > { %v3088_v14 = vadd.f32 %v4633_v10, %v7085_v2  ;;  %v3082_v48 = vpop.f32.mrb[1].mxu1 }
 0x1ea   : > { %v3083_v20 = vadd.f32 %v7085_v2, %v3082_v48 }
 0x1eb   : > { %3595 = vst.msk [vmem:[%s7092_s26 + $0x18] sm:$0xff] %vm3591_vm14, %v3088_v14 }
 0x1ec   : > { %3594 = vst.msk [vmem:[%s7092_s26 + $0x10] sm:$0xff] %vm3591_vm14, %v3083_v20  ;;  %v4636_v33 = vpop.f32.mrb[2].mxu1 }
 0x1ed   : > { %v3098_v24 = vadd.f32 %v4636_v33, %v7085_v2  ;;  %v3092_v3 = vpop.f32.mrb[3].mxu1 }
 0x1ee   : > { %v3093_v55 = vadd.f32 %v7085_v2, %v3092_v3 }
 0x1ef   : > { %3597 = vst.msk [vmem:[%s7092_s26 + $0x28] sm:$0xff] %vm3591_vm14, %v3098_v24 }
 0x1f0   : > { %3596 = vst.msk [vmem:[%s7092_s26 + $0x20] sm:$0xff] %vm3591_vm14, %v3093_v55  ;;  %v4639_v27 = vpop.f32.mrb[4].mxu1 }
 0x1f1   : > { %v3108_v28 = vadd.f32 %v4639_v27, %v7085_v2  ;;  %v3102_v11 = vpop.f32.mrb[5].mxu1 }
 0x1f2   : > { %v3103_v8 = vadd.f32 %v7085_v2, %v3102_v11 }
 0x1f3   : > { %3599 = vst.msk [vmem:[%s7092_s26 + $0x38] sm:$0xff] %vm3591_vm14, %v3108_v28 }
 0x1f4   : > { %3598 = vst.msk [vmem:[%s7092_s26 + $0x30] sm:$0xff] %vm3591_vm14, %v3103_v8  ;;  %v4642_v30 = vpop.f32.mrb[6].mxu1 }
 0x1f5   : > { %v3118_v6 = vadd.f32 %v4642_v30, %v7085_v2  ;;  %v3112_v32 = vpop.f32.mrb[7].mxu1 }
 0x1f6   : > { %v3113_v36 = vadd.f32 %v7085_v2, %v3112_v32 }
 0x1f7   : > { %3601 = vst.msk [vmem:[%s7092_s26 + $0x48] sm:$0xff] %vm3591_vm14, %v3118_v6 }
 0x1f8   : > { %3600 = vst.msk [vmem:[%s7092_s26 + $0x40] sm:$0xff] %vm3591_vm14, %v3113_v36  ;;  %v4645_v12 = vpop.f32.mrb[8].mxu1 }
 0x1f9   : > { %v3128_v51 = vadd.f32 %v4645_v12, %v7085_v2  ;;  %v3122_v31 = vpop.f32.mrb[9].mxu1 }
 0x1fa   : > { %v3123_v16 = vadd.f32 %v7085_v2, %v3122_v31 }
 0x1fb   : > { %3603 = vst.msk [vmem:[%s7092_s26 + $0x58] sm:$0xff] %vm3591_vm14, %v3128_v51 }
 0x1fc   : > { %3602 = vst.msk [vmem:[%s7092_s26 + $0x50] sm:$0xff] %vm3591_vm14, %v3123_v16  ;;  %v4648_v38 = vpop.f32.mrb[10].mxu1 }
 0x1fd   : > { %v3138_v5 = vadd.f32 %v4648_v38, %v7085_v2  ;;  %v3132_v57 = vpop.f32.mrb[11].mxu1 }
 0x1fe   : > { %v3133_v47 = vadd.f32 %v7085_v2, %v3132_v57 }
 0x1ff   : > { %3605 = vst.msk [vmem:[%s7092_s26 + $0x68] sm:$0xff] %vm3591_vm14, %v3138_v5 }
 0x200   : > { %3604 = vst.msk [vmem:[%s7092_s26 + $0x60] sm:$0xff] %vm3591_vm14, %v3133_v47  ;;  %v4651_v44 = vpop.f32.mrb[12].mxu1 }
 0x201   : > { %v3148_v23 = vadd.f32 %v4651_v44, %v7085_v2  ;;  %v3142_v53 = vpop.f32.mrb[13].mxu1 }
 0x202   : > { %v3143_v17 = vadd.f32 %v7085_v2, %v3142_v53 }
 0x203   : > { %3607 = vst.msk [vmem:[%s7092_s26 + $0x78] sm:$0xff] %vm3591_vm14, %v3148_v23 }
 0x204   : > { %3606 = vst.msk [vmem:[%s7092_s26 + $0x70] sm:$0xff] %vm3591_vm14, %v3143_v17  ;;  %v4654_v46 = vpop.f32.mrb[14].mxu1 }
 0x205   : > { %v3158_v49 = vadd.f32 %v4654_v46, %v7085_v2  ;;  %v3152_v59 = vpop.f32.mrb[15].mxu1 }
 0x206   : > { %v3153_v25 = vadd.f32 %v7085_v2, %v3152_v59 }
 0x207   : > { %3609 = vst.msk [vmem:[%s7092_s26 + $0x88] sm:$0xff] %vm3591_vm14, %v3158_v49 }
 0x208   : > { %3608 = vst.msk [vmem:[%s7092_s26 + $0x80] sm:$0xff] %vm3591_vm14, %v3153_v25  ;;  %v4657_v62 = vpop.f32.mrb[16].mxu1 }
 0x209   : > { %v3168_v42 = vadd.f32 %v4657_v62, %v7085_v2  ;;  %v3162_v58 = vpop.f32.mrb[17].mxu1 }
 0x20a   : > { %v3163_v29 = vadd.f32 %v7085_v2, %v3162_v58 }
 0x20b   : > { %3611 = vst.msk [vmem:[%s7092_s26 + $0x98] sm:$0xff] %vm3591_vm14, %v3168_v42 }
 0x20c   : > { %3610 = vst.msk [vmem:[%s7092_s26 + $0x90] sm:$0xff] %vm3591_vm14, %v3163_v29  ;;  %v4660_v56 = vpop.f32.mrb[18].mxu1 }
 0x20d   : > { %v3178_v61 = vadd.f32 %v4660_v56, %v7085_v2  ;;  %v3172_v4 = vpop.f32.mrb[19].mxu1 }
 0x20e   : > { %v3173_v63 = vadd.f32 %v7085_v2, %v3172_v4 }
 0x20f   : > { %3613 = vst.msk [vmem:[%s7092_s26 + $0xa8] sm:$0xff] %vm3591_vm14, %v3178_v61 }
 0x210   : > { %3612 = vst.msk [vmem:[%s7092_s26 + $0xa0] sm:$0xff] %vm3591_vm14, %v3173_v63  ;;  %v4663_v18 = vpop.f32.mrb[20].mxu1 }
 0x211   : > { %v3188_v39 = vadd.f32 %v4663_v18, %v7085_v2  ;;  %v3182_v60 = vpop.f32.mrb[21].mxu1 }
 0x212   : > { %v3183_v1 = vadd.f32 %v7085_v2, %v3182_v60 }
 0x213   : > { %3615 = vst.msk [vmem:[%s7092_s26 + $0xb8] sm:$0xff] %vm3591_vm14, %v3188_v39 }
 0x214   : > { %3614 = vst.msk [vmem:[%s7092_s26 + $0xb0] sm:$0xff] %vm3591_vm14, %v3183_v1  ;;  %v4666_v50 = vpop.f32.mrb[22].mxu1 }
 0x215   : > { %v3198_v35 = vadd.f32 %v4666_v50, %v7085_v2  ;;  %v3192_v0 = vpop.f32.mrb[23].mxu1 }
 0x216   : > { %v3193_v37 = vadd.f32 %v7085_v2, %v3192_v0 }
 0x217   : > { %3617 = vst.msk [vmem:[%s7092_s26 + $0xc8] sm:$0xff] %vm3591_vm14, %v3198_v35 }
 0x218   : > { %3616 = vst.msk [vmem:[%s7092_s26 + $0xc0] sm:$0xff] %vm3591_vm14, %v3193_v37  ;;  %v4669_v43 = vpop.f32.mrb[24].mxu1 }
 0x219   : > { %v3208_v52 = vadd.f32 %v4669_v43, %v7085_v2  ;;  %v3202_v40 = vpop.f32.mrb[25].mxu1 }
 0x21a   : > { %v3203_v9 = vadd.f32 %v7085_v2, %v3202_v40 }
 0x21b   : > { %3619 = vst.msk [vmem:[%s7092_s26 + $0xd8] sm:$0xff] %vm3591_vm14, %v3208_v52 }
 0x21c   : > { %3618 = vst.msk [vmem:[%s7092_s26 + $0xd0] sm:$0xff] %vm3591_vm14, %v3203_v9  ;;  %v4672_v41 = vpop.f32.mrb[26].mxu1 }
 0x21d   : > { %v3218_v7 = vadd.f32 %v4672_v41, %v7085_v2  ;;  %v3212_v54 = vpop.f32.mrb[27].mxu1 }
 0x21e   : > { %v3213_v19 = vadd.f32 %v7085_v2, %v3212_v54 }
 0x21f   : > { %3621 = vst.msk [vmem:[%s7092_s26 + $0xe8] sm:$0xff] %vm3591_vm14, %v3218_v7 }
 0x220   : > { %3620 = vst.msk [vmem:[%s7092_s26 + $0xe0] sm:$0xff] %vm3591_vm14, %v3213_v19  ;;  %v4675_v34 = vpop.f32.mrb[28].mxu1 }
 0x221   : > { %v3228_v45 = vadd.f32 %v4675_v34, %v7085_v2  ;;  %v3222_v15 = vpop.f32.mrb[29].mxu1 }
 0x222   : > { %v3223_v13 = vadd.f32 %v7085_v2, %v3222_v15 }
 0x223   : > { %3623 = vst.msk [vmem:[%s7092_s26 + $0xf8] sm:$0xff] %vm3591_vm14, %v3228_v45 }
 0x224   : > { %3622 = vst.msk [vmem:[%s7092_s26 + $0xf0] sm:$0xff] %vm3591_vm14, %v3223_v13  ;;  %v4678_v26 = vpop.f32.mrb[30].mxu1 }
 0x225   : > { %v3238_v21 = vadd.f32 %v4678_v26, %v7085_v2  ;;  %v3232_v22 = vpop.f32.mrb[31].mxu1 }
 0x226   : > { %v3233_v10 = vadd.f32 %v7085_v2, %v3232_v22 }
 0x227   : > { %3625 = vst.msk [vmem:[%s7092_s26 + $0x108] sm:$0xff] %vm3591_vm14, %v3238_v21 }
 0x228   : > { %3624 = vst.msk [vmem:[%s7092_s26 + $0x100] sm:$0xff] %vm3591_vm14, %v3233_v10  ;;  %v4681_v14 = vpop.f32.mrb[32].mxu1 }
 0x229   : > { %v3248_v48 = vadd.f32 %v4681_v14, %v7085_v2  ;;  %v3242_v20 = vpop.f32.mrb[33].mxu1 }
 0x22a   : > { %v3243_v33 = vadd.f32 %v7085_v2, %v3242_v20 }
 0x22b   : > { %3627 = vst.msk [vmem:[%s7092_s26 + $0x118] sm:$0xff] %vm3591_vm14, %v3248_v48 }
 0x22c   : > { %3626 = vst.msk [vmem:[%s7092_s26 + $0x110] sm:$0xff] %vm3591_vm14, %v3243_v33  ;;  %v4684_v24 = vpop.f32.mrb[34].mxu1 }
 0x22d   : > { %v3258_v3 = vadd.f32 %v4684_v24, %v7085_v2  ;;  %v3252_v55 = vpop.f32.mrb[35].mxu1 }
 0x22e   : > { %v3253_v27 = vadd.f32 %v7085_v2, %v3252_v55 }
 0x22f   : > { %3629 = vst.msk [vmem:[%s7092_s26 + $0x128] sm:$0xff] %vm3591_vm14, %v3258_v3 }
 0x230   : > { %3628 = vst.msk [vmem:[%s7092_s26 + $0x120] sm:$0xff] %vm3591_vm14, %v3253_v27  ;;  %v4687_v28 = vpop.f32.mrb[36].mxu1 }
 0x231   : > { %v3268_v11 = vadd.f32 %v4687_v28, %v7085_v2  ;;  %v3262_v8 = vpop.f32.mrb[37].mxu1 }
 0x232   : > { %v3263_v30 = vadd.f32 %v7085_v2, %v3262_v8 }
 0x233   : > { %3631 = vst.msk [vmem:[%s7092_s26 + $0x138] sm:$0xff] %vm3591_vm14, %v3268_v11 }
 0x234   : > { %3630 = vst.msk [vmem:[%s7092_s26 + $0x130] sm:$0xff] %vm3591_vm14, %v3263_v30  ;;  %v4690_v6 = vpop.f32.mrb[38].mxu1 }
 0x235   : > { %v3278_v32 = vadd.f32 %v4690_v6, %v7085_v2  ;;  %v3272_v36 = vpop.f32.mrb[39].mxu1 }
 0x236   : > { %v3273_v12 = vadd.f32 %v7085_v2, %v3272_v36 }
 0x237   : > { %3633 = vst.msk [vmem:[%s7092_s26 + $0x148] sm:$0xff] %vm3591_vm14, %v3278_v32 }
 0x238   : > { %3632 = vst.msk [vmem:[%s7092_s26 + $0x140] sm:$0xff] %vm3591_vm14, %v3273_v12  ;;  %v4693_v51 = vpop.f32.mrb[40].mxu1 }
 0x239   : > { %v3288_v31 = vadd.f32 %v4693_v51, %v7085_v2  ;;  %v3282_v16 = vpop.f32.mrb[41].mxu1 }
 0x23a   : > { %v3283_v38 = vadd.f32 %v7085_v2, %v3282_v16 }
 0x23b   : > { %3635 = vst.msk [vmem:[%s7092_s26 + $0x158] sm:$0xff] %vm3591_vm14, %v3288_v31 }
 0x23c   : > { %3634 = vst.msk [vmem:[%s7092_s26 + $0x150] sm:$0xff] %vm3591_vm14, %v3283_v38  ;;  %v4696_v5 = vpop.f32.mrb[42].mxu1 }
 0x23d   : > { %v3298_v57 = vadd.f32 %v4696_v5, %v7085_v2  ;;  %v3292_v47 = vpop.f32.mrb[43].mxu1 }
 0x23e   : > { %v3293_v44 = vadd.f32 %v7085_v2, %v3292_v47 }
 0x23f   : > { %3637 = vst.msk [vmem:[%s7092_s26 + $0x168] sm:$0xff] %vm3591_vm14, %v3298_v57 }
 0x240   : > { %3636 = vst.msk [vmem:[%s7092_s26 + $0x160] sm:$0xff] %vm3591_vm14, %v3293_v44  ;;  %v4699_v23 = vpop.f32.mrb[44].mxu1 }
 0x241   : > { %v3308_v53 = vadd.f32 %v4699_v23, %v7085_v2  ;;  %v3302_v17 = vpop.f32.mrb[45].mxu1 }
 0x242   : > { %v3303_v46 = vadd.f32 %v7085_v2, %v3302_v17 }
 0x243   : > { %3639 = vst.msk [vmem:[%s7092_s26 + $0x178] sm:$0xff] %vm3591_vm14, %v3308_v53 }
 0x244   : > { %3638 = vst.msk [vmem:[%s7092_s26 + $0x170] sm:$0xff] %vm3591_vm14, %v3303_v46  ;;  %v4702_v49 = vpop.f32.mrb[46].mxu1 }
 0x245   : > { %v3318_v59 = vadd.f32 %v4702_v49, %v7085_v2  ;;  %v3312_v25 = vpop.f32.mrb[47].mxu1 }
 0x246   : > { %v3313_v62 = vadd.f32 %v7085_v2, %v3312_v25 }
 0x247   : > { %3641 = vst.msk [vmem:[%s7092_s26 + $0x188] sm:$0xff] %vm3591_vm14, %v3318_v59 }
 0x248   : > { %3640 = vst.msk [vmem:[%s7092_s26 + $0x180] sm:$0xff] %vm3591_vm14, %v3313_v62  ;;  %v4705_v42 = vpop.f32.mrb[48].mxu1 }
 0x249   : > { %v3328_v58 = vadd.f32 %v4705_v42, %v7085_v2  ;;  %v3322_v29 = vpop.f32.mrb[49].mxu1 }
 0x24a   : > { %v3323_v56 = vadd.f32 %v7085_v2, %v3322_v29 }
 0x24b   : > { %3643 = vst.msk [vmem:[%s7092_s26 + $0x198] sm:$0xff] %vm3591_vm14, %v3328_v58 }
 0x24c   : > { %3642 = vst.msk [vmem:[%s7092_s26 + $0x190] sm:$0xff] %vm3591_vm14, %v3323_v56  ;;  %v4708_v61 = vpop.f32.mrb[50].mxu1 }
 0x24d   : > { %v3338_v4 = vadd.f32 %v4708_v61, %v7085_v2  ;;  %v3332_v63 = vpop.f32.mrb[51].mxu1 }
 0x24e   : > { %v3333_v18 = vadd.f32 %v7085_v2, %v3332_v63 }
 0x24f   : > { %3645 = vst.msk [vmem:[%s7092_s26 + $0x1a8] sm:$0xff] %vm3591_vm14, %v3338_v4 }
 0x250   : > { %3644 = vst.msk [vmem:[%s7092_s26 + $0x1a0] sm:$0xff] %vm3591_vm14, %v3333_v18  ;;  %v4711_v39 = vpop.f32.mrb[52].mxu1 }
 0x251   : > { %v3348_v60 = vadd.f32 %v4711_v39, %v7085_v2  ;;  %v3342_v1 = vpop.f32.mrb[53].mxu1 }
 0x252   : > { %v3343_v50 = vadd.f32 %v7085_v2, %v3342_v1 }
 0x253   : > { %3647 = vst.msk [vmem:[%s7092_s26 + $0x1b8] sm:$0xff] %vm3591_vm14, %v3348_v60 }
 0x254   : > { %3646 = vst.msk [vmem:[%s7092_s26 + $0x1b0] sm:$0xff] %vm3591_vm14, %v3343_v50  ;;  %v4714_v35 = vpop.f32.mrb[54].mxu1 }
 0x255   : > { %v3358_v0 = vadd.f32 %v4714_v35, %v7085_v2  ;;  %v3352_v37 = vpop.f32.mrb[55].mxu1 }
 0x256   : > { %v3353_v43 = vadd.f32 %v7085_v2, %v3352_v37 }
 0x257   : > { %3649 = vst.msk [vmem:[%s7092_s26 + $0x1c8] sm:$0xff] %vm3591_vm14, %v3358_v0 }
 0x258   : > { %3648 = vst.msk [vmem:[%s7092_s26 + $0x1c0] sm:$0xff] %vm3591_vm14, %v3353_v43  ;;  %v4717_v52 = vpop.f32.mrb[56].mxu1 }
 0x259   : > { %v3368_v40 = vadd.f32 %v4717_v52, %v7085_v2  ;;  %v3362_v9 = vpop.f32.mrb[57].mxu1 }
 0x25a   : > { %v3363_v41 = vadd.f32 %v7085_v2, %v3362_v9 }
 0x25b   : > { %3651 = vst.msk [vmem:[%s7092_s26 + $0x1d8] sm:$0xff] %vm3591_vm14, %v3368_v40 }
 0x25c   : > { %3650 = vst.msk [vmem:[%s7092_s26 + $0x1d0] sm:$0xff] %vm3591_vm14, %v3363_v41  ;;  %v4720_v7 = vpop.f32.mrb[58].mxu1 }
 0x25d   : > { %v3378_v54 = vadd.f32 %v4720_v7, %v7085_v2  ;;  %v3372_v19 = vpop.f32.mrb[59].mxu1 }
 0x25e   : > { %v3373_v34 = vadd.f32 %v7085_v2, %v3372_v19 }
 0x25f   : > { %3653 = vst.msk [vmem:[%s7092_s26 + $0x1e8] sm:$0xff] %vm3591_vm14, %v3378_v54 }
 0x260   : > { %3652 = vst.msk [vmem:[%s7092_s26 + $0x1e0] sm:$0xff] %vm3591_vm14, %v3373_v34  ;;  %v4723_v45 = vpop.f32.mrb[60].mxu1 }
 0x261   : > { %v3388_v15 = vadd.f32 %v4723_v45, %v7085_v2  ;;  %v3382_v13 = vpop.f32.mrb[61].mxu1 }
 0x262   : > { %v3383_v26 = vadd.f32 %v7085_v2, %v3382_v13 }
 0x263   : > { %3655 = vst.msk [vmem:[%s7092_s26 + $0x1f8] sm:$0xff] %vm3591_vm14, %v3388_v15 }
 0x264   : > { %3654 = vst.msk [vmem:[%s7092_s26 + $0x1f0] sm:$0xff] %vm3591_vm14, %v3383_v26  ;;  %v4726_v21 = vpop.f32.mrb[62].mxu1 }
 0x265   : > { %v3398_v22 = vadd.f32 %v4726_v21, %v7085_v2  ;;  %v3392_v10 = vpop.f32.mrb[63].mxu1 }
 0x266   : > { %v3393_v14 = vadd.f32 %v7085_v2, %v3392_v10 }
 0x267   : > { %3657 = vst.msk [vmem:[%s7092_s26 + $0x208] sm:$0xff] %vm3591_vm14, %v3398_v22 }
 0x268   : > { %3656 = vst.msk [vmem:[%s7092_s26 + $0x200] sm:$0xff] %vm3591_vm14, %v3393_v14  ;;  %v4729_v48 = vpop.f32.mrb[64].mxu1 }
 0x269   : > { %v3408_v20 = vadd.f32 %v4729_v48, %v7085_v2  ;;  %v3402_v33 = vpop.f32.mrb[65].mxu1 }
 0x26a   : > { %v3403_v24 = vadd.f32 %v7085_v2, %v3402_v33 }
 0x26b   : > { %3659 = vst.msk [vmem:[%s7092_s26 + $0x218] sm:$0xff] %vm3591_vm14, %v3408_v20 }
 0x26c   : > { %3658 = vst.msk [vmem:[%s7092_s26 + $0x210] sm:$0xff] %vm3591_vm14, %v3403_v24  ;;  %v4732_v3 = vpop.f32.mrb[66].mxu1 }
 0x26d   : > { %v3418_v55 = vadd.f32 %v4732_v3, %v7085_v2  ;;  %v3412_v27 = vpop.f32.mrb[67].mxu1 }
 0x26e   : > { %v3413_v28 = vadd.f32 %v7085_v2, %v3412_v27 }
 0x26f   : > { %3661 = vst.msk [vmem:[%s7092_s26 + $0x228] sm:$0xff] %vm3591_vm14, %v3418_v55 }
 0x270   : > { %3660 = vst.msk [vmem:[%s7092_s26 + $0x220] sm:$0xff] %vm3591_vm14, %v3413_v28  ;;  %v4735_v11 = vpop.f32.mrb[68].mxu1 }
 0x271   : > { %v3428_v8 = vadd.f32 %v4735_v11, %v7085_v2  ;;  %v3422_v30 = vpop.f32.mrb[69].mxu1 }
 0x272   : > { %v3423_v6 = vadd.f32 %v7085_v2, %v3422_v30 }
 0x273   : > { %3663 = vst.msk [vmem:[%s7092_s26 + $0x238] sm:$0xff] %vm3591_vm14, %v3428_v8 }
 0x274   : > { %3662 = vst.msk [vmem:[%s7092_s26 + $0x230] sm:$0xff] %vm3591_vm14, %v3423_v6  ;;  %v4738_v32 = vpop.f32.mrb[70].mxu1 }
 0x275   : > { %v3438_v36 = vadd.f32 %v4738_v32, %v7085_v2  ;;  %v3432_v12 = vpop.f32.mrb[71].mxu1 }
 0x276   : > { %v3433_v51 = vadd.f32 %v7085_v2, %v3432_v12 }
 0x277   : > { %3665 = vst.msk [vmem:[%s7092_s26 + $0x248] sm:$0xff] %vm3591_vm14, %v3438_v36 }
 0x278   : > { %3664 = vst.msk [vmem:[%s7092_s26 + $0x240] sm:$0xff] %vm3591_vm14, %v3433_v51  ;;  %v4741_v31 = vpop.f32.mrb[72].mxu1 }
 0x279   : > { %v3448_v16 = vadd.f32 %v4741_v31, %v7085_v2  ;;  %v3442_v38 = vpop.f32.mrb[73].mxu1 }
 0x27a   : > { %v3443_v5 = vadd.f32 %v7085_v2, %v3442_v38 }
 0x27b   : > { %3667 = vst.msk [vmem:[%s7092_s26 + $0x258] sm:$0xff] %vm3591_vm14, %v3448_v16 }
 0x27c   : > { %3666 = vst.msk [vmem:[%s7092_s26 + $0x250] sm:$0xff] %vm3591_vm14, %v3443_v5  ;;  %v4744_v57 = vpop.f32.mrb[74].mxu1 }
 0x27d   : > { %v3458_v47 = vadd.f32 %v4744_v57, %v7085_v2  ;;  %v3452_v44 = vpop.f32.mrb[75].mxu1 }
 0x27e   : > { %v3453_v23 = vadd.f32 %v7085_v2, %v3452_v44 }
 0x27f   : > { %3669 = vst.msk [vmem:[%s7092_s26 + $0x268] sm:$0xff] %vm3591_vm14, %v3458_v47 }
 0x280   : > { %3668 = vst.msk [vmem:[%s7092_s26 + $0x260] sm:$0xff] %vm3591_vm14, %v3453_v23  ;;  %v4747_v53 = vpop.f32.mrb[76].mxu1 }
 0x281   : > { %v3468_v17 = vadd.f32 %v4747_v53, %v7085_v2  ;;  %v3462_v46 = vpop.f32.mrb[77].mxu1 }
 0x282   : > { %v3463_v49 = vadd.f32 %v7085_v2, %v3462_v46 }
 0x283   : > { %3671 = vst.msk [vmem:[%s7092_s26 + $0x278] sm:$0xff] %vm3591_vm14, %v3468_v17 }
 0x284   : > { %3670 = vst.msk [vmem:[%s7092_s26 + $0x270] sm:$0xff] %vm3591_vm14, %v3463_v49  ;;  %v4750_v59 = vpop.f32.mrb[78].mxu1 }
 0x285   : > { %v3478_v25 = vadd.f32 %v4750_v59, %v7085_v2  ;;  %v3472_v62 = vpop.f32.mrb[79].mxu1 }
 0x286   : > { %v3473_v42 = vadd.f32 %v7085_v2, %v3472_v62 }
 0x287   : > { %3673 = vst.msk [vmem:[%s7092_s26 + $0x288] sm:$0xff] %vm3591_vm14, %v3478_v25 }
 0x288   : > { %3672 = vst.msk [vmem:[%s7092_s26 + $0x280] sm:$0xff] %vm3591_vm14, %v3473_v42  ;;  %v4753_v58 = vpop.f32.mrb[80].mxu1 }
 0x289   : > { %v3488_v29 = vadd.f32 %v4753_v58, %v7085_v2  ;;  %v3482_v56 = vpop.f32.mrb[81].mxu1 }
 0x28a   : > { %v3483_v61 = vadd.f32 %v7085_v2, %v3482_v56 }
 0x28b   : > { %3675 = vst.msk [vmem:[%s7092_s26 + $0x298] sm:$0xff] %vm3591_vm14, %v3488_v29 }
 0x28c   : > { %3674 = vst.msk [vmem:[%s7092_s26 + $0x290] sm:$0xff] %vm3591_vm14, %v3483_v61  ;;  %v4756_v4 = vpop.f32.mrb[82].mxu1 }
 0x28d   : > { %v3498_v63 = vadd.f32 %v4756_v4, %v7085_v2  ;;  %v3492_v18 = vpop.f32.mrb[83].mxu1 }
 0x28e   : > { %v3493_v39 = vadd.f32 %v7085_v2, %v3492_v18 }
 0x28f   : > { %3677 = vst.msk [vmem:[%s7092_s26 + $0x2a8] sm:$0xff] %vm3591_vm14, %v3498_v63 }
 0x290   : > { %3676 = vst.msk [vmem:[%s7092_s26 + $0x2a0] sm:$0xff] %vm3591_vm14, %v3493_v39  ;;  %v4759_v60 = vpop.f32.mrb[84].mxu1 }
 0x291   : > { %v3508_v1 = vadd.f32 %v4759_v60, %v7085_v2  ;;  %v3502_v50 = vpop.f32.mrb[85].mxu1 }
 0x292   : > { %v3503_v35 = vadd.f32 %v7085_v2, %v3502_v50 }
 0x293   : > { %3679 = vst.msk [vmem:[%s7092_s26 + $0x2b8] sm:$0xff] %vm3591_vm14, %v3508_v1 }
 0x294   : > { %3678 = vst.msk [vmem:[%s7092_s26 + $0x2b0] sm:$0xff] %vm3591_vm14, %v3503_v35  ;;  %v4762_v0 = vpop.f32.mrb[86].mxu1 }
 0x295   : > { %v3518_v37 = vadd.f32 %v4762_v0, %v7085_v2  ;;  %v3512_v43 = vpop.f32.mrb[87].mxu1 }
 0x296   : > { %v3513_v52 = vadd.f32 %v7085_v2, %v3512_v43 }
 0x297   : > { %3681 = vst.msk [vmem:[%s7092_s26 + $0x2c8] sm:$0xff] %vm3591_vm14, %v3518_v37 }
 0x298   : > { %3680 = vst.msk [vmem:[%s7092_s26 + $0x2c0] sm:$0xff] %vm3591_vm14, %v3513_v52  ;;  %v4765_v40 = vpop.f32.mrb[88].mxu1 }
 0x299   : > { %v3528_v9 = vadd.f32 %v4765_v40, %v7085_v2  ;;  %v3522_v41 = vpop.f32.mrb[89].mxu1 }
 0x29a   : > { %v3523_v7 = vadd.f32 %v7085_v2, %v3522_v41 }
 0x29b   : > { %3683 = vst.msk [vmem:[%s7092_s26 + $0x2d8] sm:$0xff] %vm3591_vm14, %v3528_v9 }
 0x29c   : > { %3682 = vst.msk [vmem:[%s7092_s26 + $0x2d0] sm:$0xff] %vm3591_vm14, %v3523_v7  ;;  %v4768_v54 = vpop.f32.mrb[90].mxu1 }
 0x29d   : > { %v3538_v19 = vadd.f32 %v4768_v54, %v7085_v2  ;;  %v3532_v34 = vpop.f32.mrb[91].mxu1 }
 0x29e   : > { %v3533_v45 = vadd.f32 %v7085_v2, %v3532_v34 }
 0x29f   : > { %3685 = vst.msk [vmem:[%s7092_s26 + $0x2e8] sm:$0xff] %vm3591_vm14, %v3538_v19 }
 0x2a0   : > { %3684 = vst.msk [vmem:[%s7092_s26 + $0x2e0] sm:$0xff] %vm3591_vm14, %v3533_v45  ;;  %v4771_v15 = vpop.f32.mrb[92].mxu1 }
 0x2a1   : > { %v3548_v13 = vadd.f32 %v4771_v15, %v7085_v2  ;;  %v3542_v26 = vpop.f32.mrb[93].mxu1 }
 0x2a2   : > { %v3543_v21 = vadd.f32 %v7085_v2, %v3542_v26 }
 0x2a3   : > { %3687 = vst.msk [vmem:[%s7092_s26 + $0x2f8] sm:$0xff] %vm3591_vm14, %v3548_v13 }
 0x2a4   : > { %3686 = vst.msk [vmem:[%s7092_s26 + $0x2f0] sm:$0xff] %vm3591_vm14, %v3543_v21  ;;  %v4774_v22 = vpop.f32.mrb[94].mxu1 }
 0x2a5   : > { %v3558_v10 = vadd.f32 %v4774_v22, %v7085_v2  ;;  %v3552_v14 = vpop.f32.mrb[95].mxu1 }
 0x2a6   : > { %v3553_v48 = vadd.f32 %v7085_v2, %v3552_v14 }
 0x2a7   : > { %3689 = vst.msk [vmem:[%s7092_s26 + $0x308] sm:$0xff] %vm3591_vm14, %v3558_v10 }
 0x2a8   : > { %3688 = vst.msk [vmem:[%s7092_s26 + $0x300] sm:$0xff] %vm3591_vm14, %v3553_v48  ;;  %v4777_v20 = vpop.f32.mrb[96].mxu1 }
 0x2a9   : > { %v3568_v33 = vadd.f32 %v4777_v20, %v7085_v2  ;;  %v3562_v24 = vpop.f32.mrb[97].mxu1 }
 0x2aa   : > { %v3563_v3 = vadd.f32 %v7085_v2, %v3562_v24 }
 0x2ab   : > { %3691 = vst.msk [vmem:[%s7092_s26 + $0x318] sm:$0xff] %vm3591_vm14, %v3568_v33 }
 0x2ac   : > { %3690 = vst.msk [vmem:[%s7092_s26 + $0x310] sm:$0xff] %vm3591_vm14, %v3563_v3  ;;  %v4780_v55 = vpop.f32.mrb[98].mxu1 }
 0x2ad   : > { %v3578_v27 = vadd.f32 %v4780_v55, %v7085_v2  ;;  %v3572_v28 = vpop.f32.mrb[99].mxu1 }
 0x2ae   : > { %v3573_v11 = vadd.f32 %v7085_v2, %v3572_v28 }
 0x2af   : > { %3693 = vst.msk [vmem:[%s7092_s26 + $0x328] sm:$0xff] %vm3591_vm14, %v3578_v27 }
 0x2b0   : > { %3692 = vst.msk [vmem:[%s7092_s26 + $0x320] sm:$0xff] %vm3591_vm14, %v3573_v11  ;;  %v4783_v8 = vpop.f32.mrb[100].mxu1 }
 0x2b1   : > { %v3588_v30 = vadd.f32 %v4783_v8, %v7085_v2  ;;  %v3582_v6 = vpop.f32.mrb[101].mxu1 }
 0x2b2   : > { %v3583_v32 = vadd.f32 %v7085_v2, %v3582_v6 }
 0x2b3   : > { %3695 = vst.msk [vmem:[%s7092_s26 + $0x338] sm:$0xff] %vm3591_vm14, %v3588_v30 }
 0x2b4   : > { %3694 = vst.msk [vmem:[%s7092_s26 + $0x330] sm:$0xff] %vm3591_vm14, %v3583_v32 }
 0x2b5 PF: > { %s16_s23 = sadd.s32 1, %s5280_s23   ;;  %s7422_s21 = smov %s5276_s22 }
 0x2b6   : > { %p13_p5 = scmp.ge.s32.totalorder %s16_s23, 5   ;;  %s7423_s22 = smov %s7425_s24 }
 0x2b8   :  { %15 = sbr.rel (!%p13_p5) target bundleno = 2 (0x2), region = 80 }

</bundles_post_ra>
